<compile_context>
chip_gen: v6e
topology: v6e:2x2x1
jax: 0.10.0
libtpu: 0.0.40
codegen_flags: <defaults>
</compile_context>

<pallas_src>
import functools

import jax
import jax.numpy as jnp
from jax.experimental import pallas as pl
from jax.experimental.pallas import tpu as pltpu

BN_EPS = 1e-5
IN_PAD = 128          # padded input feature dim (22 -> 128, lane-dense)
HID = 512
PROJ = 300
PROJ_PAD = 384        # padded projection dim (300 -> 384 = 3*128, lane-dense)
BATCH_PAD = 8         # padded graph-batch dim for the pooled output
NUM_HIDDEN_LAYERS = 5 # conv2..conv6 (conv1 handled in the step-0 prologue)


# ---------------------------------------------------------------------------
# Fused kernel.  Grid axis = hidden layer index (5 steps).
# ---------------------------------------------------------------------------
def _gearnet_kernel(x_ref, adj_ref, w0_ref, b0_ref, w_ref, b_ref,
                    gamma_ref, beta_ref, bnw_ref, pool_ref,
                    w1_ref, b1_ref, w2_ref, b2_ref,
                    out_ref, h_ref):
    li = pl.program_id(0)
    n_nodes = adj_ref.shape[1]                 # padded node count (static)
    num_rel = adj_ref.shape[0] // n_nodes      # R (static)

    gamma = gamma_ref[...]                     # (1, HID) f32 (shared BN)
    beta = beta_ref[...]                       # (1, HID) f32
    bnw = bnw_ref[...]                         # (N, 1) f32: mask / n_real

    def conv_bn(h_f32, w_slab, bias):
        """One RGCN conv + shared BN (batch stats over real nodes only)."""
        h_b = h_f32.astype(jnp.bfloat16)
        # All R relations' message passing in ONE MXU dot: (R*N, N) x (N, C).
        msg = jnp.dot(adj_ref[...], h_b, preferred_element_type=jnp.float32)
        msg_b = msg.astype(jnp.bfloat16)
        # Lane-concat [h | msg_0 | .. | msg_{R-1}] -> ONE dot with K=(R+1)*C
        # against the contiguous per-layer slab [Wroot; W_0; ..; W_{R-1}].
        cat = jnp.concatenate(
            [h_b] + [msg_b[r * n_nodes:(r + 1) * n_nodes]
                     for r in range(num_rel)],
            axis=1)
        acc = jnp.dot(cat, w_slab, preferred_element_type=jnp.float32) + bias
        # Shared BatchNorm, single-pass masked statistics (pad rows excluded).
        aw = acc * bnw
        mean = jnp.sum(aw, axis=0, keepdims=True)
        ex2 = jnp.sum(aw * acc, axis=0, keepdims=True)
        var = ex2 - mean * mean
        return (acc - mean) * jax.lax.rsqrt(var + BN_EPS) * gamma + beta

    # --- Step-0 prologue: conv1 (padded 22->128 input) + BN + ReLU ---------
    @pl.when(li == 0)
    def _():
        h1 = conv_bn(x_ref[...], w0_ref[...], b0_ref[...])
        h_ref[...] = jnp.maximum(h1, 0.0)
        # TODO(synk): F.dropout is identity here (deterministic forward).

    # --- Every step: conv(2 + li) + BN with this step's weight slab --------
    hn = conv_bn(h_ref[...], w_ref[0], b_ref[0])
    # ReLU only feeds the NEXT layer; the final conv's pooled value below uses
    # the un-ReLU'd `hn`, and h_ref is never read after the last step, so the
    # unconditional ReLU store is safe and avoids a predicated select.
    h_ref[...] = jnp.maximum(hn, 0.0)

    # --- Last-step epilogue: global mean pool + projection head ------------
    @pl.when(li == pl.num_programs(0) - 1)
    def _():
        pooled = jnp.dot(pool_ref[...], hn.astype(jnp.bfloat16),
                         preferred_element_type=jnp.float32)   # (B_PAD, HID)
        z = jnp.dot(pooled.astype(jnp.bfloat16), w1_ref[...],
                    preferred_element_type=jnp.float32) + b1_ref[...]
        z = jnp.maximum(z, 0.0)
        out = jnp.dot(z.astype(jnp.bfloat16), w2_ref[...],
                      preferred_element_type=jnp.float32) + b2_ref[...]
        out_ref[...] = out.astype(out_ref.dtype)


def gearnet_fused(x_pad, adj_flat, w0_slab, b0, w_slab, bias_s,
                  gamma, beta, bn_w, pool_mat, w1, b1, w2, b2):
    n_pad = x_pad.shape[0]

    def full(a):  # whole-array block, constant index -> DMA'd once.
        return pl.BlockSpec(a.shape, lambda li, nd=a.ndim: (0,) * nd)

    return pl.pallas_call(
        _gearnet_kernel,
        out_shape=jax.ShapeDtypeStruct((pool_mat.shape[0], w2.shape[1]),
                                       jnp.float32),
        grid=(w_slab.shape[0],),
        in_specs=[
            full(x_pad),                                       # x
            full(adj_flat),                                    # adjacency
            full(w0_slab), full(b0),                           # layer 1
            pl.BlockSpec((1,) + w_slab.shape[1:],              # per-layer slab
                         lambda li: (li, 0, 0)),
            pl.BlockSpec((1,) + bias_s.shape[1:],              # per-layer bias
                         lambda li: (li, 0, 0)),
            full(gamma), full(beta), full(bn_w),               # shared BN
            full(pool_mat),                                    # mean pool
            full(w1), full(b1), full(w2), full(b2),            # head
        ],
        out_specs=pl.BlockSpec((pool_mat.shape[0], w2.shape[1]),
                               lambda li: (0, 0)),
        scratch_shapes=[pltpu.VMEM((n_pad, HID), jnp.float32)],  # carried h
        compiler_params=pltpu.CompilerParams(
            dimension_semantics=("arbitrary",),
            # Per-step resident set is ~9 MiB (2 MiB slab double-buffered +
            # constants + activations); 32 MiB leaves headroom on every
            # generation and stays well under v7x's 64 MiB physical VMEM.
            vmem_limit_bytes=32 * 1024 * 1024),
    )(x_pad, adj_flat, w0_slab, b0, w_slab, bias_s, gamma, beta, bn_w,
      pool_mat, w1, b1, w2, b2)


# ---------------------------------------------------------------------------
# Plain-JAX glue: dense mean-normalized adjacency (flat, bf16), pooling
# matrix (bf16), node padding / masking, and slab-layout parameters.
# ---------------------------------------------------------------------------
def build_dense_adjacency(edge_index, edge_type, num_nodes_pad, num_relations):
    src, dst = edge_index[0], edge_index[1]
    a = jnp.zeros((num_relations, num_nodes_pad, num_nodes_pad), jnp.float32)
    a = a.at[edge_type, dst, src].add(1.0)            # count edges j->i per rel
    deg = a.sum(axis=2, keepdims=True)
    a = a / jnp.maximum(deg, 1.0)                     # mean aggregation weights
    # Flatten to (R*N, N) and cast to bf16: one fused message matmul, half HBM.
    return a.reshape(num_relations * num_nodes_pad, num_nodes_pad).astype(
        jnp.bfloat16)


def build_pool_matrix(batch, num_graphs, num_nodes_pad, pad_to=BATCH_PAD):
    counts = jnp.zeros((num_graphs,), jnp.float32).at[batch].add(1.0)
    onehot = jax.nn.one_hot(batch, num_graphs, dtype=jnp.float32).T  # (G, Nreal)
    m = onehot / jnp.maximum(counts, 1.0)[:, None]
    full = jnp.zeros((pad_to, num_nodes_pad), jnp.float32)
    full = full.at[:num_graphs, :batch.shape[0]].set(m)
    return full.astype(jnp.bfloat16)


def build_bn_weights(num_real_nodes, num_nodes_pad):
    # Per-node BatchNorm weight: mask / N_real (pad rows excluded from stats).
    mask = (jnp.arange(num_nodes_pad) < num_real_nodes).astype(jnp.float32)
    return (mask / jnp.float32(num_real_nodes))[:, None]


def pad_features(x, num_nodes_pad, feat_pad=IN_PAD):
    n, c = x.shape
    return jnp.zeros((num_nodes_pad, feat_pad), x.dtype).at[:n, :c].set(x)


def init_params(key, num_relations, in_dim=22, hid=HID, proj=PROJ):
    params = {}
    # Layer 1 slab: rows [root | rel_0 | rel_1 | ...], input dim padded to 128.
    key, k1, k2 = jax.random.split(key, 3)
    s0 = 1.0 / jnp.sqrt(jnp.float32(in_dim))
    wrel0 = jax.random.normal(k1, (num_relations, in_dim, hid), jnp.float32) * s0
    wroot0 = jax.random.normal(k2, (in_dim, hid), jnp.float32) * s0
    w0 = jnp.zeros(((num_relations + 1) * IN_PAD, hid), jnp.float32)
    w0 = w0.at[:in_dim].set(wroot0)
    for r in range(num_relations):
        w0 = w0.at[(r + 1) * IN_PAD:(r + 1) * IN_PAD + in_dim].set(wrel0[r])
    params["w0_slab"] = w0.astype(jnp.bfloat16)
    params["b0"] = jnp.zeros((1, hid), jnp.float32)

    # Hidden layers 2..6: one contiguous [Wroot; W_0; ..; W_{R-1}] slab each.
    sh = 1.0 / jnp.sqrt(jnp.float32(hid))
    slabs = []
    for _ in range(NUM_HIDDEN_LAYERS):
        key, k1, k2 = jax.random.split(key, 3)
        wrel = jax.random.normal(k1, (num_relations, hid, hid), jnp.float32) * sh
        wroot = jax.random.normal(k2, (hid, hid), jnp.float32) * sh
        slabs.append(jnp.concatenate(
            [wroot] + [wrel[r] for r in range(num_relations)], axis=0))
    params["w_slab"] = jnp.stack(slabs).astype(jnp.bfloat16)   # (5,(R+1)H,H)
    params["bias_s"] = jnp.zeros((NUM_HIDDEN_LAYERS, 1, hid), jnp.float32)

    # Single shared BatchNorm (as in the PyTorch module).
    params["gamma"] = jnp.ones((1, hid), jnp.float32)
    params["beta"] = jnp.zeros((1, hid), jnp.float32)

    # Projection head, zero-padded 300 -> 384 on the lane axis.
    key, k1, k2 = jax.random.split(key, 3)
    w1 = jax.random.normal(k1, (hid, proj), jnp.float32) * sh
    w2 = jax.random.normal(k2, (proj, proj), jnp.float32) / jnp.sqrt(
        jnp.float32(proj))
    params["w1"] = (jnp.zeros((hid, PROJ_PAD), jnp.float32)
                    .at[:, :proj].set(w1).astype(jnp.bfloat16))
    params["b1"] = jnp.zeros((1, PROJ_PAD), jnp.float32)
    params["w2"] = (jnp.zeros((PROJ_PAD, PROJ_PAD), jnp.float32)
                    .at[:proj, :proj].set(w2).astype(jnp.bfloat16))
    params["b2"] = jnp.zeros((1, PROJ_PAD), jnp.float32)
    return params


def gearnet_forward(params, x_pad, adj_flat, pool_mat, bn_w,
                    num_graphs, proj_dim=PROJ):
    out = gearnet_fused(
        x_pad, adj_flat,
        params["w0_slab"], params["b0"],
        params["w_slab"], params["bias_s"],
        params["gamma"], params["beta"],
        bn_w, pool_mat,
        params["w1"], params["b1"], params["w2"], params["b2"])
    return out[:num_graphs, :proj_dim]


if __name__ == "__main__":
    key = jax.random.PRNGKey(0)
    NUM_NODES = 64        # real nodes
    NODE_PAD = 128        # pad M so the wrel/wroot dots fill v5e's 128 MXU rows
    NUM_RELATIONS = 3
    NUM_EDGES = 128
    NUM_GRAPHS = 2
    IN_DIM = 22

    k_x, k_src, k_dst, k_type, k_params = jax.random.split(key, 5)

    x = jax.random.normal(k_x, (NUM_NODES, IN_DIM), jnp.float32)
    src = jax.random.randint(k_src, (NUM_EDGES,), 0, NUM_NODES)
    dst = jax.random.randint(k_dst, (NUM_EDGES,), 0, NUM_NODES)
    edge_index = jnp.stack([src, dst], axis=0)
    edge_type = jax.random.randint(k_type, (NUM_EDGES,), 0, NUM_RELATIONS)
    batch = jnp.concatenate([jnp.zeros((NUM_NODES // 2,), jnp.int32),
                             jnp.ones((NUM_NODES // 2,), jnp.int32)])

    adj_flat = build_dense_adjacency(edge_index, edge_type, NODE_PAD,
                                     NUM_RELATIONS)
    pool_mat = build_pool_matrix(batch, NUM_GRAPHS, NODE_PAD)
    bn_w = build_bn_weights(NUM_NODES, NODE_PAD)
    x_pad = pad_features(x, NODE_PAD)
    params = init_params(k_params, NUM_RELATIONS, in_dim=IN_DIM)

    fwd = jax.jit(functools.partial(gearnet_forward, num_graphs=NUM_GRAPHS))
    out = fwd(params, x_pad, adj_flat, pool_mat, bn_w)
    out = jax.block_until_ready(out)

    assert out.shape == (NUM_GRAPHS, PROJ), out.shape
    assert bool(jnp.all(jnp.isfinite(out)))
    print("KERNEL_OK")
</pallas_src>

<mosaic_0001>
module attributes {stable_mosaic.version = 11 : i64} {
  func.func @_gearnet_kernel(%arg0: i32, %arg1: memref<128x128xf32, #tpu.memory_space<vmem>>, %arg2: memref<384x128xbf16, #tpu.memory_space<vmem>>, %arg3: memref<512x512xbf16, #tpu.memory_space<vmem>>, %arg4: memref<1x512xf32, #tpu.memory_space<vmem>>, %arg5: memref<1x2048x512xbf16, #tpu.memory_space<vmem>>, %arg6: memref<1x1x512xf32, #tpu.memory_space<vmem>>, %arg7: memref<1x512xf32, #tpu.memory_space<vmem>>, %arg8: memref<1x512xf32, #tpu.memory_space<vmem>>, %arg9: memref<128x1xf32, #tpu.memory_space<vmem>>, %arg10: memref<8x128xbf16, #tpu.memory_space<vmem>>, %arg11: memref<512x384xbf16, #tpu.memory_space<vmem>>, %arg12: memref<1x384xf32, #tpu.memory_space<vmem>>, %arg13: memref<384x384xbf16, #tpu.memory_space<vmem>>, %arg14: memref<1x384xf32, #tpu.memory_space<vmem>>, %arg15: memref<8x384xf32, #tpu.memory_space<vmem>>, %arg16: memref<128x512xf32, #tpu.memory_space<vmem>>) attributes {dimension_semantics = [#tpu.dimension_semantics<arbitrary>], iteration_bounds = array<i64: 5>, scalar_prefetch = 0 : i64, scratch_operands = 1 : i64, tpu.core_type = #tpu.core_type<tc>, window_params = [{pipeline_mode = #tpu.pipeline_mode<synchronous>, transform_indices = @transform_0, window_bounds = array<i64: 128, 128>}, {pipeline_mode = #tpu.pipeline_mode<synchronous>, transform_indices = @transform_1, window_bounds = array<i64: 384, 128>}, {pipeline_mode = #tpu.pipeline_mode<synchronous>, transform_indices = @transform_2, window_bounds = array<i64: 512, 512>}, {pipeline_mode = #tpu.pipeline_mode<synchronous>, transform_indices = @transform_3, window_bounds = array<i64: 1, 512>}, {transform_indices = @transform_4, window_bounds = array<i64: 1, 2048, 512>}, {transform_indices = @transform_5, window_bounds = array<i64: 1, 1, 512>}, {pipeline_mode = #tpu.pipeline_mode<synchronous>, transform_indices = @transform_6, window_bounds = array<i64: 1, 512>}, {pipeline_mode = #tpu.pipeline_mode<synchronous>, transform_indices = @transform_7, window_bounds = array<i64: 1, 512>}, {pipeline_mode = #tpu.pipeline_mode<synchronous>, transform_indices = @transform_8, window_bounds = array<i64: 128, 1>}, {pipeline_mode = #tpu.pipeline_mode<synchronous>, transform_indices = @transform_9, window_bounds = array<i64: 8, 128>}, {pipeline_mode = #tpu.pipeline_mode<synchronous>, transform_indices = @transform_10, window_bounds = array<i64: 512, 384>}, {pipeline_mode = #tpu.pipeline_mode<synchronous>, transform_indices = @transform_11, window_bounds = array<i64: 1, 384>}, {pipeline_mode = #tpu.pipeline_mode<synchronous>, transform_indices = @transform_12, window_bounds = array<i64: 384, 384>}, {pipeline_mode = #tpu.pipeline_mode<synchronous>, transform_indices = @transform_13, window_bounds = array<i64: 1, 384>}, {pipeline_mode = #tpu.pipeline_mode<synchronous>, transform_indices = @transform_14, window_bounds = array<i64: 8, 384>}]} {
    %c0 = arith.constant 0 : index
    %c0_0 = arith.constant 0 : index
    %0 = vector.load %arg7[%c0, %c0_0] : memref<1x512xf32, #tpu.memory_space<vmem>>, vector<1x512xf32>
    %c0_1 = arith.constant 0 : index
    %c0_2 = arith.constant 0 : index
    %1 = vector.load %arg8[%c0_1, %c0_2] : memref<1x512xf32, #tpu.memory_space<vmem>>, vector<1x512xf32>
    %c0_3 = arith.constant 0 : index
    %c0_4 = arith.constant 0 : index
    %2 = vector.load %arg9[%c0_3, %c0_4] : memref<128x1xf32, #tpu.memory_space<vmem>>, vector<128x1xf32>
    %c0_i32 = arith.constant 0 : i32
    %3 = arith.cmpi eq, %arg0, %c0_i32 : i32
    %4 = arith.extui %3 : i1 to i32
    %c0_i32_5 = arith.constant 0 : i32
    %5 = arith.cmpi ne, %4, %c0_i32_5 : i32
    scf.if %5 {
      %c0_24 = arith.constant 0 : index
      %c0_25 = arith.constant 0 : index
      %48 = vector.load %arg1[%c0_24, %c0_25] : memref<128x128xf32, #tpu.memory_space<vmem>>, vector<128x128xf32>
      %c0_26 = arith.constant 0 : index
      %c0_27 = arith.constant 0 : index
      %49 = vector.load %arg3[%c0_26, %c0_27] : memref<512x512xbf16, #tpu.memory_space<vmem>>, vector<512x512xbf16>
      %c0_28 = arith.constant 0 : index
      %c0_29 = arith.constant 0 : index
      %50 = vector.load %arg4[%c0_28, %c0_29] : memref<1x512xf32, #tpu.memory_space<vmem>>, vector<1x512xf32>
      %51 = arith.truncf %48 : vector<128x128xf32> to vector<128x128xbf16>
      %c0_30 = arith.constant 0 : index
      %c0_31 = arith.constant 0 : index
      %52 = vector.load %arg2[%c0_30, %c0_31] : memref<384x128xbf16, #tpu.memory_space<vmem>>, vector<384x128xbf16>
      %cst_32 = arith.constant dense<0.000000e+00> : vector<384x128xf32>
      %53 = tpu.matmul %52, %51, %cst_32 {dimension_numbers = #tpu.dot_dimension_numbers<[1], [0], [0], [1], [0, 0, 1, 1], [], []>} : vector<384x128xbf16>, vector<128x128xbf16>, vector<384x128xf32> -> vector<384x128xf32>
      %54 = arith.truncf %53 : vector<384x128xf32> to vector<384x128xbf16>
      %55 = vector.extract_strided_slice %54 {offsets = [0, 0], sizes = [128, 128], strides = [1, 1]} : vector<384x128xbf16> to vector<128x128xbf16>
      %56 = vector.extract_strided_slice %54 {offsets = [128, 0], sizes = [128, 128], strides = [1, 1]} : vector<384x128xbf16> to vector<128x128xbf16>
      %57 = vector.extract_strided_slice %54 {offsets = [256, 0], sizes = [128, 128], strides = [1, 1]} : vector<384x128xbf16> to vector<128x128xbf16>
      %58 = tpu.concatenate %51, %55, %56, %57 in 1 : vector<128x128xbf16>, vector<128x128xbf16>, vector<128x128xbf16>, vector<128x128xbf16> -> vector<128x512xbf16>
      %cst_33 = arith.constant dense<0.000000e+00> : vector<128x512xf32>
      %59 = tpu.matmul %58, %49, %cst_33 {dimension_numbers = #tpu.dot_dimension_numbers<[1], [0], [0], [1], [0, 0, 1, 1], [], []>} : vector<128x512xbf16>, vector<512x512xbf16>, vector<128x512xf32> -> vector<128x512xf32>
      %60 = vector.broadcast %50 : vector<1x512xf32> to vector<128x512xf32>
      %61 = arith.addf %59, %60 : vector<128x512xf32>
      %62 = vector.broadcast %2 : vector<128x1xf32> to vector<128x512xf32>
      %63 = arith.mulf %61, %62 : vector<128x512xf32>
      %cst_34 = arith.constant dense<0.000000e+00> : vector<512xf32>
      %64 = vector.multi_reduction <add>, %63, %cst_34 [0] : vector<128x512xf32> to vector<512xf32>
      %65 = vector.shape_cast %64 : vector<512xf32> to vector<1x512xf32>
      %66 = arith.mulf %63, %61 : vector<128x512xf32>
      %cst_35 = arith.constant dense<0.000000e+00> : vector<512xf32>
      %67 = vector.multi_reduction <add>, %66, %cst_35 [0] : vector<128x512xf32> to vector<512xf32>
      %68 = vector.shape_cast %67 : vector<512xf32> to vector<1x512xf32>
      %69 = arith.mulf %65, %65 : vector<1x512xf32>
      %70 = arith.subf %68, %69 : vector<1x512xf32>
      %71 = vector.broadcast %65 : vector<1x512xf32> to vector<128x512xf32>
      %72 = arith.subf %61, %71 : vector<128x512xf32>
      %cst_36 = arith.constant 9.99999974E-6 : f32
      %73 = vector.broadcast %cst_36 : f32 to vector<1x512xf32>
      %74 = arith.addf %70, %73 : vector<1x512xf32>
      %75 = math.rsqrt %74 : vector<1x512xf32>
      %76 = vector.broadcast %75 : vector<1x512xf32> to vector<128x512xf32>
      %77 = arith.mulf %72, %76 : vector<128x512xf32>
      %78 = vector.broadcast %0 : vector<1x512xf32> to vector<128x512xf32>
      %79 = arith.mulf %77, %78 : vector<128x512xf32>
      %80 = vector.broadcast %1 : vector<1x512xf32> to vector<128x512xf32>
      %81 = arith.addf %79, %80 : vector<128x512xf32>
      %cst_37 = arith.constant 0.000000e+00 : f32
      %82 = vector.broadcast %cst_37 : f32 to vector<128x512xf32>
      %83 = arith.maximumf %81, %82 : vector<128x512xf32>
      %c0_38 = arith.constant 0 : index
      %c0_39 = arith.constant 0 : index
      %84 = vector.load %arg16[%c0_38, %c0_39] : memref<128x512xf32, #tpu.memory_space<vmem>>, vector<128x512xf32>
      tpu.vector_store %arg16[%c0_38, %c0_39], %83 {strides = array<i32>} : memref<128x512xf32, #tpu.memory_space<vmem>>, vector<128x512xf32>,
    } else {
    }
    %c0_6 = arith.constant 0 : index
    %c0_7 = arith.constant 0 : index
    %6 = vector.load %arg16[%c0_6, %c0_7] : memref<128x512xf32, #tpu.memory_space<vmem>>, vector<128x512xf32>
    %c0_8 = arith.constant 0 : index
    %c0_9 = arith.constant 0 : index
    %c0_10 = arith.constant 0 : index
    %7 = vector.load %arg5[%c0_8, %c0_9, %c0_10] : memref<1x2048x512xbf16, #tpu.memory_space<vmem>>, vector<1x2048x512xbf16>
    %8 = vector.shape_cast %7 : vector<1x2048x512xbf16> to vector<2048x512xbf16>
    %c0_11 = arith.constant 0 : index
    %c0_12 = arith.constant 0 : index
    %c0_13 = arith.constant 0 : index
    %9 = vector.load %arg6[%c0_11, %c0_12, %c0_13] : memref<1x1x512xf32, #tpu.memory_space<vmem>>, vector<1x1x512xf32>
    %10 = vector.shape_cast %9 : vector<1x1x512xf32> to vector<1x512xf32>
    %11 = arith.truncf %6 : vector<128x512xf32> to vector<128x512xbf16>
    %c0_14 = arith.constant 0 : index
    %c0_15 = arith.constant 0 : index
    %12 = vector.load %arg2[%c0_14, %c0_15] : memref<384x128xbf16, #tpu.memory_space<vmem>>, vector<384x128xbf16>
    %cst = arith.constant dense<0.000000e+00> : vector<384x512xf32>
    %13 = tpu.matmul %12, %11, %cst {dimension_numbers = #tpu.dot_dimension_numbers<[1], [0], [0], [1], [0, 0, 1, 1], [], []>} : vector<384x128xbf16>, vector<128x512xbf16>, vector<384x512xf32> -> vector<384x512xf32>
    %14 = arith.truncf %13 : vector<384x512xf32> to vector<384x512xbf16>
    %15 = vector.extract_strided_slice %14 {offsets = [0, 0], sizes = [128, 512], strides = [1, 1]} : vector<384x512xbf16> to vector<128x512xbf16>
    %16 = vector.extract_strided_slice %14 {offsets = [128, 0], sizes = [128, 512], strides = [1, 1]} : vector<384x512xbf16> to vector<128x512xbf16>
    %17 = vector.extract_strided_slice %14 {offsets = [256, 0], sizes = [128, 512], strides = [1, 1]} : vector<384x512xbf16> to vector<128x512xbf16>
    %18 = tpu.concatenate %11, %15, %16, %17 in 1 : vector<128x512xbf16>, vector<128x512xbf16>, vector<128x512xbf16>, vector<128x512xbf16> -> vector<128x2048xbf16>
    %cst_16 = arith.constant dense<0.000000e+00> : vector<128x512xf32>
    %19 = tpu.matmul %18, %8, %cst_16 {dimension_numbers = #tpu.dot_dimension_numbers<[1], [0], [0], [1], [0, 0, 1, 1], [], []>} : vector<128x2048xbf16>, vector<2048x512xbf16>, vector<128x512xf32> -> vector<128x512xf32>
    %20 = vector.broadcast %10 : vector<1x512xf32> to vector<128x512xf32>
    %21 = arith.addf %19, %20 : vector<128x512xf32>
    %22 = vector.broadcast %2 : vector<128x1xf32> to vector<128x512xf32>
    %23 = arith.mulf %21, %22 : vector<128x512xf32>
    %cst_17 = arith.constant dense<0.000000e+00> : vector<512xf32>
    %24 = vector.multi_reduction <add>, %23, %cst_17 [0] : vector<128x512xf32> to vector<512xf32>
    %25 = vector.shape_cast %24 : vector<512xf32> to vector<1x512xf32>
    %26 = arith.mulf %23, %21 : vector<128x512xf32>
    %cst_18 = arith.constant dense<0.000000e+00> : vector<512xf32>
    %27 = vector.multi_reduction <add>, %26, %cst_18 [0] : vector<128x512xf32> to vector<512xf32>
    %28 = vector.shape_cast %27 : vector<512xf32> to vector<1x512xf32>
    %29 = arith.mulf %25, %25 : vector<1x512xf32>
    %30 = arith.subf %28, %29 : vector<1x512xf32>
    %31 = vector.broadcast %25 : vector<1x512xf32> to vector<128x512xf32>
    %32 = arith.subf %21, %31 : vector<128x512xf32>
    %cst_19 = arith.constant 9.99999974E-6 : f32
    %33 = vector.broadcast %cst_19 : f32 to vector<1x512xf32>
    %34 = arith.addf %30, %33 : vector<1x512xf32>
    %35 = math.rsqrt %34 : vector<1x512xf32>
    %36 = vector.broadcast %35 : vector<1x512xf32> to vector<128x512xf32>
    %37 = arith.mulf %32, %36 : vector<128x512xf32>
    %38 = vector.broadcast %0 : vector<1x512xf32> to vector<128x512xf32>
    %39 = arith.mulf %37, %38 : vector<128x512xf32>
    %40 = vector.broadcast %1 : vector<1x512xf32> to vector<128x512xf32>
    %41 = arith.addf %39, %40 : vector<128x512xf32>
    %cst_20 = arith.constant 0.000000e+00 : f32
    %42 = vector.broadcast %cst_20 : f32 to vector<128x512xf32>
    %43 = arith.maximumf %41, %42 : vector<128x512xf32>
    %c0_21 = arith.constant 0 : index
    %c0_22 = arith.constant 0 : index
    %44 = vector.load %arg16[%c0_21, %c0_22] : memref<128x512xf32, #tpu.memory_space<vmem>>, vector<128x512xf32>
    tpu.vector_store %arg16[%c0_21, %c0_22], %43 {strides = array<i32>} : memref<128x512xf32, #tpu.memory_space<vmem>>, vector<128x512xf32>,
    %c4_i32 = arith.constant 4 : i32
    %45 = arith.cmpi eq, %arg0, %c4_i32 : i32
    %46 = arith.extui %45 : i1 to i32
    %c0_i32_23 = arith.constant 0 : i32
    %47 = arith.cmpi ne, %46, %c0_i32_23 : i32
    scf.if %47 {
      %c0_24 = arith.constant 0 : index
      %c0_25 = arith.constant 0 : index
      %48 = vector.load %arg10[%c0_24, %c0_25] : memref<8x128xbf16, #tpu.memory_space<vmem>>, vector<8x128xbf16>
      %49 = arith.truncf %41 : vector<128x512xf32> to vector<128x512xbf16>
      %cst_26 = arith.constant dense<0.000000e+00> : vector<8x512xf32>
      %50 = tpu.matmul %48, %49, %cst_26 {dimension_numbers = #tpu.dot_dimension_numbers<[1], [0], [0], [1], [0, 0, 1, 1], [], []>} : vector<8x128xbf16>, vector<128x512xbf16>, vector<8x512xf32> -> vector<8x512xf32>
      %51 = arith.truncf %50 : vector<8x512xf32> to vector<8x512xbf16>
      %c0_27 = arith.constant 0 : index
      %c0_28 = arith.constant 0 : index
      %52 = vector.load %arg11[%c0_27, %c0_28] : memref<512x384xbf16, #tpu.memory_space<vmem>>, vector<512x384xbf16>
      %cst_29 = arith.constant dense<0.000000e+00> : vector<8x384xf32>
      %53 = tpu.matmul %51, %52, %cst_29 {dimension_numbers = #tpu.dot_dimension_numbers<[1], [0], [0], [1], [0, 0, 1, 1], [], []>} : vector<8x512xbf16>, vector<512x384xbf16>, vector<8x384xf32> -> vector<8x384xf32>
      %c0_30 = arith.constant 0 : index
      %c0_31 = arith.constant 0 : index
      %54 = vector.load %arg12[%c0_30, %c0_31] : memref<1x384xf32, #tpu.memory_space<vmem>>, vector<1x384xf32>
      %55 = vector.broadcast %54 : vector<1x384xf32> to vector<8x384xf32>
      %56 = arith.addf %53, %55 : vector<8x384xf32>
      %cst_32 = arith.constant 0.000000e+00 : f32
      %57 = vector.broadcast %cst_32 : f32 to vector<8x384xf32>
      %58 = arith.maximumf %56, %57 : vector<8x384xf32>
      %59 = arith.truncf %58 : vector<8x384xf32> to vector<8x384xbf16>
      %c0_33 = arith.constant 0 : index
      %c0_34 = arith.constant 0 : index
      %60 = vector.load %arg13[%c0_33, %c0_34] : memref<384x384xbf16, #tpu.memory_space<vmem>>, vector<384x384xbf16>
      %cst_35 = arith.constant dense<0.000000e+00> : vector<8x384xf32>
      %61 = tpu.matmul %59, %60, %cst_35 {dimension_numbers = #tpu.dot_dimension_numbers<[1], [0], [0], [1], [0, 0, 1, 1], [], []>} : vector<8x384xbf16>, vector<384x384xbf16>, vector<8x384xf32> -> vector<8x384xf32>
      %c0_36 = arith.constant 0 : index
      %c0_37 = arith.constant 0 : index
      %62 = vector.load %arg14[%c0_36, %c0_37] : memref<1x384xf32, #tpu.memory_space<vmem>>, vector<1x384xf32>
      %63 = vector.broadcast %62 : vector<1x384xf32> to vector<8x384xf32>
      %64 = arith.addf %61, %63 : vector<8x384xf32>
      %c0_38 = arith.constant 0 : index
      %c0_39 = arith.constant 0 : index
      %65 = vector.load %arg15[%c0_38, %c0_39] : memref<8x384xf32, #tpu.memory_space<vmem>>, vector<8x384xf32>
      tpu.vector_store %arg15[%c0_38, %c0_39], %64 {strides = array<i32>} : memref<8x384xf32, #tpu.memory_space<vmem>>, vector<8x384xf32>,
    } else {
    }
    return
  }
  func.func @transform_0(%arg0: i32) -> (i32, i32) {
    %c0_i32 = arith.constant 0 : i32
    %c0_i32_0 = arith.constant 0 : i32
    %c0_i32_1 = arith.constant 0 : i32
    return %c0_i32, %c0_i32_0 : i32, i32
  }
  func.func @transform_1(%arg0: i32) -> (i32, i32) {
    %c0_i32 = arith.constant 0 : i32
    %c0_i32_0 = arith.constant 0 : i32
    %c0_i32_1 = arith.constant 0 : i32
    return %c0_i32, %c0_i32_0 : i32, i32
  }
  func.func @transform_2(%arg0: i32) -> (i32, i32) {
    %c0_i32 = arith.constant 0 : i32
    %c0_i32_0 = arith.constant 0 : i32
    %c0_i32_1 = arith.constant 0 : i32
    return %c0_i32, %c0_i32_0 : i32, i32
  }
  func.func @transform_3(%arg0: i32) -> (i32, i32) {
    %c0_i32 = arith.constant 0 : i32
    %c0_i32_0 = arith.constant 0 : i32
    %c0_i32_1 = arith.constant 0 : i32
    return %c0_i32, %c0_i32_0 : i32, i32
  }
  func.func @transform_4(%arg0: i32) -> (i32, i32, i32) {
    %c0_i32 = arith.constant 0 : i32
    %c0_i32_0 = arith.constant 0 : i32
    %c0_i32_1 = arith.constant 0 : i32
    return %arg0, %c0_i32, %c0_i32_0 : i32, i32, i32
  }
  func.func @transform_5(%arg0: i32) -> (i32, i32, i32) {
    %c0_i32 = arith.constant 0 : i32
    %c0_i32_0 = arith.constant 0 : i32
    %c0_i32_1 = arith.constant 0 : i32
    return %arg0, %c0_i32, %c0_i32_0 : i32, i32, i32
  }
  func.func @transform_6(%arg0: i32) -> (i32, i32) {
    %c0_i32 = arith.constant 0 : i32
    %c0_i32_0 = arith.constant 0 : i32
    %c0_i32_1 = arith.constant 0 : i32
    return %c0_i32, %c0_i32_0 : i32, i32
  }
  func.func @transform_7(%arg0: i32) -> (i32, i32) {
    %c0_i32 = arith.constant 0 : i32
    %c0_i32_0 = arith.constant 0 : i32
    %c0_i32_1 = arith.constant 0 : i32
    return %c0_i32, %c0_i32_0 : i32, i32
  }
  func.func @transform_8(%arg0: i32) -> (i32, i32) {
    %c0_i32 = arith.constant 0 : i32
    %c0_i32_0 = arith.constant 0 : i32
    %c0_i32_1 = arith.constant 0 : i32
    return %c0_i32, %c0_i32_0 : i32, i32
  }
  func.func @transform_9(%arg0: i32) -> (i32, i32) {
    %c0_i32 = arith.constant 0 : i32
    %c0_i32_0 = arith.constant 0 : i32
    %c0_i32_1 = arith.constant 0 : i32
    return %c0_i32, %c0_i32_0 : i32, i32
  }
  func.func @transform_10(%arg0: i32) -> (i32, i32) {
    %c0_i32 = arith.constant 0 : i32
    %c0_i32_0 = arith.constant 0 : i32
    %c0_i32_1 = arith.constant 0 : i32
    return %c0_i32, %c0_i32_0 : i32, i32
  }
  func.func @transform_11(%arg0: i32) -> (i32, i32) {
    %c0_i32 = arith.constant 0 : i32
    %c0_i32_0 = arith.constant 0 : i32
    %c0_i32_1 = arith.constant 0 : i32
    return %c0_i32, %c0_i32_0 : i32, i32
  }
  func.func @transform_12(%arg0: i32) -> (i32, i32) {
    %c0_i32 = arith.constant 0 : i32
    %c0_i32_0 = arith.constant 0 : i32
    %c0_i32_1 = arith.constant 0 : i32
    return %c0_i32, %c0_i32_0 : i32, i32
  }
  func.func @transform_13(%arg0: i32) -> (i32, i32) {
    %c0_i32 = arith.constant 0 : i32
    %c0_i32_0 = arith.constant 0 : i32
    %c0_i32_1 = arith.constant 0 : i32
    return %c0_i32, %c0_i32_0 : i32, i32
  }
  func.func @transform_14(%arg0: i32) -> (i32, i32) {
    %c0_i32 = arith.constant 0 : i32
    %c0_i32_0 = arith.constant 0 : i32
    %c0_i32_1 = arith.constant 0 : i32
    return %c0_i32, %c0_i32_0 : i32, i32
  }
}

</mosaic_0001>

<bundles_post_ra>
// kernel: gearnet_forward.1
= control target key start
LH: loop header
LB: loop body
LE: loop exit
PB: predicated region body
PF: predicated region fallthrough
CT: control target
= control target key end

     0   :  { %s19890_s0 = inlined_call_operand.hbm [shape: f32[128,128], index: 0, kind: input, shape index: {}]   ;;  %s19891_s1 = inlined_call_operand.hbm [shape: bf16[384,128], index: 1, kind: input, shape index: {}]   ;;  %s19892_s2 = inlined_call_operand.hbm [shape: bf16[512,512], index: 2, kind: input, shape index: {}]   ;;  %s19893_s3 = inlined_call_operand.hbm [shape: f32[1,512], index: 3, kind: input, shape index: {}]   ;;  %s19894_s4 = inlined_call_operand.hbm [shape: bf16[5,2048,512], index: 4, kind: input, shape index: {}]   ;;  %s19895_s5 = inlined_call_operand.hbm [shape: f32[5,1,512], index: 5, kind: input, shape index: {}]   ;;  %s19896_s6 = inlined_call_operand.hbm [shape: f32[1,512], index: 6, kind: input, shape index: {}]   ;;  %s19897_s7 = inlined_call_operand.hbm [shape: f32[1,512], index: 7, kind: input, shape index: {}]   ;;  %s19898_s8 = inlined_call_operand.vmem [shape: f32[128,1], index: 8, kind: input, shape index: {}]   ;;  %s19899_s9 = inlined_call_operand.hbm [shape: bf16[8,128], index: 9, kind: input, shape index: {}]   ;;  %s19900_s10 = inlined_call_operand.hbm [shape: bf16[512,384], index: 10, kind: input, shape index: {}]   ;;  %s19901_s11 = inlined_call_operand.hbm [shape: f32[1,384], index: 11, kind: input, shape index: {}]   ;;  %s19902_s12 = inlined_call_operand.hbm [shape: bf16[384,384], index: 12, kind: input, shape index: {}]   ;;  %s19903_s13 = inlined_call_operand.hbm [shape: f32[1,384], index: 13, kind: input, shape index: {}]   ;;  %s19904_s14 = inlined_call_operand.vmem [shape: f32[8,384], index: 14, kind: output, shape index: {}]  }
   0x1   :  { %20225 = sst [smem:[#allocation207_spill]] %s19890_s0 }
   0x2   :  { %20226 = sst [smem:[#allocation208_spill]] %s19891_s1 }
   0x3   :  { %20227 = sst [smem:[#allocation209_spill]] %s19892_s2 }
   0x4   :  { %20228 = sst [smem:[#allocation210_spill]] %s19893_s3 }
   0x5   :  { %20229 = sst [smem:[#allocation211_spill]] %s19898_s8 }
   0x6   :  { %20230 = sst [smem:[#allocation212_spill]] %s19899_s9 }
   0x7   :  { %20231 = sst [smem:[#allocation213_spill]] %s19904_s14 }
   0x8   :  { %19 = vsyncpa [#allocation4], 0 }
   0x9   :  { %20 = vsyncpa [#allocation6], 0 }
   0xa   :  { %21 = vsyncpa [#allocation9], 0 }
   0xb   :  { %22 = vsyncpa [#allocation15], 0 }
   0xc   :  { %23 = vsyncpa [#allocation18], 0 }
   0xd   :  { %24 = vsyncpa [#allocation21], 0  ;;  %s14659_s29 = smov 0   ;;  %s14661_s30 = smov 0  }
   0xe   :  { %s14663_s15 = smov 0   ;;  %s14665_s16 = smov 0  }
   0xf LB: > { %s14558_s17 = smov [#allocation3]   ;;  %s14680_s19 = sadd.s32 4294967295, %s14556_s16   ;;  %s14556_s16 = sphi %s14665_s16, %s20959_s16   ;;  %s14552_s15 = sphi %s14663_s15, %s20958_s15   ;;  %s14548_s30 = sphi %s14661_s30, %s20957_s30   ;;  %s14544_s29 = sphi %s14659_s29, %s20956_s29  }
  0x10   : > { %s372_s18 = sshll.u32 %s14558_s17, 4  ;;  %p11625_p0 = scmp.ge.s32.totalorder %s14556_s16, 1  ;;  %s373_s18 = int_to_ptr.vmem [resolvable:$true] %s372_s18 }
  0x11   : > { %p19907_p1 = scmp.eq.s32.totalorder %s14680_s19, 0  ;;  %p360_p2 = scmp.lt.s32.totalorder %s14556_s16, 6 }
  0x12   : > { %s14559_s21 = smov [#allocation5]   ;;  %s14560_s24 = smov [#allocation7]  }
  0x13   : > { %p14686_p4 = pnand %p11625_p0, %p360_p2  ;;  %s385_s22 = sshll.u32 %s14559_s21, 4  ;;  %s14698_s22 = int_to_ptr.vmem [resolvable:$true] %s385_s22 }
  0x14   : > { %s14700_s25 = sshll.u32 %s14560_s24, 4  ;;  %s14159_s27 = scalar_lea.vmem %s373_s18, 2048  ;;  %s399_s25 = int_to_ptr.vmem [resolvable:$true] %s14700_s25 }
  0x15   : > { %s20232_s20 = scalar_select %p14686_p4, 1, 0 }
  0x16   : > { %p12775_p5 = pneg %p14686_p4  ;;  %p14160_p8 = scmp.ne.s32.totalorder %s373_s18, %s14159_s27 }
  0x17   : > { %p14167_p11 = scmp.lt.s32.totalorder %s373_s18, %s373_s18  ;;  %p14168_p12 = scmp.lt.s32.totalorder %s14159_s27, %s14159_s27 }
  0x18   : > { %p14694_p6 = pnand %p12775_p5, %p19907_p1 }
  0x19   : > { %p14169_p13 = por %p14168_p12, %p14167_p11 }
  0x1a   : > { %s20233_s23 = scalar_select %p14694_p6, 1, 0 }
  0x1b   : > { %p14704_p7 = pneg %p14694_p6 }
  0x1d   : > { %p14162_p9 = pnand %p14160_p8, %p14704_p7 }
  0x1f   : > { %p14163_p10 = pneg %p14162_p9 }
  0x21   : > { %p14170_p0 = pnand %p14169_p13, %p14163_p10 }
  0x23   : > { %14173 = shalt.err (!%p14170_p0)
}
  0x24   : > { %s14561_s28 = smov 128   ;;  %s14562_s17 = smov 8  }
  0x25   : > { %s20235_s0 = sld [smem:[#allocation207_spill]]  ;;  %s14185_s14 = scalar_lea.vmem %s14698_s22, 3072 }
  0x26   : > { %p14186_p2 = scmp.ne.s32.totalorder %s14698_s22, %s14185_s14  ;;  %p14193_p9 = scmp.lt.s32.totalorder %s14698_s22, %s14698_s22 }
  0x27   : > { %p14194_p10 = scmp.lt.s32.totalorder %s14185_s14, %s14185_s14 }
  0x28   : > { %p14188_p5 = pnand %p14186_p2, %p14704_p7 }
  0x29   : > { %p14195_p11 = por %p14194_p10, %p14193_p9 }
  0x2a   : > { %p14189_p8 = pneg %p14188_p5 }
  0x2b   : > { %12778 = dma.hbm_to_vmem [thread:$0]  (!%p14694_p6), %s20235_s0, 2048, %s373_s18, [#allocation4], %s14561_s28, %s14561_s28, %s14562_s17  }
  0x2c   : > { %p14196_p12 = pnand %p14195_p11, %p14189_p8 }
  0x2e   : > { %14199 = shalt.err (!%p14196_p12)
}
  0x2f   : > { %s14563_s27 = smov 64   ;;  %s14564_s8 = smov 4  }
  0x30   : > { %s20236_s1 = sld [smem:[#allocation208_spill]]  ;;  %s14211_s28 = scalar_lea.vmem %s399_s25, 16384 }
  0x31   : > { %p14212_p13 = scmp.ne.s32.totalorder %s399_s25, %s14211_s28  ;;  %p14219_p5 = scmp.lt.s32.totalorder %s399_s25, %s399_s25 }
  0x32   : > { %p14220_p8 = scmp.lt.s32.totalorder %s14211_s28, %s14211_s28 }
  0x33   : > { %p14214_p0 = pnand %p14212_p13, %p14704_p7 }
  0x34   : > { %p14221_p9 = por %p14220_p8, %p14219_p5 }
  0x35   : > { %p14215_p2 = pneg %p14214_p0 }
  0x36   : > { %12781 = dma.hbm_to_vmem [thread:$0]  (!%p14694_p6), %s20236_s1, 3072, %s14698_s22, [#allocation6], %s14563_s27, %s14563_s27, %s14564_s8  }
  0x37   : > { %p14222_p10 = pnand %p14221_p9, %p14215_p2 }
  0x39   : > { %14225 = shalt.err (!%p14222_p10)
}
  0x3a   : > { %s19909_s14 = smov 256   ;;  %s19910_s17 = smov 16  }
  0x3b   : > { %s20237_s2 = sld [smem:[#allocation209_spill]]  ;;  %s14567_s24 = smov [#allocation8]  }
  0x3c   : > { %s412_s27 = sshll.u32 %s14567_s24, 4  ;;  %s14568_s21 = smov [#allocation14]   ;;  %s413_s27 = int_to_ptr.vmem [resolvable:$true] %s412_s27 }
  0x3d   : > { %s448_s18 = sshll.u32 %s14568_s21, 4  ;;  %s14237_s28 = scalar_lea.vmem %s413_s27, 64  ;;  %s449_s18 = int_to_ptr.vmem [resolvable:$true] %s448_s18 }
  0x3e   : > { %p14238_p11 = scmp.ne.s32.totalorder %s413_s27, %s14237_s28  ;;  %p14245_p0 = scmp.lt.s32.totalorder %s413_s27, %s413_s27 }
  0x3f   : > { %p14246_p2 = scmp.lt.s32.totalorder %s14237_s28, %s14237_s28 }
  0x40   : > { %p14240_p12 = pnand %p14238_p11, %p14704_p7 }
  0x41   : > { %12784 = dma.hbm_to_vmem [thread:$0]  (!%p14694_p6), %s20237_s2, 16384, %s399_s25, [#allocation6], %s19909_s14, %s19909_s14, %s19910_s17  }
  0x42   : > { %p14241_p13 = pneg %p14240_p12  ;;  %p14247_p5 = por %p14246_p2, %p14245_p0 }
  0x44   : > { %p14248_p8 = pnand %p14247_p5, %p14241_p13 }
  0x46   : > { %14251 = shalt.err (!%p14248_p8)
}
  0x47   : > { %s20238_s3 = sld [smem:[#allocation210_spill]]  ;;  %s14263_s25 = scalar_lea.vmem %s449_s18, 64 }
  0x48   : > { %p14264_p9 = scmp.ne.s32.totalorder %s449_s18, %s14263_s25  ;;  %p14271_p11 = scmp.lt.s32.totalorder %s449_s18, %s449_s18 }
  0x49   : > { %p14272_p12 = scmp.lt.s32.totalorder %s14263_s25, %s14263_s25 }
  0x4a   : > { %p14266_p10 = pnand %p14264_p9, %p14704_p7 }
  0x4b   : > { %p14273_p1 = por %p14272_p12, %p14271_p11 }
  0x4c   : > { %p14267_p3 = pneg %p14266_p10 }
  0x4d   : > { %12787 = dma.hbm_to_vmem [thread:$0]  (!%p14694_p6), %s20238_s3, 64, %s413_s27, [#allocation9]  }
  0x4e   : > { %p14274_p4 = pnand %p14273_p1, %p14267_p3 }
  0x50   : > { %14277 = shalt.err (!%p14274_p4)
}
  0x51   : > { %s20239_s9 = sld [smem:[#allocation212_spill]]  ;;  %s14569_s0 = smov [#allocation17]  }
  0x52   : > { %s472_s27 = sshll.u32 %s14569_s0, 4  ;;  %s473_s27 = int_to_ptr.vmem [resolvable:$true] %s472_s27 }
  0x53   : > { %s14289_s21 = scalar_lea.vmem %s473_s27, 48  ;;  %s14296_s28 = scalar_lea.vmem %s473_s27, 64 }
  0x54   : > { %p14290_p13 = scmp.ne.s32.totalorder %s473_s27, %s14289_s21  ;;  %p14297_p5 = scmp.lt.s32.totalorder %s473_s27, %s473_s27 }
  0x55   : > { %p14298_p8 = scmp.lt.s32.totalorder %s14296_s28, %s14289_s21 }
  0x56   : > { %p14292_p0 = pnand %p14290_p13, %p14704_p7 }
  0x57   : > { %12796 = dma.hbm_to_vmem [thread:$0]  (!%p14694_p6), %s20239_s9, 64, %s449_s18, [#allocation15]  }
  0x58   : > { %p14293_p2 = pneg %p14292_p0  ;;  %p14299_p1 = por %p14298_p8, %p14297_p5 }
  0x5a   : > { %p14300_p3 = pnand %p14299_p1, %p14293_p2 }
  0x5c   : > { %14303 = shalt.err (!%p14300_p3)
}
  0x5d   : > { %12802 = dma.hbm_to_vmem [thread:$0]  (!%p14694_p6), %s19901_s11, 48, %s473_s27, [#allocation18]  }
  0x5e   : > { %s14760_s18 = sadd.s32 1, %s14556_s16   ;;  %s121_s22 = sadd.s32 1, %s14552_s15 }
  0x5f   : > { %s118_s24 = ssub.s32 %s14556_s16, %s14760_s18  ;;  %p128_p4 = scmp.ne.s32.totalorder %s14552_s15, %s14548_s30 }
  0x60   : > { %p119_p9 = scmp.eq.s32.totalorder %s118_s24, 0  ;;  %p129_p10 = scmp.eq.s32.totalorder %s14556_s16, 0 }
  0x61   : > { %p134_p11 = scmp.ne.s32.totalorder %s14548_s30, %s14544_s29  ;;  %p12827_p12 = scmp.lt.s32.totalorder %s14556_s16, 5 }
  0x62   : > { %s14772_s0 = scalar_select %p119_p9, %s14552_s15, %s121_s22  }
  0x63   : > { %p130_p13 = por %p129_p10, %p128_p4  ;;  %p20240_p0 = scmp.eq.s32.totalorder %s14680_s19, 0 }
  0x64   : > { %s507_s28 = sand.u32 1, %s14556_s16   ;;  %s19911_s27 = sand.u32 1, %s14552_s15  }
  0x65   : > { %p14776_p2 = por %p20240_p0, %p134_p11  ;;  %s11638_s8 = sshll.u32 %s19911_s27, 12 }
  0x66   : > { %s12518_s25 = sshll.u32 %s14556_s16, 16  ;;  %s511_s29 = scalar_lea.vmem [#allocation10], %s11638_s8 }
  0x67   : > { %s20241_s21 = scalar_select %p14776_p2, 1, 0 }
  0x68   : > { %s14788_s24 = scalar_lea.hbm %s19894_s4, %s12518_s25  ;;  %s518_s22 = sshll.u32 %s511_s29, 4  ;;  %s14790_s22 = int_to_ptr.vmem [resolvable:$true] %s518_s22 }
  0x69   : > { %p14792_p5 = pnand %p12827_p12, %p130_p13  ;;  %s14570_s27 = smov [#allocation12]  }
  0x6a   : > { %s14796_s2 = sshll.u32 %s14570_s27, 4  ;;  %s14798_s3 = scalar_lea.sflag [#allocation4], %s507_s28  ;;  %s424_s2 = int_to_ptr.vmem [resolvable:$true] %s14796_s2 }
  0x6b   : > { %s20242_s1 = scalar_select %p14792_p5, 1, 0 }
  0x6c   : > { %s14304_s14 = scalar_lea.hbm %s14788_s24, 65536  ;;  %p19915_p1 = pneg %p14792_p5 }
  0x6d   : > { %p14305_p8 = scmp.ne.s32.totalorder %s14788_s24, %s14304_s14  ;;  %s14309_s25 = scalar_lea.hbm %s19894_s4, 327680 }
  0x6e   : > { %p14310_p9 = scmp.lt.s32.totalorder %s14788_s24, %s19894_s4  ;;  %p14311_p10 = scmp.lt.s32.totalorder %s14309_s25, %s14304_s14 }
  0x6f   : > { %p14307_p3 = pnand %p19915_p1, %p14305_p8 }
  0x70   : > { %p14312_p11 = por %p14311_p10, %p14310_p9 }
  0x71   : > { %p14308_p4 = pneg %p14307_p3 }
  0x73   : > { %p14313_p12 = pnand %p14312_p11, %p14308_p4 }
  0x75   : > { %14316 = shalt.err (!%p14313_p12)
}
  0x76   : > { %s14317_s28 = scalar_lea.vmem %s14790_s22, 65536  ;;  %s14571_s27 = smov [#allocation10]  }
  0x77   : > { %p14318_p13 = scmp.ne.s32.totalorder %s14790_s22, %s14317_s28  ;;  %s14322_s17 = sshll.u32 %s14571_s27, 4  ;;  %s14323_s17 = int_to_ptr.vmem [resolvable:$false] %s14322_s17 }
  0x78   : > { %s14324_s8 = scalar_lea.vmem %s14323_s17, 131072  ;;  %p14325_p3 = scmp.lt.s32.totalorder %s14790_s22, %s14323_s17 }
  0x79   : > { %p14320_p0 = pnand %p14318_p13, %p19915_p1  ;;  %p14326_p2 = scmp.lt.s32.totalorder %s14324_s8, %s14317_s28 }
  0x7b   : > { %p14321_p8 = pneg %p14320_p0  ;;  %p14327_p6 = por %p14326_p2, %p14325_p3 }
  0x7d   : > { %p14328_p9 = pnand %p14327_p6, %p14321_p8 }
  0x7f   : > { %14331 = shalt.err (!%p14328_p9)
}
  0x80   : > { %s20243_s9 = smov 16   ;;  %s20244_s14 = smov 256  }
  0x81   : > { %12812 = dma.hbm_to_vmem [thread:$0]  (!%p14792_p5), %s14788_s24, 65536, %s14790_s22, %s14798_s3, %s20244_s14, %s20244_s14, %s20243_s9  }
  0x82   : > { %s14572_s25 = smov [#allocation13]   ;;  %s14343_s27 = scalar_lea.vmem %s424_s2, 64 }
  0x83   : > { %s434_s29 = sshll.u32 %s14572_s25, 4  ;;  %p14344_p4 = scmp.ne.s32.totalorder %s424_s2, %s14343_s27  ;;  %s435_s29 = int_to_ptr.vmem [resolvable:$true] %s434_s29 }
  0x84   : > { %p14351_p10 = scmp.lt.s32.totalorder %s424_s2, %s424_s2  ;;  %p14352_p11 = scmp.lt.s32.totalorder %s14343_s27, %s14343_s27 }
  0x85   : > { %p14346_p2 = pnand %p14344_p4, %p14704_p7 }
  0x86   : > { %p14353_p12 = por %p14352_p11, %p14351_p10 }
  0x87   : > { %p14347_p6 = pneg %p14346_p2 }
  0x89   : > { %p14354_p13 = pnand %p14353_p12, %p14347_p6 }
  0x8b   : > { %14357 = shalt.err (!%p14354_p13)
}
  0x8c   : > { %p20245_p0 = scmp.ne.s32.totalorder %s20233_s23, 0  ;;  %s14369_s24 = scalar_lea.vmem %s435_s29, 64 }
  0x8d   : > { %p14370_p8 = scmp.ne.s32.totalorder %s435_s29, %s14369_s24  ;;  %p14377_p4 = scmp.lt.s32.totalorder %s435_s29, %s435_s29 }
  0x8e   : > { %12790 = dma.hbm_to_vmem [thread:$0]  (!%p20245_p0), %s19896_s6, 64, %s424_s2, [#allocation6]  }
  0x8f   : > { %p14372_p3 = pnand %p14370_p8, %p14704_p7  ;;  %p14378_p2 = scmp.lt.s32.totalorder %s14369_s24, %s14369_s24 }
  0x91   : > { %p14373_p9 = pneg %p14372_p3  ;;  %p14379_p1 = por %p14378_p2, %p14377_p4 }
  0x93   : > { %p14380_p5 = pnand %p14379_p1, %p14373_p9 }
  0x95   : > { %14383 = shalt.err (!%p14380_p5)
}
  0x96   : > { %12793 = dma.hbm_to_vmem [thread:$0]  (!%p20245_p0), %s19897_s7, 64, %s435_s29, [#allocation9]  }
  0x97   : > { %s14573_s9 = smov [#allocation16]  }
  0x98   : > { %s458_s2 = sshll.u32 %s14573_s9, 4  ;;  %s459_s2 = int_to_ptr.vmem [resolvable:$true] %s458_s2 }
  0x99   : > { %s14395_s14 = scalar_lea.vmem %s459_s2, 12288  ;;  %p14403_p12 = scmp.lt.s32.totalorder %s459_s2, %s459_s2 }
  0x9a   : > { %p14396_p6 = scmp.ne.s32.totalorder %s459_s2, %s14395_s14  ;;  %p14404_p13 = scmp.lt.s32.totalorder %s14395_s14, %s14395_s14 }
  0x9c   : > { %p14398_p10 = pnand %p14396_p6, %p14704_p7  ;;  %p14405_p8 = por %p14404_p13, %p14403_p12 }
  0x9e   : > { %p14399_p11 = pneg %p14398_p10 }
  0xa0   : > { %p14406_p1 = pnand %p14405_p8, %p14399_p11 }
  0xa2   : > { %14409 = shalt.err (!%p14406_p1)
}
  0xa3   : > { %s14574_s25 = smov 192   ;;  %s14575_s27 = smov 12  }
  0xa4   : > { %12799 = dma.hbm_to_vmem [thread:$0]  (!%p20245_p0), %s19900_s10, 12288, %s459_s2, [#allocation15], %s14574_s25, %s14574_s25, %s14575_s27  }
  0xa5   : > { %s14576_s17 = smov [#allocation19]   ;;  %s14577_s22 = smov [#allocation20]  }
  0xa6   : > { %s482_s24 = sshll.u32 %s14576_s17, 4  ;;  %s496_s8 = sshll.u32 %s14577_s22, 4  ;;  %s483_s24 = int_to_ptr.vmem [resolvable:$true] %s482_s24  ;;  %s497_s8 = int_to_ptr.vmem [resolvable:$true] %s496_s8 }
  0xa7   : > { %s14421_s9 = scalar_lea.vmem %s483_s24, 9216  ;;  %p14429_p4 = scmp.lt.s32.totalorder %s483_s24, %s483_s24 }
  0xa8   : > { %p14422_p5 = scmp.ne.s32.totalorder %s483_s24, %s14421_s9  ;;  %p14430_p2 = scmp.lt.s32.totalorder %s14421_s9, %s14421_s9 }
  0xaa   : > { %p14424_p3 = pnand %p14422_p5, %p14704_p7  ;;  %p14431_p6 = por %p14430_p2, %p14429_p4 }
  0xac   : > { %p14425_p9 = pneg %p14424_p3 }
  0xae   : > { %p14432_p10 = pnand %p14431_p6, %p14425_p9 }
  0xb0   : > { %14435 = shalt.err (!%p14432_p10)
}
  0xb1   : > { %12805 = dma.hbm_to_vmem [thread:$0]  (!%p20245_p0), %s19902_s12, 9216, %s483_s24, [#allocation18], %s14574_s25, %s14574_s25, %s14575_s27  }
  0xb2   : > { %s14447_s28 = scalar_lea.vmem %s497_s8, 48  ;;  %s14454_s29 = scalar_lea.vmem %s497_s8, 64 }
  0xb3   : > { %p14448_p11 = scmp.ne.s32.totalorder %s497_s8, %s14447_s28  ;;  %p14455_p8 = scmp.lt.s32.totalorder %s497_s8, %s497_s8 }
  0xb4   : > { %p14456_p1 = scmp.lt.s32.totalorder %s14454_s29, %s14447_s28 }
  0xb5   : > { %p14450_p12 = pnand %p14448_p11, %p14704_p7 }
  0xb6   : > { %p14457_p5 = por %p14456_p1, %p14455_p8 }
  0xb7   : > { %p14451_p13 = pneg %p14450_p12 }
  0xb9   : > { %p14458_p3 = pnand %p14457_p5, %p14451_p13 }
  0xbb   : > { %14461 = shalt.err (!%p14458_p3)
}
  0xbc   : > { %12808 = dma.hbm_to_vmem [thread:$0]  (!%p20245_p0), %s19903_s13, 48, %s497_s8, [#allocation21]  }
  0xbd   : > { %s20246_s25 = sand.u32 1, %s14552_s15   ;;  %s12519_s26 = sshll.u32 %s14556_s16, 6 }
  0xbe   : > { %s11641_s27 = sshll.u32 %s20246_s25, 2  ;;  %s538_s14 = scalar_lea.hbm %s19895_s5, %s12519_s26 }
  0xbf   : > { %s532_s2 = scalar_lea.vmem [#allocation11], %s11641_s27  ;;  %s14462_s29 = scalar_lea.hbm %s538_s14, 64 }
  0xc0   : > { %s540_s28 = sshll.u32 %s532_s2, 4  ;;  %p14463_p7 = scmp.ne.s32.totalorder %s538_s14, %s14462_s29  ;;  %s541_s28 = int_to_ptr.vmem [resolvable:$true] %s540_s28 }
  0xc1   : > { %p20247_p9 = scmp.ne.s32.totalorder %s20242_s1, 0  ;;  %s14467_s8 = scalar_lea.hbm %s19895_s5, 320 }
  0xc2   : > { %p14468_p0 = scmp.lt.s32.totalorder %s538_s14, %s19895_s5  ;;  %p14469_p10 = scmp.lt.s32.totalorder %s14467_s8, %s14462_s29 }
  0xc3   : > { %p20248_p4 = pneg %p20247_p9 }
  0xc4   : > { %p14470_p11 = por %p14469_p10, %p14468_p0 }
  0xc5   : > { %p14465_p2 = pnand %p14463_p7, %p20248_p4 }
  0xc7   : > { %p14466_p6 = pneg %p14465_p2 }
  0xc9   : > { %p14471_p12 = pnand %p14470_p11, %p14466_p6 }
  0xcb   : > { %14474 = shalt.err (!%p14471_p12)
}
  0xcc   : > { %s14475_s16 = scalar_lea.vmem %s541_s28, 64  ;;  %p20249_p8 = pmov %p20248_p4 }
  0xcd   : > { %p14476_p13 = scmp.ne.s32.totalorder %s541_s28, %s14475_s16  ;;  %s14578_s27 = smov [#allocation11]  }
  0xce   : > { %s14480_s26 = sshll.u32 %s14578_s27, 4  ;;  %s14481_s26 = int_to_ptr.vmem [resolvable:$false] %s14480_s26 }
  0xcf   : > { %p14478_p1 = pnand %p14476_p13, %p20249_p8  ;;  %s14482_s24 = scalar_lea.vmem %s14481_s26, 128 }
  0xd0   : > { %p14483_p3 = scmp.lt.s32.totalorder %s541_s28, %s14481_s26  ;;  %p14484_p7 = scmp.lt.s32.totalorder %s14482_s24, %s14475_s16 }
  0xd1   : > { %p14479_p5 = pneg %p14478_p1 }
  0xd2   : > { %p14485_p4 = por %p14484_p7, %p14483_p3 }
  0xd4   : > { %p14486_p2 = pnand %p14485_p4, %p14479_p5 }
  0xd6   : > { %14489 = shalt.err (!%p14486_p2)
}
  0xd7   : > { %12815 = dma.hbm_to_vmem [thread:$0]  (!%p20247_p9), %s538_s14, 64, %s541_s28, %s14798_s3  }
  0xd8   : > { %p20250_p6 = scmp.ne.s32.totalorder %s20232_s20, 0 }
  0xda   : > { %549 = sbr.rel (%p20250_p6) target bundleno = 2703 (0xa8f), region = 76 }
  0xdf   : > { %p20251_p0 = scmp.eq.s32.totalorder %s14680_s19, 0 }
  0xe1   : > { %14507 = dma.done.wait (%p20251_p0), [#allocation4], 2048   ;;  %p20252_p10 = pmov %p20251_p0 }
  0xe2   : > { %p20253_p11 = pmov %p20251_p0 }
  0xe3   : > { %14509 = vsyncadd (%p20252_p10), [#allocation4], 4294965248 }
  0xe4   : > { %14511 = dma.done.wait (%p20253_p11), [#allocation6], 19456   ;;  %p20254_p12 = pmov %p20251_p0 }
  0xe5   : > { %p20255_p13 = pmov %p20251_p0 }
  0xe6   : > { %14513 = vsyncadd (%p20254_p12), [#allocation6], 4294947840 }
  0xe7   : > { %14515 = dma.done.wait (%p20255_p13), [#allocation9], 64   ;;  %p20256_p9 = pmov %p20251_p0 }
  0xe8   : > { %s567_s1 = sand.u32 1, %s14680_s19   ;;  %s569_s3 = sand.u32 1, %s14548_s30  }
  0xe9   : > { %14517 = vsyncadd (%p20256_p9), [#allocation9], 4294967232  ;;  %s11649_s20 = sshll.u32 %s569_s3, 12  ;;  %s568_s9 = scalar_lea.sflag [#allocation4], %s567_s1 }
  0xea   : > { %s14901_s14 = scalar_lea.vmem [#allocation10], %s11649_s20  ;;  %p20257_p8 = scmp.ne.s32.totalorder %s20241_s21, 0 }
  0xec   : > { %14519 = dma.done.wait (%p20257_p8), %s568_s9, 65600  }
  0xed   : > { %14521 = vsyncadd (%p20257_p8), %s568_s9, 4294901696  ;;  %s14907_s2 = sshll.u32 %s569_s3, 2  ;;  %p20258_p1 = pmov %p20251_p0 }
  0xee   : > { %s580_s28 = scalar_lea.vmem [#allocation11], %s14907_s2 }
  0xef   : > { %14523 = dma.done.wait (%p20258_p1), [#allocation6], 64   ;;  %p20259_p5 = pmov %p20251_p0 }
  0xf0   : > { %p20260_p3 = pmov %p20251_p0 }
  0xf1   : > { %14525 = vsyncadd (%p20259_p5), [#allocation6], 4294967232 }
  0xf2   : > { %14527 = dma.done.wait (%p20260_p3), [#allocation9], 64   ;;  %p20261_p7 = pmov %p20251_p0 }
  0xf3   : > { %p20262_p4 = pmov %p20251_p0 }
  0xf4   : > { %14529 = vsyncadd (%p20261_p7), [#allocation9], 4294967232 }
  0xf5   : > { %14531 = dma.done.wait (%p20262_p4), [#allocation15], 12352   ;;  %p20263_p2 = pmov %p20251_p0 }
  0xf6   : > { %p20264_p6 = pmov %p20251_p0 }
  0xf7   : > { %14533 = vsyncadd (%p20263_p2), [#allocation15], 4294954944 }
  0xf8   : > { %14535 = dma.done.wait (%p20264_p6), [#allocation18], 9264  }
  0xf9   : > { %14537 = vsyncadd (%p20251_p0), [#allocation18], 4294958032  ;;  %p20265_p10 = pmov %p20251_p0 }
  0xfa   : > { %p20266_p11 = pmov %p20251_p0 }
  0xfb   : > { %14539 = dma.done.wait (%p20265_p10), [#allocation21], 48  }
  0xfc   : > { %14541 = vsyncadd (%p20266_p11), [#allocation21], 4294967248  ;;  %v14930_v0 = vld [vmem:[#allocation12] sm:$0xf]  ;;  %v14932_v1 = vld [vmem:[#allocation13] sm:$0xf] }
  0xfd   : > { %20267 = vst [vmem:[#allocation31_spill] sm:$0xff] %v14930_v0  ;;  %20268 = vst [vmem:[#allocation32_spill] sm:$0xff] %v14932_v1  ;;  %s20269_s23 = sld [smem:[#allocation211_spill]]  ;;  %p20286_p12 = scmp.ne.s32.totalorder %s14680_s19, 0 }
 0x103   : > { %v14937_v2 = vld [vmem:[%s20269_s23] sm:$0xff]  ;;  %v14942_v3 = vld [vmem:[%s20269_s23 + $0x8] sm:$0xff]  ;;  %v14947_v4 = vld [vmem:[%s20269_s23 + $0x10] sm:$0xff] }
 0x104   : > { %20270 = vst [vmem:[#allocation33_spill] sm:$0xff] %v14937_v2  ;;  %20271 = vst [vmem:[#allocation34_spill] sm:$0xff] %v14942_v3  ;;  %v14952_v5 = vld [vmem:[%s20269_s23 + $0x18] sm:$0xff]  ;;  %v14957_v6 = vld [vmem:[%s20269_s23 + $0x20] sm:$0xff] }
 0x105   : > { %20272 = vst [vmem:[#allocation35_spill] sm:$0xff] %v14947_v4  ;;  %20273 = vst [vmem:[#allocation36_spill] sm:$0xff] %v14952_v5  ;;  %v14962_v7 = vld [vmem:[%s20269_s23 + $0x28] sm:$0xff]  ;;  %v14967_v8 = vld [vmem:[%s20269_s23 + $0x30] sm:$0xff] }
 0x106   : > { %20274 = vst [vmem:[#allocation37_spill] sm:$0xff] %v14957_v6  ;;  %20275 = vst [vmem:[#allocation38_spill] sm:$0xff] %v14962_v7  ;;  %v14972_v9 = vld [vmem:[%s20269_s23 + $0x38] sm:$0xff]  ;;  %v14977_v10 = vld [vmem:[%s20269_s23 + $0x40] sm:$0xff] }
 0x107   : > { %20276 = vst [vmem:[#allocation39_spill] sm:$0xff] %v14967_v8  ;;  %20277 = vst [vmem:[#allocation40_spill] sm:$0xff] %v14972_v9  ;;  %v14982_v11 = vld [vmem:[%s20269_s23 + $0x48] sm:$0xff]  ;;  %v14987_v12 = vld [vmem:[%s20269_s23 + $0x50] sm:$0xff]  ;;  %675 = sbr.rel (%p20286_p12) target bundleno = 967 (0x3c7), region = 132 }
 0x108   : > { %20278 = vst [vmem:[#allocation41_spill] sm:$0xff] %v14977_v10  ;;  %20279 = vst [vmem:[#allocation42_spill] sm:$0xff] %v14982_v11  ;;  %v14992_v13 = vld [vmem:[%s20269_s23 + $0x58] sm:$0xff]  ;;  %v14997_v14 = vld [vmem:[%s20269_s23 + $0x60] sm:$0xff] }
 0x109   : > { %20280 = vst [vmem:[#allocation43_spill] sm:$0xff] %v14987_v12  ;;  %20281 = vst [vmem:[#allocation44_spill] sm:$0xff] %v14992_v13  ;;  %v15002_v15 = vld [vmem:[%s20269_s23 + $0x68] sm:$0xff]  ;;  %v15007_v16 = vld [vmem:[%s20269_s23 + $0x70] sm:$0xff] }
 0x10a   : > { %20282 = vst [vmem:[#allocation45_spill] sm:$0xff] %v14997_v14  ;;  %20283 = vst [vmem:[#allocation46_spill] sm:$0xff] %v15002_v15  ;;  %v15012_v17 = vld [vmem:[%s20269_s23 + $0x78] sm:$0xff] }
 0x10b   : > { %20284 = vst [vmem:[#allocation47_spill] sm:$0xff] %v15007_v16  ;;  %20285 = vst [vmem:[#allocation48_spill] sm:$0xff] %v15012_v17 }
 0x10c   : > { %v690_v18 = vld [vmem:[#allocation3 + $0x70] sm:$0xff]  ;;  %v691_v19 = vld [vmem:[#allocation3 + $0x78] sm:$0xff]  ;;  %v688_v20 = vld [vmem:[#allocation3 + $0x60] sm:$0xff] }
 0x10d   : > { %v15016_v21 = vpack.c.bf16 %v691_v19, %v690_v18  ;;  %v689_v22 = vld [vmem:[#allocation3 + $0x68] sm:$0xff]  ;;  %v686_v24 = vld [vmem:[#allocation3 + $0x50] sm:$0xff]  ;;  %v687_v25 = vld [vmem:[#allocation3 + $0x58] sm:$0xff] }
 0x10e   : > { %v15018_v23 = vpack.c.bf16 %v689_v22, %v688_v20  ;;  %v684_v26 = vld [vmem:[#allocation3 + $0x40] sm:$0xff]  ;;  %v15025_v27 = vpack.c.bf16 %v687_v25, %v686_v24  ;;  %v685_v28 = vld [vmem:[#allocation3 + $0x48] sm:$0xff]  ;;  %v682_v31 = vld [vmem:[#allocation3 + $0x30] sm:$0xff] }
 0x10f   : > { %12627 = vmatprep.subr.bf16.mxu0 %v15016_v21  ;;  %12711 = vmatprep.subr.bf16.mxu1 %v15016_v21  ;;  %v12897_v29 = vld [vmem:[#allocation5] sm:$0xff]   ;;  %v15031_v30 = vpack.c.bf16 %v685_v28, %v684_v26  ;;  %v683_v32 = vld [vmem:[#allocation3 + $0x38] sm:$0xff]  ;;  %v681_v35 = vld [vmem:[#allocation3 + $0x28] sm:$0xff] }
 0x110   : > { %12628 = vmatpush3.bf16.msra.mxu0 %v15016_v21  ;;  %12719 = vmatpush3.bf16.msra.mxu1 %v15016_v21  ;;  %v680_v33 = vld [vmem:[#allocation3 + $0x20] sm:$0xff]  ;;  %v15037_v34 = vpack.c.bf16 %v683_v32, %v682_v31  ;;  %v678_v38 = vld [vmem:[#allocation3 + $0x10] sm:$0xff]  ;;  %v679_v39 = vld [vmem:[#allocation3 + $0x18] sm:$0xff] }
 0x111   : > { %12629 = vmatprep.subr.bf16.mxu0 %v15018_v23  ;;  %12712 = vmatprep.subr.bf16.mxu1 %v15018_v23  ;;  %v12905_v36 = vld [vmem:[#allocation5 + $0x80] sm:$0xff]   ;;  %v15043_v37 = vpack.c.bf16 %v681_v35, %v680_v33  ;;  %v15049_v40 = vpack.c.bf16 %v679_v39, %v678_v38  ;;  %v677_v42 = vld [vmem:[#allocation3 + $0x8] sm:$0xff]  ;;  %v12899_v46 = vld [vmem:[#allocation5 + $0x10] sm:$0xff]  }
 0x112   : > { %12643 = vmatprep.mubr.bf16.mxu0 %v12897_v29  ;;  %12675 = vmatprep.mubr.bf16.mxu1 %v12905_v36  ;;  %v676_v41 = vld [vmem:[#allocation3] sm:$0xff]  ;;  %v12898_v44 = vld [vmem:[#allocation5 + $0x8] sm:$0xff]   ;;  %v12909_v48 = vld [vmem:[#allocation5 + $0x90] sm:$0xff]  }
 0x113   : > { %v15055_v43 = vpack.c.bf16 %v677_v42, %v676_v41  ;;  %v12923_v45 = vld [vmem:[#allocation7 + $0xe4] ss:$16 sps:$4 sm:$0xff]   ;;  %v12906_v47 = vld [vmem:[#allocation5 + $0x88] sm:$0xff]   ;;  %v12921_v49 = vld [vmem:[#allocation7 + $0xe0] ss:$16 sps:$4 sm:$0xff]  }
 0x114   : > { %12630 = vmatpush3.bf16.msra.mxu0 %v15018_v23  ;;  %12720 = vmatpush3.bf16.msra.mxu1 %v15018_v23  ;;  %v12926_v50 = vld [vmem:[#allocation7 + $0xc4] ss:$16 sps:$4 sm:$0xff]   ;;  %v12900_v51 = vld [vmem:[#allocation5 + $0x18] sm:$0xff]   ;;  %v12924_v52 = vld [vmem:[#allocation7 + $0xc0] ss:$16 sps:$4 sm:$0xff]  }
 0x115   : > { %12631 = vmatprep.subr.bf16.mxu0 %v15025_v27  ;;  %12713 = vmatprep.subr.bf16.mxu1 %v15025_v27  ;;  %v12901_v53 = vld [vmem:[#allocation5 + $0x20] sm:$0xff]   ;;  %v12911_v55 = vld [vmem:[#allocation5 + $0x98] sm:$0xff]   ;;  %v12902_v62 = vld [vmem:[#allocation5 + $0x28] sm:$0xff]  }
 0x116   : > { %v12929_v54 = vld [vmem:[#allocation7 + $0xa4] ss:$16 sps:$4 sm:$0xff]   ;;  %v12927_v57 = vld [vmem:[#allocation7 + $0xa0] ss:$16 sps:$4 sm:$0xff]   ;;  %v12915_v22 = vld [vmem:[#allocation5 + $0xa8] sm:$0xff]  }
 0x117   : > { %v12913_v56 = vld [vmem:[#allocation5 + $0xa0] sm:$0xff]   ;;  %v12903_v18 = vld [vmem:[#allocation5 + $0x30] sm:$0xff]   ;;  %v12904_v32 = vld [vmem:[#allocation5 + $0x38] sm:$0xff]  }
 0x118   : > { %12632 = vmatpush3.bf16.msra.mxu0 %v15025_v27  ;;  %12721 = vmatpush3.bf16.msra.mxu1 %v15025_v27  ;;  %v12947_v58 = vld [vmem:[#allocation7 + $0x2e4] ss:$16 sps:$4 sm:$0xff]   ;;  %v12945_v60 = vld [vmem:[#allocation7 + $0x2e0] ss:$16 sps:$4 sm:$0xff]   ;;  %v12919_v33 = vld [vmem:[#allocation5 + $0xb8] sm:$0xff]  }
 0x119   : > { %12633 = vmatprep.subr.bf16.mxu0 %v15031_v30  ;;  %12714 = vmatprep.subr.bf16.mxu1 %v15031_v30  ;;  %v12932_v59 = vld [vmem:[#allocation7 + $0x84] ss:$16 sps:$4 sm:$0xff]   ;;  %v12930_v63 = vld [vmem:[#allocation7 + $0x80] ss:$16 sps:$4 sm:$0xff]  }
 0x11a   : > { %v12953_v61 = vld [vmem:[#allocation7 + $0x2c4] ss:$16 sps:$4 sm:$0xff]   ;;  %v12951_v20 = vld [vmem:[#allocation7 + $0x2c0] ss:$16 sps:$4 sm:$0xff]  }
 0x11b   : > { %v12935_v19 = vld [vmem:[#allocation7 + $0x64] ss:$16 sps:$4 sm:$0xff]   ;;  %v12933_v25 = vld [vmem:[#allocation7 + $0x60] ss:$16 sps:$4 sm:$0xff]  }
 0x11c   : > { %12634 = vmatpush3.bf16.msra.mxu0 %v15031_v30  ;;  %12722 = vmatpush3.bf16.msra.mxu1 %v15031_v30  ;;  %v12917_v24 = vld [vmem:[#allocation5 + $0xb0] sm:$0xff]   ;;  %v12907_v36 = vld [vmem:[#allocation5 + $0x40] sm:$0xff]  }
 0x11d   : > { %12635 = vmatprep.subr.bf16.mxu0 %v15037_v34  ;;  %12715 = vmatprep.subr.bf16.mxu1 %v15037_v34  ;;  %v12959_v26 = vld [vmem:[#allocation7 + $0x2a4] ss:$16 sps:$4 sm:$0xff]   ;;  %v12957_v29 = vld [vmem:[#allocation7 + $0x2a0] ss:$16 sps:$4 sm:$0xff]  }
 0x11e   : > { %v12938_v28 = vld [vmem:[#allocation7 + $0x44] ss:$16 sps:$4 sm:$0xff]   ;;  %v12936_v35 = vld [vmem:[#allocation7 + $0x40] ss:$16 sps:$4 sm:$0xff]  }
 0x11f   : > { %v12965_v31 = vld [vmem:[#allocation7 + $0x284] ss:$16 sps:$4 sm:$0xff]   ;;  %v12963_v39 = vld [vmem:[#allocation7 + $0x280] ss:$16 sps:$4 sm:$0xff]  }
 0x120   : > { %12636 = vmatpush3.bf16.msra.mxu0 %v15037_v34  ;;  %12723 = vmatpush3.bf16.msra.mxu1 %v15037_v34  ;;  %v12941_v38 = vld [vmem:[#allocation7 + $0x24] ss:$16 sps:$4 sm:$0xff]   ;;  %v12939_v41 = vld [vmem:[#allocation7 + $0x20] ss:$16 sps:$4 sm:$0xff]  }
 0x121   : > { %12637 = vmatprep.subr.bf16.mxu0 %v15043_v37  ;;  %12716 = vmatprep.subr.bf16.mxu1 %v15043_v37  ;;  %v12971_v42 = vld [vmem:[#allocation7 + $0x264] ss:$16 sps:$4 sm:$0xff]  }
 0x124   : > { %12638 = vmatpush3.bf16.msra.mxu0 %v15043_v37  ;;  %12724 = vmatpush3.bf16.msra.mxu1 %v15043_v37 }
 0x125   : > { %12639 = vmatprep.subr.bf16.mxu0 %v15049_v40  ;;  %12717 = vmatprep.subr.bf16.mxu1 %v15049_v40 }
 0x128   : > { %12640 = vmatpush3.bf16.msra.mxu0 %v15049_v40  ;;  %12725 = vmatpush3.bf16.msra.mxu1 %v15049_v40 }
 0x129   : > { %12641 = vmatprep.subr.bf16.mxu0 %v15055_v43  ;;  %12718 = vmatprep.subr.bf16.mxu1 %v15055_v43 }
 0x12c   : > { %12642 = vmatpush3.bf16.msra.mxu0 %v15055_v43  ;;  %12726 = vmatpush3.bf16.msra.mxu1 %v15055_v43 }
 0x12d   : > { %1931 = vmatprep.subr.bf16.mxu1 %v12923_v45  ;;  %2044 = vmatprep.subr.bf16.mxu0 %v12947_v58  ;;  %v12969_v45 = vld [vmem:[#allocation7 + $0x260] ss:$16 sps:$4 sm:$0xff]  }
 0x12e   : > { %v12960_v58 = vld [vmem:[#allocation7 + $0x1a0] ss:$16 sps:$4 sm:$0xff]  }
 0x12f   : > { %12644 = vmatmul.mubr.bf16.vlgmr.msra.gmra.mxu0 %v12898_v44  ;;  %12676 = vmatmul.mubr.bf16.vlgmr.msra.gmra.mxu1 %v12906_v47  ;;  %v12944_v44 = vld [vmem:[#allocation7 + $0x4] ss:$16 sps:$4 sm:$0xff]   ;;  %v12942_v47 = vld [vmem:[#allocation7] ss:$16 sps:$4 sm:$0xff]  }
 0x130   : > { %12647 = vmatprep.mubr.bf16.mxu0 %v12899_v46  ;;  %12679 = vmatprep.mubr.bf16.mxu1 %v12909_v48  ;;  %v12977_v46 = vld [vmem:[#allocation7 + $0x244] ss:$16 sps:$4 sm:$0xff]  }
 0x131   : > { %1932 = vmatpush1.bf16.msra.mxu1 %v12921_v49  ;;  %2045 = vmatpush1.bf16.msra.mxu0 %v12945_v60  ;;  %v12950_v48 = vld [vmem:[#allocation7 + $0x1e4] ss:$16 sps:$4 sm:$0xff]   ;;  %v12975_v49 = vld [vmem:[#allocation7 + $0x240] ss:$16 sps:$4 sm:$0xff]  }
 0x132   : > { %1933 = vmatprep.subr.bf16.mxu1 %v12926_v50  ;;  %2046 = vmatprep.subr.bf16.mxu0 %v12953_v61  ;;  %v12908_v50 = vld [vmem:[#allocation5 + $0x48] sm:$0xff]   ;;  %v12966_v60 = vld [vmem:[#allocation7 + $0x180] ss:$16 sps:$4 sm:$0xff]   ;;  %v12974_v61 = vld [vmem:[#allocation7 + $0x164] ss:$16 sps:$4 sm:$0xff]  }
 0x135   : > { %1934 = vmatpush1.bf16.msra.mxu1 %v12924_v52  ;;  %2047 = vmatpush1.bf16.msra.mxu0 %v12951_v20  ;;  %v12948_v52 = vld [vmem:[#allocation7 + $0x1e0] ss:$16 sps:$4 sm:$0xff]  }
 0x136   : > { %1935 = vmatprep.subr.bf16.mxu1 %v12929_v54  ;;  %2048 = vmatprep.subr.bf16.mxu0 %v12959_v26  ;;  %v12954_v54 = vld [vmem:[#allocation7 + $0x1c0] ss:$16 sps:$4 sm:$0xff]   ;;  %v12986_v26 = vld [vmem:[#allocation7 + $0x124] ss:$16 sps:$4 sm:$0xff]  }
 0x137   : > { %12648 = vmatmul.mubr.bf16.gmra.mxu0 %v12900_v51  ;;  %12680 = vmatmul.mubr.bf16.gmra.mxu1 %v12911_v55  ;;  %v12910_v51 = vld [vmem:[#allocation5 + $0x50] sm:$0xff]  }
 0x138   : > { %12651 = vmatprep.mubr.bf16.mxu0 %v12901_v53  ;;  %12683 = vmatprep.mubr.bf16.mxu1 %v12913_v56  ;;  %v12956_v53 = vld [vmem:[#allocation7 + $0x1c4] ss:$16 sps:$4 sm:$0xff]   ;;  %v12912_v56 = vld [vmem:[#allocation5 + $0x58] sm:$0xff]   ;;  %v12978_v20 = vld [vmem:[#allocation7 + $0x140] ss:$16 sps:$4 sm:$0xff]  }
 0x139   : > { %1936 = vmatpush1.bf16.msra.mxu1 %v12927_v57  ;;  %2049 = vmatpush1.bf16.msra.mxu0 %v12957_v29  ;;  %v12962_v55 = vld [vmem:[#allocation7 + $0x1a4] ss:$16 sps:$4 sm:$0xff]  }
 0x13a   : > { %1937 = vmatprep.subr.bf16.mxu1 %v12932_v59  ;;  %2050 = vmatprep.subr.bf16.mxu0 %v12965_v31  ;;  %v12914_v57 = vld [vmem:[#allocation5 + $0x60] sm:$0xff]  }
 0x13b   : > { %v12968_v59 = vld [vmem:[#allocation7 + $0x184] ss:$16 sps:$4 sm:$0xff]   ;;  %v12987_v31 = vld [vmem:[#allocation7 + $0x200] ss:$16 sps:$4 sm:$0xff]  }
 0x13c   : > { %v12989_v29 = vld [vmem:[#allocation7 + $0x204] ss:$16 sps:$4 sm:$0xff]  }
 0x13d   : > { %1938 = vmatpush1.bf16.msra.mxu1 %v12930_v63  ;;  %2051 = vmatpush1.bf16.msra.mxu0 %v12963_v39  ;;  %v12918_v63 = vld [vmem:[#allocation5 + $0x70] sm:$0xff]  }
 0x13e   : > { %1939 = vmatprep.subr.bf16.mxu1 %v12935_v19  ;;  %2052 = vmatprep.subr.bf16.mxu0 %v12971_v42  ;;  %v12980_v19 = vld [vmem:[#allocation7 + $0x144] ss:$16 sps:$4 sm:$0xff]  }
 0x13f   : > { %12652 = vmatmul.mubr.bf16.gmra.mxu0 %v12902_v62  ;;  %12684 = vmatmul.mubr.bf16.gmra.mxu1 %v12915_v22  ;;  %v12916_v62 = vld [vmem:[#allocation5 + $0x68] sm:$0xff]   ;;  %v12920_v22 = vld [vmem:[#allocation5 + $0x78] sm:$0xff]   ;;  %v13001_v39 = vld [vmem:[#allocation7 + $0x3c4] ss:$16 sps:$4 sm:$0xff]  }
 0x140   : > { %12655 = vmatprep.mubr.bf16.mxu0 %v12903_v18  ;;  %12687 = vmatprep.mubr.bf16.mxu1 %v12917_v24  ;;  %v12972_v18 = vld [vmem:[#allocation7 + $0x160] ss:$16 sps:$4 sm:$0xff]   ;;  %v12983_v24 = vld [vmem:[#allocation7 + $0x224] ss:$16 sps:$4 sm:$0xff]  }
 0x141   : > { %1940 = vmatpush1.bf16.msra.mxu1 %v12933_v25  ;;  %2053 = vmatpush1.bf16.msra.mxu0 %v12969_v45  ;;  %v12981_v25 = vld [vmem:[#allocation7 + $0x220] ss:$16 sps:$4 sm:$0xff]   ;;  %v13007_v42 = vld [vmem:[#allocation7 + $0x3a4] ss:$16 sps:$4 sm:$0xff]  }
 0x142   : > { %1941 = vmatprep.subr.bf16.mxu1 %v12938_v28  ;;  %2054 = vmatprep.subr.bf16.mxu0 %v12977_v46  ;;  %v12984_v28 = vld [vmem:[#allocation7 + $0x120] ss:$16 sps:$4 sm:$0xff]   ;;  %v13013_v45 = vld [vmem:[#allocation7 + $0x384] ss:$16 sps:$4 sm:$0xff]  }
 0x143   : > { %v13011_v46 = vld [vmem:[#allocation7 + $0x380] ss:$16 sps:$4 sm:$0xff]  }
 0x145   : > { %1942 = vmatpush1.bf16.msra.mxu1 %v12936_v35  ;;  %2055 = vmatpush1.bf16.msra.mxu0 %v12975_v49  ;;  %v12995_v35 = vld [vmem:[#allocation7 + $0x3e4] ss:$16 sps:$4 sm:$0xff]  }
 0x146   : > { %1943 = vmatprep.subr.bf16.mxu1 %v12941_v38  ;;  %2056 = vmatprep.subr.bf16.mxu0 %v12983_v24  ;;  %v12998_v38 = vld [vmem:[#allocation7 + $0xec] ss:$16 sps:$4 sm:$0xff]   ;;  %v13025_v49 = vld [vmem:[#allocation7 + $0x344] ss:$16 sps:$4 sm:$0xff]  }
 0x147   : > { %12656 = vmatmul.mubr.bf16.gmra.mxu0 %v12904_v32  ;;  %12688 = vmatmul.mubr.bf16.gmra.mxu1 %v12919_v33  ;;  %v12992_v32 = vld [vmem:[#allocation7 + $0x104] ss:$16 sps:$4 sm:$0xff]   ;;  %v12990_v33 = vld [vmem:[#allocation7 + $0x100] ss:$16 sps:$4 sm:$0xff]  }
 0x148   : > { %12659 = vmatprep.mubr.bf16.mxu0 %v12907_v36  ;;  %v12993_v36 = vld [vmem:[#allocation7 + $0x3e0] ss:$16 sps:$4 sm:$0xff]  }
 0x149   : > { %1944 = vmatpush1.bf16.msra.mxu1 %v12939_v41  ;;  %2057 = vmatpush1.bf16.msra.mxu0 %v12981_v25  ;;  %v12999_v41 = vld [vmem:[#allocation7 + $0x3c0] ss:$16 sps:$4 sm:$0xff]   ;;  %v13004_v25 = vld [vmem:[#allocation7 + $0xcc] ss:$16 sps:$4 sm:$0xff]  }
 0x14a   : > { %1945 = vmatprep.subr.bf16.mxu1 %v12944_v44  ;;  %2058 = vmatprep.subr.bf16.mxu0 %v12989_v29  ;;  %v13005_v44 = vld [vmem:[#allocation7 + $0x3a0] ss:$16 sps:$4 sm:$0xff]   ;;  %v13002_v29 = vld [vmem:[#allocation7 + $0xc8] ss:$16 sps:$4 sm:$0xff]  }
 0x14d   : > { %1946 = vmatpush1.bf16.msra.mxu1 %v12942_v47  ;;  %2059 = vmatpush1.bf16.msra.mxu0 %v12987_v31  ;;  %v13019_v47 = vld [vmem:[#allocation7 + $0x364] ss:$16 sps:$4 sm:$0xff]  }
 0x14e   : > { %1947 = vmatprep.subr.bf16.mxu1 %v12950_v48  ;;  %2060 = vmatprep.subr.bf16.mxu0 %v12995_v35  ;;  %v13017_v48 = vld [vmem:[#allocation7 + $0x360] ss:$16 sps:$4 sm:$0xff]   ;;  %v13008_v35 = vld [vmem:[#allocation7 + $0xa8] ss:$16 sps:$4 sm:$0xff]  }
 0x14f   : > { %12660 = vmatmul.mubr.bf16.gmra.mxu0 %v12908_v50  ;;  %v13023_v50 = vld [vmem:[#allocation7 + $0x340] ss:$16 sps:$4 sm:$0xff]  }
 0x150   : > { %12663 = vmatprep.mubr.bf16.mxu0 %v12910_v51  ;;  %v13031_v51 = vld [vmem:[#allocation7 + $0x324] ss:$16 sps:$4 sm:$0xff]  }
 0x151   : > { %1948 = vmatpush2.bf16.msra.mxu1 %v12948_v52  ;;  %2061 = vmatpush2.bf16.msra.mxu0 %v12993_v36  ;;  %v13029_v52 = vld [vmem:[#allocation7 + $0x320] ss:$16 sps:$4 sm:$0xff]  }
 0x152   : > { %1949 = vmatprep.subr.bf16.mxu1 %v12956_v53  ;;  %2062 = vmatprep.subr.bf16.mxu0 %v13001_v39  ;;  %v13037_v53 = vld [vmem:[#allocation7 + $0x304] ss:$16 sps:$4 sm:$0xff]  }
 0x155   : > { %1950 = vmatpush2.bf16.msra.mxu1 %v12954_v54  ;;  %2063 = vmatpush2.bf16.msra.mxu0 %v12999_v41  ;;  %v13035_v54 = vld [vmem:[#allocation7 + $0x300] ss:$16 sps:$4 sm:$0xff]  }
 0x156   : > { %1951 = vmatprep.subr.bf16.mxu1 %v12962_v55  ;;  %2064 = vmatprep.subr.bf16.mxu0 %v13007_v42  ;;  %v13043_v55 = vld [vmem:[#allocation7 + $0x2ec] ss:$16 sps:$4 sm:$0xff]   ;;  %v13014_v42 = vld [vmem:[#allocation7 + $0x88] ss:$16 sps:$4 sm:$0xff]  }
 0x157   : > { %12664 = vmatmul.mubr.bf16.gmra.mxu0 %v12912_v56  ;;  %v14579_v56 = vmov 0  }
 0x158   : > { %12667 = vmatprep.mubr.bf16.mxu0 %v12914_v57  ;;  %12895 = vset.pattern.permute.xlu0 %v14579_v56 }
 0x159   : > { %1952 = vmatpush2.bf16.msra.mxu1 %v12960_v58  ;;  %2065 = vmatpush2.bf16.msra.mxu0 %v13005_v44 }
 0x15a   : > { %1953 = vmatprep.subr.bf16.mxu1 %v12968_v59  ;;  %2066 = vmatprep.subr.bf16.mxu0 %v13013_v45  ;;  %v13022_v45 = vld [vmem:[#allocation7 + $0x6c] ss:$16 sps:$4 sm:$0xff]  }
 0x15b   : > { %12896 = vset.pattern.permute.xlu1 %v14579_v56  ;;  %2385 = vperm.xlu0 %12895, %v14937_v2   ;;  %v13032_v56 = vld [vmem:[#allocation7 + $0x28] ss:$16 sps:$4 sm:$0xff]  }
 0x15c   : > { %2395 = vperm.xlu1 %12896, %v14947_v4  }
 0x15d   : > { %1954 = vmatpush2.bf16.msra.mxu1 %v12966_v60  ;;  %2067 = vmatpush2.bf16.msra.mxu0 %v13011_v46 }
 0x15e   : > { %1955 = vmatprep.subr.bf16.mxu1 %v12974_v61  ;;  %2068 = vmatprep.subr.bf16.mxu0 %v13019_v47  ;;  %v13020_v47 = vld [vmem:[#allocation7 + $0x68] ss:$16 sps:$4 sm:$0xff]  }
 0x15f   : > { %12668 = vmatmul.mubr.bf16.gmra.mxu0 %v12916_v62  ;;  %2390 = vperm.xlu0 %12895, %v14942_v3  }
 0x160   : > { %12671 = vmatprep.mubr.bf16.mxu0 %v12918_v63  ;;  %2400 = vperm.xlu1 %12896, %v14952_v5  }
 0x161   : > { %1956 = vmatpush2.bf16.msra.mxu1 %v12972_v18  ;;  %2069 = vmatpush2.bf16.msra.mxu0 %v13017_v48 }
 0x162   : > { %1957 = vmatprep.subr.bf16.mxu1 %v12980_v19  ;;  %2070 = vmatprep.subr.bf16.mxu0 %v13025_v49  ;;  %v13028_v49 = vld [vmem:[#allocation7 + $0x4c] ss:$16 sps:$4 sm:$0xff]  }
 0x163   : > { %2405 = vperm.xlu0 %12895, %v14957_v6  }
 0x164   : > { %2410 = vperm.xlu1 %12896, %v14962_v7  }
 0x165   : > { %1958 = vmatpush2.bf16.msra.mxu1 %v12978_v20  ;;  %2071 = vmatpush2.bf16.msra.mxu0 %v13023_v50  ;;  %v12996_v20 = vld [vmem:[#allocation7 + $0xe8] ss:$16 sps:$4 sm:$0xff]  }
 0x166   : > { %1959 = vmatprep.subr.bf16.mxu1 %v12986_v26  ;;  %2072 = vmatprep.subr.bf16.mxu0 %v13031_v51 }
 0x167   : > { %12672 = vmatmul.mubr.bf16.gmra.mxu0 %v12920_v22  ;;  %2415 = vperm.xlu0 %12895, %v14967_v8  }
 0x168   : > { %2420 = vperm.xlu1 %12896, %v14972_v9  }
 0x169   : > { %1960 = vmatpush2.bf16.msra.mxu1 %v12984_v28  ;;  %2073 = vmatpush2.bf16.msra.mxu0 %v13029_v52  ;;  %v13026_v52 = vld [vmem:[#allocation7 + $0x48] ss:$16 sps:$4 sm:$0xff]  }
 0x16a   : > { %1961 = vmatprep.subr.bf16.mxu1 %v12992_v32  ;;  %2074 = vmatprep.subr.bf16.mxu0 %v13037_v53  ;;  %v13010_v32 = vld [vmem:[#allocation7 + $0xac] ss:$16 sps:$4 sm:$0xff]  }
 0x16b   : > { %2425 = vperm.xlu0 %12895, %v14977_v10  }
 0x16c   : > { %2430 = vperm.xlu1 %12896, %v14982_v11  }
 0x16d   : > { %1962 = vmatpush2.bf16.msra.mxu1 %v12990_v33  ;;  %2075 = vmatpush2.bf16.msra.mxu0 %v13035_v54  ;;  %v13034_v54 = vld [vmem:[#allocation7 + $0x2c] ss:$16 sps:$4 sm:$0xff]  }
 0x16e   : > { %2157 = vmatprep.subr.bf16.mxu1 %v12998_v38  ;;  %2270 = vmatprep.subr.bf16.mxu0 %v13043_v55  ;;  %v13016_v38 = vld [vmem:[#allocation7 + $0x8c] ss:$16 sps:$4 sm:$0xff]  }
 0x16f   : > { %2435 = vperm.xlu0 %12895, %v14987_v12  }
 0x170   : > { %2440 = vperm.xlu1 %12896, %v14992_v13  }
 0x173   : > { %2445 = vperm.xlu0 %12895, %v14997_v14  }
 0x174   : > { %2450 = vperm.xlu1 %12896, %v15002_v15  }
 0x177   : > { %2455 = vperm.xlu0 %12895, %v15007_v16  }
 0x178   : > { %2460 = vperm.xlu1 %12896, %v15012_v17  }
 0x1d7   : > { %v15250_v14 = vpop.permute.xlu1 %2395 }
 0x1ef   : > { %v12645_v57 = vpop.f32.mrf.mxu0  ;;  %v15074_v58 = vpop.f32.mrf.mxu1 }
 0x1f1   : > { %v1055_v59 = vpop.f32.mrf.mxu0  ;;  %v1183_v60 = vpop.f32.mrf.mxu1 }
 0x1f3   : > { %v12646_v61 = vpop.f32.mrf.mxu0  ;;  %v15078_v62 = vpop.f32.mrf.mxu1 }
 0x1f4   : > { %v15086_v26 = vpack.c.bf16 %v12646_v61, %v12645_v57 }
 0x1f5   : > { %v1058_v63 = vpop.f32.mrf.mxu0  ;;  %v1186_v18 = vpop.f32.mrf.mxu1 }
 0x1f6   : > { %v15082_v19 = vpack.c.bf16 %v1058_v63, %v1055_v59  ;;  %v15084_v22 = vpack.c.bf16 %v1186_v18, %v1183_v60  ;;  %v13040_v59 = vld [vmem:[#allocation7 + $0xc] ss:$16 sps:$4 sm:$0xff]   ;;  %v13038_v18 = vld [vmem:[#allocation7 + $0x8] ss:$16 sps:$4 sm:$0xff]  }
 0x1f7   : > { %v12649_v24 = vpop.f32.mrf.mxu0  ;;  %v15106_v60 = vpop.f32.mrf.mxu1 }
 0x1f8   : > { %1963 = vmatprep.mubr.bf16.mxu1 %v15082_v19  ;;  %2076 = vmatprep.mubr.bf16.mxu0 %v15084_v22 }
 0x1f9   : > { %v1071_v28 = vpop.f32.mrf.mxu0  ;;  %1964 = vmatmul.mubr.bf16.vlgmr.msra.gmra.mxu1 %v15055_v43 }
 0x1fa   : > { %1973 = vmatprep.mubr.bf16.mxu1 %v15086_v26  ;;  %2158 = vmatpush1.bf16.msra.mxu1 %v12996_v20 }
 0x1fb   : > { %v12650_v31 = vpop.f32.mrf.mxu0  ;;  %2159 = vmatprep.subr.bf16.mxu1 %v13004_v25  ;;  %v1199_v25 = vpop.f32.mrf.mxu1 }
 0x1fc   : > { %v15100_v50 = vpack.c.bf16 %v12650_v31, %v12649_v24  ;;  %v13046_v24 = vld [vmem:[#allocation7 + $0x1ec] ss:$16 sps:$4 sm:$0xff]  }
 0x1fd   : > { %v1074_v33 = vpop.f32.mrf.mxu0 }
 0x1fe   : > { %2160 = vmatpush1.bf16.msra.mxu1 %v13002_v29  ;;  %v15094_v39 = vpack.c.bf16 %v1074_v33, %v1071_v28  ;;  %v13041_v29 = vld [vmem:[#allocation7 + $0x2e8] ss:$16 sps:$4 sm:$0xff]  }
 0x1ff   : > { %v12653_v36 = vpop.f32.mrf.mxu0  ;;  %2161 = vmatprep.subr.bf16.mxu1 %v13010_v32  ;;  %v13044_v33 = vld [vmem:[#allocation7 + $0x1e8] ss:$16 sps:$4 sm:$0xff]  }
 0x201   : > { %v1087_v41 = vpop.f32.mrf.mxu0  ;;  %1974 = vmatmul.mubr.bf16.gmra.mxu1 %v15049_v40 }
 0x202   : > { %1983 = vmatprep.mubr.bf16.mxu1 %v15094_v39  ;;  %2162 = vmatpush1.bf16.msra.mxu1 %v13008_v35  ;;  %v13049_v35 = vld [vmem:[#allocation7 + $0x2cc] ss:$16 sps:$4 sm:$0xff]  }
 0x203   : > { %v12654_v44 = vpop.f32.mrf.mxu0  ;;  %2163 = vmatprep.subr.bf16.mxu1 %v13016_v38  ;;  %v12682_v38 = vpop.f32.mrf.mxu1 }
 0x205   : > { %v1090_v46 = vpop.f32.mrf.mxu0 }
 0x206   : > { %2164 = vmatpush1.bf16.msra.mxu1 %v13014_v42  ;;  %v15108_v61 = vpack.c.bf16 %v1090_v46, %v1087_v41  ;;  %v15116_v41 = vpack.c.bf16 %v12654_v44, %v12653_v36  ;;  %v15120_v42 = vpack.c.bf16 %v15078_v62, %v15074_v58  ;;  %v13047_v46 = vld [vmem:[#allocation7 + $0x2c8] ss:$16 sps:$4 sm:$0xff]   ;;  %v1202_v44 = vpop.f32.mrf.mxu1  ;;  %v13058_v58 = vld [vmem:[#allocation7 + $0x1ac] ss:$16 sps:$4 sm:$0xff]  }
 0x207   : > { %v15098_v48 = vpop.f32.mrf.mxu0  ;;  %2165 = vmatprep.subr.bf16.mxu1 %v13022_v45  ;;  %v13052_v45 = vld [vmem:[#allocation7 + $0x1cc] ss:$16 sps:$4 sm:$0xff]   ;;  %v13050_v36 = vld [vmem:[#allocation7 + $0x1c8] ss:$16 sps:$4 sm:$0xff]  }
 0x208   : > { %v13053_v62 = vld [vmem:[#allocation7 + $0x2a8] ss:$16 sps:$4 sm:$0xff]  }
 0x209   : > { %v1103_v51 = vpop.f32.mrf.mxu0  ;;  %1984 = vmatmul.mubr.bf16.gmra.mxu1 %v15043_v37 }
 0x20a   : > { %1993 = vmatprep.mubr.bf16.mxu1 %v15100_v50  ;;  %2166 = vmatpush1.bf16.msra.mxu1 %v13020_v47  ;;  %v13055_v47 = vld [vmem:[#allocation7 + $0x2ac] ss:$16 sps:$4 sm:$0xff]  }
 0x20b   : > { %v15104_v53 = vpop.f32.mrf.mxu0  ;;  %2167 = vmatprep.subr.bf16.mxu1 %v13028_v49 }
 0x20d   : > { %v1106_v55 = vpop.f32.mrf.mxu0 }
 0x20e   : > { %2168 = vmatpush1.bf16.msra.mxu1 %v13026_v52 }
 0x20f   : > { %v12661_v57 = vpop.f32.mrf.mxu0  ;;  %2169 = vmatprep.subr.bf16.mxu1 %v13034_v54  ;;  %v15128_v54 = vpack.c.bf16 %v1202_v44, %v1199_v25  ;;  %v15144_v44 = vpack.c.bf16 %v15104_v53, %v15098_v48  ;;  %v13074_v48 = vld [vmem:[#allocation7 + $0x148] ss:$16 sps:$4 sm:$0xff]  }
 0x211   : > { %v1119_v63 = vpop.f32.mrf.mxu0  ;;  %1994 = vmatmul.mubr.bf16.gmra.mxu1 %v15037_v34 }
 0x212   : > { %2003 = vmatprep.mubr.bf16.mxu1 %v15108_v61  ;;  %2170 = vmatpush1.bf16.msra.mxu1 %v13032_v56 }
 0x213   : > { %v12662_v20 = vpop.f32.mrf.mxu0  ;;  %2171 = vmatprep.subr.bf16.mxu1 %v13040_v59  ;;  %v13056_v59 = vld [vmem:[#allocation7 + $0x1a8] ss:$16 sps:$4 sm:$0xff]  }
 0x214   : > { %v15126_v52 = vpack.c.bf16 %v12662_v20, %v12661_v57  ;;  %v13059_v57 = vld [vmem:[#allocation7 + $0x288] ss:$16 sps:$4 sm:$0xff]   ;;  %v13067_v20 = vld [vmem:[#allocation7 + $0x26c] ss:$16 sps:$4 sm:$0xff]  }
 0x215   : > { %v1122_v28 = vpop.f32.mrf.mxu0 }
 0x216   : > { %v15112_v31 = vpack.c.bf16 %v1122_v28, %v1119_v63  ;;  %2172 = vmatpush1.bf16.msra.mxu1 %v13038_v18  ;;  %v13061_v63 = vld [vmem:[#allocation7 + $0x28c] ss:$16 sps:$4 sm:$0xff]   ;;  %v15130_v18 = vpop.f32.mrf.mxu1 }
 0x217   : > { %v15114_v32 = vpop.f32.mrf.mxu0  ;;  %2173 = vmatprep.subr.bf16.mxu1 %v13046_v24  ;;  %v15132_v24 = vpack.c.bf16 %v1106_v55, %v1103_v51  ;;  %v13064_v28 = vld [vmem:[#allocation7 + $0x18c] ss:$16 sps:$4 sm:$0xff]   ;;  %v13065_v55 = vld [vmem:[#allocation7 + $0x268] ss:$16 sps:$4 sm:$0xff]  }
 0x218   : > { %2077 = vmatmul.mubr.bf16.vlgmr.msra.gmra.mxu0 %v15112_v31  ;;  %v13070_v51 = vld [vmem:[#allocation7 + $0x16c] ss:$16 sps:$4 sm:$0xff]  }
 0x219   : > { %2271 = vmatpush1.bf16.msra.mxu0 %v13041_v29  ;;  %2004 = vmatmul.mubr.bf16.gmra.mxu1 %v15031_v30  ;;  %v1135_v49 = vpop.f32.mrf.mxu0  ;;  %v13062_v29 = vld [vmem:[#allocation7 + $0x188] ss:$16 sps:$4 sm:$0xff]  }
 0x21a   : > { %2086 = vmatprep.mubr.bf16.mxu0 %v15120_v42  ;;  %2013 = vmatprep.mubr.bf16.mxu1 %v15116_v41 }
 0x21b   : > { %2174 = vmatpush2.bf16.msra.mxu1 %v13044_v33  ;;  %2272 = vmatprep.subr.bf16.mxu0 %v13049_v35  ;;  %v12666_v56 = vpop.f32.mrf.mxu0  ;;  %v1215_v33 = vpop.f32.mrf.mxu1 }
 0x21c   : > { %2175 = vmatprep.subr.bf16.mxu1 %v13052_v45 }
 0x21d   : > { %2273 = vmatpush1.bf16.msra.mxu0 %v13047_v46  ;;  %v1138_v25 = vpop.f32.mrf.mxu0  ;;  %v13068_v46 = vld [vmem:[#allocation7 + $0x168] ss:$16 sps:$4 sm:$0xff]  }
 0x21e   : > { %2274 = vmatprep.subr.bf16.mxu0 %v13055_v47  ;;  %v15138_v35 = vpack.c.bf16 %v1138_v25, %v1135_v49  ;;  %v13073_v47 = vld [vmem:[#allocation7 + $0x24c] ss:$16 sps:$4 sm:$0xff]   ;;  %v13071_v49 = vld [vmem:[#allocation7 + $0x248] ss:$16 sps:$4 sm:$0xff]  }
 0x21f   : > { %2176 = vmatpush2.bf16.msra.mxu1 %v13050_v36  ;;  %v15140_v45 = vpop.f32.mrf.mxu0  ;;  %v12686_v36 = vpop.f32.mrf.mxu1 }
 0x220   : > { %2087 = vmatmul.mubr.bf16.gmra.mxu0 %v15126_v52  ;;  %2177 = vmatprep.subr.bf16.mxu1 %v13058_v58  ;;  %v15147_v58 = vpack.c.bf16 %v12682_v38, %v15106_v60  ;;  %v13082_v60 = vld [vmem:[#allocation7 + $0x12c] ss:$16 sps:$4 sm:$0xff]   ;;  %v13077_v38 = vld [vmem:[#allocation7 + $0x228] ss:$16 sps:$4 sm:$0xff]  }
 0x221   : > { %2275 = vmatpush1.bf16.msra.mxu0 %v13053_v62  ;;  %2014 = vmatmul.mubr.bf16.gmra.mxu1 %v15025_v27  ;;  %v13076_v62 = vld [vmem:[#allocation7 + $0x14c] ss:$16 sps:$4 sm:$0xff]   ;;  %v1218_v53 = vpop.f32.mrf.mxu1 }
 0x222   : > { %2096 = vmatprep.mubr.bf16.mxu0 %v15128_v54  ;;  %2023 = vmatprep.mubr.bf16.mxu1 %v15132_v24 }
 0x223   : > { %2178 = vmatpush2.bf16.msra.mxu1 %v13056_v59  ;;  %2276 = vmatprep.subr.bf16.mxu0 %v13061_v63  ;;  %v13079_v59 = vld [vmem:[#allocation7 + $0x22c] ss:$16 sps:$4 sm:$0xff]   ;;  %v1151_v63 = vpop.f32.mrf.mxu0 }
 0x224   : > { %2179 = vmatprep.subr.bf16.mxu1 %v13064_v28  ;;  %v15154_v28 = vpack.c.bf16 %v12666_v56, %v15114_v32  ;;  %v13091_v32 = vld [vmem:[#allocation7 + $0x3ec] ss:$16 sps:$4 sm:$0xff]  }
 0x225   : > { %2277 = vmatpush1.bf16.msra.mxu0 %v13059_v57  ;;  %v15156_v57 = vpack.c.bf16 %v1218_v53, %v1215_v33  ;;  %v12670_v25 = vpop.f32.mrf.mxu0  ;;  %v15165_v53 = vpack.c.bf16 %v12686_v36, %v15130_v18  ;;  %v13095_v18 = vld [vmem:[#allocation7 + $0x3a8] ss:$16 sps:$4 sm:$0xff]  }
 0x226   : > { %2278 = vmatprep.subr.bf16.mxu0 %v13067_v20  ;;  %v12689_v20 = vpop.f32.mrf.mxu1  ;;  %v1259_v36 = vpack.c.bf16 %v12670_v25, %v15140_v45  ;;  %v13104_v25 = vld [vmem:[#allocation7 + $0x348] ss:$16 sps:$4 sm:$0xff]  }
 0x227   : > { %2180 = vmatpush2.bf16.msra.mxu1 %v13062_v29  ;;  %v13080_v29 = vld [vmem:[#allocation7 + $0x128] ss:$16 sps:$4 sm:$0xff]   ;;  %v1154_v33 = vpop.f32.mrf.mxu0 }
 0x228   : > { %2097 = vmatmul.mubr.bf16.gmra.mxu0 %v15138_v35  ;;  %2181 = vmatprep.subr.bf16.mxu1 %v13070_v51  ;;  %v13085_v51 = vld [vmem:[#allocation7 + $0x20c] ss:$16 sps:$4 sm:$0xff]   ;;  %v1231_v56 = vpop.f32.mrf.mxu1 }
 0x229   : > { %2279 = vmatpush1.bf16.msra.mxu0 %v13065_v55  ;;  %2024 = vmatmul.mubr.bf16.gmra.mxu1 %v15018_v23  ;;  %v13088_v55 = vld [vmem:[#allocation7 + $0x10c] ss:$16 sps:$4 sm:$0xff]  }
 0x22a   : > { %2106 = vmatprep.mubr.bf16.mxu0 %v15147_v58  ;;  %2033 = vmatprep.mubr.bf16.mxu1 %v15144_v44 }
 0x22b   : > { %2182 = vmatpush2.bf16.msra.mxu1 %v13068_v46  ;;  %2280 = vmatprep.subr.bf16.mxu0 %v13073_v47  ;;  %v13083_v46 = vld [vmem:[#allocation7 + $0x208] ss:$16 sps:$4 sm:$0xff]  }
 0x22c   : > { %2183 = vmatprep.subr.bf16.mxu1 %v13076_v62  ;;  %v13086_v47 = vld [vmem:[#allocation7 + $0x108] ss:$16 sps:$4 sm:$0xff]  }
 0x22d   : > { %2281 = vmatpush1.bf16.msra.mxu0 %v13071_v49  ;;  %v13089_v62 = vld [vmem:[#allocation7 + $0x3e8] ss:$16 sps:$4 sm:$0xff]   ;;  %v15162_v49 = vpack.c.bf16 %v1154_v33, %v1151_v63  ;;  %v13097_v63 = vld [vmem:[#allocation7 + $0x3ac] ss:$16 sps:$4 sm:$0xff]  }
 0x22e   : > { %2282 = vmatprep.subr.bf16.mxu0 %v13079_v59  ;;  %v13094_v59 = vld [vmem:[#allocation7 + $0x3cc] ss:$16 sps:$4 sm:$0xff]  }
 0x22f   : > { %2184 = vmatpush2.bf16.msra.mxu1 %v13074_v48  ;;  %v12690_v48 = vpop.f32.mrf.mxu1 }
 0x230   : > { %2107 = vmatmul.mubr.bf16.gmra.mxu0 %v15154_v28  ;;  %2185 = vmatprep.subr.bf16.mxu1 %v13082_v60  ;;  %v12673_v60 = vpop.f32.mrf.mxu0  ;;  %v1269_v45 = vpack.c.bf16 %v12690_v48, %v12689_v20  ;;  %v13110_v20 = vld [vmem:[#allocation7 + $0x308] ss:$16 sps:$4 sm:$0xff]  }
 0x231   : > { %2283 = vmatpush1.bf16.msra.mxu0 %v13077_v38  ;;  %2034 = vmatmul.mubr.bf16.gmra.mxu1 %v15016_v21  ;;  %v1234_v38 = vpop.f32.mrf.mxu1 }
 0x232   : > { %2116 = vmatprep.mubr.bf16.mxu0 %v15156_v57  ;;  %2189 = vmatprep.mubr.bf16.mxu1 %v15082_v19  ;;  %v13092_v19 = vld [vmem:[#allocation7 + $0x3c8] ss:$16 sps:$4 sm:$0xff]  }
 0x233   : > { %2186 = vmatpush2.bf16.msra.mxu1 %v13080_v29  ;;  %2284 = vmatprep.subr.bf16.mxu0 %v13085_v51  ;;  %v1167_v29 = vpop.f32.mrf.mxu0  ;;  %v1268_v51 = vpack.c.bf16 %v1234_v38, %v1231_v56  ;;  %v820_v38 = vld [vmem:[#allocation8] sm:$0xf] }
 0x234   : > { %2187 = vmatprep.subr.bf16.mxu1 %v13088_v55  ;;  %v13100_v55 = vld [vmem:[#allocation7 + $0x38c] ss:$16 sps:$4 sm:$0xff]  }
 0x235   : > { %2285 = vmatpush1.bf16.msra.mxu0 %v13083_v46  ;;  %v12674_v46 = vpop.f32.mrf.mxu0 }
 0x236   : > { %2286 = vmatprep.subr.bf16.mxu0 %v13091_v32  ;;  %v13098_v32 = vld [vmem:[#allocation7 + $0x388] ss:$16 sps:$4 sm:$0xff]  }
 0x237   : > { %2188 = vmatpush2.bf16.msra.mxu1 %v13086_v47  ;;  %v1170_v33 = vpop.f32.mrf.mxu0  ;;  %v13106_v47 = vld [vmem:[#allocation7 + $0x34c] ss:$16 sps:$4 sm:$0xff]  }
 0x238   : > { %2117 = vmatmul.mubr.bf16.gmra.mxu0 %v15162_v49  ;;  %v1260_v56 = vpack.c.bf16 %v1170_v33, %v1167_v29 }
 0x239   : > { %2287 = vmatpush2.bf16.msra.mxu0 %v13089_v62  ;;  %2126 = vmatprep.mubr.bf16.mxu0 %v15165_v53  ;;  %v13109_v62 = vld [vmem:[#allocation7 + $0x32c] ss:$16 sps:$4 sm:$0xff]  }
 0x23a   : > { %2190 = vmatmul.mubr.bf16.vlgmr.msra.gmra.mxu1 %v15055_v43  ;;  %2288 = vmatprep.subr.bf16.mxu0 %v13094_v59  ;;  %v13103_v43 = vld [vmem:[#allocation7 + $0x36c] ss:$16 sps:$4 sm:$0xff]   ;;  %v1261_v59 = vpack.c.bf16 %v12674_v46, %v12673_v60  ;;  %v15216_v46 = vpop.permute.xlu0 %2385 }
 0x23b   : > { %2199 = vmatprep.mubr.bf16.mxu1 %v15086_v26  ;;  %v13101_v26 = vld [vmem:[#allocation7 + $0x368] ss:$16 sps:$4 sm:$0xff]  }
 0x23d   : > { %2289 = vmatpush2.bf16.msra.mxu0 %v13092_v19 }
 0x23e   : > { %2290 = vmatprep.subr.bf16.mxu0 %v13097_v63 }
 0x240   : > { %2127 = vmatmul.mubr.bf16.gmra.mxu0 %v1259_v36 }
 0x241   : > { %2291 = vmatpush2.bf16.msra.mxu0 %v13095_v18  ;;  %2136 = vmatprep.mubr.bf16.mxu0 %v1268_v51 }
 0x242   : > { %2200 = vmatmul.mubr.bf16.gmra.mxu1 %v15049_v40  ;;  %2292 = vmatprep.subr.bf16.mxu0 %v13100_v55  ;;  %v13107_v40 = vld [vmem:[#allocation7 + $0x328] ss:$16 sps:$4 sm:$0xff]  }
 0x243   : > { %2209 = vmatprep.mubr.bf16.mxu1 %v15094_v39  ;;  %v13112_v39 = vld [vmem:[#allocation7 + $0x30c] ss:$16 sps:$4 sm:$0xff]  }
 0x245   : > { %2293 = vmatpush2.bf16.msra.mxu0 %v13098_v32 }
 0x246   : > { %2294 = vmatprep.subr.bf16.mxu0 %v13103_v43 }
 0x248   : > { %2137 = vmatmul.mubr.bf16.gmra.mxu0 %v1260_v56 }
 0x249   : > { %2295 = vmatpush2.bf16.msra.mxu0 %v13101_v26  ;;  %2146 = vmatprep.mubr.bf16.mxu0 %v1269_v45 }
 0x24a   : > { %2210 = vmatmul.mubr.bf16.gmra.mxu1 %v15043_v37  ;;  %2296 = vmatprep.subr.bf16.mxu0 %v13106_v47 }
 0x24b   : > { %2219 = vmatprep.mubr.bf16.mxu1 %v15100_v50 }
 0x24d   : > { %2297 = vmatpush2.bf16.msra.mxu0 %v13104_v25 }
 0x24e   : > { %2298 = vmatprep.subr.bf16.mxu0 %v13109_v62 }
 0x250   : > { %2147 = vmatmul.mubr.bf16.gmra.mxu0 %v1261_v59 }
 0x251   : > { %2299 = vmatpush2.bf16.msra.mxu0 %v13107_v40  ;;  %2302 = vmatprep.mubr.bf16.mxu0 %v15084_v22 }
 0x252   : > { %2220 = vmatmul.mubr.bf16.gmra.mxu1 %v15037_v34  ;;  %2300 = vmatprep.subr.bf16.mxu0 %v13112_v39 }
 0x253   : > { %2229 = vmatprep.mubr.bf16.mxu1 %v15108_v61 }
 0x255   : > { %2301 = vmatpush2.bf16.msra.mxu0 %v13110_v20 }
 0x258   : > { %2303 = vmatmul.mubr.bf16.vlgmr.msra.gmra.mxu0 %v15112_v31 }
 0x259   : > { %2312 = vmatprep.mubr.bf16.mxu0 %v15120_v42 }
 0x25a   : > { %2230 = vmatmul.mubr.bf16.gmra.mxu1 %v15031_v30 }
 0x25b   : > { %2239 = vmatprep.mubr.bf16.mxu1 %v15116_v41 }
 0x260   : > { %2313 = vmatmul.mubr.bf16.gmra.mxu0 %v15126_v52 }
 0x261   : > { %2322 = vmatprep.mubr.bf16.mxu0 %v15128_v54 }
 0x262   : > { %2240 = vmatmul.mubr.bf16.gmra.mxu1 %v15025_v27 }
 0x263   : > { %2249 = vmatprep.mubr.bf16.mxu1 %v15132_v24  ;;  %v1271_v24 = vlaneseq }
 0x268   : > { %2323 = vmatmul.mubr.bf16.gmra.mxu0 %v15138_v35 }
 0x269   : > { %2332 = vmatprep.mubr.bf16.mxu0 %v15147_v58 }
 0x26a   : > { %2250 = vmatmul.mubr.bf16.gmra.mxu1 %v15018_v23 }
 0x26b   : > { %2259 = vmatprep.mubr.bf16.mxu1 %v15144_v44 }
 0x270   : > { %2333 = vmatmul.mubr.bf16.gmra.mxu0 %v15154_v28  ;;  %v1272_v28 = vshrl.u32 %v1271_v24, 7 }
 0x271   : > { %2342 = vmatprep.mubr.bf16.mxu0 %v15156_v57 }
 0x272   : > { %2260 = vmatmul.mubr.bf16.gmra.mxu1 %v15016_v21  ;;  %v1273_v60 = vsub.s32 0, %v1272_v28  ;;  %v15226_v62 = vsub.s32 2, %v1272_v28  ;;  %v15228_v40 = vsub.s32 3, %v1272_v28 }
 0x274   : > { %20287 = vst [vmem:[#allocation49_spill] sm:$0xff] %v15226_v62  ;;  %20288 = vst [vmem:[#allocation50_spill] sm:$0xff] %v15228_v40  ;;  %v15243_v15 = vrot.slane %v14932_v1, %v1273_v60  ;;  %v15259_v13 = vrot.slane %v820_v38, %v15226_v62 }
 0x276   : > { %20290 = vst [vmem:[#allocation52_spill] sm:$0xff] %v15243_v15  ;;  %20293 = vst [vmem:[#allocation55_spill] sm:$0xff] %v15259_v13 }
 0x278   : > { %2343 = vmatmul.mubr.bf16.gmra.mxu0 %v15162_v49 }
 0x279   : > { %2352 = vmatprep.mubr.bf16.mxu0 %v15165_v53 }
 0x280   : > { %2353 = vmatmul.mubr.bf16.gmra.mxu0 %v1259_v36  ;;  %v15212_v36 = vrot.slane %v820_v38, %v1273_v60 }
 0x281   : > { %2362 = vmatprep.mubr.bf16.mxu0 %v1268_v51  ;;  %v1277_v51 = vsub.s32 1, %v1272_v28 }
 0x283   : > { %v15220_v33 = vrot.slane %v820_v38, %v1277_v51  ;;  %v15246_v28 = vrot.slane %v14932_v1, %v1277_v51 }
 0x285   : > { %20291 = vst [vmem:[#allocation53_spill] sm:$0xff] %v15246_v28 }
 0x288   : > { %2363 = vmatmul.mubr.bf16.gmra.mxu0 %v1260_v56 }
 0x289   : > { %2372 = vmatprep.mubr.bf16.mxu0 %v1269_v45 }
 0x290   : > { %2373 = vmatmul.mubr.bf16.gmra.mxu0 %v1261_v59 }
 0x2b9   : > { %v1965_v27 = vpop.f32.mrf.mxu1 }
 0x2ba   : > { %v1966_v56 = vadd.f32 %v1965_v27, %v15212_v36  ;;  %v15237_v27 = vpop.permute.xlu0 %2390 }
 0x2bb   : > { %v1967_v30 = vpop.f32.mrf.mxu1 }
 0x2bc   : > { %v1968_v20 = vadd.f32 %v1967_v30, %v15220_v33 }
 0x2bd   : > { %v1969_v23 = vpop.f32.mrf.mxu1 }
 0x2be   : > { %v1970_v45 = vadd.f32 %v1969_v23, %v15212_v36  ;;  %v15240_v23 = vrot.slane %v14930_v0, %v1273_v60  ;;  %v15262_v60 = vrot.slane %v820_v38, %v15228_v40  ;;  %v15334_v2 = vpop.permute.xlu0 %2405 }
 0x2bf   : > { %v1971_v34 = vpop.f32.mrf.mxu1  ;;  %20298 = vst [vmem:[#allocation60_spill] sm:$0xff] %v15334_v2 }
 0x2c0   : > { %v1972_v24 = vadd.f32 %v1971_v34, %v15220_v33  ;;  %20289 = vst [vmem:[#allocation51_spill] sm:$0xff] %v15240_v23 }
 0x2c1   : > { %v1975_v37 = vpop.f32.mrf.mxu1 }
 0x2c2   : > { %v1976_v59 = vadd.f32 %v1975_v37, %v15212_v36 }
 0x2c3   : > { %v1977_v22 = vpop.f32.mrf.mxu1 }
 0x2c4   : > { %v1978_v12 = vadd.f32 %v1977_v22, %v15220_v33 }
 0x2c5   : > { %v1979_v50 = vpop.f32.mrf.mxu1 }
 0x2c7   : > { %v1981_v61 = vpop.f32.mrf.mxu1 }
 0x2c9   : > { %v1985_v31 = vpop.f32.mrf.mxu1 }
 0x2cb   : > { %v1987_v41 = vpop.f32.mrf.mxu1 }
 0x2cd   : > { %v1989_v21 = vpop.f32.mrf.mxu1 }
 0x2ce   : > { %v1990_v38 = vadd.f32 %v1989_v21, %v15212_v36 }
 0x2cf   : > { %v1991_v42 = vpop.f32.mrf.mxu1 }
 0x2d1   : > { %v15196_v52 = vpop.f32.mrf.mxu1 }
 0x2d2   : > { %v1996_v9 = vadd.f32 %v15196_v52, %v15212_v36 }
 0x2d3   : > { %v15198_v54 = vpop.f32.mrf.mxu1 }
 0x2d5   : > { %v15200_v35 = vpop.f32.mrf.mxu1 }
 0x2d6   : > { %v2000_v7 = vadd.f32 %v15200_v35, %v15212_v36 }
 0x2d7   : > { %v15202_v44 = vpop.f32.mrf.mxu1 }
 0x2d8   : > { %v2078_v58 = vpop.f32.mrf.mxu0  ;;  %v15309_v52 = vadd.f32 %v15202_v44, %v15220_v33 }
 0x2d9   : > { %v15204_v57 = vpop.f32.mrf.mxu1  ;;  %v15248_v37 = vadd.f32 %v2078_v58, %v1966_v56  ;;  %v1980_v58 = vadd.f32 %v1979_v50, %v15212_v36  ;;  %v1982_v56 = vadd.f32 %v1981_v61, %v15220_v33  ;;  %v1992_v61 = vadd.f32 %v1991_v42, %v15220_v33 }
 0x2da   : > { %v2080_v49 = vpop.f32.mrf.mxu0 }
 0x2db   : > { %v15206_v48 = vpop.f32.mrf.mxu1  ;;  %v15254_v34 = vadd.f32 %v2080_v49, %v1968_v20  ;;  %v1988_v20 = vadd.f32 %v1987_v41, %v15220_v33  ;;  %v2463_v22 = vmul.f32 %v15216_v46, %v15248_v37 }
 0x2dc   : > { %v2082_v53 = vpop.f32.mrf.mxu0 }
 0x2dd   : > { %v15208_v19 = vpop.f32.mrf.mxu1  ;;  %v15235_v17 = vadd.f32 %v2082_v53, %v1970_v45 }
 0x2de   : > { %v2084_v63 = vpop.f32.mrf.mxu0  ;;  %v15326_v44 = vadd.f32 %v15208_v19, %v15212_v36 }
 0x2df   : > { %v15210_v29 = vpop.f32.mrf.mxu1  ;;  %v15256_v53 = vadd.f32 %v2084_v63, %v1972_v24  ;;  %v2467_v49 = vmul.f32 %v15237_v27, %v15235_v17  ;;  %v1986_v63 = vadd.f32 %v1985_v31, %v15212_v36  ;;  %v2464_v31 = vmul.f32 %v15216_v46, %v15254_v34 }
 0x2e0   : > { %v2088_v18 = vpop.f32.mrf.mxu0 }
 0x2e1   : > { %v15214_v55 = vpop.f32.mrf.mxu1  ;;  %20292 = vst [vmem:[#allocation54_spill] sm:$0xff] %v15256_v53  ;;  %v15267_v11 = vadd.f32 %v2088_v18, %v1976_v59  ;;  %v15284_v59 = vrot.slane %v14930_v0, %v1277_v51  ;;  %v2468_v41 = vmul.f32 %v15237_v27, %v15256_v53  ;;  %v1998_v51 = vadd.f32 %v15198_v54, %v15220_v33 }
 0x2e2   : > { %v2090_v32 = vpop.f32.mrf.mxu0  ;;  %v2611_v54 = vmul.f32 %v2463_v22, %v15248_v37 }
 0x2e3   : > { %v15218_v43 = vpop.f32.mrf.mxu1  ;;  %v15278_v50 = vadd.f32 %v2090_v32, %v1978_v12  ;;  %20295 = vst [vmem:[#allocation57_spill] sm:$0xff] %v15284_v59  ;;  %v2471_v42 = vmul.f32 %v15250_v14, %v15267_v11  ;;  %v15296_v32 = vpop.permute.xlu1 %2400  ;;  %v2616_v4 = vmul.f32 %v2468_v41, %v15256_v53  ;;  %v2548_v59 = vadd.f32 %v2468_v41, %v2464_v31 }
 0x2e4   : > { %v2092_v26 = vpop.f32.mrf.mxu0  ;;  %20296 = vst [vmem:[#allocation58_spill] sm:$0xff] %v15296_v32  ;;  %v15351_v53 = vadd.f32 %v15214_v55, %v15212_v36 }
 0x2e5   : > { %v15223_v47 = vpop.f32.mrf.mxu1  ;;  %20294 = vst [vmem:[#allocation56_spill] sm:$0xff] %v15278_v50  ;;  %v15290_v21 = vadd.f32 %v2092_v26, %v1980_v58  ;;  %v2615_v26 = vmul.f32 %v2467_v49, %v15235_v17  ;;  %v15313_v58 = vadd.f32 %v15204_v57, %v15212_v36  ;;  %v2472_v35 = vmul.f32 %v15250_v14, %v15278_v50 }
 0x2e6   : > { %v2094_v25 = vpop.f32.mrf.mxu0  ;;  %v2612_v57 = vmul.f32 %v2464_v31, %v15254_v34  ;;  %v2619_v19 = vmul.f32 %v2471_v42, %v15267_v11 }
 0x2e7   : > { %v15231_v39 = vpop.f32.mrf.mxu1  ;;  %v15298_v8 = vadd.f32 %v2094_v25, %v1982_v56  ;;  %v15317_v56 = vadd.f32 %v15206_v48, %v15220_v33  ;;  %v2475_v48 = vmul.f32 %v15296_v32, %v15290_v21  ;;  %v2675_v28 = vadd.f32 %v2615_v26, %v2611_v54 }
 0x2e8   : > { %v2098_v16 = vpop.f32.mrf.mxu0  ;;  %v15369_v26 = vadd.f32 %v15223_v47, %v15212_v36  ;;  %v15384_v47 = vadd.f32 %v15231_v39, %v15220_v33 }
 0x2e9   : > { %v15252_v30 = vpop.f32.mrf.mxu1  ;;  %20297 = vst [vmem:[#allocation59_spill] sm:$0xff] %v15298_v8  ;;  %v15322_v5 = vadd.f32 %v2098_v16, %v1986_v63  ;;  %v15338_v16 = vadd.f32 %v15210_v29, %v15220_v33  ;;  %v2527_v63 = vadd.f32 %v2467_v49, %v2463_v22  ;;  %v2476_v40 = vmul.f32 %v15296_v32, %v15298_v8  ;;  %v15356_v22 = vpop.permute.xlu1 %2410 }
 0x2ea   : > { %v2100_v45 = vpop.f32.mrf.mxu0  ;;  %v2620_v29 = vmul.f32 %v2472_v35, %v15278_v50  ;;  %20300 = vst [vmem:[#allocation62_spill] sm:$0xff] %v15356_v22  ;;  %v2623_v55 = vmul.f32 %v2475_v48, %v15290_v21  ;;  %v2676_v54 = vadd.f32 %v2675_v28, %v2619_v19  ;;  %v2549_v50 = vadd.f32 %v2548_v59, %v2472_v35 }
 0x2eb   : > { %v15269_v10 = vpop.f32.mrf.mxu1  ;;  %v15343_v1 = vadd.f32 %v2100_v45, %v1988_v20  ;;  %v2479_v49 = vmul.f32 %v15334_v2, %v15322_v5  ;;  %v15362_v20 = vadd.f32 %v15218_v43, %v15220_v33  ;;  %v2528_v31 = vadd.f32 %v2527_v63, %v2471_v42 }
 0x2ec   : > { %v2102_v24 = vpop.f32.mrf.mxu0  ;;  %v2624_v32 = vmul.f32 %v2476_v40, %v15298_v8  ;;  %v15391_v59 = vadd.f32 %v15252_v30, %v15212_v36  ;;  %v2550_v35 = vadd.f32 %v2549_v50, %v2476_v40  ;;  %v15406_v30 = vadd.f32 %v15269_v10, %v15220_v33 }
 0x2ed   : > { %v15281_v18 = vpop.f32.mrf.mxu1  ;;  %20299 = vst [vmem:[#allocation61_spill] sm:$0xff] %v15343_v1  ;;  %v15347_v15 = vadd.f32 %v2102_v24, %v1990_v38  ;;  %v2696_v24 = vadd.f32 %v2616_v4, %v2612_v57  ;;  %v2529_v4 = vadd.f32 %v2528_v31, %v2475_v48  ;;  %v15380_v57 = vpop.permute.xlu0 %2415  ;;  %v2627_v19 = vmul.f32 %v2479_v49, %v15322_v5 }
 0x2ee   : > { %v2104_v12 = vpop.f32.mrf.mxu0  ;;  %20302 = vst [vmem:[#allocation64_spill] sm:$0xff] %v15380_v57  ;;  %v15414_v50 = vadd.f32 %v15281_v18, %v15212_v36 }
 0x2ef   : > { %v15304_v6 = vpop.f32.mrf.mxu1  ;;  %v15358_v45 = vadd.f32 %v2104_v12, %v1992_v61  ;;  %v2480_v61 = vmul.f32 %v15334_v2, %v15343_v1  ;;  %v2483_v42 = vmul.f32 %v15356_v22, %v15347_v15  ;;  %v2697_v28 = vadd.f32 %v2696_v24, %v2620_v29 }
 0x2f0   : > { %v2108_v25 = vpop.f32.mrf.mxu0  ;;  %v2530_v40 = vadd.f32 %v2529_v4, %v2479_v49 }
 0x2f1   : > { %v15328_v3 = vpop.f32.mrf.mxu1  ;;  %20301 = vst [vmem:[#allocation63_spill] sm:$0xff] %v15358_v45  ;;  %v15374_v12 = vadd.f32 %v2108_v25, %v1996_v9  ;;  %v2484_v9 = vmul.f32 %v15356_v22, %v15358_v45  ;;  %v2677_v25 = vadd.f32 %v2676_v54, %v2623_v55  ;;  %v2698_v39 = vadd.f32 %v2697_v28, %v2624_v32  ;;  %v15402_v22 = vpop.permute.xlu1 %2420 }
 0x2f2   : > { %v2110_v0 = vpop.f32.mrf.mxu0  ;;  %v2628_v29 = vmul.f32 %v2480_v61, %v15343_v1  ;;  %20304 = vst [vmem:[#allocation66_spill] sm:$0xff] %v15402_v22  ;;  %v2551_v55 = vadd.f32 %v2550_v35, %v2480_v61  ;;  %v15422_v49 = vpop.permute.xlu0 %2425  ;;  %v2531_v4 = vadd.f32 %v2530_v40, %v2483_v42  ;;  %v15430_v28 = vadd.f32 %v15304_v6, %v15220_v33 }
 0x2f3   : > { %v15345_v62 = vpop.f32.mrf.mxu1  ;;  %v15393_v48 = vadd.f32 %v2110_v0, %v1998_v51  ;;  %v2487_v24 = vmul.f32 %v15380_v57, %v15374_v12  ;;  %v2631_v0 = vmul.f32 %v2483_v42, %v15347_v15  ;;  %v2678_v51 = vadd.f32 %v2677_v25, %v2627_v19  ;;  %20306 = vst [vmem:[#allocation68_spill] sm:$0xff] %v15422_v49 }
 0x2f4   : > { %v2112_v23 = vpop.f32.mrf.mxu0  ;;  %v2632_v54 = vmul.f32 %v2484_v9, %v15358_v45  ;;  %v2699_v19 = vadd.f32 %v2698_v39, %v2628_v29  ;;  %v2552_v40 = vadd.f32 %v2551_v55, %v2484_v9  ;;  %v15447_v45 = vadd.f32 %v15328_v3, %v15212_v36 }
 0x2f5   : > { %v15364_v38 = vpop.f32.mrf.mxu1  ;;  %20303 = vst [vmem:[#allocation65_spill] sm:$0xff] %v15393_v48  ;;  %v15395_v31 = vadd.f32 %v2112_v23, %v2000_v7  ;;  %v15441_v25 = vpop.permute.xlu1 %2430  ;;  %v2679_v35 = vadd.f32 %v2678_v51, %v2631_v0  ;;  %v2532_v9 = vadd.f32 %v2531_v4, %v2487_v24 }
 0x2f6   : > { %v2114_v41 = vpop.f32.mrf.mxu0  ;;  %20308 = vst [vmem:[#allocation70_spill] sm:$0xff] %v15441_v25  ;;  %v2700_v29 = vadd.f32 %v2699_v19, %v2632_v54 }
 0x2f7   : > { %v15376_v43 = vpop.f32.mrf.mxu1  ;;  %v15410_v7 = vadd.f32 %v2114_v41, %v15309_v52  ;;  %v2488_v52 = vmul.f32 %v15380_v57, %v15393_v48  ;;  %v2491_v41 = vmul.f32 %v15402_v22, %v15395_v31 }
 0x2f8   : > { %v2118_v63 = vpop.f32.mrf.mxu0 }
 0x2f9   : > { %20305 = vst [vmem:[#allocation67_spill] sm:$0xff] %v15410_v7  ;;  %v15420_v10 = vadd.f32 %v2118_v63, %v15313_v58  ;;  %v2635_v58 = vmul.f32 %v2487_v24, %v15374_v12  ;;  %v2492_v57 = vmul.f32 %v15402_v22, %v15410_v7  ;;  %v2636_v0 = vmul.f32 %v2488_v52, %v15393_v48 }
 0x2fa   : > { %v2120_v2 = vpop.f32.mrf.mxu0  ;;  %v15397_v8 = vpop.f32.mrf.mxu1  ;;  %v2553_v24 = vadd.f32 %v2552_v40, %v2488_v52 }
 0x2fb   : > { %v15436_v63 = vadd.f32 %v2120_v2, %v15317_v56  ;;  %v2495_v2 = vmul.f32 %v15422_v49, %v15420_v10  ;;  %v2680_v54 = vadd.f32 %v2679_v35, %v2635_v58  ;;  %v2640_v4 = vmul.f32 %v2492_v57, %v15410_v7 }
 0x2fc   : > { %v2122_v23 = vpop.f32.mrf.mxu0  ;;  %v15416_v32 = vpop.f32.mrf.mxu1  ;;  %v15479_v58 = vadd.f32 %v15376_v43, %v15220_v33  ;;  %v2701_v52 = vadd.f32 %v2700_v29, %v2636_v0  ;;  %v2554_v40 = vadd.f32 %v2553_v24, %v2492_v57 }
 0x2fd   : > { %20307 = vst [vmem:[#allocation69_spill] sm:$0xff] %v15436_v63  ;;  %v15439_v42 = vadd.f32 %v2122_v23, %v15326_v44  ;;  %v15456_v44 = vadd.f32 %v15345_v62, %v15220_v33  ;;  %v2639_v23 = vmul.f32 %v2491_v41, %v15395_v31  ;;  %v2496_v19 = vmul.f32 %v15422_v49, %v15436_v63 }
 0x2fe   : > { %v2124_v18 = vpop.f32.mrf.mxu0  ;;  %v15432_v61 = vpop.f32.mrf.mxu1  ;;  %v15471_v62 = vadd.f32 %v15364_v38, %v15212_v36  ;;  %v2533_v49 = vadd.f32 %v2532_v9, %v2491_v41  ;;  %v2643_v22 = vmul.f32 %v2495_v2, %v15420_v10 }
 0x2ff   : > { %v15452_v56 = vadd.f32 %v2124_v18, %v15338_v16  ;;  %v2499_v16 = vmul.f32 %v15441_v25, %v15439_v42  ;;  %v15467_v18 = vpop.permute.xlu0 %2435  ;;  %v15487_v38 = vpop.permute.xlu1 %2440  ;;  %v2644_v41 = vmul.f32 %v2496_v19, %v15436_v63 }
 0x300   : > { %v2128_v6 = vpop.f32.mrf.mxu0  ;;  %v2197_v39 = vpop.f32.mrf.mxu1  ;;  %20310 = vst [vmem:[#allocation72_spill] sm:$0xff] %v15467_v18  ;;  %20312 = vst [vmem:[#allocation74_spill] sm:$0xff] %v15487_v38  ;;  %v2534_v29 = vadd.f32 %v2533_v49, %v2495_v2  ;;  %v2555_v49 = vadd.f32 %v2554_v40, %v2496_v19 }
 0x301   : > { %20309 = vst [vmem:[#allocation71_spill] sm:$0xff] %v15452_v56  ;;  %v15461_v3 = vadd.f32 %v2128_v6, %v15351_v53  ;;  %v2500_v48 = vmul.f32 %v15441_v25, %v15452_v56  ;;  %v2647_v9 = vmul.f32 %v2499_v16, %v15439_v42 }
 0x302   : > { %v2130_v51 = vpop.f32.mrf.mxu0  ;;  %v2201_v55 = vpop.f32.mrf.mxu1  ;;  %v2535_v2 = vadd.f32 %v2534_v29, %v2499_v16 }
 0x303   : > { %v15475_v53 = vadd.f32 %v2130_v51, %v15362_v20  ;;  %v2681_v20 = vadd.f32 %v2680_v54, %v2639_v23  ;;  %v2503_v51 = vmul.f32 %v15467_v18, %v15461_v3  ;;  %v15504_v23 = vadd.f32 %v15416_v32, %v15262_v60  ;;  %v15521_v63 = vpop.permute.xlu1 %2450 }
 0x304   : > { %v2132_v6 = vpop.f32.mrf.mxu0  ;;  %v2203_v35 = vpop.f32.mrf.mxu1  ;;  %v2648_v25 = vmul.f32 %v2500_v48, %v15452_v56  ;;  %v15517_v32 = vadd.f32 %v15432_v61, %v15259_v13  ;;  %20315 = vst [vmem:[#allocation77_spill] sm:$0xff] %v15521_v63  ;;  %v2556_v19 = vadd.f32 %v2555_v49, %v2500_v48 }
 0x305   : > { %20311 = vst [vmem:[#allocation73_spill] sm:$0xff] %v15475_v53  ;;  %v15485_v36 = vadd.f32 %v2132_v6, %v15369_v26  ;;  %v15498_v26 = vadd.f32 %v15397_v8, %v15259_v13  ;;  %v2702_v6 = vadd.f32 %v2701_v52, %v2640_v4  ;;  %v2504_v57 = vmul.f32 %v15467_v18, %v15475_v53  ;;  %v15512_v4 = vpop.permute.xlu0 %2445 }
 0x306   : > { %v2134_v33 = vpop.f32.mrf.mxu0  ;;  %v2205_v43 = vpop.f32.mrf.mxu1  ;;  %v2682_v24 = vadd.f32 %v2681_v20, %v2643_v22  ;;  %20314 = vst [vmem:[#allocation76_spill] sm:$0xff] %v15512_v4  ;;  %v2651_v52 = vmul.f32 %v2503_v51, %v15461_v3  ;;  %v2536_v48 = vadd.f32 %v2535_v2, %v2503_v51 }
 0x307   : > { %v15494_v7 = vadd.f32 %v2134_v33, %v15384_v47  ;;  %v2507_v47 = vmul.f32 %v15487_v38, %v15485_v36  ;;  %v2703_v20 = vadd.f32 %v2702_v6, %v2644_v41  ;;  %v2652_v16 = vmul.f32 %v2504_v57, %v15475_v53 }
 0x308   : > { %v2138_v0 = vpop.f32.mrf.mxu0  ;;  %v2207_v54 = vpop.f32.mrf.mxu1  ;;  %v2683_v18 = vadd.f32 %v2682_v24, %v2647_v9  ;;  %v2557_v51 = vadd.f32 %v2556_v19, %v2504_v57 }
 0x309   : > { %20313 = vst [vmem:[#allocation75_spill] sm:$0xff] %v15494_v7  ;;  %v15510_v8 = vadd.f32 %v2138_v0, %v15391_v59  ;;  %v2508_v56 = vmul.f32 %v15487_v38, %v15494_v7  ;;  %v15524_v59 = vadd.f32 %v2197_v39, %v15262_v60  ;;  %v2704_v9 = vadd.f32 %v2703_v20, %v2648_v25 }
 0x30a   : > { %v2140_v33 = vpop.f32.mrf.mxu0  ;;  %v2211_v22 = vpop.f32.mrf.mxu1  ;;  %v2655_v6 = vmul.f32 %v2507_v47, %v15485_v36  ;;  %v15537_v39 = vadd.f32 %v2201_v55, %v15259_v13  ;;  %v2684_v24 = vadd.f32 %v2683_v18, %v2651_v52  ;;  %v15553_v18 = vadd.f32 %v2205_v43, %v15259_v13 }
 0x30b   : > { %v2511_v40 = vmul.f32 %v15512_v4, %v15510_v8  ;;  %v15530_v61 = vadd.f32 %v2140_v33, %v15406_v30  ;;  %v15542_v30 = vadd.f32 %v2203_v35, %v15262_v60  ;;  %v2656_v25 = vmul.f32 %v2508_v56, %v15494_v7  ;;  %v15550_v55 = vpop.permute.xlu0 %2455 }
 0x30c   : > { %v2142_v29 = vpop.f32.mrf.mxu0  ;;  %v2213_v41 = vpop.f32.mrf.mxu1  ;;  %20318 = vst [vmem:[#allocation80_spill] sm:$0xff] %v15550_v55  ;;  %v2705_v2 = vadd.f32 %v2704_v9, %v2652_v16  ;;  %v2537_v52 = vadd.f32 %v2536_v48, %v2507_v47  ;;  %v2685_v53 = vadd.f32 %v2684_v24, %v2655_v6  ;;  %v15567_v19 = vadd.f32 %v2211_v22, %v15259_v13 }
 0x30d   : > { %20316 = vst [vmem:[#allocation78_spill] sm:$0xff] %v15530_v61  ;;  %v15534_v0 = vadd.f32 %v2142_v29, %v15414_v50  ;;  %v2512_v49 = vmul.f32 %v15512_v4, %v15530_v61  ;;  %v2659_v35 = vmul.f32 %v2511_v40, %v15510_v8 }
 0x30e   : > { %v2144_v38 = vpop.f32.mrf.mxu0  ;;  %v2215_v33 = vpop.f32.mrf.mxu1  ;;  %v2706_v9 = vadd.f32 %v2705_v2, %v2656_v25  ;;  %v2538_v6 = vadd.f32 %v2537_v52, %v2511_v40 }
 0x30f   : > { %v2515_v20 = vmul.f32 %v15521_v63, %v15534_v0  ;;  %v15548_v50 = vadd.f32 %v2144_v38, %v15430_v28  ;;  %v15562_v28 = vadd.f32 %v2207_v54, %v15262_v60  ;;  %v2558_v38 = vadd.f32 %v2557_v51, %v2508_v56 }
 0x310   : > { %v2148_v29 = vpop.f32.mrf.mxu0  ;;  %v2217_v4 = vpop.f32.mrf.mxu1  ;;  %v2660_v43 = vmul.f32 %v2512_v49, %v15530_v61  ;;  %v15574_v54 = vadd.f32 %v2213_v41, %v15262_v60  ;;  %v2686_v56 = vadd.f32 %v2685_v53, %v2659_v35  ;;  %v15585_v2 = vadd.f32 %v2215_v33, %v15259_v13 }
 0x311   : > { %20317 = vst [vmem:[#allocation79_spill] sm:$0xff] %v15548_v50  ;;  %v2516_v7 = vmul.f32 %v15521_v63, %v15548_v50  ;;  %v15559_v1 = vadd.f32 %v2148_v29, %v15447_v45  ;;  %v2663_v57 = vmul.f32 %v2515_v20, %v15534_v0  ;;  %v15571_v45 = vpop.permute.xlu1 %2460  ;;  %v2559_v24 = vadd.f32 %v2558_v38, %v2512_v49 }
 0x312   : > { %v2150_v47 = vpop.f32.mrf.mxu0  ;;  %v2221_v16 = vpop.f32.mrf.mxu1  ;;  %20319 = vst [vmem:[#allocation81_spill] sm:$0xff] %v15571_v45  ;;  %v2539_v61 = vadd.f32 %v2538_v6, %v2515_v20  ;;  %v2707_v41 = vadd.f32 %v2706_v9, %v2660_v43 }
 0x313   : > { %v2519_v48 = vmul.f32 %v15550_v55, %v15559_v1  ;;  %v2664_v51 = vmul.f32 %v2516_v7, %v15548_v50  ;;  %v15578_v29 = vadd.f32 %v2150_v47, %v15456_v44  ;;  %v2560_v52 = vadd.f32 %v2559_v24, %v2516_v7 }
 0x314   : > { %v2152_v22 = vpop.f32.mrf.mxu0  ;;  %v2223_v63 = vpop.f32.mrf.mxu1  ;;  %v2687_v53 = vadd.f32 %v2686_v56, %v2663_v57 }
 0x315   : > { %20320 = vst [vmem:[#allocation82_spill] sm:$0xff] %v15578_v29  ;;  %v2667_v40 = vmul.f32 %v2519_v48, %v15559_v1  ;;  %v15582_v25 = vadd.f32 %v2152_v22, %v15471_v62  ;;  %v2520_v49 = vmul.f32 %v15550_v55, %v15578_v29  ;;  %v2540_v38 = vadd.f32 %v2539_v61, %v2519_v48 }
 0x316   : > { %v2154_v35 = vpop.f32.mrf.mxu0  ;;  %v2225_v44 = vpop.f32.mrf.mxu1  ;;  %v15595_v62 = vadd.f32 %v2217_v4, %v15262_v60  ;;  %v2708_v33 = vadd.f32 %v2707_v41, %v2664_v51  ;;  %v15605_v4 = vadd.f32 %v2221_v16, %v15259_v13  ;;  %v15608_v51 = vadd.f32 %v2223_v63, %v15262_v60 }
 0x317   : > { %v2523_v20 = vmul.f32 %v15571_v45, %v15582_v25  ;;  %v15592_v47 = vadd.f32 %v2154_v35, %v15479_v58  ;;  %v2688_v6 = vadd.f32 %v2687_v53, %v2667_v40  ;;  %v2561_v43 = vadd.f32 %v2560_v52, %v2520_v49 }
 0x318   : > { %v2668_v7 = vmul.f32 %v2520_v49, %v15578_v29  ;;  %v2304_v57 = vpop.f32.mrf.mxu0  ;;  %v2227_v9 = vpop.f32.mrf.mxu1  ;;  %v15611_v40 = vadd.f32 %v2225_v44, %v15259_v13 }
 0x319   : > { %20321 = vst [vmem:[#allocation83_spill] sm:$0xff] %v15592_v47  ;;  %v2541_v56 = vadd.f32 %v2540_v38, %v2523_v20  ;;  %v2671_v24 = vmul.f32 %v2523_v20, %v15582_v25  ;;  %v2524_v61 = vmul.f32 %v15571_v45, %v15592_v47  ;;  %v15602_v48 = vadd.f32 %v2304_v57, %v15498_v26 }
 0x31a   : > { %v2709_v58 = vadd.f32 %v2708_v33, %v2668_v7  ;;  %v2306_v22 = vpop.f32.mrf.mxu0  ;;  %v2231_v41 = vpop.f32.mrf.mxu1  ;;  %v15620_v20 = vadd.f32 %v2227_v9, %v15262_v60 }
 0x31b   : > { %20322 = vst [vmem:[#allocation84_spill] sm:$0xff] %v15602_v48  ;;  %v2542_v52 = vrot.slane %v2541_v56, 4  ;;  %v2689_v53 = vadd.f32 %v2688_v6, %v2671_v24  ;;  %v2562_v49 = vadd.f32 %v2561_v43, %v2524_v61  ;;  %v2672_v35 = vmul.f32 %v2524_v61, %v15592_v47 }
 0x31c   : > { %v2465_v26 = vmul.f32 %v15216_v46, %v15602_v48  ;;  %v15617_v38 = vadd.f32 %v2306_v22, %v15504_v23  ;;  %v2308_v16 = vpop.f32.mrf.mxu0  ;;  %20324 = vst [vmem:[#allocation86_spill] sm:$0xff] %v15620_v20  ;;  %v15623_v63 = vadd.f32 %v2231_v41, %v15259_v13  ;;  %v2233_v44 = vpop.f32.mrf.mxu1 }
 0x31d   : > { %v2543_v33 = vadd.f32 %v2542_v52, %v2541_v56  ;;  %v2690_v7 = vrot.slane %v2689_v53, 4  ;;  %v2563_v6 = vrot.slane %v2562_v49, 4  ;;  %v2710_v43 = vadd.f32 %v2709_v58, %v2672_v35 }
 0x31e   : > { %20323 = vst [vmem:[#allocation85_spill] sm:$0xff] %v15617_v38  ;;  %20325 = vst [vmem:[#allocation87_spill] sm:$0xff] %v15623_v63  ;;  %v2613_v57 = vmul.f32 %v2465_v26, %v15602_v48  ;;  %v2466_v24 = vmul.f32 %v15216_v46, %v15617_v38  ;;  %v15629_v23 = vadd.f32 %v2308_v16, %v15517_v32  ;;  %v2310_v61 = vpop.f32.mrf.mxu0  ;;  %v2235_v56 = vpop.f32.mrf.mxu1 }
 0x31f   : > { %v15632_v9 = vadd.f32 %v2233_v44, %v15262_v60  ;;  %v2544_v22 = vrot.slane %v2543_v33, 2  ;;  %v2691_v41 = vadd.f32 %v2690_v7, %v2689_v53  ;;  %v2564_v45 = vadd.f32 %v2563_v6, %v2562_v49 }
 0x320   : > { %20326 = vst [vmem:[#allocation88_spill] sm:$0xff] %v15629_v23  ;;  %v2711_v55 = vrot.slane %v2710_v43, 4  ;;  %v2614_v52 = vmul.f32 %v2466_v24, %v15617_v38  ;;  %v2469_v58 = vmul.f32 %v15237_v27, %v15629_v23  ;;  %v15638_v35 = vadd.f32 %v2310_v61, %v15524_v59  ;;  %v2314_v46 = vpop.f32.mrf.mxu0 }
 0x321   : > { %20327 = vst [vmem:[#allocation89_spill] sm:$0xff] %v15632_v9  ;;  %v15641_v32 = vadd.f32 %v2235_v56, %v15259_v13  ;;  %v2545_v16 = vadd.f32 %v2544_v22, %v2543_v33  ;;  %v2692_v44 = vrot.slane %v2691_v41, 2  ;;  %v2565_v48 = vrot.slane %v2564_v45, 2 }
 0x322   : > { %20328 = vst [vmem:[#allocation90_spill] sm:$0xff] %v15638_v35  ;;  %v2712_v9 = vadd.f32 %v2711_v55, %v2710_v43  ;;  %v2569_v53 = vadd.f32 %v2469_v58, %v2465_v26  ;;  %v2617_v49 = vmul.f32 %v2469_v58, %v15629_v23  ;;  %v2470_v7 = vmul.f32 %v15237_v27, %v15638_v35  ;;  %v2316_v38 = vpop.f32.mrf.mxu0 }
 0x323   : > { %20329 = vst [vmem:[#allocation91_spill] sm:$0xff] %v15641_v32  ;;  %v15647_v6 = vadd.f32 %v2314_v46, %v15537_v39  ;;  %v2546_v59 = vrot.slane %v2545_v16, 1  ;;  %v2693_v61 = vadd.f32 %v2692_v44, %v2691_v41  ;;  %v2566_v63 = vadd.f32 %v2565_v48, %v2564_v45 }
 0x324   : > { %v2713_v20 = vrot.slane %v2712_v9, 2  ;;  %v2717_v56 = vadd.f32 %v2617_v49, %v2613_v57  ;;  %v15649_v32 = vadd.f32 %v2470_v7, %v2466_v24  ;;  %v2618_v33 = vmul.f32 %v2470_v7, %v15638_v35  ;;  %v2318_v26 = vpop.f32.mrf.mxu0  ;;  %v20344_v35 = vld [vmem:[#allocation73_spill] sm:$0xff] }
 0x325   : > { %20330 = vst [vmem:[#allocation92_spill] sm:$0xff] %v15647_v6  ;;  %v2473_v55 = vmul.f32 %v15250_v14, %v15647_v6  ;;  %v15654_v43 = vadd.f32 %v2546_v59, %v2545_v16  ;;  %v2694_v27 = vrot.slane %v2693_v61, 1  ;;  %v2567_v22 = vrot.slane %v2566_v63, 1  ;;  %v20343_v16 = vld [vmem:[#allocation71_spill] sm:$0xff] }
 0x326   : > { %v2714_v39 = vadd.f32 %v2713_v20, %v2712_v9  ;;  %v15656_v58 = vadd.f32 %v2618_v33, %v2614_v52  ;;  %v15662_v48 = vadd.f32 %v2316_v38, %v15542_v30  ;;  %v2320_v57 = vpop.f32.mrf.mxu0  ;;  %v20341_v52 = vld [vmem:[#allocation67_spill] sm:$0xff]  ;;  %v20342_v9 = vld [vmem:[#allocation69_spill] sm:$0xff] }
 0x327   : > { %v15658_v46 = vadd.f32 %v2569_v53, %v2473_v55  ;;  %v2621_v45 = vmul.f32 %v2473_v55, %v15647_v6  ;;  %v2695_v24 = vadd.f32 %v2694_v27, %v2693_v61  ;;  %v2759_v41 = vmul.f32 %v15654_v43, %v15654_v43 }
 0x328   : > { %20331 = vst [vmem:[#allocation93_spill] sm:$0xff] %v15662_v48  ;;  %v2324_v44 = vpop.f32.mrf.mxu0  ;;  %v15698_v49 = vadd.f32 %v2567_v22, %v2566_v63  ;;  %v2715_v33 = vrot.slane %v2714_v39, 1  ;;  %v2474_v55 = vmul.f32 %v15250_v14, %v15662_v48  ;;  %v15703_v27 = vadd.f32 %v2318_v26, %v15553_v18  ;;  %v20335_v14 = vld [vmem:[#allocation54_spill] sm:$0xff]  ;;  %v20336_v18 = vld [vmem:[#allocation56_spill] sm:$0xff] }
 0x329   : > { %v2763_v53 = vsub.f32 %v2695_v24, %v2759_v41  ;;  %v2718_v38 = vadd.f32 %v2717_v56, %v2621_v45  ;;  %v15706_v41 = vadd.f32 %v2320_v57, %v15562_v28  ;;  %v15709_v7 = vadd.f32 %v2324_v44, %v15567_v19  ;;  %v20337_v28 = vld [vmem:[#allocation59_spill] sm:$0xff]  ;;  %v20338_v19 = vld [vmem:[#allocation61_spill] sm:$0xff]  ;;  %v20348_v56 = vld [vmem:[#allocation60_spill] sm:$0xff] }
 0x32a   : > { %v2326_v24 = vpop.f32.mrf.mxu0  ;;  %20332 = vst [vmem:[#allocation94_spill] sm:$0xff] %v15703_v27  ;;  %v2716_v59 = vadd.f32 %v2715_v33, %v2714_v39  ;;  %v2760_v63 = vmul.f32 %v15698_v49, %v15698_v49  ;;  %v20339_v39 = vld [vmem:[#allocation63_spill] sm:$0xff]  ;;  %v20340_v33 = vld [vmem:[#allocation65_spill] sm:$0xff]  ;;  %v2591_v13 = vadd.f32 %v15649_v32, %v2474_v55  ;;  %v2622_v44 = vmul.f32 %v2474_v55, %v15662_v48 }
 0x32b   : > { %v2831_v61 = vadd.f32 1e-05, %v2763_v53  ;;  %20333 = vst [vmem:[#allocation95_spill] sm:$0xff] %v15706_v41  ;;  %20334 = vst [vmem:[#allocation96_spill] sm:$0xff] %v15709_v7  ;;  %v20347_v53 = vld [vmem:[#allocation58_spill] sm:$0xff]  ;;  %v2481_v50 = vmul.f32 %v20348_v56, %v15709_v7  ;;  %v15754_v22 = vadd.f32 %v2326_v24, %v15574_v54 }
 0x32c   : > { %v2328_v30 = vpop.f32.mrf.mxu0  ;;  %v2477_v6 = vmul.f32 %v20347_v53, %v15703_v27  ;;  %v2739_v32 = vadd.f32 %v15656_v58, %v2622_v44  ;;  %v20351_v54 = vld [vmem:[#allocation62_spill] sm:$0xff] }
 0x32d   : > { %13113 = vrsqrt.f32 %v2831_v61  ;;  %v2764_v61 = vsub.f32 %v2716_v59, %v2760_v63  ;;  %v2478_v63 = vmul.f32 %v20347_v53, %v15706_v41  ;;  %20349 = vst [vmem:[#allocation54_spill] sm:$0xff] %v15754_v22  ;;  %v2482_v29 = vmul.f32 %v20348_v56, %v15754_v22 }
 0x32e   : > { %v2330_v45 = vpop.f32.mrf.mxu0  ;;  %v2571_v55 = vadd.f32 %v15658_v46, %v2477_v6  ;;  %v2625_v48 = vmul.f32 %v2477_v6, %v15703_v27 }
 0x32f   : > { %v2832_v23 = vadd.f32 1e-05, %v2764_v61  ;;  %v15757_v61 = vadd.f32 %v2328_v30, %v15585_v2  ;;  %v2592_v47 = vadd.f32 %v2591_v13, %v2478_v63  ;;  %v2626_v53 = vmul.f32 %v2478_v63, %v15706_v41  ;;  %v2237_v13 = vpop.f32.mrf.mxu1 }
 0x330   : > { %v2334_v26 = vpop.f32.mrf.mxu0  ;;  %v2719_v30 = vadd.f32 %v2718_v38, %v2625_v48  ;;  %v2572_v59 = vadd.f32 %v2571_v55, %v2481_v50  ;;  %v15771_v58 = vadd.f32 %v2330_v45, %v15595_v62  ;;  %v2630_v63 = vmul.f32 %v2482_v29, %v15754_v22 }
 0x331   : > { %13115 = vrsqrt.f32 %v2832_v23  ;;  %20350 = vst [vmem:[#allocation56_spill] sm:$0xff] %v15757_v61  ;;  %v2629_v23 = vmul.f32 %v2481_v50, %v15709_v7  ;;  %v2485_v24 = vmul.f32 %v20351_v54, %v15757_v61  ;;  %v15774_v6 = vadd.f32 %v2334_v26, %v15605_v4  ;;  %v20352_v4 = vld [vmem:[#allocation64_spill] sm:$0xff] }
 0x332   : > { %v2336_v57 = vpop.f32.mrf.mxu0  ;;  %v2740_v46 = vadd.f32 %v2739_v32, %v2626_v53  ;;  %v15776_v44 = vadd.f32 %v2592_v47, %v2482_v29  ;;  %v15790_v62 = vmul.f32 %v20351_v54, %v15771_v58  ;;  %v15805_v26 = vadd.f32 %v2237_v13, %v15262_v60 }
 0x333   : > { %v15780_v56 = vmul.f32 %v2485_v24, %v15757_v61  ;;  %v15784_v7 = vadd.f32 %v2719_v30, %v2629_v23  ;;  %v15786_v50 = vadd.f32 %v2572_v59, %v2485_v24  ;;  %v15794_v48 = vmul.f32 %v20352_v4, %v15774_v6 }
 0x334   : > { %v2338_v20 = vpop.f32.mrf.mxu0  ;;  %v15796_v38 = vadd.f32 %v2740_v46, %v2630_v63  ;;  %v15799_v29 = vadd.f32 %v2336_v57, %v15608_v51  ;;  %20353 = vst [vmem:[#allocation59_spill] sm:$0xff] %v15805_v26  ;;  %v20354_v32 = vsub.f32 %v15248_v37, %v15654_v43  ;;  %v20355_v53 = vsub.f32 %v15235_v17, %v15654_v43 }
 0x335   : > { %v15802_v45 = vadd.f32 %v2338_v20, %v15611_v40  ;;  %v20356_v51 = vsub.f32 %v15267_v11, %v15654_v43  ;;  %v20357_v40 = vsub.f32 %v15290_v21, %v15654_v43  ;;  %v20358_v54 = vsub.f32 %v15322_v5, %v15654_v43 }
 0x336   : > { %v15768_v2 = vpop.f32.mrf.mxu0  ;;  %v20359_v37 = vsub.f32 %v15347_v15, %v15654_v43  ;;  %v20360_v17 = vsub.f32 %v15374_v12, %v15654_v43  ;;  %v20361_v11 = vsub.f32 %v15395_v31, %v15654_v43  ;;  %v20363_v21 = vsub.f32 %v15420_v10, %v15654_v43  ;;  %v15847_v31 = vpop.f32.mrf.mxu1 }
 0x337   : > { %v20364_v5 = vsub.f32 %v15439_v42, %v15654_v43  ;;  %v20365_v15 = vsub.f32 %v15461_v3, %v15654_v43  ;;  %v20366_v12 = vsub.f32 %v15485_v36, %v15654_v43  ;;  %v20368_v10 = vsub.f32 %v15534_v0, %v15654_v43  ;;  %v20371_v36 = vld [vmem:[#allocation51_spill] sm:$0xff] }
 0x338   : > { %v15782_v41 = vpop.f32.mrf.mxu0  ;;  %v20369_v42 = vsub.f32 %v15559_v1, %v15654_v43  ;;  %v20370_v3 = vsub.f32 %v15582_v25, %v15654_v43 }
 0x33a   : > { %v13114_v47 = vpop.eup %13113  ;;  %v15807_v59 = vpop.f32.mrf.mxu0 }
 0x33b   : > { %v2839_v55 = vmul.f32 %v13114_v47, %v20354_v32  ;;  %v2843_v23 = vmul.f32 %v13114_v47, %v20355_v53  ;;  %v2847_v57 = vmul.f32 %v13114_v47, %v20356_v51  ;;  %v2851_v20 = vmul.f32 %v13114_v47, %v20357_v40 }
 0x33c   : > { %v2855_v24 = vmul.f32 %v13114_v47, %v20358_v54  ;;  %v2859_v30 = vmul.f32 %v13114_v47, %v20359_v37  ;;  %v2863_v13 = vmul.f32 %v13114_v47, %v20360_v17  ;;  %v2867_v46 = vmul.f32 %v13114_v47, %v20361_v11  ;;  %v15833_v63 = vpop.f32.mrf.mxu0 }
 0x33d   : > { %20362 = vst [vmem:[#allocation61_spill] sm:$0xff] %v15833_v63  ;;  %v2871_v32 = vmul.f32 %v13114_v47, %v20363_v21  ;;  %v2875_v53 = vmul.f32 %v13114_v47, %v20364_v5  ;;  %v2879_v51 = vmul.f32 %v13114_v47, %v20365_v15  ;;  %v2883_v40 = vmul.f32 %v13114_v47, %v20366_v12 }
 0x33e   : > { %v20367_v54 = vsub.f32 %v15510_v8, %v15654_v43  ;;  %v2891_v17 = vmul.f32 %v13114_v47, %v20368_v10  ;;  %v2895_v11 = vmul.f32 %v13114_v47, %v20369_v42  ;;  %v2899_v21 = vmul.f32 %v13114_v47, %v20370_v3  ;;  %v15871_v25 = vpop.eup %13115 }
 0x33f   : > { %v2924_v5 = vmul.f32 %v20371_v36, %v2839_v55  ;;  %v2928_v15 = vmul.f32 %v20371_v36, %v2843_v23  ;;  %v2932_v12 = vmul.f32 %v20371_v36, %v2847_v57  ;;  %v2936_v8 = vmul.f32 %v20371_v36, %v2851_v20  ;;  %v15877_v57 = vpop.f32.mrf.mxu1 }
 0x340   : > { %v2887_v37 = vmul.f32 %v13114_v47, %v20367_v54  ;;  %v15865_v54 = vpop.f32.mrf.mxu0  ;;  %v2940_v0 = vmul.f32 %v20371_v36, %v2855_v24  ;;  %v2944_v10 = vmul.f32 %v20371_v36, %v2859_v30  ;;  %v2948_v1 = vmul.f32 %v20371_v36, %v2863_v13 }
 0x341   : > { %20372 = vst [vmem:[#allocation63_spill] sm:$0xff] %v15865_v54  ;;  %v2952_v42 = vmul.f32 %v20371_v36, %v2867_v46  ;;  %v2956_v43 = vmul.f32 %v20371_v36, %v2871_v32  ;;  %v2960_v47 = vmul.f32 %v20371_v36, %v2875_v53  ;;  %v2964_v55 = vmul.f32 %v20371_v36, %v2879_v51  ;;  %v20373_v46 = vld [vmem:[#allocation52_spill] sm:$0xff] }
 0x342   : > { %v2968_v23 = vmul.f32 %v20371_v36, %v2883_v40  ;;  %v2972_v20 = vmul.f32 %v20371_v36, %v2887_v37  ;;  %v2976_v24 = vmul.f32 %v20371_v36, %v2891_v17  ;;  %v2980_v30 = vmul.f32 %v20371_v36, %v2895_v11  ;;  %v15887_v22 = vpop.f32.mrf.mxu0 }
 0x343   : > { %v2984_v13 = vmul.f32 %v20371_v36, %v2899_v21  ;;  %v3009_v3 = vadd.f32 %v20373_v46, %v2924_v5  ;;  %v3013_v32 = vadd.f32 %v20373_v46, %v2928_v15  ;;  %v3017_v53 = vadd.f32 %v20373_v46, %v2932_v12  ;;  %20374 = vst [vmem:[#allocation65_spill] sm:$0xff] %v15887_v22  ;;  %v15897_v12 = vpop.f32.mrf.mxu1 }
 0x344   : > { %v3021_v51 = vadd.f32 %v20373_v46, %v2936_v8  ;;  %v3025_v40 = vadd.f32 %v20373_v46, %v2940_v0  ;;  %v3029_v37 = vadd.f32 %v20373_v46, %v2944_v10  ;;  %v3033_v17 = vadd.f32 %v20373_v46, %v2948_v1  ;;  %20375 = vst [vmem:[#allocation67_spill] sm:$0xff] %v15897_v12  ;;  %v15903_v22 = vpop.f32.mrf.mxu0 }
 0x345   : > { %v3037_v11 = vadd.f32 %v20373_v46, %v2952_v42  ;;  %v3041_v21 = vadd.f32 %v20373_v46, %v2956_v43  ;;  %v3045_v36 = vadd.f32 %v20373_v46, %v2960_v47  ;;  %v3049_v5 = vadd.f32 %v20373_v46, %v2964_v55 }
 0x346   : > { %v3053_v15 = vadd.f32 %v20373_v46, %v2968_v23  ;;  %v3057_v8 = vadd.f32 %v20373_v46, %v2972_v20  ;;  %v3061_v0 = vadd.f32 %v20373_v46, %v2976_v24  ;;  %v3065_v10 = vadd.f32 %v20373_v46, %v2980_v30  ;;  %v15905_v24 = vpop.f32.mrf.mxu1 }
 0x347   : > { %v3069_v1 = vadd.f32 %v20373_v46, %v2984_v13  ;;  %v3073_v61 = vmax.f32 %v3009_v3, 0.0  ;;  %v3077_v42 = vmax.f32 %v3013_v32, 0.0  ;;  %v3081_v27 = vmax.f32 %v3017_v53, 0.0 }
 0x348   : > { %v3085_v43 = vmax.f32 %v3021_v51, 0.0  ;;  %v3089_v47 = vmax.f32 %v3025_v40, 0.0  ;;  %v3093_v55 = vmax.f32 %v3029_v37, 0.0  ;;  %v3097_v54 = vmax.f32 %v3033_v17, 0.0  ;;  %v15923_v40 = vpop.f32.mrf.mxu0 }
 0x349   : > { %v3101_v23 = vmax.f32 %v3037_v11, 0.0  ;;  %v3105_v26 = vmax.f32 %v3041_v21, 0.0  ;;  %v3109_v63 = vmax.f32 %v3045_v36, 0.0  ;;  %v3113_v12 = vmax.f32 %v3049_v5, 0.0  ;;  %3137 = vst [vmem:[#allocation2 + $0xb0] sm:$0xff] %v3073_v61  ;;  %3141 = vst [vmem:[#allocation2 + $0x50] sm:$0xff] %v3077_v42 }
 0x34a   : > { %v3117_v20 = vmax.f32 %v3053_v15, 0.0  ;;  %3145 = vst [vmem:[#allocation2 + $0x180] sm:$0xff] %v3081_v27  ;;  %3149 = vst [vmem:[#allocation2 + $0x120] sm:$0xff] %v3085_v43  ;;  %v3121_v30 = vmax.f32 %v3057_v8, 0.0  ;;  %v3125_v13 = vmax.f32 %v3061_v0, 0.0  ;;  %v3129_v46 = vmax.f32 %v3065_v10, 0.0  ;;  %v15957_v0 = vpop.f32.mrf.mxu1 }
 0x34b   : > { %v3133_v3 = vmax.f32 %v3069_v1, 0.0  ;;  %3153 = vst [vmem:[#allocation2 + $0xe0] sm:$0xff] %v3089_v47  ;;  %3157 = vst [vmem:[#allocation2 + $0x80] sm:$0xff] %v3093_v55  ;;  %v20376_v61 = vsub.f32 %v15254_v34, %v15698_v49  ;;  %v20377_v32 = vsub.f32 %v20335_v14, %v15698_v49  ;;  %v20378_v51 = vsub.f32 %v20336_v18, %v15698_v49 }
 0x34c   : > { %3161 = vst [vmem:[#allocation2 + $0x1e8] sm:$0xff] %v3097_v54  ;;  %3165 = vst [vmem:[#allocation2 + $0x1e0] sm:$0xff] %v3101_v23  ;;  %v20380_v34 = vsub.f32 %v20338_v19, %v15698_v49  ;;  %v20381_v18 = vsub.f32 %v20339_v39, %v15698_v49  ;;  %v20383_v11 = vsub.f32 %v20341_v52, %v15698_v49  ;;  %v20395_v23 = vld [vmem:[#allocation83_spill] sm:$0xff] }
 0x34d   : > { %3169 = vst [vmem:[#allocation2 + $0x148] sm:$0xff] %v3105_v26  ;;  %3173 = vst [vmem:[#allocation2 + $0x40] sm:$0xff] %v3109_v63  ;;  %v2840_v27 = vmul.f32 %v15871_v25, %v20376_v61  ;;  %v2844_v53 = vmul.f32 %v15871_v25, %v20377_v32  ;;  %v2848_v54 = vmul.f32 %v15871_v25, %v20378_v51  ;;  %v15979_v51 = vpop.f32.mrf.mxu0 }
 0x34e   : > { %3177 = vst [vmem:[#allocation2 + $0x1a0] sm:$0xff] %v3113_v12  ;;  %3181 = vst [vmem:[#allocation2 + $0x70] sm:$0xff] %v3117_v20  ;;  %v20379_v26 = vsub.f32 %v20337_v28, %v15698_v49  ;;  %v2856_v14 = vmul.f32 %v15871_v25, %v20380_v34  ;;  %v2860_v37 = vmul.f32 %v15871_v25, %v20381_v18  ;;  %v20387_v12 = vld [vmem:[#allocation75_spill] sm:$0xff] }
 0x34f   : > { %3185 = vst [vmem:[#allocation2 + $0xb8] sm:$0xff] %v3121_v30  ;;  %3189 = vst [vmem:[#allocation2 + $0x170] sm:$0xff] %v3125_v13  ;;  %v20382_v28 = vsub.f32 %v20340_v33, %v15698_v49  ;;  %v2868_v21 = vmul.f32 %v15871_v25, %v20383_v11  ;;  %v20384_v19 = vsub.f32 %v20342_v9, %v15698_v49  ;;  %v20389_v9 = vld [vmem:[#allocation78_spill] sm:$0xff]  ;;  %v20397_v13 = vld [vmem:[#allocation57_spill] sm:$0xff] }
 0x350   : > { %v2852_v63 = vmul.f32 %v15871_v25, %v20379_v26  ;;  %3193 = vst [vmem:[#allocation2 + $0x198] sm:$0xff] %v3129_v46  ;;  %3197 = vst [vmem:[#allocation2 + $0x158] sm:$0xff] %v3133_v3  ;;  %v20385_v39 = vsub.f32 %v20343_v16, %v15698_v49  ;;  %v20386_v33 = vsub.f32 %v20344_v35, %v15698_v49  ;;  %v20391_v16 = vld [vmem:[#allocation79_spill] sm:$0xff]  ;;  %v20393_v35 = vld [vmem:[#allocation82_spill] sm:$0xff] }
 0x351   : > { %v2864_v17 = vmul.f32 %v15871_v25, %v20382_v28  ;;  %v2872_v36 = vmul.f32 %v15871_v25, %v20384_v19  ;;  %v20388_v52 = vsub.f32 %v20387_v12, %v15698_v49  ;;  %v20390_v10 = vsub.f32 %v20389_v9, %v15698_v49  ;;  %v15989_v28 = vpop.f32.mrf.mxu1  ;;  %v20398_v11 = vld [vmem:[#allocation53_spill] sm:$0xff] }
 0x352   : > { %v2876_v5 = vmul.f32 %v15871_v25, %v20385_v39  ;;  %v2880_v15 = vmul.f32 %v15871_v25, %v20386_v33  ;;  %v20392_v42 = vsub.f32 %v20391_v16, %v15698_v49  ;;  %v20394_v47 = vsub.f32 %v20393_v35, %v15698_v49 }
 0x353   : > { %v2884_v8 = vmul.f32 %v15871_v25, %v20388_v52  ;;  %v2888_v1 = vmul.f32 %v15871_v25, %v20390_v10  ;;  %v20396_v20 = vsub.f32 %v20395_v23, %v15698_v49  ;;  %v2925_v46 = vmul.f32 %v20397_v13, %v2840_v27  ;;  %v16009_v16 = vpop.f32.mrf.mxu1 }
 0x354   : > { %v2892_v43 = vmul.f32 %v15871_v25, %v20392_v42  ;;  %v2896_v55 = vmul.f32 %v15871_v25, %v20394_v47  ;;  %v2929_v3 = vmul.f32 %v20397_v13, %v2844_v53  ;;  %v2933_v61 = vmul.f32 %v20397_v13, %v2848_v54 }
 0x355   : > { %v2900_v30 = vmul.f32 %v15871_v25, %v20396_v20  ;;  %v2937_v32 = vmul.f32 %v20397_v13, %v2852_v63  ;;  %v2941_v26 = vmul.f32 %v20397_v13, %v2856_v14  ;;  %v2945_v34 = vmul.f32 %v20397_v13, %v2860_v37 }
 0x356   : > { %v2949_v18 = vmul.f32 %v20397_v13, %v2864_v17  ;;  %v2953_v49 = vmul.f32 %v20397_v13, %v2868_v21  ;;  %v2957_v25 = vmul.f32 %v20397_v13, %v2872_v36  ;;  %v2961_v27 = vmul.f32 %v20397_v13, %v2876_v5  ;;  %v15999_v5 = vpop.f32.mrf.mxu0 }
 0x357   : > { %v2965_v53 = vmul.f32 %v20397_v13, %v2880_v15  ;;  %v2969_v54 = vmul.f32 %v20397_v13, %v2884_v8  ;;  %v2973_v63 = vmul.f32 %v20397_v13, %v2888_v1  ;;  %v2977_v14 = vmul.f32 %v20397_v13, %v2892_v43 }
 0x358   : > { %v2981_v37 = vmul.f32 %v20397_v13, %v2896_v55  ;;  %v2985_v17 = vmul.f32 %v20397_v13, %v2900_v30  ;;  %v3010_v21 = vadd.f32 %v20398_v11, %v2925_v46  ;;  %v3014_v19 = vadd.f32 %v20398_v11, %v2929_v3  ;;  %v16015_v13 = vpop.f32.mrf.mxu0 }
 0x359   : > { %v3018_v36 = vadd.f32 %v20398_v11, %v2933_v61  ;;  %v3022_v39 = vadd.f32 %v20398_v11, %v2937_v32  ;;  %v3026_v33 = vadd.f32 %v20398_v11, %v2941_v26  ;;  %v3030_v15 = vadd.f32 %v20398_v11, %v2945_v34 }
 0x35a   : > { %v3034_v12 = vadd.f32 %v20398_v11, %v2949_v18  ;;  %v3038_v52 = vadd.f32 %v20398_v11, %v2953_v49  ;;  %v3042_v8 = vadd.f32 %v20398_v11, %v2957_v25  ;;  %v3046_v9 = vadd.f32 %v20398_v11, %v2961_v27  ;;  %v16017_v25 = vpop.f32.mrf.mxu1 }
 0x35b   : > { %v3050_v10 = vadd.f32 %v20398_v11, %v2965_v53  ;;  %v3054_v1 = vadd.f32 %v20398_v11, %v2969_v54  ;;  %v3058_v42 = vadd.f32 %v20398_v11, %v2973_v63  ;;  %v3062_v43 = vadd.f32 %v20398_v11, %v2977_v14 }
 0x35c   : > { %v3066_v35 = vadd.f32 %v20398_v11, %v2981_v37  ;;  %v3070_v47 = vadd.f32 %v20398_v11, %v2985_v17  ;;  %v3074_v55 = vmax.f32 %v3010_v21, 0.0  ;;  %v3078_v23 = vmax.f32 %v3014_v19, 0.0  ;;  %v16027_v21 = vpop.f32.mrf.mxu0 }
 0x35d   : > { %v3082_v20 = vmax.f32 %v3018_v36, 0.0  ;;  %v3086_v30 = vmax.f32 %v3022_v39, 0.0  ;;  %v3090_v46 = vmax.f32 %v3026_v33, 0.0  ;;  %v3094_v3 = vmax.f32 %v3030_v15, 0.0  ;;  %v20400_v36 = vld [vmem:[#allocation86_spill] sm:$0xff]  ;;  %v20401_v39 = vld [vmem:[#allocation55_spill] sm:$0xff] }
 0x35e   : > { %v3098_v61 = vmax.f32 %v3034_v12, 0.0  ;;  %v3102_v32 = vmax.f32 %v3038_v52, 0.0  ;;  %v3106_v26 = vmax.f32 %v3042_v8, 0.0  ;;  %v3110_v34 = vmax.f32 %v3046_v9, 0.0  ;;  %3138 = vst [vmem:[#allocation2 + $0x1b0] sm:$0xff] %v3074_v55  ;;  %3142 = vst [vmem:[#allocation2 + $0x168] sm:$0xff] %v3078_v23 }
 0x35f   : > { %v3114_v18 = vmax.f32 %v3050_v10, 0.0  ;;  %v3118_v49 = vmax.f32 %v3054_v1, 0.0  ;;  %3146 = vst [vmem:[#allocation2 + $0x110] sm:$0xff] %v3082_v20  ;;  %3150 = vst [vmem:[#allocation2 + $0x150] sm:$0xff] %v3086_v30  ;;  %v3122_v27 = vmax.f32 %v3058_v42, 0.0  ;;  %v3126_v53 = vmax.f32 %v3062_v43, 0.0  ;;  %v16058_v43 = vpop.f32.mrf.mxu0 }
 0x360   : > { %v3130_v54 = vmax.f32 %v3066_v35, 0.0  ;;  %v3134_v63 = vmax.f32 %v3070_v47, 0.0  ;;  %3154 = vst [vmem:[#allocation2 + $0x188] sm:$0xff] %v3090_v46  ;;  %3158 = vst [vmem:[#allocation2 + $0x1a8] sm:$0xff] %v3094_v3  ;;  %v2721_v14 = vadd.f32 %v15784_v7, %v15780_v56  ;;  %v2594_v37 = vadd.f32 %v15776_v44, %v15790_v62  ;;  %v20399_v44 = vld [vmem:[#allocation66_spill] sm:$0xff]  ;;  %v20402_v15 = vld [vmem:[#allocation87_spill] sm:$0xff] }
 0x361   : > { %3162 = vst [vmem:[#allocation2 + $0xf8] sm:$0xff] %v3098_v61  ;;  %3166 = vst [vmem:[#allocation2] sm:$0xff] %v3102_v32  ;;  %v2634_v17 = vmul.f32 %v15790_v62, %v15771_v58  ;;  %v2574_v11 = vadd.f32 %v15786_v50, %v15794_v48  ;;  %v2637_v19 = vmul.f32 %v15794_v48, %v15774_v6  ;;  %v20404_v42 = vld [vmem:[#allocation89_spill] sm:$0xff]  ;;  %v20405_v35 = vld [vmem:[#allocation67_spill] sm:$0xff] }
 0x362   : > { %3170 = vst [vmem:[#allocation2 + $0x1d0] sm:$0xff] %v3106_v26  ;;  %3174 = vst [vmem:[#allocation2 + $0x1f8] sm:$0xff] %v3110_v34  ;;  %v2490_v7 = vmul.f32 %v20352_v4, %v15799_v29  ;;  %v2493_v56 = vmul.f32 %v20399_v44, %v15802_v45  ;;  %v16037_v62 = vadd.f32 %v15768_v2, %v20400_v36  ;;  %v2261_v4 = vpop.f32.mrf.mxu1  ;;  %v20406_v55 = vld [vmem:[#allocation91_spill] sm:$0xff]  ;;  %v20407_v23 = vld [vmem:[#allocation61_spill] sm:$0xff] }
 0x363   : > { %3178 = vst [vmem:[#allocation2 + $0x1f0] sm:$0xff] %v3114_v18  ;;  %3182 = vst [vmem:[#allocation2 + $0x90] sm:$0xff] %v3118_v49  ;;  %v2742_v50 = vadd.f32 %v15796_v38, %v2634_v17  ;;  %v2242_v33 = vadd.f32 %v15847_v31, %v20401_v39  ;;  %v16044_v12 = vadd.f32 %v15782_v41, %v20402_v15  ;;  %v20403_v31 = vld [vmem:[#allocation68_spill] sm:$0xff]  ;;  %v20408_v18 = vld [vmem:[#allocation70_spill] sm:$0xff] }
 0x364   : > { %3186 = vst [vmem:[#allocation2 + $0x88] sm:$0xff] %v3122_v27  ;;  %3190 = vst [vmem:[#allocation2 + $0x178] sm:$0xff] %v3126_v53  ;;  %v2244_v48 = vadd.f32 %v15877_v57, %v15262_v60  ;;  %v2722_v52 = vadd.f32 %v2721_v14, %v2637_v19  ;;  %v2595_v8 = vadd.f32 %v2594_v37, %v2490_v7  ;;  %v20409_v27 = vld [vmem:[#allocation59_spill] sm:$0xff]  ;;  %v20411_v14 = vld [vmem:[#allocation65_spill] sm:$0xff] }
 0x365   : > { %3194 = vst [vmem:[#allocation2 + $0x38] sm:$0xff] %v3130_v54  ;;  %3198 = vst [vmem:[#allocation2 + $0x10] sm:$0xff] %v3134_v63  ;;  %v2638_v9 = vmul.f32 %v2490_v7, %v15799_v29  ;;  %v2575_v10 = vadd.f32 %v2574_v11, %v2493_v56  ;;  %v2641_v2 = vmul.f32 %v2493_v56, %v15802_v45  ;;  %v20410_v53 = vld [vmem:[#allocation63_spill] sm:$0xff]  ;;  %v2374_v11 = vpop.f32.mrf.mxu0  ;;  %v20412_v15 = vld [vmem:[#allocation72_spill] sm:$0xff] }
 0x366   : > { %v2494_v38 = vmul.f32 %v20399_v44, %v16037_v62  ;;  %v2497_v1 = vmul.f32 %v20403_v31, %v16044_v12  ;;  %v16056_v41 = vadd.f32 %v15807_v59, %v20404_v42  ;;  %v2246_v47 = vadd.f32 %v20405_v35, %v20401_v39  ;;  %v2263_v59 = vpop.f32.mrf.mxu1 }
 0x367   : > { %v2743_v57 = vadd.f32 %v2742_v50, %v2638_v9  ;;  %v16064_v20 = vadd.f32 %v20407_v23, %v20406_v55  ;;  %v2248_v30 = vadd.f32 %v15905_v24, %v15262_v60  ;;  %v2723_v46 = vadd.f32 %v2722_v52, %v2641_v2  ;;  %v2376_v42 = vpop.f32.mrf.mxu0 }
 0x368   : > { %v2596_v3 = vadd.f32 %v2595_v8, %v2494_v38  ;;  %v2642_v61 = vmul.f32 %v2494_v38, %v16037_v62  ;;  %v2576_v32 = vadd.f32 %v2575_v10, %v2497_v1  ;;  %v2645_v26 = vmul.f32 %v2497_v1, %v16044_v12  ;;  %v2265_v52 = vpop.f32.mrf.mxu1 }
 0x369   : > { %v2498_v34 = vmul.f32 %v20403_v31, %v16056_v41  ;;  %v2501_v49 = vmul.f32 %v20408_v18, %v16064_v20  ;;  %v16076_v54 = vadd.f32 %v20410_v53, %v20409_v27  ;;  %v2252_v24 = vadd.f32 %v15957_v0, %v20401_v39 }
 0x36a   : > { %v2744_v63 = vadd.f32 %v2743_v57, %v2642_v61  ;;  %v16081_v37 = vadd.f32 %v20411_v14, %v2242_v33  ;;  %v2254_v17 = vadd.f32 %v15989_v28, %v15262_v60  ;;  %v2724_v19 = vadd.f32 %v2723_v46, %v2645_v26  ;;  %v20413_v57 = vld [vmem:[#allocation74_spill] sm:$0xff]  ;;  %v2267_v23 = vpop.f32.mrf.mxu1 }
 0x36b   : > { %v2597_v7 = vadd.f32 %v2596_v3, %v2498_v34  ;;  %v2646_v44 = vmul.f32 %v2498_v34, %v16056_v41  ;;  %v2577_v56 = vadd.f32 %v2576_v32, %v2501_v49  ;;  %v2649_v36 = vmul.f32 %v2501_v49, %v16064_v20 }
 0x36c   : > { %v2502_v50 = vmul.f32 %v20408_v18, %v16076_v54  ;;  %v2505_v0 = vmul.f32 %v20412_v15, %v16081_v37  ;;  %v16092_v33 = vadd.f32 %v15903_v22, %v2244_v48  ;;  %v2256_v28 = vadd.f32 %v16009_v16, %v20401_v39 }
 0x36d   : > { %v2745_v8 = vadd.f32 %v2744_v63, %v2646_v44  ;;  %v16097_v9 = vadd.f32 %v15923_v40, %v2246_v47  ;;  %v2258_v10 = vadd.f32 %v16017_v25, %v15262_v60  ;;  %v2725_v2 = vadd.f32 %v2724_v19, %v2649_v36 }
 0x36e   : > { %v2598_v38 = vadd.f32 %v2597_v7, %v2502_v50  ;;  %v2650_v31 = vmul.f32 %v2502_v50, %v16076_v54  ;;  %v2578_v1 = vadd.f32 %v2577_v56, %v2505_v0  ;;  %v2653_v22 = vmul.f32 %v2505_v0, %v16081_v37 }
 0x36f   : > { %v2506_v48 = vmul.f32 %v20412_v15, %v16092_v33  ;;  %v2509_v16 = vmul.f32 %v20413_v57, %v16097_v9  ;;  %v16108_v40 = vadd.f32 %v15979_v51, %v2248_v30  ;;  %v2262_v25 = vadd.f32 %v2261_v4, %v20401_v39  ;;  %v20414_v30 = vld [vmem:[#allocation76_spill] sm:$0xff] }
 0x370   : > { %v2746_v35 = vadd.f32 %v2745_v8, %v2650_v31  ;;  %v16112_v47 = vadd.f32 %v15999_v5, %v2252_v24  ;;  %v2264_v55 = vadd.f32 %v2263_v59, %v15262_v60  ;;  %v2726_v46 = vadd.f32 %v2725_v2, %v2653_v22  ;;  %v2378_v5 = vpop.f32.mrf.mxu0 }
 0x371   : > { %v2599_v3 = vadd.f32 %v2598_v38, %v2506_v48  ;;  %v2654_v61 = vmul.f32 %v2506_v48, %v16092_v33  ;;  %v2579_v32 = vadd.f32 %v2578_v1, %v2509_v16  ;;  %v2657_v26 = vmul.f32 %v2509_v16, %v16097_v9  ;;  %v20417_v38 = vld [vmem:[#allocation81_spill] sm:$0xff] }
 0x372   : > { %v2510_v51 = vmul.f32 %v20413_v57, %v16108_v40  ;;  %v2513_v34 = vmul.f32 %v20414_v30, %v16112_v47  ;;  %v16122_v4 = vadd.f32 %v16015_v13, %v2254_v17  ;;  %v2266_v59 = vadd.f32 %v2265_v52, %v20401_v39  ;;  %v20415_v17 = vld [vmem:[#allocation77_spill] sm:$0xff]  ;;  %v2380_v36 = vpop.f32.mrf.mxu0 }
 0x373   : > { %v2747_v18 = vadd.f32 %v2746_v35, %v2654_v61  ;;  %v16126_v49 = vadd.f32 %v16027_v21, %v2256_v28  ;;  %v2268_v27 = vadd.f32 %v2267_v23, %v15262_v60  ;;  %v2727_v53 = vadd.f32 %v2726_v46, %v2657_v26 }
 0x374   : > { %v2600_v63 = vadd.f32 %v2599_v3, %v2510_v51  ;;  %v2658_v24 = vmul.f32 %v2510_v51, %v16108_v40  ;;  %v2580_v14 = vadd.f32 %v2579_v32, %v2513_v34  ;;  %v2661_v19 = vmul.f32 %v2513_v34, %v16112_v47 }
 0x375   : > { %v2514_v13 = vmul.f32 %v20414_v30, %v16122_v4  ;;  %v2517_v7 = vmul.f32 %v20415_v17, %v16126_v49  ;;  %v16136_v39 = vadd.f32 %v16058_v43, %v2258_v10  ;;  %v16138_v44 = vadd.f32 %v2374_v11, %v2262_v25  ;;  %v20416_v43 = vld [vmem:[#allocation80_spill] sm:$0xff] }
 0x376   : > { %v2748_v21 = vadd.f32 %v2747_v18, %v2658_v24  ;;  %v16140_v60 = vadd.f32 %v2376_v42, %v2264_v55  ;;  %v16142_v56 = vadd.f32 %v2378_v5, %v2266_v59  ;;  %v2728_v50 = vadd.f32 %v2727_v53, %v2661_v19 }
 0x377   : > { %v2601_v15 = vadd.f32 %v2600_v63, %v2514_v13  ;;  %v2662_v0 = vmul.f32 %v2514_v13, %v16122_v4  ;;  %v2581_v52 = vadd.f32 %v2580_v14, %v2517_v7  ;;  %v2665_v8 = vmul.f32 %v2517_v7, %v16126_v49 }
 0x378   : > { %v2518_v28 = vmul.f32 %v20415_v17, %v16136_v39  ;;  %v2521_v10 = vmul.f32 %v20416_v43, %v16138_v44  ;;  %v2522_v11 = vmul.f32 %v20416_v43, %v16140_v60  ;;  %v2525_v31 = vmul.f32 %v20417_v38, %v16142_v56 }
 0x379   : > { %v2749_v2 = vadd.f32 %v2748_v21, %v2662_v0  ;;  %v16154_v1 = vadd.f32 %v2380_v36, %v2268_v27  ;;  %v2729_v42 = vadd.f32 %v2728_v50, %v2665_v8 }
 0x37a   : > { %v2602_v22 = vadd.f32 %v2601_v15, %v2518_v28  ;;  %v2666_v48 = vmul.f32 %v2518_v28, %v16136_v39  ;;  %v2582_v57 = vadd.f32 %v2581_v52, %v2521_v10  ;;  %v2669_v16 = vmul.f32 %v2521_v10, %v16138_v44 }
 0x37b   : > { %v2670_v35 = vmul.f32 %v2522_v11, %v16140_v60  ;;  %v2673_v25 = vmul.f32 %v2525_v31, %v16142_v56  ;;  %v2526_v55 = vmul.f32 %v20417_v38, %v16154_v1 }
 0x37c   : > { %v2750_v23 = vadd.f32 %v2749_v2, %v2666_v48  ;;  %v2603_v46 = vadd.f32 %v2602_v22, %v2522_v11  ;;  %v2583_v3 = vadd.f32 %v2582_v57, %v2525_v31  ;;  %v2730_v61 = vadd.f32 %v2729_v42, %v2669_v16  ;;  %v20418_v48 = vld [vmem:[#allocation49_spill] sm:$0xff]  ;;  %v20419_v57 = vld [vmem:[#allocation32_spill] sm:$0xff] }
 0x37d   : > { %v2674_v32 = vmul.f32 %v2526_v55, %v16154_v1  ;;  %v16173_v16 = vrot.slane %v20419_v57, %v20418_v48 }
 0x37e   : > { %v2751_v26 = vadd.f32 %v2750_v23, %v2670_v35  ;;  %v2584_v51 = vrot.slane %v2583_v3, 4  ;;  %v2604_v30 = vadd.f32 %v2603_v46, %v2526_v55  ;;  %v2731_v34 = vadd.f32 %v2730_v61, %v2673_v25  ;;  %v20420_v35 = vld [vmem:[#allocation50_spill] sm:$0xff]  ;;  %v20421_v55 = vld [vmem:[#allocation31_spill] sm:$0xff]  ;;  %v20422_v46 = vld [vmem:[#allocation84_spill] sm:$0xff] }
 0x37f   : > { %v16177_v25 = vrot.slane %v20419_v57, %v20420_v35  ;;  %v16181_v23 = vrot.slane %v20421_v55, %v20418_v48  ;;  %v20423_v61 = vld [vmem:[#allocation88_spill] sm:$0xff] }
 0x380   : > { %v2585_v5 = vadd.f32 %v2584_v51, %v2583_v3  ;;  %v2605_v18 = vrot.slane %v2604_v30, 4  ;;  %v2752_v59 = vadd.f32 %v2751_v26, %v2674_v32  ;;  %v2732_v27 = vrot.slane %v2731_v34, 4 }
 0x381   : > { %v16189_v51 = vrot.slane %v20421_v55, %v20420_v35 }
 0x382   : > { %v2586_v53 = vrot.slane %v2585_v5, 2  ;;  %v2606_v63 = vadd.f32 %v2605_v18, %v2604_v30  ;;  %v2753_v24 = vrot.slane %v2752_v59, 4  ;;  %v2733_v14 = vadd.f32 %v2732_v27, %v2731_v34  ;;  %v20424_v30 = vld [vmem:[#allocation92_spill] sm:$0xff] }
 0x384   : > { %v2587_v19 = vadd.f32 %v2586_v53, %v2585_v5  ;;  %v2607_v13 = vrot.slane %v2606_v63, 2  ;;  %v2754_v17 = vadd.f32 %v2753_v24, %v2752_v59  ;;  %v2734_v7 = vrot.slane %v2733_v14, 2  ;;  %v20425_v5 = vld [vmem:[#allocation94_spill] sm:$0xff]  ;;  %v20426_v59 = vld [vmem:[#allocation96_spill] sm:$0xff] }
 0x385   : > { %v20427_v53 = vld [vmem:[#allocation56_spill] sm:$0xff] }
 0x386   : > { %v2588_v21 = vrot.slane %v2587_v19, 1  ;;  %v2608_v36 = vadd.f32 %v2607_v13, %v2606_v63  ;;  %v2735_v50 = vadd.f32 %v2734_v7, %v2733_v14  ;;  %v2755_v15 = vrot.slane %v2754_v17, 2 }
 0x388   : > { %v16163_v0 = vadd.f32 %v2588_v21, %v2587_v19  ;;  %v2736_v52 = vrot.slane %v2735_v50, 1  ;;  %v2609_v28 = vrot.slane %v2608_v36, 1  ;;  %v2756_v10 = vadd.f32 %v2755_v15, %v2754_v17 }
 0x38a   : > { %v2761_v8 = vmul.f32 %v16163_v0, %v16163_v0  ;;  %v2737_v43 = vadd.f32 %v2736_v52, %v2735_v50  ;;  %v16167_v2 = vadd.f32 %v2609_v28, %v2608_v36  ;;  %v2757_v31 = vrot.slane %v2756_v10, 1 }
 0x38b   : > { %v2769_v3 = vsub.f32 %v20422_v46, %v16163_v0  ;;  %v2773_v32 = vsub.f32 %v20423_v61, %v16163_v0  ;;  %v2777_v34 = vsub.f32 %v20424_v30, %v16163_v0  ;;  %v2781_v18 = vsub.f32 %v20425_v5, %v16163_v0 }
 0x38c   : > { %v2765_v11 = vsub.f32 %v2737_v43, %v2761_v8  ;;  %v2758_v42 = vadd.f32 %v2757_v31, %v2756_v10  ;;  %v2762_v22 = vmul.f32 %v16167_v2, %v16167_v2  ;;  %v2785_v27 = vsub.f32 %v20426_v59, %v16163_v0 }
 0x38d   : > { %v2789_v63 = vsub.f32 %v20427_v53, %v16163_v0  ;;  %v2793_v24 = vsub.f32 %v15774_v6, %v16163_v0  ;;  %v2797_v14 = vsub.f32 %v15802_v45, %v16163_v0  ;;  %v2801_v19 = vsub.f32 %v16044_v12, %v16163_v0 }
 0x38e   : > { %v2833_v38 = vadd.f32 1e-05, %v2765_v11  ;;  %v2766_v26 = vsub.f32 %v2758_v42, %v2762_v22  ;;  %v2805_v13 = vsub.f32 %v16064_v20, %v16163_v0  ;;  %v2809_v17 = vsub.f32 %v16081_v37, %v16163_v0  ;;  %v20428_v20 = vld [vmem:[#allocation85_spill] sm:$0xff]  ;;  %v20429_v37 = vld [vmem:[#allocation90_spill] sm:$0xff] }
 0x38f   : > { %v2813_v7 = vsub.f32 %v16097_v9, %v16163_v0  ;;  %v2817_v21 = vsub.f32 %v16112_v47, %v16163_v0  ;;  %v2821_v6 = vsub.f32 %v16126_v49, %v16163_v0  ;;  %v2825_v45 = vsub.f32 %v16138_v44, %v16163_v0  ;;  %v20430_v9 = vld [vmem:[#allocation93_spill] sm:$0xff]  ;;  %v20431_v47 = vld [vmem:[#allocation95_spill] sm:$0xff]  ;;  %v20432_v49 = vld [vmem:[#allocation54_spill] sm:$0xff] }
 0x390   : > { %13117 = vrsqrt.f32 %v2833_v38  ;;  %v2829_v12 = vsub.f32 %v16142_v56, %v16163_v0  ;;  %v2770_v36 = vsub.f32 %v20428_v20, %v16167_v2  ;;  %v2834_v50 = vadd.f32 1e-05, %v2766_v26 }
 0x391   : > { %v2774_v15 = vsub.f32 %v20429_v37, %v16167_v2  ;;  %v2778_v52 = vsub.f32 %v20430_v9, %v16167_v2  ;;  %v2782_v8 = vsub.f32 %v20431_v47, %v16167_v2  ;;  %v2786_v28 = vsub.f32 %v20432_v49, %v16167_v2 }
 0x392   : > { %v2790_v44 = vsub.f32 %v15771_v58, %v16167_v2  ;;  %v2794_v56 = vsub.f32 %v15799_v29, %v16167_v2  ;;  %v2830_v57 = vsub.f32 %v16154_v1, %v16167_v2  ;;  %13119 = vrsqrt.f32 %v2834_v50 }
 0x393   : > { %v20436_v58 = vsub.f32 %v16092_v33, %v16167_v2  ;;  %v20437_v29 = vsub.f32 %v16108_v40, %v16167_v2 }
 0x39d   : > { %v13118_v42 = vpop.eup %13117 }
 0x39e   : > { %v2841_v35 = vmul.f32 %v13118_v42, %v2769_v3  ;;  %v2845_v55 = vmul.f32 %v13118_v42, %v2773_v32  ;;  %v2849_v46 = vmul.f32 %v13118_v42, %v2777_v34  ;;  %v2853_v61 = vmul.f32 %v13118_v42, %v2781_v18 }
 0x39f   : > { %v2857_v26 = vmul.f32 %v13118_v42, %v2785_v27  ;;  %v2861_v30 = vmul.f32 %v13118_v42, %v2789_v63  ;;  %v2865_v5 = vmul.f32 %v13118_v42, %v2793_v24  ;;  %v2869_v59 = vmul.f32 %v13118_v42, %v2797_v14 }
 0x3a0   : > { %v2873_v53 = vmul.f32 %v13118_v42, %v2801_v19  ;;  %v2877_v31 = vmul.f32 %v13118_v42, %v2805_v13  ;;  %v2881_v38 = vmul.f32 %v13118_v42, %v2809_v17  ;;  %v2885_v11 = vmul.f32 %v13118_v42, %v2813_v7 }
 0x3a1   : > { %v2889_v22 = vmul.f32 %v13118_v42, %v2817_v21  ;;  %v2893_v10 = vmul.f32 %v13118_v42, %v2821_v6  ;;  %v2897_v43 = vmul.f32 %v13118_v42, %v2825_v45  ;;  %v2901_v48 = vmul.f32 %v13118_v42, %v2829_v12 }
 0x3a2   : > { %v2926_v0 = vmul.f32 %v16181_v23, %v2841_v35  ;;  %v2930_v50 = vmul.f32 %v16181_v23, %v2845_v55  ;;  %v2934_v3 = vmul.f32 %v16181_v23, %v2849_v46  ;;  %v2938_v32 = vmul.f32 %v16181_v23, %v2853_v61 }
 0x3a3   : > { %v2942_v34 = vmul.f32 %v16181_v23, %v2857_v26  ;;  %v2946_v18 = vmul.f32 %v16181_v23, %v2861_v30  ;;  %v2950_v27 = vmul.f32 %v16181_v23, %v2865_v5  ;;  %v2954_v63 = vmul.f32 %v16181_v23, %v2869_v59  ;;  %v13120_v26 = vpop.eup %13119 }
 0x3a4   : > { %v2958_v24 = vmul.f32 %v16181_v23, %v2873_v53  ;;  %v2962_v14 = vmul.f32 %v16181_v23, %v2877_v31  ;;  %v2966_v19 = vmul.f32 %v16181_v23, %v2881_v38  ;;  %v2970_v13 = vmul.f32 %v16181_v23, %v2885_v11 }
 0x3a5   : > { %v2974_v17 = vmul.f32 %v16181_v23, %v2889_v22  ;;  %v2978_v7 = vmul.f32 %v16181_v23, %v2893_v10  ;;  %v2982_v21 = vmul.f32 %v16181_v23, %v2897_v43  ;;  %v2986_v6 = vmul.f32 %v16181_v23, %v2901_v48 }
 0x3a6   : > { %v3011_v45 = vadd.f32 %v16173_v16, %v2926_v0  ;;  %v3015_v12 = vadd.f32 %v16173_v16, %v2930_v50  ;;  %v3019_v42 = vadd.f32 %v16173_v16, %v2934_v3  ;;  %v3023_v31 = vadd.f32 %v16173_v16, %v2938_v32 }
 0x3a7   : > { %v3027_v38 = vadd.f32 %v16173_v16, %v2942_v34  ;;  %v3031_v11 = vadd.f32 %v16173_v16, %v2946_v18  ;;  %v3035_v22 = vadd.f32 %v16173_v16, %v2950_v27  ;;  %v3039_v10 = vadd.f32 %v16173_v16, %v2954_v63 }
 0x3a8   : > { %v3043_v43 = vadd.f32 %v16173_v16, %v2958_v24  ;;  %v3047_v23 = vadd.f32 %v16173_v16, %v2962_v14  ;;  %v3051_v0 = vadd.f32 %v16173_v16, %v2966_v19  ;;  %v3055_v48 = vadd.f32 %v16173_v16, %v2970_v13 }
 0x3a9   : > { %v3059_v35 = vadd.f32 %v16173_v16, %v2974_v17  ;;  %v3063_v55 = vadd.f32 %v16173_v16, %v2978_v7  ;;  %v3067_v46 = vadd.f32 %v16173_v16, %v2982_v21  ;;  %v3071_v61 = vadd.f32 %v16173_v16, %v2986_v6 }
 0x3aa   : > { %v3075_v30 = vmax.f32 %v3011_v45, 0.0  ;;  %v3079_v5 = vmax.f32 %v3015_v12, 0.0  ;;  %v3083_v59 = vmax.f32 %v3019_v42, 0.0  ;;  %v3087_v53 = vmax.f32 %v3023_v31, 0.0 }
 0x3ab   : > { %v3091_v50 = vmax.f32 %v3027_v38, 0.0  ;;  %v3095_v3 = vmax.f32 %v3031_v11, 0.0  ;;  %v3099_v32 = vmax.f32 %v3035_v22, 0.0  ;;  %v3103_v34 = vmax.f32 %v3039_v10, 0.0 }
 0x3ac   : > { %v3107_v18 = vmax.f32 %v3043_v43, 0.0  ;;  %v3111_v27 = vmax.f32 %v3047_v23, 0.0  ;;  %v3115_v63 = vmax.f32 %v3051_v0, 0.0  ;;  %v3119_v24 = vmax.f32 %v3055_v48, 0.0  ;;  %3139 = vst [vmem:[#allocation2 + $0xd8] sm:$0xff] %v3075_v30  ;;  %3143 = vst [vmem:[#allocation2 + $0x130] sm:$0xff] %v3079_v5 }
 0x3ad   : > { %3147 = vst [vmem:[#allocation2 + $0x118] sm:$0xff] %v3083_v59  ;;  %3151 = vst [vmem:[#allocation2 + $0x108] sm:$0xff] %v3087_v53  ;;  %v3123_v14 = vmax.f32 %v3059_v35, 0.0  ;;  %v3127_v19 = vmax.f32 %v3063_v55, 0.0  ;;  %v3131_v16 = vmax.f32 %v3067_v46, 0.0  ;;  %v3135_v13 = vmax.f32 %v3071_v61, 0.0 }
 0x3ae   : > { %3155 = vst [vmem:[#allocation2 + $0x138] sm:$0xff] %v3091_v50  ;;  %3159 = vst [vmem:[#allocation2 + $0x1b8] sm:$0xff] %v3095_v3  ;;  %v2842_v17 = vmul.f32 %v13120_v26, %v2770_v36  ;;  %v2846_v7 = vmul.f32 %v13120_v26, %v2774_v15  ;;  %v2850_v21 = vmul.f32 %v13120_v26, %v2778_v52 }
 0x3af   : > { %3163 = vst [vmem:[#allocation2 + $0x160] sm:$0xff] %v3099_v32  ;;  %3167 = vst [vmem:[#allocation2 + $0xf0] sm:$0xff] %v3103_v34  ;;  %v2854_v6 = vmul.f32 %v13120_v26, %v2782_v8  ;;  %v2858_v20 = vmul.f32 %v13120_v26, %v2786_v28  ;;  %v2862_v36 = vmul.f32 %v13120_v26, %v2790_v44 }
 0x3b0   : > { %3171 = vst [vmem:[#allocation2 + $0x100] sm:$0xff] %v3107_v18  ;;  %3175 = vst [vmem:[#allocation2 + $0x20] sm:$0xff] %v3111_v27  ;;  %v2866_v37 = vmul.f32 %v13120_v26, %v2794_v56  ;;  %v20433_v15 = vsub.f32 %v16037_v62, %v16167_v2  ;;  %v20434_v52 = vsub.f32 %v16056_v41, %v16167_v2 }
 0x3b1   : > { %3179 = vst [vmem:[#allocation2 + $0xe8] sm:$0xff] %v3115_v63  ;;  %3183 = vst [vmem:[#allocation2 + $0x1d8] sm:$0xff] %v3119_v24  ;;  %v20435_v8 = vsub.f32 %v16076_v54, %v16167_v2  ;;  %v2882_v28 = vmul.f32 %v13120_v26, %v20436_v58  ;;  %v2886_v44 = vmul.f32 %v13120_v26, %v20437_v29 }
 0x3b2   : > { %3187 = vst [vmem:[#allocation2 + $0xa8] sm:$0xff] %v3123_v14  ;;  %3191 = vst [vmem:[#allocation2 + $0x68] sm:$0xff] %v3127_v19  ;;  %v2870_v9 = vmul.f32 %v13120_v26, %v20433_v15  ;;  %v2874_v47 = vmul.f32 %v13120_v26, %v20434_v52  ;;  %v20438_v62 = vsub.f32 %v16122_v4, %v16167_v2 }
 0x3b3   : > { %3195 = vst [vmem:[#allocation2 + $0xc0] sm:$0xff] %v3131_v16  ;;  %3199 = vst [vmem:[#allocation2 + $0x58] sm:$0xff] %v3135_v13  ;;  %v2878_v49 = vmul.f32 %v13120_v26, %v20435_v8  ;;  %v20439_v41 = vsub.f32 %v16136_v39, %v16167_v2  ;;  %v20440_v54 = vsub.f32 %v16140_v60, %v16167_v2 }
 0x3b4   : > { %v2890_v56 = vmul.f32 %v13120_v26, %v20438_v62  ;;  %v2902_v33 = vmul.f32 %v13120_v26, %v2830_v57  ;;  %v2927_v42 = vmul.f32 %v16189_v51, %v2842_v17  ;;  %v2931_v40 = vmul.f32 %v16189_v51, %v2846_v7 }
 0x3b5   : > { %v2894_v45 = vmul.f32 %v13120_v26, %v20439_v41  ;;  %v2898_v12 = vmul.f32 %v13120_v26, %v20440_v54  ;;  %v2935_v31 = vmul.f32 %v16189_v51, %v2850_v21  ;;  %v2939_v4 = vmul.f32 %v16189_v51, %v2854_v6 }
 0x3b6   : > { %v2943_v38 = vmul.f32 %v16189_v51, %v2858_v20  ;;  %v2947_v39 = vmul.f32 %v16189_v51, %v2862_v36  ;;  %v2951_v11 = vmul.f32 %v16189_v51, %v2866_v37  ;;  %v2955_v60 = vmul.f32 %v16189_v51, %v2870_v9 }
 0x3b7   : > { %v2959_v22 = vmul.f32 %v16189_v51, %v2874_v47  ;;  %v2963_v1 = vmul.f32 %v16189_v51, %v2878_v49  ;;  %v2967_v2 = vmul.f32 %v16189_v51, %v2882_v28  ;;  %v2971_v57 = vmul.f32 %v16189_v51, %v2886_v44 }
 0x3b8   : > { %v2975_v10 = vmul.f32 %v16189_v51, %v2890_v56  ;;  %v2979_v43 = vmul.f32 %v16189_v51, %v2894_v45  ;;  %v2983_v23 = vmul.f32 %v16189_v51, %v2898_v12  ;;  %v2987_v0 = vmul.f32 %v16189_v51, %v2902_v33 }
 0x3b9   : > { %v3012_v48 = vadd.f32 %v16177_v25, %v2927_v42  ;;  %v3016_v35 = vadd.f32 %v16177_v25, %v2931_v40  ;;  %v3020_v55 = vadd.f32 %v16177_v25, %v2935_v31  ;;  %v3024_v46 = vadd.f32 %v16177_v25, %v2939_v4 }
 0x3ba   : > { %v3028_v61 = vadd.f32 %v16177_v25, %v2943_v38  ;;  %v3032_v26 = vadd.f32 %v16177_v25, %v2947_v39  ;;  %v3036_v30 = vadd.f32 %v16177_v25, %v2951_v11  ;;  %v3040_v5 = vadd.f32 %v16177_v25, %v2955_v60 }
 0x3bb   : > { %v3044_v59 = vadd.f32 %v16177_v25, %v2959_v22  ;;  %v3048_v51 = vadd.f32 %v16177_v25, %v2963_v1  ;;  %v3052_v53 = vadd.f32 %v16177_v25, %v2967_v2  ;;  %v3056_v50 = vadd.f32 %v16177_v25, %v2971_v57 }
 0x3bc   : > { %v3060_v3 = vadd.f32 %v16177_v25, %v2975_v10  ;;  %v3064_v32 = vadd.f32 %v16177_v25, %v2979_v43  ;;  %v3068_v34 = vadd.f32 %v16177_v25, %v2983_v23  ;;  %v3072_v18 = vadd.f32 %v16177_v25, %v2987_v0 }
 0x3bd   : > { %v3076_v27 = vmax.f32 %v3012_v48, 0.0  ;;  %v3080_v63 = vmax.f32 %v3016_v35, 0.0  ;;  %v3084_v24 = vmax.f32 %v3020_v55, 0.0  ;;  %v3088_v14 = vmax.f32 %v3024_v46, 0.0 }
 0x3be   : > { %v3092_v19 = vmax.f32 %v3028_v61, 0.0  ;;  %v3096_v16 = vmax.f32 %v3032_v26, 0.0  ;;  %v3100_v13 = vmax.f32 %v3036_v30, 0.0  ;;  %v3104_v17 = vmax.f32 %v3040_v5, 0.0 }
 0x3bf   : > { %v3108_v7 = vmax.f32 %v3044_v59, 0.0  ;;  %v3112_v21 = vmax.f32 %v3048_v51, 0.0  ;;  %v3116_v6 = vmax.f32 %v3052_v53, 0.0  ;;  %v3120_v20 = vmax.f32 %v3056_v50, 0.0  ;;  %3140 = vst [vmem:[#allocation2 + $0x18] sm:$0xff] %v3076_v27  ;;  %3144 = vst [vmem:[#allocation2 + $0x48] sm:$0xff] %v3080_v63 }
 0x3c0   : > { %3148 = vst [vmem:[#allocation2 + $0x98] sm:$0xff] %v3084_v24  ;;  %3152 = vst [vmem:[#allocation2 + $0x60] sm:$0xff] %v3088_v14  ;;  %v3124_v36 = vmax.f32 %v3060_v3, 0.0  ;;  %v3128_v37 = vmax.f32 %v3064_v32, 0.0  ;;  %v3132_v15 = vmax.f32 %v3068_v34, 0.0  ;;  %v3136_v25 = vmax.f32 %v3072_v18, 0.0 }
 0x3c1   : > { %3156 = vst [vmem:[#allocation2 + $0x140] sm:$0xff] %v3092_v19  ;;  %3160 = vst [vmem:[#allocation2 + $0x28] sm:$0xff] %v3096_v16 }
 0x3c2   : > { %3164 = vst [vmem:[#allocation2 + $0x30] sm:$0xff] %v3100_v13  ;;  %3168 = vst [vmem:[#allocation2 + $0x8] sm:$0xff] %v3104_v17 }
 0x3c3   : > { %3172 = vst [vmem:[#allocation2 + $0xc8] sm:$0xff] %v3108_v7  ;;  %3176 = vst [vmem:[#allocation2 + $0x128] sm:$0xff] %v3112_v21 }
 0x3c4   : > { %3180 = vst [vmem:[#allocation2 + $0x78] sm:$0xff] %v3116_v6  ;;  %3184 = vst [vmem:[#allocation2 + $0xd0] sm:$0xff] %v3120_v20 }
 0x3c5   : > { %3188 = vst [vmem:[#allocation2 + $0x1c8] sm:$0xff] %v3124_v36  ;;  %3192 = vst [vmem:[#allocation2 + $0x190] sm:$0xff] %v3128_v37 }
 0x3c6   : > { %3196 = vst [vmem:[#allocation2 + $0x1c0] sm:$0xff] %v3132_v15  ;;  %3200 = vst [vmem:[#allocation2 + $0xa0] sm:$0xff] %v3136_v25 }
 0x3c7 PF: > { %v3258_v9 = vld [vmem:[#allocation2 + $0x38] sm:$0xff]  ;;  %v3262_v52 = vld [vmem:[#allocation2 + $0x10] sm:$0xff]  ;;  %v14580_v29 = vmov 0   ;;  %v3259_v56 = vld [vmem:[#allocation2 + $0xc0] sm:$0xff]  ;;  %p12347_p13 = scmp.ne.s32.totalorder %s14680_s19, 4 }
 0x3c8   : > { %v16363_v8 = vpack.c.bf16 %v3262_v52, %v3258_v9  ;;  %v3257_v58 = vld [vmem:[#allocation2 + $0x198] sm:$0xff]  ;;  %4034 = vmatprep.mubr.bf16.mxu0 %v14580_v29  ;;  %4307 = vmatprep.mubr.bf16.mxu1 %v14580_v29  ;;  %v3250_v45 = vld [vmem:[#allocation2 + $0x88] sm:$0xff]  ;;  %v20445_v40 = vld [vmem:[#allocation33_spill] sm:$0xff]  ;;  %s20955_s2 = sld [smem:[#allocation213_spill]] (!%p12347_p13) }
 0x3c9   : > { %v3261_v28 = vld [vmem:[#allocation2 + $0x158] sm:$0xff]  ;;  %13121 = vset.pattern.permute.xlu0 %v14580_v29  ;;  %13122 = vset.pattern.permute.xlu1 %v14580_v29  ;;  %v3253_v39 = vld [vmem:[#allocation2 + $0x170] sm:$0xff]  ;;  %v3251_v11 = vld [vmem:[#allocation2 + $0xa8] sm:$0xff] }
 0x3ca   : > { %20441 = vst [vmem:[#allocation97_spill] sm:$0xff] %v16363_v8  ;;  %v16369_v62 = vpack.c.bf16 %v3261_v28, %v3257_v58  ;;  %v3263_v41 = vld [vmem:[#allocation2 + $0x58] sm:$0xff]  ;;  %4002 = vmatprep.subr.bf16.mxu0 %v16363_v8  ;;  %9035 = vperm.xlu0 %13121, %v20445_v40   ;;  %v3255_v22 = vld [vmem:[#allocation2 + $0x68] sm:$0xff]  ;;  %v3242_v1 = vld [vmem:[#allocation2 + $0x1f0] sm:$0xff] }
 0x3cb   : > { %v16374_v54 = vpack.c.bf16 %v3263_v41, %v3259_v56  ;;  %v3254_v12 = vld [vmem:[#allocation2 + $0x178] sm:$0xff]  ;;  %v3246_v2 = vld [vmem:[#allocation2 + $0x90] sm:$0xff]  ;;  %v20449_v57 = vld [vmem:[#allocation35_spill] sm:$0xff]  ;;  %v16389_v10 = vpack.c.bf16 %v3255_v22, %v3251_v11 }
 0x3cc   : > { %20443 = vst [vmem:[#allocation99_spill] sm:$0xff] %v16369_v62  ;;  %v3252_v33 = vld [vmem:[#allocation2 + $0x1c8] sm:$0xff]  ;;  %v3256_v42 = vld [vmem:[#allocation2 + $0x190] sm:$0xff]  ;;  %4003 = vmatpush1.bf16.msra.mxu0 %v16369_v62  ;;  %v16379_v31 = vpack.c.bf16 %v3254_v12, %v3250_v45  ;;  %v3249_v38 = vld [vmem:[#allocation2 + $0xb8] sm:$0xff]  ;;  %9045 = vperm.xlu1 %13122, %v20449_v57   ;;  %v16391_v43 = vpack.c.bf16 %v3246_v2, %v3242_v1 }
 0x3cd   : > { %v3260_v47 = vld [vmem:[#allocation2 + $0x1c0] sm:$0xff]  ;;  %20444 = vst [vmem:[#allocation100_spill] sm:$0xff] %v16374_v54  ;;  %v16381_v4 = vpack.c.bf16 %v3256_v42, %v3252_v33  ;;  %v16384_v60 = vpack.c.bf16 %v3253_v39, %v3249_v38  ;;  %20450 = vst [vmem:[#allocation35_spill] sm:$0xff] %v16389_v10  ;;  %v3244_v23 = vld [vmem:[#allocation2 + $0x78] sm:$0xff] }
 0x3ce   : > { %v3264_v49 = vld [vmem:[#allocation2 + $0xa0] sm:$0xff]  ;;  %20446 = vst [vmem:[#allocation33_spill] sm:$0xff] %v16379_v31  ;;  %4004 = vmatprep.subr.bf16.mxu0 %v16379_v31  ;;  %20451 = vst [vmem:[#allocation103_spill] sm:$0xff] %v16391_v43  ;;  %v3248_v0 = vld [vmem:[#allocation2 + $0xd0] sm:$0xff] }
 0x3cf   : > { %v16367_v44 = vpack.c.bf16 %v3264_v49, %v3260_v47  ;;  %20447 = vst [vmem:[#allocation101_spill] sm:$0xff] %v16381_v4  ;;  %20448 = vst [vmem:[#allocation102_spill] sm:$0xff] %v16384_v60  ;;  %v3241_v48 = vld [vmem:[#allocation2 + $0x1a0] sm:$0xff]  ;;  %v16393_v35 = vpack.c.bf16 %v3248_v0, %v3244_v23  ;;  %v3245_v55 = vld [vmem:[#allocation2 + $0x70] sm:$0xff] }
 0x3d0   : > { %v3243_v46 = vld [vmem:[#allocation2 + $0xe8] sm:$0xff]  ;;  %v3247_v61 = vld [vmem:[#allocation2 + $0x1d8] sm:$0xff]  ;;  %4005 = vmatpush1.bf16.msra.mxu0 %v16384_v60  ;;  %v16397_v30 = vpack.c.bf16 %v3245_v55, %v3241_v48  ;;  %v3234_v5 = vld [vmem:[#allocation2 + $0x1d0] sm:$0xff] }
 0x3d1   : > { %20442 = vst [vmem:[#allocation98_spill] sm:$0xff] %v16367_v44  ;;  %4275 = vmatprep.subr.bf16.mxu1 %v16367_v44  ;;  %20452 = vst [vmem:[#allocation104_spill] sm:$0xff] %v16393_v35  ;;  %v20453_v26 = vld [vmem:[#allocation34_spill] sm:$0xff]  ;;  %v3236_v51 = vld [vmem:[#allocation2 + $0xc8] sm:$0xff]  ;;  %4006 = vmatprep.subr.bf16.mxu0 %v16391_v43  ;;  %v16401_v53 = vpack.c.bf16 %v3247_v61, %v3243_v46 }
 0x3d2   : > { %4276 = vmatpush1.bf16.msra.mxu1 %v16374_v54  ;;  %9040 = vperm.xlu0 %13121, %v20453_v26   ;;  %20454 = vst [vmem:[#allocation34_spill] sm:$0xff] %v16397_v30  ;;  %v3238_v59 = vld [vmem:[#allocation2 + $0x1f8] sm:$0xff]  ;;  %v3240_v3 = vld [vmem:[#allocation2 + $0x128] sm:$0xff]  ;;  %v3237_v34 = vld [vmem:[#allocation2 + $0x40] sm:$0xff] }
 0x3d3   : > { %4277 = vmatprep.subr.bf16.mxu1 %v16381_v4  ;;  %20455 = vst [vmem:[#allocation105_spill] sm:$0xff] %v16401_v53  ;;  %v16403_v50 = vpack.c.bf16 %v3238_v59, %v3234_v5  ;;  %v3233_v32 = vld [vmem:[#allocation2 + $0x148] sm:$0xff]  ;;  %v16406_v18 = vpack.c.bf16 %v3240_v3, %v3236_v51  ;;  %v3235_v27 = vld [vmem:[#allocation2 + $0x100] sm:$0xff]  ;;  %v3226_v24 = vld [vmem:[#allocation2 + $0xf8] sm:$0xff] }
 0x3d4   : > { %v3239_v63 = vld [vmem:[#allocation2 + $0x20] sm:$0xff]  ;;  %v20458_v14 = vld [vmem:[#allocation36_spill] sm:$0xff]  ;;  %v3228_v16 = vld [vmem:[#allocation2 + $0x30] sm:$0xff]  ;;  %4007 = vmatpush1.bf16.msra.mxu0 %v16397_v30  ;;  %v16411_v7 = vpack.c.bf16 %v3237_v34, %v3233_v32 }
 0x3d5   : > { %20456 = vst [vmem:[#allocation106_spill] sm:$0xff] %v16403_v50  ;;  %20457 = vst [vmem:[#allocation107_spill] sm:$0xff] %v16406_v18  ;;  %9050 = vperm.xlu1 %13122, %v20458_v14   ;;  %v3230_v19 = vld [vmem:[#allocation2] sm:$0xff]  ;;  %v3232_v13 = vld [vmem:[#allocation2 + $0x8] sm:$0xff]  ;;  %4008 = vmatprep.subr.bf16.mxu0 %v16403_v50  ;;  %v16415_v21 = vpack.c.bf16 %v3239_v63, %v3235_v27 }
 0x3d6   : > { %4278 = vmatpush1.bf16.msra.mxu1 %v16389_v10  ;;  %v20459_v17 = vld [vmem:[#allocation37_spill] sm:$0xff]  ;;  %20460 = vst [vmem:[#allocation36_spill] sm:$0xff] %v16411_v7  ;;  %v16417_v6 = vpack.c.bf16 %v3230_v19, %v3226_v24  ;;  %v3225_v20 = vld [vmem:[#allocation2 + $0x1e8] sm:$0xff]  ;;  %v3229_v36 = vld [vmem:[#allocation2 + $0x1e0] sm:$0xff]  ;;  %v16420_v15 = vpack.c.bf16 %v3232_v13, %v3228_v16 }
 0x3d7   : > { %4279 = vmatprep.subr.bf16.mxu1 %v16393_v35  ;;  %9055 = vperm.xlu0 %13121, %v20459_v17   ;;  %20461 = vst [vmem:[#allocation37_spill] sm:$0xff] %v16415_v21  ;;  %v3227_v37 = vld [vmem:[#allocation2 + $0x160] sm:$0xff]  ;;  %v3231_v25 = vld [vmem:[#allocation2 + $0xf0] sm:$0xff]  ;;  %v3218_v9 = vld [vmem:[#allocation2 + $0x188] sm:$0xff]  ;;  %v16425_v56 = vpack.c.bf16 %v3229_v36, %v3225_v20 }
 0x3d8   : > { %20462 = vst [vmem:[#allocation108_spill] sm:$0xff] %v16417_v6  ;;  %20463 = vst [vmem:[#allocation109_spill] sm:$0xff] %v16420_v15  ;;  %v3222_v52 = vld [vmem:[#allocation2 + $0x1a8] sm:$0xff]  ;;  %v20464_v47 = vld [vmem:[#allocation38_spill] sm:$0xff]  ;;  %4009 = vmatpush1.bf16.msra.mxu0 %v16411_v7  ;;  %v16429_v41 = vpack.c.bf16 %v3231_v25, %v3227_v37 }
 0x3d9   : > { %9060 = vperm.xlu1 %13122, %v20464_v47   ;;  %v3220_v49 = vld [vmem:[#allocation2 + $0x140] sm:$0xff]  ;;  %v3224_v58 = vld [vmem:[#allocation2 + $0x28] sm:$0xff]  ;;  %20466 = vst [vmem:[#allocation38_spill] sm:$0xff] %v16425_v56  ;;  %4010 = vmatprep.subr.bf16.mxu0 %v16417_v6  ;;  %v16431_v45 = vpack.c.bf16 %v3222_v52, %v3218_v9  ;;  %v3219_v42 = vld [vmem:[#allocation2 + $0x138] sm:$0xff] }
 0x3da   : > { %4280 = vmatpush1.bf16.msra.mxu1 %v16401_v53  ;;  %v20465_v28 = vld [vmem:[#allocation39_spill] sm:$0xff]  ;;  %v16434_v40 = vpack.c.bf16 %v3224_v58, %v3220_v49  ;;  %v3223_v38 = vld [vmem:[#allocation2 + $0x1b8] sm:$0xff]  ;;  %v3210_v39 = vld [vmem:[#allocation2 + $0x110] sm:$0xff] }
 0x3db   : > { %4281 = vmatprep.subr.bf16.mxu1 %v16406_v18  ;;  %9065 = vperm.xlu0 %13121, %v20465_v28   ;;  %20467 = vst [vmem:[#allocation39_spill] sm:$0xff] %v16429_v41  ;;  %20468 = vst [vmem:[#allocation110_spill] sm:$0xff] %v16431_v45  ;;  %v3217_v12 = vld [vmem:[#allocation2 + $0xe0] sm:$0xff]  ;;  %v3214_v11 = vld [vmem:[#allocation2 + $0x150] sm:$0xff]  ;;  %v16443_v61 = vpack.c.bf16 %v3223_v38, %v3219_v42 }
 0x3dc   : > { %v3221_v33 = vld [vmem:[#allocation2 + $0x80] sm:$0xff]  ;;  %20469 = vst [vmem:[#allocation111_spill] sm:$0xff] %v16434_v40  ;;  %v20470_v22 = vld [vmem:[#allocation40_spill] sm:$0xff]  ;;  %v3212_v1 = vld [vmem:[#allocation2 + $0x98] sm:$0xff]  ;;  %4011 = vmatpush1.bf16.msra.mxu0 %v16425_v56  ;;  %v16445_v26 = vpack.c.bf16 %v3214_v11, %v3210_v39 }
 0x3dd   : > { %9070 = vperm.xlu1 %13122, %v20470_v22   ;;  %v3216_v2 = vld [vmem:[#allocation2 + $0x60] sm:$0xff]  ;;  %v20471_v23 = vld [vmem:[#allocation41_spill] sm:$0xff]  ;;  %v16439_v0 = vpack.c.bf16 %v3221_v33, %v3217_v12  ;;  %v3211_v55 = vld [vmem:[#allocation2 + $0x118] sm:$0xff]  ;;  %4012 = vmatprep.subr.bf16.mxu0 %v16431_v45 }
 0x3de   : > { %4282 = vmatpush1.bf16.msra.mxu1 %v16415_v21  ;;  %v3209_v57 = vld [vmem:[#allocation2 + $0x180] sm:$0xff]  ;;  %v3215_v46 = vld [vmem:[#allocation2 + $0x108] sm:$0xff]  ;;  %20473 = vst [vmem:[#allocation41_spill] sm:$0xff] %v16443_v61  ;;  %20474 = vst [vmem:[#allocation112_spill] sm:$0xff] %v16445_v26  ;;  %v16448_v59 = vpack.c.bf16 %v3216_v2, %v3212_v1 }
 0x3df   : > { %4283 = vmatprep.subr.bf16.mxu1 %v16420_v15  ;;  %9075 = vperm.xlu0 %13121, %v20471_v23   ;;  %20472 = vst [vmem:[#allocation40_spill] sm:$0xff] %v16439_v0  ;;  %v3213_v48 = vld [vmem:[#allocation2 + $0x120] sm:$0xff]  ;;  %v3202_v5 = vld [vmem:[#allocation2 + $0x1b0] sm:$0xff]  ;;  %v3206_v51 = vld [vmem:[#allocation2 + $0x168] sm:$0xff]  ;;  %v16457_v19 = vpack.c.bf16 %v3215_v46, %v3211_v55 }
 0x3e0   : > { %20475 = vst [vmem:[#allocation113_spill] sm:$0xff] %v16448_v59  ;;  %v20476_v3 = vld [vmem:[#allocation42_spill] sm:$0xff]  ;;  %v3208_v34 = vld [vmem:[#allocation2 + $0x48] sm:$0xff]  ;;  %v20477_v27 = vld [vmem:[#allocation43_spill] sm:$0xff]  ;;  %4013 = vmatpush1.bf16.msra.mxu0 %v16439_v0  ;;  %v16453_v63 = vpack.c.bf16 %v3213_v48, %v3209_v57  ;;  %v16459_v16 = vpack.c.bf16 %v3206_v51, %v3202_v5 }
 0x3e1   : > { %9080 = vperm.xlu1 %13122, %v20476_v3   ;;  %v3204_v32 = vld [vmem:[#allocation2 + $0x18] sm:$0xff]  ;;  %v3201_v24 = vld [vmem:[#allocation2 + $0xb0] sm:$0xff]  ;;  %4014 = vmatprep.subr.bf16.mxu0 %v16445_v26  ;;  %20479 = vst [vmem:[#allocation43_spill] sm:$0xff] %v16457_v19  ;;  %v20482_v36 = vld [vmem:[#allocation44_spill] sm:$0xff] }
 0x3e2   : > { %4284 = vmatpush1.bf16.msra.mxu1 %v16429_v41  ;;  %20478 = vst [vmem:[#allocation42_spill] sm:$0xff] %v16453_v63  ;;  %v3205_v14 = vld [vmem:[#allocation2 + $0x50] sm:$0xff]  ;;  %20480 = vst [vmem:[#allocation114_spill] sm:$0xff] %v16459_v16  ;;  %v3203_v13 = vld [vmem:[#allocation2 + $0xd8] sm:$0xff]  ;;  %v16462_v17 = vpack.c.bf16 %v3208_v34, %v3204_v32 }
 0x3e3   : > { %4285 = vmatprep.subr.bf16.mxu1 %v16434_v40  ;;  %9085 = vperm.xlu0 %13121, %v20477_v27   ;;  %v3207_v20 = vld [vmem:[#allocation2 + $0x130] sm:$0xff]  ;;  %v16467_v25 = vpack.c.bf16 %v3205_v14, %v3201_v24  ;;  %v13126_v52 = vld [vmem:[%s14901_s14 + $0xe4] ss:$16 sps:$4 sm:$0xff]   ;;  %v13123_v58 = vld [vmem:[#allocation5] sm:$0xff]  }
 0x3e4   : > { %20481 = vst [vmem:[#allocation115_spill] sm:$0xff] %v16462_v17  ;;  %v20483_v37 = vld [vmem:[#allocation45_spill] sm:$0xff]  ;;  %4015 = vmatpush1.bf16.msra.mxu0 %v16453_v63  ;;  %v16471_v9 = vpack.c.bf16 %v3207_v20, %v3203_v13  ;;  %v13129_v47 = vld [vmem:[%s14901_s14 + $0x2e4] ss:$16 sps:$4 sm:$0xff]   ;;  %v20487_v28 = vld [vmem:[#allocation47_spill] sm:$0xff] }
 0x3e5   : > { %9090 = vperm.xlu1 %13122, %v20482_v36   ;;  %20484 = vst [vmem:[#allocation44_spill] sm:$0xff] %v16467_v25  ;;  %4016 = vmatprep.subr.bf16.mxu0 %v16459_v16  ;;  %v20486_v49 = vld [vmem:[#allocation46_spill] sm:$0xff]  ;;  %v13124_v12 = vld [vmem:[%s14901_s14 + $0xe0] ss:$16 sps:$4 sm:$0xff]   ;;  %v20488_v38 = vld [vmem:[#allocation48_spill] sm:$0xff] }
 0x3e6   : > { %4286 = vmatpush1.bf16.msra.mxu1 %v16443_v61  ;;  %20485 = vst [vmem:[#allocation45_spill] sm:$0xff] %v16471_v9  ;;  %v13127_v33 = vld [vmem:[%s14901_s14 + $0x2e0] ss:$16 sps:$4 sm:$0xff]   ;;  %v13133_v42 = vld [vmem:[%s14901_s14 + $0xc4] ss:$16 sps:$4 sm:$0xff]  }
 0x3e7   : > { %4287 = vmatprep.subr.bf16.mxu1 %v16448_v59  ;;  %9095 = vperm.xlu0 %13121, %v20483_v37   ;;  %v13136_v39 = vld [vmem:[%s14901_s14 + $0x2c4] ss:$16 sps:$4 sm:$0xff]   ;;  %v13131_v11 = vld [vmem:[%s14901_s14 + $0xc0] ss:$16 sps:$4 sm:$0xff]  }
 0x3e8   : > { %4017 = vmatpush1.bf16.msra.mxu0 %v16467_v25  ;;  %v13134_v22 = vld [vmem:[%s14901_s14 + $0x2c0] ss:$16 sps:$4 sm:$0xff]   ;;  %v13141_v1 = vld [vmem:[%s14901_s14 + $0xa4] ss:$16 sps:$4 sm:$0xff]  }
 0x3e9   : > { %9100 = vperm.xlu1 %13122, %v20486_v49   ;;  %7225 = vmatprep.subr.bf16.mxu0 %v13126_v52  ;;  %v13144_v2 = vld [vmem:[%s14901_s14 + $0x2a4] ss:$16 sps:$4 sm:$0xff]   ;;  %v13139_v23 = vld [vmem:[%s14901_s14 + $0xa0] ss:$16 sps:$4 sm:$0xff]  }
 0x3ea   : > { %4288 = vmatpush1.bf16.msra.mxu1 %v16457_v19  ;;  %v13130_v57 = vld [vmem:[#allocation5 + $0x8] sm:$0xff]   ;;  %v13142_v48 = vld [vmem:[%s14901_s14 + $0x2a0] ss:$16 sps:$4 sm:$0xff]   ;;  %v13138_v20 = vld [vmem:[#allocation5 + $0x18] sm:$0xff]  }
 0x3eb   : > { %4289 = vmatprep.subr.bf16.mxu1 %v16462_v17  ;;  %9105 = vperm.xlu0 %13121, %v20487_v28   ;;  %v13148_v55 = vld [vmem:[%s14901_s14 + $0x84] ss:$16 sps:$4 sm:$0xff]   ;;  %v13146_v5 = vld [vmem:[%s14901_s14 + $0x80] ss:$16 sps:$4 sm:$0xff]  }
 0x3ec   : > { %4035 = vmatmul.mubr.bf16.vlgmr.msra.gmra.mxu0 %v13123_v58  ;;  %v13151_v46 = vld [vmem:[%s14901_s14 + $0x284] ss:$16 sps:$4 sm:$0xff]   ;;  %v13137_v51 = vld [vmem:[#allocation5 + $0x10] sm:$0xff]  }
 0x3ed   : > { %9110 = vperm.xlu1 %13122, %v20488_v38   ;;  %7226 = vmatpush1.bf16.msra.mxu0 %v13124_v12  ;;  %v13149_v3 = vld [vmem:[%s14901_s14 + $0x280] ss:$16 sps:$4 sm:$0xff]   ;;  %v13156_v32 = vld [vmem:[%s14901_s14 + $0x64] ss:$16 sps:$4 sm:$0xff]  }
 0x3ee   : > { %4290 = vmatpush1.bf16.msra.mxu1 %v16471_v9  ;;  %4044 = vmatprep.mubr.bf16.mxu0 %v14580_v29  ;;  %v13159_v34 = vld [vmem:[%s14901_s14 + $0x264] ss:$16 sps:$4 sm:$0xff]   ;;  %v13154_v27 = vld [vmem:[%s14901_s14 + $0x60] ss:$16 sps:$4 sm:$0xff]  }
 0x3ef   : > { %7338 = vmatprep.subr.bf16.mxu1 %v13129_v47  ;;  %7227 = vmatprep.subr.bf16.mxu0 %v13133_v42  ;;  %v13157_v24 = vld [vmem:[%s14901_s14 + $0x260] ss:$16 sps:$4 sm:$0xff]   ;;  %v13163_v14 = vld [vmem:[%s14901_s14 + $0x44] ss:$16 sps:$4 sm:$0xff]  }
 0x3f0   : > { %v13166_v13 = vld [vmem:[%s14901_s14 + $0x244] ss:$16 sps:$4 sm:$0xff]   ;;  %v13161_v36 = vld [vmem:[%s14901_s14 + $0x40] ss:$16 sps:$4 sm:$0xff]  }
 0x3f1   : > { %4308 = vmatmul.mubr.bf16.vlgmr.msra.gmra.mxu1 %v13123_v58  ;;  %7228 = vmatpush1.bf16.msra.mxu0 %v13131_v11  ;;  %v13164_v37 = vld [vmem:[%s14901_s14 + $0x240] ss:$16 sps:$4 sm:$0xff]   ;;  %v13171_v52 = vld [vmem:[%s14901_s14 + $0x24] ss:$16 sps:$4 sm:$0xff]  }
 0x3f2   : > { %7339 = vmatpush1.bf16.msra.mxu1 %v13127_v33  ;;  %4317 = vmatprep.mubr.bf16.mxu1 %v14580_v29  ;;  %v13174_v47 = vld [vmem:[%s14901_s14 + $0x224] ss:$16 sps:$4 sm:$0xff]   ;;  %v13169_v49 = vld [vmem:[%s14901_s14 + $0x20] ss:$16 sps:$4 sm:$0xff]  }
 0x3f3   : > { %7340 = vmatprep.subr.bf16.mxu1 %v13136_v39  ;;  %7229 = vmatprep.subr.bf16.mxu0 %v13141_v1  ;;  %v13172_v58 = vld [vmem:[%s14901_s14 + $0x220] ss:$16 sps:$4 sm:$0xff]   ;;  %v13178_v28 = vld [vmem:[%s14901_s14 + $0x4] ss:$16 sps:$4 sm:$0xff]  }
 0x3f4   : > { %4045 = vmatmul.mubr.bf16.gmra.mxu0 %v13130_v57  ;;  %v13181_v12 = vld [vmem:[%s14901_s14 + $0x204] ss:$16 sps:$4 sm:$0xff]   ;;  %v13145_v33 = vld [vmem:[#allocation5 + $0x20] sm:$0xff]  }
 0x3f5   : > { %4054 = vmatprep.mubr.bf16.mxu0 %v14580_v29  ;;  %7230 = vmatpush1.bf16.msra.mxu0 %v13139_v23  ;;  %v13176_v42 = vld [vmem:[%s14901_s14] ss:$16 sps:$4 sm:$0xff]   ;;  %v13186_v39 = vld [vmem:[%s14901_s14 + $0x1e4] ss:$16 sps:$4 sm:$0xff]  }
 0x3f6   : > { %7341 = vmatpush1.bf16.msra.mxu1 %v13134_v22  ;;  %7231 = vmatprep.subr.bf16.mxu0 %v13148_v55  ;;  %v13179_v38 = vld [vmem:[%s14901_s14 + $0x200] ss:$16 sps:$4 sm:$0xff]   ;;  %v13189_v11 = vld [vmem:[%s14901_s14 + $0x3e4] ss:$16 sps:$4 sm:$0xff]  }
 0x3f7   : > { %7342 = vmatprep.subr.bf16.mxu1 %v13144_v2  ;;  %v13184_v22 = vld [vmem:[%s14901_s14 + $0x1e0] ss:$16 sps:$4 sm:$0xff]   ;;  %v13193_v2 = vld [vmem:[%s14901_s14 + $0x1c4] ss:$16 sps:$4 sm:$0xff]  }
 0x3f8   : > { %v13187_v1 = vld [vmem:[%s14901_s14 + $0x3e0] ss:$16 sps:$4 sm:$0xff]  }
 0x3f9   : > { %4318 = vmatmul.mubr.bf16.gmra.mxu1 %v13130_v57  ;;  %7232 = vmatpush1.bf16.msra.mxu0 %v13146_v5  ;;  %v13196_v57 = vld [vmem:[%s14901_s14 + $0x3c4] ss:$16 sps:$4 sm:$0xff]   ;;  %v13191_v23 = vld [vmem:[%s14901_s14 + $0x1c0] ss:$16 sps:$4 sm:$0xff]  }
 0x3fa   : > { %4327 = vmatprep.mubr.bf16.mxu1 %v14580_v29  ;;  %7343 = vmatpush1.bf16.msra.mxu1 %v13142_v48  ;;  %v13152_v48 = vld [vmem:[#allocation5 + $0x28] sm:$0xff]   ;;  %v13194_v55 = vld [vmem:[%s14901_s14 + $0x3c0] ss:$16 sps:$4 sm:$0xff]  }
 0x3fb   : > { %7344 = vmatprep.subr.bf16.mxu1 %v13151_v46  ;;  %7233 = vmatprep.subr.bf16.mxu0 %v13156_v32  ;;  %v13201_v46 = vld [vmem:[%s14901_s14 + $0x1a4] ss:$16 sps:$4 sm:$0xff]  }
 0x3fc   : > { %4055 = vmatmul.mubr.bf16.gmra.mxu0 %v13137_v51  ;;  %v13204_v5 = vld [vmem:[%s14901_s14 + $0x3a4] ss:$16 sps:$4 sm:$0xff]  }
 0x3fd   : > { %4064 = vmatprep.mubr.bf16.mxu0 %v14580_v29  ;;  %7234 = vmatpush1.bf16.msra.mxu0 %v13154_v27  ;;  %v13208_v32 = vld [vmem:[%s14901_s14 + $0x184] ss:$16 sps:$4 sm:$0xff]   ;;  %v13153_v27 = vld [vmem:[#allocation5 + $0x30] sm:$0xff]  }
 0x3fe   : > { %7345 = vmatpush1.bf16.msra.mxu1 %v13149_v3  ;;  %7235 = vmatprep.subr.bf16.mxu0 %v13163_v14  ;;  %v13202_v3 = vld [vmem:[%s14901_s14 + $0x3a0] ss:$16 sps:$4 sm:$0xff]  }
 0x3ff   : > { %7346 = vmatprep.subr.bf16.mxu1 %v13159_v34  ;;  %v13211_v34 = vld [vmem:[%s14901_s14 + $0x384] ss:$16 sps:$4 sm:$0xff]   ;;  %v13209_v14 = vld [vmem:[%s14901_s14 + $0x380] ss:$16 sps:$4 sm:$0xff]  }
 0x401   : > { %4328 = vmatmul.mubr.bf16.gmra.mxu1 %v13137_v51  ;;  %7236 = vmatpush1.bf16.msra.mxu0 %v13161_v36  ;;  %v13199_v51 = vld [vmem:[%s14901_s14 + $0x1a0] ss:$16 sps:$4 sm:$0xff]  }
 0x402   : > { %4337 = vmatprep.mubr.bf16.mxu1 %v14580_v29  ;;  %7347 = vmatpush1.bf16.msra.mxu1 %v13157_v24  ;;  %v13206_v24 = vld [vmem:[%s14901_s14 + $0x180] ss:$16 sps:$4 sm:$0xff]  }
 0x403   : > { %7348 = vmatprep.subr.bf16.mxu1 %v13166_v13  ;;  %7237 = vmatprep.subr.bf16.mxu0 %v13171_v52  ;;  %v13216_v13 = vld [vmem:[%s14901_s14 + $0x164] ss:$16 sps:$4 sm:$0xff]   ;;  %v13214_v36 = vld [vmem:[%s14901_s14 + $0x160] ss:$16 sps:$4 sm:$0xff]  }
 0x404   : > { %4065 = vmatmul.mubr.bf16.gmra.mxu0 %v13138_v20  ;;  %v13223_v52 = vld [vmem:[%s14901_s14 + $0x144] ss:$16 sps:$4 sm:$0xff]  }
 0x405   : > { %4074 = vmatprep.mubr.bf16.mxu0 %v14580_v29  ;;  %7238 = vmatpush1.bf16.msra.mxu0 %v13169_v49  ;;  %v13160_v49 = vld [vmem:[#allocation5 + $0x38] sm:$0xff]  }
 0x406   : > { %7349 = vmatpush1.bf16.msra.mxu1 %v13164_v37  ;;  %7239 = vmatprep.subr.bf16.mxu0 %v13178_v28  ;;  %v13217_v37 = vld [vmem:[%s14901_s14 + $0x360] ss:$16 sps:$4 sm:$0xff]  }
 0x407   : > { %7350 = vmatprep.subr.bf16.mxu1 %v13174_v47  ;;  %v13226_v47 = vld [vmem:[%s14901_s14 + $0x344] ss:$16 sps:$4 sm:$0xff]   ;;  %v13224_v28 = vld [vmem:[%s14901_s14 + $0x340] ss:$16 sps:$4 sm:$0xff]  }
 0x409   : > { %4338 = vmatmul.mubr.bf16.gmra.mxu1 %v13138_v20  ;;  %7240 = vmatpush1.bf16.msra.mxu0 %v13176_v42  ;;  %v13219_v20 = vld [vmem:[%s14901_s14 + $0x364] ss:$16 sps:$4 sm:$0xff]  }
 0x40a   : > { %4347 = vmatprep.mubr.bf16.mxu1 %v14580_v29  ;;  %7351 = vmatpush1.bf16.msra.mxu1 %v13172_v58  ;;  %v13221_v58 = vld [vmem:[%s14901_s14 + $0x140] ss:$16 sps:$4 sm:$0xff]   ;;  %v13234_v42 = vld [vmem:[%s14901_s14 + $0x324] ss:$16 sps:$4 sm:$0xff]  }
 0x40b   : > { %7352 = vmatprep.subr.bf16.mxu1 %v13181_v12  ;;  %7241 = vmatprep.subr.bf16.mxu0 %v13186_v39  ;;  %v13231_v12 = vld [vmem:[%s14901_s14 + $0x124] ss:$16 sps:$4 sm:$0xff]  }
 0x40c   : > { %4075 = vmatmul.mubr.bf16.gmra.mxu0 %v13145_v33  ;;  %v13238_v39 = vld [vmem:[%s14901_s14 + $0x104] ss:$16 sps:$4 sm:$0xff]  }
 0x40d   : > { %4084 = vmatprep.mubr.bf16.mxu0 %v14580_v29  ;;  %7242 = vmatpush2.bf16.msra.mxu0 %v13184_v22  ;;  %v13236_v22 = vld [vmem:[%s14901_s14 + $0x100] ss:$16 sps:$4 sm:$0xff]  }
 0x40e   : > { %7353 = vmatpush1.bf16.msra.mxu1 %v13179_v38  ;;  %7243 = vmatprep.subr.bf16.mxu0 %v13193_v2  ;;  %v13232_v38 = vld [vmem:[%s14901_s14 + $0x320] ss:$16 sps:$4 sm:$0xff]  }
 0x40f   : > { %7354 = vmatprep.subr.bf16.mxu1 %v13189_v11  ;;  %v13241_v11 = vld [vmem:[%s14901_s14 + $0x304] ss:$16 sps:$4 sm:$0xff]   ;;  %v13167_v2 = vld [vmem:[#allocation5 + $0x40] sm:$0xff]  }
 0x411   : > { %4348 = vmatmul.mubr.bf16.gmra.mxu1 %v13145_v33  ;;  %7244 = vmatpush2.bf16.msra.mxu0 %v13191_v23  ;;  %v13229_v33 = vld [vmem:[%s14901_s14 + $0x120] ss:$16 sps:$4 sm:$0xff]   ;;  %v13248_v23 = vld [vmem:[%s14901_s14 + $0x6e4] ss:$16 sps:$4 sm:$0xff]  }
 0x412   : > { %4357 = vmatprep.mubr.bf16.mxu1 %v14580_v29  ;;  %7355 = vmatpush2.bf16.msra.mxu1 %v13187_v1  ;;  %v13239_v1 = vld [vmem:[%s14901_s14 + $0x300] ss:$16 sps:$4 sm:$0xff]  }
 0x413   : > { %7356 = vmatprep.subr.bf16.mxu1 %v13196_v57  ;;  %7245 = vmatprep.subr.bf16.mxu0 %v13201_v46  ;;  %v13245_v57 = vld [vmem:[%s14901_s14 + $0x4e4] ss:$16 sps:$4 sm:$0xff]  }
 0x414   : > { %4085 = vmatmul.mubr.bf16.gmra.mxu0 %v13152_v48  ;;  %v13182_v46 = vld [vmem:[#allocation5 + $0x58] sm:$0xff]  }
 0x415   : > { %4094 = vmatprep.mubr.bf16.mxu0 %v14580_v29  ;;  %7246 = vmatpush2.bf16.msra.mxu0 %v13199_v51  ;;  %v13190_v51 = vld [vmem:[#allocation5 + $0x68] sm:$0xff]  }
 0x416   : > { %7357 = vmatpush2.bf16.msra.mxu1 %v13194_v55  ;;  %7247 = vmatprep.subr.bf16.mxu0 %v13208_v32  ;;  %v13175_v55 = vld [vmem:[#allocation5 + $0x50] sm:$0xff]   ;;  %v13198_v32 = vld [vmem:[#allocation5 + $0x78] sm:$0xff]  }
 0x417   : > { %7358 = vmatprep.subr.bf16.mxu1 %v13204_v5  ;;  %v13183_v5 = vld [vmem:[#allocation5 + $0x60] sm:$0xff]  }
 0x419   : > { %4358 = vmatmul.mubr.bf16.gmra.mxu1 %v13152_v48  ;;  %7248 = vmatpush2.bf16.msra.mxu0 %v13206_v24  ;;  %v13168_v48 = vld [vmem:[#allocation5 + $0x48] sm:$0xff]   ;;  %v13213_v24 = vld [vmem:[#allocation5 + $0x90] sm:$0xff]  }
 0x41a   : > { %4367 = vmatprep.mubr.bf16.mxu1 %v14580_v29  ;;  %7359 = vmatpush2.bf16.msra.mxu1 %v13202_v3  ;;  %v13197_v3 = vld [vmem:[#allocation5 + $0x70] sm:$0xff]  }
 0x41b   : > { %7360 = vmatprep.subr.bf16.mxu1 %v13211_v34  ;;  %7249 = vmatprep.subr.bf16.mxu0 %v13216_v13  ;;  %v13205_v34 = vld [vmem:[#allocation5 + $0x80] sm:$0xff]  }
 0x41c   : > { %4095 = vmatmul.mubr.bf16.gmra.mxu0 %v13153_v27  ;;  %v13227_v13 = vld [vmem:[#allocation5 + $0xa0] sm:$0xff]  }
 0x41d   : > { %4104 = vmatprep.mubr.bf16.mxu0 %v14580_v29  ;;  %7250 = vmatpush2.bf16.msra.mxu0 %v13214_v36  ;;  %v13235_v36 = vld [vmem:[#allocation5 + $0xb0] sm:$0xff]  }
 0x41e   : > { %7361 = vmatpush2.bf16.msra.mxu1 %v13209_v14  ;;  %7251 = vmatprep.subr.bf16.mxu0 %v13223_v52  ;;  %v13220_v14 = vld [vmem:[#allocation5 + $0x98] sm:$0xff]   ;;  %v13243_v52 = vld [vmem:[%s14901_s14 + $0x4e0] ss:$16 sps:$4 sm:$0xff]  }
 0x41f   : > { %7362 = vmatprep.subr.bf16.mxu1 %v13219_v20  ;;  %v13228_v20 = vld [vmem:[#allocation5 + $0xa8] sm:$0xff]  }
 0x421   : > { %4368 = vmatmul.mubr.bf16.gmra.mxu1 %v13153_v27  ;;  %7252 = vmatpush2.bf16.msra.mxu0 %v13221_v58  ;;  %v13212_v27 = vld [vmem:[#allocation5 + $0x88] sm:$0xff]  }
 0x422   : > { %4377 = vmatprep.mubr.bf16.mxu1 %v14580_v29  ;;  %7363 = vmatpush2.bf16.msra.mxu1 %v13217_v37  ;;  %v13242_v37 = vld [vmem:[#allocation5 + $0xb8] sm:$0xff]  }
 0x423   : > { %7364 = vmatprep.subr.bf16.mxu1 %v13226_v47  ;;  %7253 = vmatprep.subr.bf16.mxu0 %v13231_v12  ;;  %v13246_v47 = vld [vmem:[%s14901_s14 + $0x6e0] ss:$16 sps:$4 sm:$0xff]   ;;  %v13254_v58 = vld [vmem:[%s14901_s14 + $0x6c4] ss:$16 sps:$4 sm:$0xff]  }
 0x424   : > { %4105 = vmatmul.mubr.bf16.gmra.mxu0 %v13160_v49  ;;  %v13249_v12 = vld [vmem:[%s14901_s14 + $0x4c0] ss:$16 sps:$4 sm:$0xff]  }
 0x425   : > { %4114 = vmatprep.mubr.bf16.mxu0 %v14580_v29  ;;  %7254 = vmatpush2.bf16.msra.mxu0 %v13229_v33  ;;  %v13252_v33 = vld [vmem:[%s14901_s14 + $0x6c0] ss:$16 sps:$4 sm:$0xff]  }
 0x426   : > { %7365 = vmatpush2.bf16.msra.mxu1 %v13224_v28  ;;  %7255 = vmatprep.subr.bf16.mxu0 %v13238_v39 }
 0x427   : > { %7366 = vmatprep.subr.bf16.mxu1 %v13234_v42  ;;  %v13257_v42 = vld [vmem:[%s14901_s14 + $0x4a4] ss:$16 sps:$4 sm:$0xff]  }
 0x429   : > { %4378 = vmatmul.mubr.bf16.gmra.mxu1 %v13160_v49  ;;  %7256 = vmatpush2.bf16.msra.mxu0 %v13236_v22  ;;  %v13251_v49 = vld [vmem:[%s14901_s14 + $0x4c4] ss:$16 sps:$4 sm:$0xff]  }
 0x42a   : > { %4387 = vmatprep.mubr.bf16.mxu1 %v14580_v29  ;;  %7367 = vmatpush2.bf16.msra.mxu1 %v13232_v38  ;;  %v13260_v38 = vld [vmem:[%s14901_s14 + $0x6a4] ss:$16 sps:$4 sm:$0xff]  }
 0x42b   : > { %7368 = vmatprep.subr.bf16.mxu1 %v13241_v11  ;;  %7451 = vmatprep.subr.bf16.mxu0 %v13245_v57  ;;  %v13258_v57 = vld [vmem:[%s14901_s14 + $0x6a0] ss:$16 sps:$4 sm:$0xff]  }
 0x42c   : > { %4115 = vmatmul.mubr.bf16.gmra.mxu0 %v13167_v2 }
 0x42d   : > { %4124 = vmatprep.mubr.bf16.mxu0 %v14580_v29 }
 0x42e   : > { %7369 = vmatpush2.bf16.msra.mxu1 %v13239_v1 }
 0x42f   : > { %7564 = vmatprep.subr.bf16.mxu1 %v13248_v23 }
 0x431   : > { %4388 = vmatmul.mubr.bf16.gmra.mxu1 %v13167_v2  ;;  %v13255_v2 = vld [vmem:[%s14901_s14 + $0x4a0] ss:$16 sps:$4 sm:$0xff]  }
 0x432   : > { %4397 = vmatprep.mubr.bf16.mxu1 %v14580_v29 }
 0x434   : > { %4125 = vmatmul.mubr.bf16.gmra.mxu0 %v13168_v48 }
 0x435   : > { %4134 = vmatprep.mubr.bf16.mxu0 %v14580_v29 }
 0x439   : > { %4398 = vmatmul.mubr.bf16.gmra.mxu1 %v13168_v48  ;;  %v13263_v48 = vld [vmem:[%s14901_s14 + $0x484] ss:$16 sps:$4 sm:$0xff]  }
 0x43a   : > { %4407 = vmatprep.mubr.bf16.mxu1 %v14580_v29 }
 0x43c   : > { %4135 = vmatmul.mubr.bf16.gmra.mxu0 %v13175_v55 }
 0x43d   : > { %4144 = vmatprep.mubr.bf16.mxu0 %v14580_v29 }
 0x441   : > { %4408 = vmatmul.mubr.bf16.gmra.mxu1 %v13175_v55  ;;  %v13266_v55 = vld [vmem:[%s14901_s14 + $0x684] ss:$16 sps:$4 sm:$0xff]  }
 0x442   : > { %4417 = vmatprep.mubr.bf16.mxu1 %v14580_v29 }
 0x444   : > { %4145 = vmatmul.mubr.bf16.gmra.mxu0 %v13182_v46 }
 0x445   : > { %4154 = vmatprep.mubr.bf16.mxu0 %v14580_v29 }
 0x449   : > { %4418 = vmatmul.mubr.bf16.gmra.mxu1 %v13182_v46 }
 0x44a   : > { %4427 = vmatprep.mubr.bf16.mxu1 %v14580_v29 }
 0x44c   : > { %4155 = vmatmul.mubr.bf16.gmra.mxu0 %v13183_v5 }
 0x44d   : > { %4164 = vmatprep.mubr.bf16.mxu0 %v14580_v29 }
 0x451   : > { %4428 = vmatmul.mubr.bf16.gmra.mxu1 %v13183_v5 }
 0x452   : > { %4437 = vmatprep.mubr.bf16.mxu1 %v14580_v29 }
 0x454   : > { %4165 = vmatmul.mubr.bf16.gmra.mxu0 %v13190_v51 }
 0x455   : > { %4174 = vmatprep.mubr.bf16.mxu0 %v14580_v29 }
 0x459   : > { %4438 = vmatmul.mubr.bf16.gmra.mxu1 %v13190_v51 }
 0x45a   : > { %4447 = vmatprep.mubr.bf16.mxu1 %v14580_v29 }
 0x45c   : > { %4175 = vmatmul.mubr.bf16.gmra.mxu0 %v13197_v3 }
 0x45d   : > { %4184 = vmatprep.mubr.bf16.mxu0 %v14580_v29 }
 0x461   : > { %4448 = vmatmul.mubr.bf16.gmra.mxu1 %v13197_v3  ;;  %v13261_v3 = vld [vmem:[%s14901_s14 + $0x480] ss:$16 sps:$4 sm:$0xff]  }
 0x462   : > { %4457 = vmatprep.mubr.bf16.mxu1 %v14580_v29 }
 0x464   : > { %4185 = vmatmul.mubr.bf16.gmra.mxu0 %v13198_v32 }
 0x465   : > { %4194 = vmatprep.mubr.bf16.mxu0 %v14580_v29 }
 0x469   : > { %4458 = vmatmul.mubr.bf16.gmra.mxu1 %v13198_v32  ;;  %v13264_v32 = vld [vmem:[%s14901_s14 + $0x680] ss:$16 sps:$4 sm:$0xff]  }
 0x46a   : > { %4467 = vmatprep.mubr.bf16.mxu1 %v14580_v29 }
 0x46c   : > { %4195 = vmatmul.mubr.bf16.gmra.mxu0 %v13205_v34 }
 0x46d   : > { %4204 = vmatprep.mubr.bf16.mxu0 %v14580_v29 }
 0x471   : > { %4468 = vmatmul.mubr.bf16.gmra.mxu1 %v13205_v34 }
 0x472   : > { %4477 = vmatprep.mubr.bf16.mxu1 %v14580_v29 }
 0x474   : > { %4205 = vmatmul.mubr.bf16.gmra.mxu0 %v13212_v27 }
 0x475   : > { %4214 = vmatprep.mubr.bf16.mxu0 %v14580_v29 }
 0x479   : > { %4478 = vmatmul.mubr.bf16.gmra.mxu1 %v13212_v27  ;;  %v13269_v27 = vld [vmem:[%s14901_s14 + $0x464] ss:$16 sps:$4 sm:$0xff]  }
 0x47a   : > { %4487 = vmatprep.mubr.bf16.mxu1 %v14580_v29 }
 0x47c   : > { %4215 = vmatmul.mubr.bf16.gmra.mxu0 %v13213_v24 }
 0x47d   : > { %4224 = vmatprep.mubr.bf16.mxu0 %v14580_v29 }
 0x481   : > { %4488 = vmatmul.mubr.bf16.gmra.mxu1 %v13213_v24  ;;  %v13272_v24 = vld [vmem:[%s14901_s14 + $0x664] ss:$16 sps:$4 sm:$0xff]  }
 0x482   : > { %4497 = vmatprep.mubr.bf16.mxu1 %v14580_v29 }
 0x484   : > { %4225 = vmatmul.mubr.bf16.gmra.mxu0 %v13220_v14 }
 0x485   : > { %4234 = vmatprep.mubr.bf16.mxu0 %v14580_v29 }
 0x489   : > { %4498 = vmatmul.mubr.bf16.gmra.mxu1 %v13220_v14 }
 0x48a   : > { %4507 = vmatprep.mubr.bf16.mxu1 %v14580_v29 }
 0x48c   : > { %4235 = vmatmul.mubr.bf16.gmra.mxu0 %v13227_v13 }
 0x48d   : > { %4244 = vmatprep.mubr.bf16.mxu0 %v14580_v29 }
 0x491   : > { %4508 = vmatmul.mubr.bf16.gmra.mxu1 %v13227_v13 }
 0x492   : > { %4517 = vmatprep.mubr.bf16.mxu1 %v14580_v29 }
 0x494   : > { %4245 = vmatmul.mubr.bf16.gmra.mxu0 %v13228_v20 }
 0x495   : > { %4254 = vmatprep.mubr.bf16.mxu0 %v14580_v29 }
 0x499   : > { %4518 = vmatmul.mubr.bf16.gmra.mxu1 %v13228_v20 }
 0x49a   : > { %4527 = vmatprep.mubr.bf16.mxu1 %v14580_v29 }
 0x49c   : > { %4255 = vmatmul.mubr.bf16.gmra.mxu0 %v13235_v36 }
 0x49d   : > { %4264 = vmatprep.mubr.bf16.mxu0 %v14580_v29 }
 0x4a1   : > { %4528 = vmatmul.mubr.bf16.gmra.mxu1 %v13235_v36  ;;  %v13267_v36 = vld [vmem:[%s14901_s14 + $0x460] ss:$16 sps:$4 sm:$0xff]  }
 0x4a2   : > { %4537 = vmatprep.mubr.bf16.mxu1 %v14580_v29 }
 0x4a4   : > { %4265 = vmatmul.mubr.bf16.gmra.mxu0 %v13242_v37 }
 0x4a5   : > { %7257 = vmatprep.mubr.bf16.mxu0 %v16459_v16 }
 0x4a9   : > { %4538 = vmatmul.mubr.bf16.gmra.mxu1 %v13242_v37  ;;  %v13270_v37 = vld [vmem:[%s14901_s14 + $0x660] ss:$16 sps:$4 sm:$0xff]  }
 0x4aa   : > { %7370 = vmatprep.mubr.bf16.mxu1 %v16462_v17  ;;  %v13326_v17 = vld [vmem:[%s14901_s14 + $0x744] ss:$16 sps:$4 sm:$0xff]  }
 0x4ac   : > { %v16597_v28 = vpop.f32.mrf.mxu0  ;;  %7258 = vmatmul.mubr.bf16.vlgmr.msra.gmra.mxu0 %v16467_v25 }
 0x4ad   : > { %7452 = vmatpush1.bf16.msra.mxu0 %v13243_v52  ;;  %7267 = vmatprep.mubr.bf16.mxu0 %v16445_v26 }
 0x4ae   : > { %v16607_v39 = vpop.f32.mrf.mxu0  ;;  %7453 = vmatprep.subr.bf16.mxu0 %v13251_v49  ;;  %v13278_v49 = vld [vmem:[%s14901_s14 + $0x644] ss:$16 sps:$4 sm:$0xff]  }
 0x4b0   : > { %v16612_v22 = vpop.f32.mrf.mxu0 }
 0x4b1   : > { %v16602_v29 = vpop.f32.mrf.mxu1  ;;  %7371 = vmatmul.mubr.bf16.vlgmr.msra.gmra.mxu1 %v16471_v9  ;;  %7454 = vmatpush1.bf16.msra.mxu0 %v13249_v12  ;;  %v13320_v9 = vld [vmem:[%s14901_s14 + $0x764] ss:$16 sps:$4 sm:$0xff]  }
 0x4b2   : > { %7565 = vmatpush1.bf16.msra.mxu1 %v13246_v47  ;;  %7380 = vmatprep.mubr.bf16.mxu1 %v16448_v59  ;;  %v16619_v23 = vpop.f32.mrf.mxu0  ;;  %v13275_v47 = vld [vmem:[%s14901_s14 + $0x444] ss:$16 sps:$4 sm:$0xff]  }
 0x4b3   : > { %v16609_v11 = vpop.f32.mrf.mxu1  ;;  %7566 = vmatprep.subr.bf16.mxu1 %v13254_v58  ;;  %7455 = vmatprep.subr.bf16.mxu0 %v13257_v42  ;;  %v13273_v42 = vld [vmem:[%s14901_s14 + $0x440] ss:$16 sps:$4 sm:$0xff]   ;;  %v13314_v59 = vld [vmem:[%s14901_s14 + $0x784] ss:$16 sps:$4 sm:$0xff]  }
 0x4b4   : > { %v16625_v5 = vpop.f32.mrf.mxu0  ;;  %7268 = vmatmul.mubr.bf16.gmra.mxu0 %v16453_v63 }
 0x4b5   : > { %v16615_v1 = vpop.f32.mrf.mxu1  ;;  %7456 = vmatpush1.bf16.msra.mxu0 %v13255_v2  ;;  %7277 = vmatprep.mubr.bf16.mxu0 %v16431_v45 }
 0x4b6   : > { %7567 = vmatpush1.bf16.msra.mxu1 %v13252_v33  ;;  %v16633_v34 = vpop.f32.mrf.mxu0  ;;  %7457 = vmatprep.subr.bf16.mxu0 %v13263_v48  ;;  %v13284_v48 = vld [vmem:[%s14901_s14 + $0x624] ss:$16 sps:$4 sm:$0xff]  }
 0x4b7   : > { %v16623_v46 = vpop.f32.mrf.mxu1  ;;  %7568 = vmatprep.subr.bf16.mxu1 %v13260_v38  ;;  %v13276_v38 = vld [vmem:[%s14901_s14 + $0x640] ss:$16 sps:$4 sm:$0xff]  }
 0x4b8   : > { %v16640_v13 = vpop.f32.mrf.mxu0 }
 0x4b9   : > { %v16628_v51 = vpop.f32.mrf.mxu1  ;;  %7381 = vmatmul.mubr.bf16.gmra.mxu1 %v16457_v19  ;;  %7458 = vmatpush1.bf16.msra.mxu0 %v13261_v3  ;;  %v13308_v19 = vld [vmem:[%s14901_s14 + $0x7a4] ss:$16 sps:$4 sm:$0xff]  }
 0x4ba   : > { %7569 = vmatpush1.bf16.msra.mxu1 %v13258_v57  ;;  %7390 = vmatprep.mubr.bf16.mxu1 %v16434_v40  ;;  %v16647_v52 = vpop.f32.mrf.mxu0  ;;  %v13281_v57 = vld [vmem:[%s14901_s14 + $0x424] ss:$16 sps:$4 sm:$0xff]  }
 0x4bb   : > { %v16637_v14 = vpop.f32.mrf.mxu1  ;;  %7570 = vmatprep.subr.bf16.mxu1 %v13266_v55  ;;  %7459 = vmatprep.subr.bf16.mxu0 %v13269_v27  ;;  %v13279_v27 = vld [vmem:[%s14901_s14 + $0x420] ss:$16 sps:$4 sm:$0xff]   ;;  %v13302_v40 = vld [vmem:[%s14901_s14 + $0x7c4] ss:$16 sps:$4 sm:$0xff]  }
 0x4bc   : > { %v16653_v12 = vpop.f32.mrf.mxu0  ;;  %7278 = vmatmul.mubr.bf16.gmra.mxu0 %v16439_v0 }
 0x4bd   : > { %v16643_v20 = vpop.f32.mrf.mxu1  ;;  %7460 = vmatpush1.bf16.msra.mxu0 %v13267_v36  ;;  %7287 = vmatprep.mubr.bf16.mxu0 %v16417_v6 }
 0x4be   : > { %7571 = vmatpush1.bf16.msra.mxu1 %v13264_v32  ;;  %v16661_v2 = vpop.f32.mrf.mxu0  ;;  %7461 = vmatprep.subr.bf16.mxu0 %v13275_v47  ;;  %v13290_v47 = vld [vmem:[%s14901_s14 + $0x604] ss:$16 sps:$4 sm:$0xff]  }
 0x4bf   : > { %v16651_v58 = vpop.f32.mrf.mxu1  ;;  %7572 = vmatprep.subr.bf16.mxu1 %v13272_v24  ;;  %v13282_v24 = vld [vmem:[%s14901_s14 + $0x620] ss:$16 sps:$4 sm:$0xff]  }
 0x4c0   : > { %v16668_v3 = vpop.f32.mrf.mxu0 }
 0x4c1   : > { %v16656_v33 = vpop.f32.mrf.mxu1  ;;  %7391 = vmatmul.mubr.bf16.gmra.mxu1 %v16443_v61  ;;  %7462 = vmatpush1.bf16.msra.mxu0 %v13273_v42  ;;  %v13285_v42 = vld [vmem:[%s14901_s14 + $0x400] ss:$16 sps:$4 sm:$0xff]   ;;  %v13296_v61 = vld [vmem:[%s14901_s14 + $0x7e4] ss:$16 sps:$4 sm:$0xff]  }
 0x4c2   : > { %7573 = vmatpush1.bf16.msra.mxu1 %v13270_v37  ;;  %7400 = vmatprep.mubr.bf16.mxu1 %v16420_v15  ;;  %v16675_v36 = vpop.f32.mrf.mxu0  ;;  %v13287_v37 = vld [vmem:[%s14901_s14 + $0x404] ss:$16 sps:$4 sm:$0xff]  }
 0x4c3   : > { %v16665_v55 = vpop.f32.mrf.mxu1  ;;  %7574 = vmatprep.subr.bf16.mxu1 %v13278_v49  ;;  %7463 = vmatprep.subr.bf16.mxu0 %v13281_v57 }
 0x4c4   : > { %v16681_v6 = vpop.f32.mrf.mxu0  ;;  %7288 = vmatmul.mubr.bf16.gmra.mxu0 %v16425_v56 }
 0x4c5   : > { %v16671_v32 = vpop.f32.mrf.mxu1  ;;  %7464 = vmatpush1.bf16.msra.mxu0 %v13279_v27  ;;  %7297 = vmatprep.mubr.bf16.mxu0 %v16403_v50 }
 0x4c6   : > { %7575 = vmatpush1.bf16.msra.mxu1 %v13276_v38  ;;  %v13288_v38 = vld [vmem:[%s14901_s14 + $0x600] ss:$16 sps:$4 sm:$0xff]   ;;  %v16689_v57 = vpop.f32.mrf.mxu0  ;;  %7465 = vmatprep.subr.bf16.mxu0 %v13287_v37 }
 0x4c7   : > { %v16679_v49 = vpop.f32.mrf.mxu1  ;;  %7576 = vmatprep.subr.bf16.mxu1 %v13284_v48  ;;  %v13293_v48 = vld [vmem:[%s14901_s14 + $0x5e4] ss:$16 sps:$4 sm:$0xff]  }
 0x4c8   : > { %v16696_v56 = vpop.f32.mrf.mxu0 }
 0x4c9   : > { %v16684_v15 = vpop.f32.mrf.mxu1  ;;  %7401 = vmatmul.mubr.bf16.gmra.mxu1 %v16429_v41  ;;  %7466 = vmatpush1.bf16.msra.mxu0 %v13285_v42  ;;  %v13294_v41 = vld [vmem:[%s14901_s14 + $0x7e0] ss:$16 sps:$4 sm:$0xff]  }
 0x4ca   : > { %7577 = vmatpush1.bf16.msra.mxu1 %v13282_v24  ;;  %7410 = vmatprep.mubr.bf16.mxu1 %v16406_v18  ;;  %v13291_v24 = vld [vmem:[%s14901_s14 + $0x5e0] ss:$16 sps:$4 sm:$0xff]   ;;  %v16703_v37 = vpop.f32.mrf.mxu0 }
 0x4cb   : > { %v16693_v0 = vpop.f32.mrf.mxu1  ;;  %7578 = vmatprep.subr.bf16.mxu1 %v13290_v47  ;;  %7467 = vmatprep.subr.bf16.mxu0 %v13293_v48  ;;  %v13299_v47 = vld [vmem:[%s14901_s14 + $0x5c4] ss:$16 sps:$4 sm:$0xff]   ;;  %v13297_v42 = vld [vmem:[%s14901_s14 + $0x5c0] ss:$16 sps:$4 sm:$0xff]  }
 0x4cc   : > { %v16709_v45 = vpop.f32.mrf.mxu0  ;;  %7298 = vmatmul.mubr.bf16.gmra.mxu0 %v16411_v7 }
 0x4cd   : > { %v16699_v27 = vpop.f32.mrf.mxu1  ;;  %7468 = vmatpush2.bf16.msra.mxu0 %v13291_v24  ;;  %7307 = vmatprep.mubr.bf16.mxu0 %v16391_v43 }
 0x4ce   : > { %7579 = vmatpush1.bf16.msra.mxu1 %v13288_v38  ;;  %v13300_v38 = vld [vmem:[%s14901_s14 + $0x7c0] ss:$16 sps:$4 sm:$0xff]   ;;  %v16717_v48 = vpop.f32.mrf.mxu0  ;;  %7469 = vmatprep.subr.bf16.mxu0 %v13299_v47 }
 0x4cf   : > { %v16707_v50 = vpop.f32.mrf.mxu1  ;;  %7580 = vmatprep.subr.bf16.mxu1 %v13296_v61  ;;  %v13305_v61 = vld [vmem:[%s14901_s14 + $0x5a4] ss:$16 sps:$4 sm:$0xff]  }
 0x4d0   : > { %v16724_v7 = vpop.f32.mrf.mxu0 }
 0x4d1   : > { %v16712_v18 = vpop.f32.mrf.mxu1  ;;  %7411 = vmatmul.mubr.bf16.gmra.mxu1 %v16415_v21  ;;  %7470 = vmatpush2.bf16.msra.mxu0 %v13297_v42  ;;  %v13306_v21 = vld [vmem:[%s14901_s14 + $0x7a0] ss:$16 sps:$4 sm:$0xff]  }
 0x4d2   : > { %7581 = vmatpush2.bf16.msra.mxu1 %v13294_v41  ;;  %7420 = vmatprep.mubr.bf16.mxu1 %v16393_v35  ;;  %v13303_v41 = vld [vmem:[%s14901_s14 + $0x5a0] ss:$16 sps:$4 sm:$0xff]   ;;  %v16731_v47 = vpop.f32.mrf.mxu0 }
 0x4d3   : > { %v16721_v63 = vpop.f32.mrf.mxu1  ;;  %7582 = vmatprep.subr.bf16.mxu1 %v13302_v40  ;;  %7471 = vmatprep.subr.bf16.mxu0 %v13305_v61  ;;  %v13311_v40 = vld [vmem:[%s14901_s14 + $0x584] ss:$16 sps:$4 sm:$0xff]   ;;  %v13309_v42 = vld [vmem:[%s14901_s14 + $0x580] ss:$16 sps:$4 sm:$0xff]  }
 0x4d4   : > { %v16737_v26 = vpop.f32.mrf.mxu0  ;;  %7308 = vmatmul.mubr.bf16.gmra.mxu0 %v16397_v30 }
 0x4d5   : > { %v16727_v24 = vpop.f32.mrf.mxu1  ;;  %7472 = vmatpush2.bf16.msra.mxu0 %v13303_v41  ;;  %7317 = vmatprep.mubr.bf16.mxu0 %v16379_v31 }
 0x4d6   : > { %7583 = vmatpush2.bf16.msra.mxu1 %v13300_v38  ;;  %v13312_v38 = vld [vmem:[%s14901_s14 + $0x780] ss:$16 sps:$4 sm:$0xff]   ;;  %v16745_v61 = vpop.f32.mrf.mxu0  ;;  %7473 = vmatprep.subr.bf16.mxu0 %v13311_v40 }
 0x4d7   : > { %v16735_v43 = vpop.f32.mrf.mxu1  ;;  %7584 = vmatprep.subr.bf16.mxu1 %v13308_v19  ;;  %v13317_v19 = vld [vmem:[%s14901_s14 + $0x564] ss:$16 sps:$4 sm:$0xff]  }
 0x4d8   : > { %v16752_v30 = vpop.f32.mrf.mxu0 }
 0x4d9   : > { %v16740_v35 = vpop.f32.mrf.mxu1  ;;  %7421 = vmatmul.mubr.bf16.gmra.mxu1 %v16401_v53  ;;  %7474 = vmatpush2.bf16.msra.mxu0 %v13309_v42  ;;  %v13318_v53 = vld [vmem:[%s14901_s14 + $0x760] ss:$16 sps:$4 sm:$0xff]  }
 0x4da   : > { %7585 = vmatpush2.bf16.msra.mxu1 %v13306_v21  ;;  %7430 = vmatprep.mubr.bf16.mxu1 %v16381_v4  ;;  %v13315_v21 = vld [vmem:[%s14901_s14 + $0x560] ss:$16 sps:$4 sm:$0xff]   ;;  %v16759_v40 = vpop.f32.mrf.mxu0 }
 0x4db   : > { %v16749_v25 = vpop.f32.mrf.mxu1  ;;  %7586 = vmatprep.subr.bf16.mxu1 %v13314_v59  ;;  %7475 = vmatprep.subr.bf16.mxu0 %v13317_v19  ;;  %v13323_v59 = vld [vmem:[%s14901_s14 + $0x544] ss:$16 sps:$4 sm:$0xff]   ;;  %v13321_v42 = vld [vmem:[%s14901_s14 + $0x540] ss:$16 sps:$4 sm:$0xff]  }
 0x4dc   : > { %v16765_v16 = vpop.f32.mrf.mxu0  ;;  %7318 = vmatmul.mubr.bf16.gmra.mxu0 %v16384_v60 }
 0x4dd   : > { %v16755_v41 = vpop.f32.mrf.mxu1  ;;  %20490 = vst [vmem:[#allocation47_spill] sm:$0xff] %v16765_v16  ;;  %7476 = vmatpush2.bf16.msra.mxu0 %v13315_v21  ;;  %7327 = vmatprep.mubr.bf16.mxu0 %v16363_v8 }
 0x4de   : > { %20489 = vst [vmem:[#allocation46_spill] sm:$0xff] %v16755_v41  ;;  %7587 = vmatpush2.bf16.msra.mxu1 %v13312_v38  ;;  %v13324_v38 = vld [vmem:[%s14901_s14 + $0x740] ss:$16 sps:$4 sm:$0xff]   ;;  %v16773_v19 = vpop.f32.mrf.mxu0  ;;  %7477 = vmatprep.subr.bf16.mxu0 %v13323_v59  ;;  %v13332_v41 = vld [vmem:[%s14901_s14 + $0x724] ss:$16 sps:$4 sm:$0xff]  }
 0x4df   : > { %v16763_v31 = vpop.f32.mrf.mxu1  ;;  %7588 = vmatprep.subr.bf16.mxu1 %v13320_v9  ;;  %v13329_v9 = vld [vmem:[%s14901_s14 + $0x524] ss:$16 sps:$4 sm:$0xff]  }
 0x4e0   : > { %v16780_v60 = vpop.f32.mrf.mxu0 }
 0x4e1   : > { %v16768_v4 = vpop.f32.mrf.mxu1  ;;  %7431 = vmatmul.mubr.bf16.gmra.mxu1 %v16389_v10  ;;  %7478 = vmatpush2.bf16.msra.mxu0 %v13321_v42  ;;  %v13330_v10 = vld [vmem:[%s14901_s14 + $0x720] ss:$16 sps:$4 sm:$0xff]  }
 0x4e2   : > { %20491 = vst [vmem:[#allocation48_spill] sm:$0xff] %v16768_v4  ;;  %7589 = vmatpush2.bf16.msra.mxu1 %v13318_v53  ;;  %7440 = vmatprep.mubr.bf16.mxu1 %v16367_v44  ;;  %v13327_v53 = vld [vmem:[%s14901_s14 + $0x520] ss:$16 sps:$4 sm:$0xff]   ;;  %v16787_v59 = vpop.f32.mrf.mxu0  ;;  %v13335_v4 = vld [vmem:[%s14901_s14 + $0x504] ss:$16 sps:$4 sm:$0xff]   ;;  %v16795_v44 = vpack.c.bf16 %v16619_v23, %v16607_v39 }
 0x4e3   : > { %v16777_v16 = vpop.f32.mrf.mxu1  ;;  %7590 = vmatprep.subr.bf16.mxu1 %v13326_v17  ;;  %7479 = vmatprep.subr.bf16.mxu0 %v13329_v9  ;;  %v13338_v17 = vld [vmem:[%s14901_s14 + $0x704] ss:$16 sps:$4 sm:$0xff]  }
 0x4e4   : > { %20493 = vst [vmem:[#allocation117_spill] sm:$0xff] %v16795_v44  ;;  %v16797_v42 = vpop.f32.mrf.mxu0  ;;  %7328 = vmatmul.mubr.bf16.gmra.mxu0 %v16369_v62  ;;  %v13341_v23 = vld [vmem:[%s14901_s14 + $0x8e4] ss:$16 sps:$4 sm:$0xff]  }
 0x4e5   : > { %v16783_v21 = vpop.f32.mrf.mxu1  ;;  %7480 = vmatpush2.bf16.msra.mxu0 %v13327_v53  ;;  %7483 = vmatprep.mubr.bf16.mxu0 %v16795_v44  ;;  %v13344_v62 = vld [vmem:[%s14901_s14 + $0xae4] ss:$16 sps:$4 sm:$0xff]   ;;  %v13339_v44 = vld [vmem:[%s14901_s14 + $0x8e0] ss:$16 sps:$4 sm:$0xff]  }
 0x4e6   : > { %20492 = vst [vmem:[#allocation116_spill] sm:$0xff] %v16783_v21  ;;  %7591 = vmatpush2.bf16.msra.mxu1 %v13324_v38  ;;  %v16802_v38 = vpack.c.bf16 %v16623_v46, %v16609_v11  ;;  %v13333_v21 = vld [vmem:[%s14901_s14 + $0x500] ss:$16 sps:$4 sm:$0xff]   ;;  %v16810_v39 = vpop.f32.mrf.mxu0  ;;  %7481 = vmatprep.subr.bf16.mxu0 %v13335_v4  ;;  %v13347_v4 = vld [vmem:[%s14901_s14 + $0x8c4] ss:$16 sps:$4 sm:$0xff]  }
 0x4e7   : > { %v16791_v8 = vpop.f32.mrf.mxu1  ;;  %7592 = vmatprep.subr.bf16.mxu1 %v13332_v41  ;;  %v13336_v41 = vld [vmem:[%s14901_s14 + $0x700] ss:$16 sps:$4 sm:$0xff]  }
 0x4e8   : > { %20494 = vst [vmem:[#allocation118_spill] sm:$0xff] %v16802_v38  ;;  %v16817_v46 = vpop.f32.mrf.mxu0 }
 0x4e9   : > { %v16804_v9 = vpop.f32.mrf.mxu1  ;;  %7441 = vmatmul.mubr.bf16.gmra.mxu1 %v16374_v54  ;;  %7482 = vmatpush2.bf16.msra.mxu0 %v13333_v21  ;;  %v16836_v21 = vpack.c.bf16 %v16647_v52, %v16633_v34  ;;  %v13348_v34 = vld [vmem:[%s14901_s14 + $0xac0] ss:$16 sps:$4 sm:$0xff]   ;;  %v13356_v52 = vld [vmem:[%s14901_s14 + $0xaa4] ss:$16 sps:$4 sm:$0xff]  }
 0x4ea   : > { %7593 = vmatpush2.bf16.msra.mxu1 %v13330_v10  ;;  %7596 = vmatprep.mubr.bf16.mxu1 %v16802_v38  ;;  %v16824_v10 = vpack.c.bf16 %v16612_v22, %v16597_v28  ;;  %v16826_v54 = vpop.f32.mrf.mxu0  ;;  %v13342_v38 = vld [vmem:[%s14901_s14 + $0xae0] ss:$16 sps:$4 sm:$0xff]   ;;  %v16842_v22 = vpack.c.bf16 %v16651_v58, %v16637_v14  ;;  %v13353_v14 = vld [vmem:[%s14901_s14 + $0x8a4] ss:$16 sps:$4 sm:$0xff]  }
 0x4eb   : > { %v16815_v11 = vpop.f32.mrf.mxu1  ;;  %7594 = vmatprep.subr.bf16.mxu1 %v13338_v17  ;;  %7677 = vmatprep.subr.bf16.mxu0 %v13341_v23  ;;  %v16832_v17 = vpack.c.bf16 %v16615_v1, %v16602_v29  ;;  %20497 = vst [vmem:[#allocation121_spill] sm:$0xff] %v16836_v21  ;;  %v13350_v23 = vld [vmem:[%s14901_s14 + $0xac4] ss:$16 sps:$4 sm:$0xff]   ;;  %v13345_v1 = vld [vmem:[%s14901_s14 + $0x8c0] ss:$16 sps:$4 sm:$0xff]  }
 0x4ec   : > { %20495 = vst [vmem:[#allocation119_spill] sm:$0xff] %v16824_v10  ;;  %20498 = vst [vmem:[#allocation122_spill] sm:$0xff] %v16842_v22  ;;  %7484 = vmatmul.mubr.bf16.vlgmr.msra.gmra.mxu0 %v16824_v10  ;;  %v16867_v10 = vpack.c.bf16 %v16640_v13, %v16625_v5  ;;  %v13359_v5 = vld [vmem:[%s14901_s14 + $0x884] ss:$16 sps:$4 sm:$0xff]  }
 0x4ed   : > { %v16819_v53 = vpop.f32.mrf.mxu1  ;;  %20496 = vst [vmem:[#allocation120_spill] sm:$0xff] %v16832_v17  ;;  %7493 = vmatprep.mubr.bf16.mxu0 %v16836_v21  ;;  %7678 = vmatpush1.bf16.msra.mxu0 %v13339_v44  ;;  %v13362_v13 = vld [vmem:[%s14901_s14 + $0xa84] ss:$16 sps:$4 sm:$0xff]  }
 0x4ee   : > { %7595 = vmatpush2.bf16.msra.mxu1 %v13336_v41  ;;  %v16844_v41 = vpop.f32.mrf.mxu0  ;;  %7679 = vmatprep.subr.bf16.mxu0 %v13347_v4  ;;  %20500 = vst [vmem:[#allocation124_spill] sm:$0xff] %v16867_v10  ;;  %v16879_v4 = vpack.c.bf16 %v16675_v36, %v16661_v2  ;;  %v13360_v36 = vld [vmem:[%s14901_s14 + $0xa80] ss:$16 sps:$4 sm:$0xff]  }
 0x4ef   : > { %v16838_v28 = vpop.f32.mrf.mxu1  ;;  %7790 = vmatprep.subr.bf16.mxu1 %v13344_v62 }
 0x4f0   : > { %v16855_v62 = vpop.f32.mrf.mxu0  ;;  %20502 = vst [vmem:[#allocation126_spill] sm:$0xff] %v16879_v4 }
 0x4f1   : > { %v16848_v29 = vpop.f32.mrf.mxu1  ;;  %7597 = vmatmul.mubr.bf16.vlgmr.msra.gmra.mxu1 %v16832_v17  ;;  %7680 = vmatpush1.bf16.msra.mxu0 %v13345_v1  ;;  %v16887_v1 = vpack.c.bf16 %v16679_v49, %v16665_v55  ;;  %v13357_v55 = vld [vmem:[%s14901_s14 + $0x880] ss:$16 sps:$4 sm:$0xff]  }
 0x4f2   : > { %20499 = vst [vmem:[#allocation123_spill] sm:$0xff] %v16848_v29  ;;  %7606 = vmatprep.mubr.bf16.mxu1 %v16842_v22  ;;  %7791 = vmatpush1.bf16.msra.mxu1 %v13342_v38  ;;  %v16861_v17 = vpop.f32.mrf.mxu0  ;;  %v13351_v22 = vld [vmem:[%s14901_s14 + $0x8a0] ss:$16 sps:$4 sm:$0xff]   ;;  %v16875_v38 = vpack.c.bf16 %v16643_v20, %v16628_v51 }
 0x4f3   : > { %v16859_v58 = vpop.f32.mrf.mxu1  ;;  %7792 = vmatprep.subr.bf16.mxu1 %v13350_v23  ;;  %v13354_v29 = vld [vmem:[%s14901_s14 + $0xaa0] ss:$16 sps:$4 sm:$0xff]   ;;  %7681 = vmatprep.subr.bf16.mxu0 %v13353_v14  ;;  %20503 = vst [vmem:[#allocation127_spill] sm:$0xff] %v16887_v1  ;;  %v13368_v14 = vld [vmem:[%s14901_s14 + $0xa64] ss:$16 sps:$4 sm:$0xff]  }
 0x4f4   : > { %v16869_v44 = vpop.f32.mrf.mxu0  ;;  %20501 = vst [vmem:[#allocation125_spill] sm:$0xff] %v16875_v38  ;;  %7494 = vmatmul.mubr.bf16.gmra.mxu0 %v16867_v10  ;;  %v13366_v10 = vld [vmem:[%s14901_s14 + $0xa60] ss:$16 sps:$4 sm:$0xff]  }
 0x4f5   : > { %v16863_v21 = vpop.f32.mrf.mxu1  ;;  %7503 = vmatprep.mubr.bf16.mxu0 %v16879_v4  ;;  %7682 = vmatpush1.bf16.msra.mxu0 %v13351_v22  ;;  %v16911_v22 = vpack.c.bf16 %v16668_v3, %v16653_v12  ;;  %v13371_v12 = vld [vmem:[%s14901_s14 + $0x844] ss:$16 sps:$4 sm:$0xff]   ;;  %v16930_v3 = vpack.c.bf16 %v16707_v50, %v16693_v0  ;;  %v13369_v0 = vld [vmem:[%s14901_s14 + $0x840] ss:$16 sps:$4 sm:$0xff]  }
 0x4f6   : > { %7793 = vmatpush1.bf16.msra.mxu1 %v13348_v34  ;;  %v16889_v51 = vpop.f32.mrf.mxu0  ;;  %7683 = vmatprep.subr.bf16.mxu0 %v13359_v5  ;;  %v13365_v34 = vld [vmem:[%s14901_s14 + $0x864] ss:$16 sps:$4 sm:$0xff]   ;;  %v16918_v5 = vpack.c.bf16 %v16671_v32, %v16656_v33 }
 0x4f7   : > { %v16881_v23 = vpop.f32.mrf.mxu1  ;;  %7794 = vmatprep.subr.bf16.mxu1 %v13356_v52  ;;  %20504 = vst [vmem:[#allocation128_spill] sm:$0xff] %v16911_v22  ;;  %20507 = vst [vmem:[#allocation131_spill] sm:$0xff] %v16930_v3  ;;  %v13374_v33 = vld [vmem:[%s14901_s14 + $0xa44] ss:$16 sps:$4 sm:$0xff]  }
 0x4f8   : > { %v16897_v2 = vpop.f32.mrf.mxu0  ;;  %20505 = vst [vmem:[#allocation129_spill] sm:$0xff] %v16918_v5 }
 0x4f9   : > { %v16892_v20 = vpop.f32.mrf.mxu1  ;;  %7607 = vmatmul.mubr.bf16.gmra.mxu1 %v16875_v38  ;;  %7684 = vmatpush1.bf16.msra.mxu0 %v13357_v55  ;;  %v16922_v38 = vpack.c.bf16 %v16703_v37, %v16689_v57  ;;  %v13372_v37 = vld [vmem:[%s14901_s14 + $0xa40] ss:$16 sps:$4 sm:$0xff]  }
 0x4fa   : > { %7616 = vmatprep.mubr.bf16.mxu1 %v16887_v1  ;;  %7795 = vmatpush1.bf16.msra.mxu1 %v13354_v29  ;;  %v16905_v52 = vpop.f32.mrf.mxu0  ;;  %v13363_v29 = vld [vmem:[%s14901_s14 + $0x860] ss:$16 sps:$4 sm:$0xff]  }
 0x4fb   : > { %v16901_v49 = vpop.f32.mrf.mxu1  ;;  %7796 = vmatprep.subr.bf16.mxu1 %v13362_v13  ;;  %20506 = vst [vmem:[#allocation130_spill] sm:$0xff] %v16922_v38  ;;  %7685 = vmatprep.subr.bf16.mxu0 %v13365_v34 }
 0x4fc   : > { %v16913_v1 = vpop.f32.mrf.mxu0  ;;  %7504 = vmatmul.mubr.bf16.gmra.mxu0 %v16911_v22  ;;  %v13378_v22 = vld [vmem:[%s14901_s14 + $0xa20] ss:$16 sps:$4 sm:$0xff]  }
 0x4fd   : > { %v16907_v4 = vpop.f32.mrf.mxu1  ;;  %7513 = vmatprep.mubr.bf16.mxu0 %v16922_v38  ;;  %7686 = vmatpush1.bf16.msra.mxu0 %v13363_v29  ;;  %v16955_v29 = vpack.c.bf16 %v16696_v56, %v16681_v6  ;;  %v13383_v6 = vld [vmem:[%s14901_s14 + $0x804] ss:$16 sps:$4 sm:$0xff]   ;;  %v16974_v56 = vpack.c.bf16 %v16735_v43, %v16721_v63  ;;  %v13381_v63 = vld [vmem:[%s14901_s14 + $0x800] ss:$16 sps:$4 sm:$0xff]  }
 0x4fe   : > { %7797 = vmatpush1.bf16.msra.mxu1 %v13360_v36  ;;  %v16932_v55 = vpop.f32.mrf.mxu0  ;;  %7687 = vmatprep.subr.bf16.mxu0 %v13371_v12  ;;  %v13377_v36 = vld [vmem:[%s14901_s14 + $0x824] ss:$16 sps:$4 sm:$0xff]   ;;  %v16962_v12 = vpack.c.bf16 %v16699_v27, %v16684_v15 }
 0x4ff   : > { %v16924_v13 = vpop.f32.mrf.mxu1  ;;  %7798 = vmatprep.subr.bf16.mxu1 %v13368_v14  ;;  %v13380_v14 = vld [vmem:[%s14901_s14 + $0xa24] ss:$16 sps:$4 sm:$0xff]   ;;  %20508 = vst [vmem:[#allocation132_spill] sm:$0xff] %v16955_v29  ;;  %20511 = vst [vmem:[#allocation135_spill] sm:$0xff] %v16974_v56 }
 0x500   : > { %v16941_v50 = vpop.f32.mrf.mxu0  ;;  %20509 = vst [vmem:[#allocation133_spill] sm:$0xff] %v16962_v12  ;;  %v13386_v15 = vld [vmem:[%s14901_s14 + $0xa04] ss:$16 sps:$4 sm:$0xff]  }
 0x501   : > { %v16936_v32 = vpop.f32.mrf.mxu1  ;;  %7617 = vmatmul.mubr.bf16.gmra.mxu1 %v16918_v5  ;;  %7688 = vmatpush1.bf16.msra.mxu0 %v13369_v0  ;;  %v16966_v5 = vpack.c.bf16 %v16731_v47, %v16717_v48  ;;  %v13384_v47 = vld [vmem:[%s14901_s14 + $0xa00] ss:$16 sps:$4 sm:$0xff]  }
 0x502   : > { %7626 = vmatprep.mubr.bf16.mxu1 %v16930_v3  ;;  %7799 = vmatpush1.bf16.msra.mxu1 %v13366_v10  ;;  %v16948_v34 = vpop.f32.mrf.mxu0  ;;  %v13375_v3 = vld [vmem:[%s14901_s14 + $0x820] ss:$16 sps:$4 sm:$0xff]  }
 0x503   : > { %v16944_v57 = vpop.f32.mrf.mxu1  ;;  %7800 = vmatprep.subr.bf16.mxu1 %v13374_v33  ;;  %20510 = vst [vmem:[#allocation134_spill] sm:$0xff] %v16966_v5  ;;  %7689 = vmatprep.subr.bf16.mxu0 %v13377_v36 }
 0x504   : > { %v16957_v10 = vpop.f32.mrf.mxu0  ;;  %7514 = vmatmul.mubr.bf16.gmra.mxu0 %v16955_v29  ;;  %v13390_v29 = vld [vmem:[%s14901_s14 + $0xbe0] ss:$16 sps:$4 sm:$0xff]  }
 0x505   : > { %v16951_v38 = vpop.f32.mrf.mxu1  ;;  %7523 = vmatprep.mubr.bf16.mxu0 %v16966_v5  ;;  %7690 = vmatpush1.bf16.msra.mxu0 %v13375_v3  ;;  %v16999_v3 = vpack.c.bf16 %v16724_v7, %v16709_v45  ;;  %v13395_v7 = vld [vmem:[%s14901_s14 + $0x9c4] ss:$16 sps:$4 sm:$0xff]   ;;  %v17018_v45 = vpack.c.bf16 %v16763_v31, %v16749_v25  ;;  %v13393_v25 = vld [vmem:[%s14901_s14 + $0x9c0] ss:$16 sps:$4 sm:$0xff]  }
 0x506   : > { %7801 = vmatpush1.bf16.msra.mxu1 %v13372_v37  ;;  %v16976_v0 = vpop.f32.mrf.mxu0  ;;  %7691 = vmatprep.subr.bf16.mxu0 %v13383_v6  ;;  %v13389_v37 = vld [vmem:[%s14901_s14 + $0x9e4] ss:$16 sps:$4 sm:$0xff]   ;;  %v17006_v6 = vpack.c.bf16 %v16727_v24, %v16712_v18 }
 0x507   : > { %v16968_v33 = vpop.f32.mrf.mxu1  ;;  %7802 = vmatprep.subr.bf16.mxu1 %v13380_v14  ;;  %v13392_v14 = vld [vmem:[%s14901_s14 + $0xbe4] ss:$16 sps:$4 sm:$0xff]   ;;  %20512 = vst [vmem:[#allocation136_spill] sm:$0xff] %v16999_v3  ;;  %20515 = vst [vmem:[#allocation139_spill] sm:$0xff] %v17018_v45 }
 0x508   : > { %v16985_v43 = vpop.f32.mrf.mxu0  ;;  %20513 = vst [vmem:[#allocation137_spill] sm:$0xff] %v17006_v6  ;;  %v13398_v18 = vld [vmem:[%s14901_s14 + $0xbc4] ss:$16 sps:$4 sm:$0xff]  }
 0x509   : > { %v16980_v27 = vpop.f32.mrf.mxu1  ;;  %7627 = vmatmul.mubr.bf16.gmra.mxu1 %v16962_v12  ;;  %7692 = vmatpush1.bf16.msra.mxu0 %v13381_v63  ;;  %v17010_v12 = vpack.c.bf16 %v16759_v40, %v16745_v61  ;;  %v13396_v40 = vld [vmem:[%s14901_s14 + $0xbc0] ss:$16 sps:$4 sm:$0xff]  }
 0x50a   : > { %7636 = vmatprep.mubr.bf16.mxu1 %v16974_v56  ;;  %7803 = vmatpush1.bf16.msra.mxu1 %v13378_v22  ;;  %v16992_v36 = vpop.f32.mrf.mxu0  ;;  %v13387_v56 = vld [vmem:[%s14901_s14 + $0x9e0] ss:$16 sps:$4 sm:$0xff]  }
 0x50b   : > { %v16988_v48 = vpop.f32.mrf.mxu1  ;;  %7804 = vmatprep.subr.bf16.mxu1 %v13386_v15  ;;  %20514 = vst [vmem:[#allocation138_spill] sm:$0xff] %v17010_v12  ;;  %7693 = vmatprep.subr.bf16.mxu0 %v13389_v37 }
 0x50c   : > { %v17001_v22 = vpop.f32.mrf.mxu0  ;;  %7524 = vmatmul.mubr.bf16.gmra.mxu0 %v16999_v3  ;;  %v17054_v3 = vpack.c.bf16 %v16787_v59, %v16773_v19 }
 0x50d   : > { %v16995_v5 = vpop.f32.mrf.mxu1  ;;  %7533 = vmatprep.mubr.bf16.mxu0 %v17010_v12  ;;  %7694 = vmatpush2.bf16.msra.mxu0 %v13387_v56  ;;  %v17043_v56 = vpack.c.bf16 %v16752_v30, %v16737_v26  ;;  %v13407_v30 = vld [vmem:[%s14901_s14 + $0x984] ss:$16 sps:$4 sm:$0xff]   ;;  %v17062_v26 = vpack.c.bf16 %v16791_v8, %v16777_v16  ;;  %v13405_v16 = vld [vmem:[%s14901_s14 + $0x980] ss:$16 sps:$4 sm:$0xff]  }
 0x50e   : > { %7805 = vmatpush1.bf16.msra.mxu1 %v13384_v47  ;;  %v17020_v63 = vpop.f32.mrf.mxu0  ;;  %7695 = vmatprep.subr.bf16.mxu0 %v13395_v7  ;;  %v13401_v47 = vld [vmem:[%s14901_s14 + $0x9a4] ss:$16 sps:$4 sm:$0xff]   ;;  %20520 = vst [vmem:[#allocation142_spill] sm:$0xff] %v17054_v3 }
 0x50f   : > { %v17012_v15 = vpop.f32.mrf.mxu1  ;;  %7806 = vmatprep.subr.bf16.mxu1 %v13392_v14  ;;  %v13404_v14 = vld [vmem:[%s14901_s14 + $0xba4] ss:$16 sps:$4 sm:$0xff]   ;;  %20517 = vst [vmem:[#allocation141_spill] sm:$0xff] %v17043_v56  ;;  %20521 = vst [vmem:[#allocation143_spill] sm:$0xff] %v17062_v26 }
 0x510   : > { %v17029_v31 = vpop.f32.mrf.mxu0  ;;  %v20518_v7 = vld [vmem:[#allocation46_spill] sm:$0xff] }
 0x511   : > { %v17024_v24 = vpop.f32.mrf.mxu1  ;;  %7637 = vmatmul.mubr.bf16.gmra.mxu1 %v17006_v6  ;;  %7696 = vmatpush2.bf16.msra.mxu0 %v13393_v25  ;;  %v17050_v6 = vpack.c.bf16 %v20518_v7, %v16740_v35  ;;  %v13410_v35 = vld [vmem:[%s14901_s14 + $0xb84] ss:$16 sps:$4 sm:$0xff]  }
 0x512   : > { %7646 = vmatprep.mubr.bf16.mxu1 %v17018_v45  ;;  %7807 = vmatpush2.bf16.msra.mxu1 %v13390_v29  ;;  %v17036_v37 = vpop.f32.mrf.mxu0  ;;  %v13399_v45 = vld [vmem:[%s14901_s14 + $0x9a0] ss:$16 sps:$4 sm:$0xff]   ;;  %v13416_v7 = vld [vmem:[%s14901_s14 + $0xb64] ss:$16 sps:$4 sm:$0xff]  }
 0x513   : > { %v17032_v61 = vpop.f32.mrf.mxu1  ;;  %7808 = vmatprep.subr.bf16.mxu1 %v13398_v18  ;;  %20519 = vst [vmem:[#allocation46_spill] sm:$0xff] %v17050_v6  ;;  %7697 = vmatprep.subr.bf16.mxu0 %v13401_v47  ;;  %v13413_v47 = vld [vmem:[%s14901_s14 + $0x964] ss:$16 sps:$4 sm:$0xff]  }
 0x514   : > { %v17045_v29 = vpop.f32.mrf.mxu0  ;;  %7534 = vmatmul.mubr.bf16.gmra.mxu0 %v17043_v56  ;;  %v20528_v56 = vld [vmem:[#allocation116_spill] sm:$0xff] }
 0x515   : > { %v17039_v12 = vpop.f32.mrf.mxu1  ;;  %7543 = vmatprep.mubr.bf16.mxu0 %v17054_v3  ;;  %7698 = vmatpush2.bf16.msra.mxu0 %v13399_v45 }
 0x516   : > { %20516 = vst [vmem:[#allocation140_spill] sm:$0xff] %v17039_v12  ;;  %7809 = vmatpush2.bf16.msra.mxu1 %v13396_v40  ;;  %v13402_v12 = vld [vmem:[%s14901_s14 + $0xba0] ss:$16 sps:$4 sm:$0xff]   ;;  %v17064_v25 = vpop.f32.mrf.mxu0  ;;  %7699 = vmatprep.subr.bf16.mxu0 %v13407_v30  ;;  %v20527_v30 = vld [vmem:[#allocation48_spill] sm:$0xff] }
 0x517   : > { %v17056_v18 = vpop.f32.mrf.mxu1  ;;  %7810 = vmatprep.subr.bf16.mxu1 %v13404_v14  ;;  %v13408_v40 = vld [vmem:[%s14901_s14 + $0xb80] ss:$16 sps:$4 sm:$0xff]  }
 0x518   : > { %v17073_v8 = vpop.f32.mrf.mxu0 }
 0x519   : > { %v17068_v19 = vpop.f32.mrf.mxu1  ;;  %7647 = vmatmul.mubr.bf16.gmra.mxu1 %v17050_v6  ;;  %7700 = vmatpush2.bf16.msra.mxu0 %v13405_v16  ;;  %v13411_v6 = vld [vmem:[%s14901_s14 + $0x960] ss:$16 sps:$4 sm:$0xff]  }
 0x51a   : > { %20522 = vst [vmem:[#allocation144_spill] sm:$0xff] %v17068_v19  ;;  %7656 = vmatprep.mubr.bf16.mxu1 %v17062_v26  ;;  %7811 = vmatpush2.bf16.msra.mxu1 %v13402_v12  ;;  %v17080_v14 = vpop.f32.mrf.mxu0  ;;  %v20525_v26 = vld [vmem:[#allocation47_spill] sm:$0xff]  ;;  %v17094_v19 = vpack.c.bf16 %v20528_v56, %v20527_v30  ;;  %v13428_v30 = vld [vmem:[%s14901_s14 + $0xb24] ss:$16 sps:$4 sm:$0xff]  }
 0x51b   : > { %v17076_v59 = vpop.f32.mrf.mxu1  ;;  %20523 = vst [vmem:[#allocation145_spill] sm:$0xff] %v17080_v14  ;;  %7812 = vmatprep.subr.bf16.mxu1 %v13410_v35  ;;  %v17087_v45 = vpack.c.bf16 %v16780_v60, %v20525_v26  ;;  %v17098_v14 = vpack.c.bf16 %v16826_v54, %v16810_v39  ;;  %7701 = vmatprep.subr.bf16.mxu0 %v13413_v47  ;;  %v13419_v60 = vld [vmem:[%s14901_s14 + $0x944] ss:$16 sps:$4 sm:$0xff]  }
 0x51c   : > { %v17089_v12 = vpop.f32.mrf.mxu0  ;;  %20529 = vst [vmem:[#allocation48_spill] sm:$0xff] %v17094_v19  ;;  %v17106_v26 = vpack.c.bf16 %v16838_v28, %v16815_v11  ;;  %v13422_v54 = vld [vmem:[%s14901_s14 + $0xb44] ss:$16 sps:$4 sm:$0xff]   ;;  %v13417_v28 = vld [vmem:[%s14901_s14 + $0x940] ss:$16 sps:$4 sm:$0xff]  }
 0x51d   : > { %v17083_v3 = vpop.f32.mrf.mxu1  ;;  %20526 = vst [vmem:[#allocation47_spill] sm:$0xff] %v17087_v45  ;;  %20530 = vst [vmem:[#allocation116_spill] sm:$0xff] %v17098_v14  ;;  %7544 = vmatmul.mubr.bf16.gmra.mxu0 %v17087_v45  ;;  %v13425_v47 = vld [vmem:[%s14901_s14 + $0x924] ss:$16 sps:$4 sm:$0xff]   ;;  %v13426_v45 = vld [vmem:[%s14901_s14 + $0xb20] ss:$16 sps:$4 sm:$0xff]  }
 0x51e   : > { %20524 = vst [vmem:[#allocation146_spill] sm:$0xff] %v17083_v3  ;;  %7813 = vmatpush2.bf16.msra.mxu1 %v13408_v40  ;;  %v13414_v3 = vld [vmem:[%s14901_s14 + $0xb60] ss:$16 sps:$4 sm:$0xff]   ;;  %20531 = vst [vmem:[#allocation147_spill] sm:$0xff] %v17106_v26  ;;  %v17108_v16 = vpop.f32.mrf.mxu0  ;;  %7553 = vmatprep.mubr.bf16.mxu0 %v17098_v14 }
 0x51f   : > { %v17100_v35 = vpop.f32.mrf.mxu1  ;;  %7814 = vmatprep.subr.bf16.mxu1 %v13416_v7  ;;  %7702 = vmatpush2.bf16.msra.mxu0 %v13411_v6  ;;  %v13420_v40 = vld [vmem:[%s14901_s14 + $0xb40] ss:$16 sps:$4 sm:$0xff]   ;;  %v17131_v6 = vpack.c.bf16 %v16817_v46, %v16797_v42  ;;  %v13431_v42 = vld [vmem:[%s14901_s14 + $0x904] ss:$16 sps:$4 sm:$0xff]   ;;  %v17150_v46 = vpack.c.bf16 %v16881_v23, %v16859_v58 }
 0x520   : > { %v17117_v11 = vpop.f32.mrf.mxu0  ;;  %7703 = vmatprep.subr.bf16.mxu0 %v13419_v60  ;;  %v17138_v60 = vpack.c.bf16 %v16819_v53, %v16804_v9  ;;  %v13434_v9 = vld [vmem:[%s14901_s14 + $0xb04] ss:$16 sps:$4 sm:$0xff]   ;;  %v13429_v58 = vld [vmem:[%s14901_s14 + $0x900] ss:$16 sps:$4 sm:$0xff]  }
 0x521   : > { %v17112_v39 = vpop.f32.mrf.mxu1  ;;  %7657 = vmatmul.mubr.bf16.gmra.mxu1 %v17094_v19  ;;  %20532 = vst [vmem:[#allocation148_spill] sm:$0xff] %v17131_v6  ;;  %v17142_v19 = vpack.c.bf16 %v16869_v44, %v16855_v62  ;;  %20535 = vst [vmem:[#allocation151_spill] sm:$0xff] %v17150_v46  ;;  %v13432_v23 = vld [vmem:[%s14901_s14 + $0xb00] ss:$16 sps:$4 sm:$0xff]  }
 0x522   : > { %7666 = vmatprep.mubr.bf16.mxu1 %v17106_v26  ;;  %7815 = vmatpush2.bf16.msra.mxu1 %v13414_v3  ;;  %v17124_v7 = vpop.f32.mrf.mxu0  ;;  %v13423_v26 = vld [vmem:[%s14901_s14 + $0x920] ss:$16 sps:$4 sm:$0xff]   ;;  %20533 = vst [vmem:[#allocation149_spill] sm:$0xff] %v17138_v60 }
 0x523   : > { %v17120_v56 = vpop.f32.mrf.mxu1  ;;  %7816 = vmatprep.subr.bf16.mxu1 %v13422_v54  ;;  %7704 = vmatpush2.bf16.msra.mxu0 %v13417_v28  ;;  %20534 = vst [vmem:[#allocation150_spill] sm:$0xff] %v17142_v19 }
 0x524   : > { %v17133_v3 = vpop.f32.mrf.mxu0  ;;  %7705 = vmatprep.subr.bf16.mxu0 %v13425_v47 }
 0x525   : > { %v17127_v14 = vpop.f32.mrf.mxu1  ;;  %7554 = vmatmul.mubr.bf16.gmra.mxu0 %v17131_v6 }
 0x526   : > { %7817 = vmatpush2.bf16.msra.mxu1 %v13420_v40  ;;  %v17152_v28 = vpop.f32.mrf.mxu0  ;;  %7709 = vmatprep.mubr.bf16.mxu0 %v17142_v19  ;;  %v13437_v40 = vld [vmem:[%s14901_s14 + $0xce4] ss:$16 sps:$4 sm:$0xff]  }
 0x527   : > { %v17144_v54 = vpop.f32.mrf.mxu1  ;;  %7818 = vmatprep.subr.bf16.mxu1 %v13428_v30  ;;  %7706 = vmatpush2.bf16.msra.mxu0 %v13423_v26  ;;  %v13440_v30 = vld [vmem:[%s14901_s14 + $0xee4] ss:$16 sps:$4 sm:$0xff]  }
 0x528   : > { %v17161_v62 = vpop.f32.mrf.mxu0  ;;  %7707 = vmatprep.subr.bf16.mxu0 %v13431_v42 }
 0x529   : > { %v17156_v53 = vpop.f32.mrf.mxu1  ;;  %7667 = vmatmul.mubr.bf16.gmra.mxu1 %v17138_v60  ;;  %v20538_v60 = vld [vmem:[#allocation123_spill] sm:$0xff] }
 0x52a   : > { %7822 = vmatprep.mubr.bf16.mxu1 %v17150_v46  ;;  %7819 = vmatpush2.bf16.msra.mxu1 %v13426_v45  ;;  %v17168_v47 = vpop.f32.mrf.mxu0  ;;  %v17177_v45 = vpack.c.bf16 %v16861_v17, %v16844_v41  ;;  %v13435_v46 = vld [vmem:[%s14901_s14 + $0xce0] ss:$16 sps:$4 sm:$0xff]   ;;  %v17184_v6 = vpack.c.bf16 %v16863_v21, %v20538_v60  ;;  %v13443_v17 = vld [vmem:[%s14901_s14 + $0xcc4] ss:$16 sps:$4 sm:$0xff]   ;;  %v17196_v41 = vpack.c.bf16 %v16924_v13, %v16901_v49 }
 0x52b   : > { %v17164_v44 = vpop.f32.mrf.mxu1  ;;  %7820 = vmatprep.subr.bf16.mxu1 %v13434_v9  ;;  %7708 = vmatpush2.bf16.msra.mxu0 %v13429_v58  ;;  %v17188_v9 = vpack.c.bf16 %v16913_v1, %v16897_v2  ;;  %v13446_v21 = vld [vmem:[%s14901_s14 + $0xec4] ss:$16 sps:$4 sm:$0xff]   ;;  %v13441_v49 = vld [vmem:[%s14901_s14 + $0xcc0] ss:$16 sps:$4 sm:$0xff]  }
 0x52c   : > { %v17173_v26 = vpop.f32.mrf.mxu0  ;;  %20537 = vst [vmem:[#allocation153_spill] sm:$0xff] %v17177_v45  ;;  %7903 = vmatprep.subr.bf16.mxu0 %v13437_v40  ;;  %20539 = vst [vmem:[#allocation123_spill] sm:$0xff] %v17184_v6  ;;  %v13444_v60 = vld [vmem:[%s14901_s14 + $0xec0] ss:$16 sps:$4 sm:$0xff]   ;;  %v13449_v40 = vld [vmem:[%s14901_s14 + $0xca4] ss:$16 sps:$4 sm:$0xff]  }
 0x52d   : > { %v17171_v19 = vpop.f32.mrf.mxu1  ;;  %20540 = vst [vmem:[#allocation154_spill] sm:$0xff] %v17188_v9  ;;  %20541 = vst [vmem:[#allocation155_spill] sm:$0xff] %v17196_v41 }
 0x52e   : > { %20536 = vst [vmem:[#allocation152_spill] sm:$0xff] %v17171_v19  ;;  %7821 = vmatpush2.bf16.msra.mxu1 %v13432_v23  ;;  %v17190_v58 = vpop.f32.mrf.mxu0  ;;  %v13438_v19 = vld [vmem:[%s14901_s14 + $0xee0] ss:$16 sps:$4 sm:$0xff]   ;;  %7710 = vmatmul.mubr.bf16.vlgmr.msra.gmra.mxu0 %v17177_v45  ;;  %v17232_v45 = vpack.c.bf16 %v16957_v10, %v16941_v50 }
 0x52f   : > { %v17179_v42 = vpop.f32.mrf.mxu1  ;;  %8016 = vmatprep.subr.bf16.mxu1 %v13440_v30  ;;  %7719 = vmatprep.mubr.bf16.mxu0 %v17188_v9  ;;  %v13452_v9 = vld [vmem:[%s14901_s14 + $0xea4] ss:$16 sps:$4 sm:$0xff]  }
 0x530   : > { %v17204_v1 = vpop.f32.mrf.mxu0  ;;  %7904 = vmatpush1.bf16.msra.mxu0 %v13435_v46  ;;  %v17221_v46 = vpack.c.bf16 %v16905_v52, %v16889_v51  ;;  %20545 = vst [vmem:[#allocation159_spill] sm:$0xff] %v17232_v45  ;;  %v13455_v51 = vld [vmem:[%s14901_s14 + $0xc84] ss:$16 sps:$4 sm:$0xff]   ;;  %v17240_v52 = vpack.c.bf16 %v16968_v33, %v16944_v57  ;;  %v13453_v57 = vld [vmem:[%s14901_s14 + $0xc80] ss:$16 sps:$4 sm:$0xff]  }
 0x531   : > { %v17198_v23 = vpop.f32.mrf.mxu1  ;;  %7823 = vmatmul.mubr.bf16.vlgmr.msra.gmra.mxu1 %v17184_v6  ;;  %7905 = vmatprep.subr.bf16.mxu0 %v13443_v17  ;;  %v17228_v17 = vpack.c.bf16 %v16907_v4, %v16892_v20  ;;  %v13458_v4 = vld [vmem:[%s14901_s14 + $0xe84] ss:$16 sps:$4 sm:$0xff]   ;;  %v13456_v33 = vld [vmem:[%s14901_s14 + $0xe80] ss:$16 sps:$4 sm:$0xff]  }
 0x532   : > { %7832 = vmatprep.mubr.bf16.mxu1 %v17196_v41  ;;  %8017 = vmatpush1.bf16.msra.mxu1 %v13438_v19  ;;  %v17210_v13 = vpop.f32.mrf.mxu0  ;;  %20543 = vst [vmem:[#allocation157_spill] sm:$0xff] %v17221_v46  ;;  %v13447_v41 = vld [vmem:[%s14901_s14 + $0xca0] ss:$16 sps:$4 sm:$0xff]   ;;  %20546 = vst [vmem:[#allocation160_spill] sm:$0xff] %v17240_v52 }
 0x533   : > { %v17207_v2 = vpop.f32.mrf.mxu1  ;;  %8018 = vmatprep.subr.bf16.mxu1 %v13446_v21  ;;  %20544 = vst [vmem:[#allocation158_spill] sm:$0xff] %v17228_v17 }
 0x534   : > { %v17217_v6 = vpop.f32.mrf.mxu0  ;;  %7906 = vmatpush1.bf16.msra.mxu0 %v13441_v49 }
 0x535   : > { %v17214_v30 = vpop.f32.mrf.mxu1  ;;  %7907 = vmatprep.subr.bf16.mxu0 %v13449_v40  ;;  %v13464_v40 = vld [vmem:[%s14901_s14 + $0xe64] ss:$16 sps:$4 sm:$0xff]  }
 0x536   : > { %20542 = vst [vmem:[#allocation156_spill] sm:$0xff] %v17214_v30  ;;  %8019 = vmatpush1.bf16.msra.mxu1 %v13444_v60  ;;  %v17234_v21 = vpop.f32.mrf.mxu0  ;;  %v13450_v30 = vld [vmem:[%s14901_s14 + $0xea0] ss:$16 sps:$4 sm:$0xff]   ;;  %7720 = vmatmul.mubr.bf16.gmra.mxu0 %v17221_v46 }
 0x537   : > { %v17223_v19 = vpop.f32.mrf.mxu1  ;;  %8020 = vmatprep.subr.bf16.mxu1 %v13452_v9  ;;  %7729 = vmatprep.mubr.bf16.mxu0 %v17232_v45  ;;  %v13461_v9 = vld [vmem:[%s14901_s14 + $0xc64] ss:$16 sps:$4 sm:$0xff]   ;;  %v13462_v46 = vld [vmem:[%s14901_s14 + $0xe60] ss:$16 sps:$4 sm:$0xff]  }
 0x538   : > { %v17248_v20 = vpop.f32.mrf.mxu0  ;;  %7908 = vmatpush1.bf16.msra.mxu0 %v13447_v41  ;;  %v17265_v41 = vpack.c.bf16 %v16948_v34, %v16932_v55  ;;  %v13467_v55 = vld [vmem:[%s14901_s14 + $0xc44] ss:$16 sps:$4 sm:$0xff]   ;;  %v17284_v34 = vpack.c.bf16 %v17012_v15, %v16988_v48  ;;  %v13465_v48 = vld [vmem:[%s14901_s14 + $0xc40] ss:$16 sps:$4 sm:$0xff]  }
 0x539   : > { %v17242_v49 = vpop.f32.mrf.mxu1  ;;  %7833 = vmatmul.mubr.bf16.gmra.mxu1 %v17228_v17  ;;  %7909 = vmatprep.subr.bf16.mxu0 %v13455_v51  ;;  %v17272_v51 = vpack.c.bf16 %v16951_v38, %v16936_v32  ;;  %v17276_v17 = vpack.c.bf16 %v17001_v22, %v16985_v43  ;;  %v13470_v38 = vld [vmem:[%s14901_s14 + $0xe44] ss:$16 sps:$4 sm:$0xff]   ;;  %v13468_v15 = vld [vmem:[%s14901_s14 + $0xe40] ss:$16 sps:$4 sm:$0xff]  }
 0x53a   : > { %7842 = vmatprep.mubr.bf16.mxu1 %v17240_v52  ;;  %8021 = vmatpush1.bf16.msra.mxu1 %v13450_v30  ;;  %v17254_v10 = vpop.f32.mrf.mxu0  ;;  %20547 = vst [vmem:[#allocation161_spill] sm:$0xff] %v17265_v41  ;;  %v13459_v52 = vld [vmem:[%s14901_s14 + $0xc60] ss:$16 sps:$4 sm:$0xff]   ;;  %20550 = vst [vmem:[#allocation164_spill] sm:$0xff] %v17284_v34 }
 0x53b   : > { %v17251_v50 = vpop.f32.mrf.mxu1  ;;  %8022 = vmatprep.subr.bf16.mxu1 %v13458_v4  ;;  %20548 = vst [vmem:[#allocation162_spill] sm:$0xff] %v17272_v51  ;;  %20549 = vst [vmem:[#allocation163_spill] sm:$0xff] %v17276_v17 }
 0x53c   : > { %v17261_v45 = vpop.f32.mrf.mxu0  ;;  %7910 = vmatpush1.bf16.msra.mxu0 %v13453_v57 }
 0x53d   : > { %v17258_v60 = vpop.f32.mrf.mxu1  ;;  %7911 = vmatprep.subr.bf16.mxu0 %v13461_v9 }
 0x53e   : > { %8023 = vmatpush1.bf16.msra.mxu1 %v13456_v33  ;;  %v17278_v4 = vpop.f32.mrf.mxu0  ;;  %7730 = vmatmul.mubr.bf16.gmra.mxu0 %v17265_v41  ;;  %v13473_v33 = vld [vmem:[%s14901_s14 + $0xc24] ss:$16 sps:$4 sm:$0xff]   ;;  %v13474_v41 = vld [vmem:[%s14901_s14 + $0xe20] ss:$16 sps:$4 sm:$0xff]  }
 0x53f   : > { %v17267_v30 = vpop.f32.mrf.mxu1  ;;  %8024 = vmatprep.subr.bf16.mxu1 %v13464_v40  ;;  %7739 = vmatprep.mubr.bf16.mxu0 %v17276_v17  ;;  %v13476_v40 = vld [vmem:[%s14901_s14 + $0xe24] ss:$16 sps:$4 sm:$0xff]  }
 0x540   : > { %v17292_v32 = vpop.f32.mrf.mxu0  ;;  %7912 = vmatpush1.bf16.msra.mxu0 %v13459_v52  ;;  %v17309_v52 = vpack.c.bf16 %v16992_v36, %v16976_v0  ;;  %v13479_v0 = vld [vmem:[%s14901_s14 + $0xc04] ss:$16 sps:$4 sm:$0xff]   ;;  %v17328_v36 = vpack.c.bf16 %v17056_v18, %v17032_v61  ;;  %v13477_v61 = vld [vmem:[%s14901_s14 + $0xc00] ss:$16 sps:$4 sm:$0xff]  }
 0x541   : > { %v17286_v57 = vpop.f32.mrf.mxu1  ;;  %7843 = vmatmul.mubr.bf16.gmra.mxu1 %v17272_v51  ;;  %7913 = vmatprep.subr.bf16.mxu0 %v13467_v55  ;;  %v17316_v55 = vpack.c.bf16 %v16995_v5, %v16980_v27  ;;  %v17320_v51 = vpack.c.bf16 %v17045_v29, %v17029_v31  ;;  %v13482_v5 = vld [vmem:[%s14901_s14 + $0xe04] ss:$16 sps:$4 sm:$0xff]   ;;  %v13480_v18 = vld [vmem:[%s14901_s14 + $0xe00] ss:$16 sps:$4 sm:$0xff]  }
 0x542   : > { %7852 = vmatprep.mubr.bf16.mxu1 %v17284_v34  ;;  %8025 = vmatpush1.bf16.msra.mxu1 %v13462_v46  ;;  %v17298_v22 = vpop.f32.mrf.mxu0  ;;  %20551 = vst [vmem:[#allocation165_spill] sm:$0xff] %v17309_v52  ;;  %v13471_v34 = vld [vmem:[%s14901_s14 + $0xc20] ss:$16 sps:$4 sm:$0xff]   ;;  %20554 = vst [vmem:[#allocation168_spill] sm:$0xff] %v17328_v36 }
 0x543   : > { %v17295_v43 = vpop.f32.mrf.mxu1  ;;  %8026 = vmatprep.subr.bf16.mxu1 %v13470_v38  ;;  %20552 = vst [vmem:[#allocation166_spill] sm:$0xff] %v17316_v55  ;;  %20553 = vst [vmem:[#allocation167_spill] sm:$0xff] %v17320_v51 }
 0x544   : > { %v17305_v17 = vpop.f32.mrf.mxu0  ;;  %7914 = vmatpush1.bf16.msra.mxu0 %v13465_v48 }
 0x545   : > { %v17302_v9 = vpop.f32.mrf.mxu1  ;;  %7915 = vmatprep.subr.bf16.mxu0 %v13473_v33 }
 0x546   : > { %8027 = vmatpush1.bf16.msra.mxu1 %v13468_v15  ;;  %v17322_v38 = vpop.f32.mrf.mxu0  ;;  %7740 = vmatmul.mubr.bf16.gmra.mxu0 %v17309_v52  ;;  %v13485_v15 = vld [vmem:[%s14901_s14 + $0xde4] ss:$16 sps:$4 sm:$0xff]   ;;  %v17364_v52 = vpack.c.bf16 %v17089_v12, %v17073_v8  ;;  %v13489_v12 = vld [vmem:[%s14901_s14 + $0xdc0] ss:$16 sps:$4 sm:$0xff]  }
 0x547   : > { %v17311_v46 = vpop.f32.mrf.mxu1  ;;  %8028 = vmatprep.subr.bf16.mxu1 %v13476_v40  ;;  %7749 = vmatprep.mubr.bf16.mxu0 %v17320_v51  ;;  %v13488_v40 = vld [vmem:[%s14901_s14 + $0xfe4] ss:$16 sps:$4 sm:$0xff]  }
 0x548   : > { %v17336_v27 = vpop.f32.mrf.mxu0  ;;  %7916 = vmatpush1.bf16.msra.mxu0 %v13471_v34  ;;  %v17353_v34 = vpack.c.bf16 %v17036_v37, %v17020_v63  ;;  %20559 = vst [vmem:[#allocation171_spill] sm:$0xff] %v17364_v52  ;;  %v13491_v63 = vld [vmem:[%s14901_s14 + $0xdc4] ss:$16 sps:$4 sm:$0xff]   ;;  %v17372_v37 = vpack.c.bf16 %v17100_v35, %v17076_v59 }
 0x549   : > { %v17330_v48 = vpop.f32.mrf.mxu1  ;;  %7853 = vmatmul.mubr.bf16.gmra.mxu1 %v17316_v55  ;;  %7917 = vmatprep.subr.bf16.mxu0 %v13479_v0  ;;  %v20557_v0 = vld [vmem:[#allocation140_spill] sm:$0xff] }
 0x54a   : > { %7862 = vmatprep.mubr.bf16.mxu1 %v17328_v36  ;;  %8029 = vmatpush1.bf16.msra.mxu1 %v13474_v41  ;;  %v17342_v29 = vpop.f32.mrf.mxu0  ;;  %20556 = vst [vmem:[#allocation170_spill] sm:$0xff] %v17353_v34  ;;  %v13483_v36 = vld [vmem:[%s14901_s14 + $0xde0] ss:$16 sps:$4 sm:$0xff]   ;;  %v17360_v55 = vpack.c.bf16 %v20557_v0, %v17024_v24  ;;  %20560 = vst [vmem:[#allocation172_spill] sm:$0xff] %v17372_v37  ;;  %v13494_v24 = vld [vmem:[%s14901_s14 + $0xfc4] ss:$16 sps:$4 sm:$0xff]  }
 0x54b   : > { %v17339_v31 = vpop.f32.mrf.mxu1  ;;  %8030 = vmatprep.subr.bf16.mxu1 %v13482_v5  ;;  %v13500_v0 = vld [vmem:[%s14901_s14 + $0xfa4] ss:$16 sps:$4 sm:$0xff]  }
 0x54c   : > { %v17349_v51 = vpop.f32.mrf.mxu0  ;;  %7918 = vmatpush1.bf16.msra.mxu0 %v13477_v61  ;;  %20558 = vst [vmem:[#allocation140_spill] sm:$0xff] %v17360_v55 }
 0x54d   : > { %v17346_v33 = vpop.f32.mrf.mxu1  ;;  %7919 = vmatprep.subr.bf16.mxu0 %v13485_v15  ;;  %v13497_v15 = vld [vmem:[%s14901_s14 + $0xda4] ss:$16 sps:$4 sm:$0xff]  }
 0x54e   : > { %20555 = vst [vmem:[#allocation169_spill] sm:$0xff] %v17346_v33  ;;  %8031 = vmatpush1.bf16.msra.mxu1 %v13480_v18  ;;  %v17366_v5 = vpop.f32.mrf.mxu0  ;;  %v13486_v33 = vld [vmem:[%s14901_s14 + $0xfe0] ss:$16 sps:$4 sm:$0xff]   ;;  %7750 = vmatmul.mubr.bf16.gmra.mxu0 %v17353_v34  ;;  %v20567_v34 = vld [vmem:[#allocation146_spill] sm:$0xff] }
 0x54f   : > { %v17355_v41 = vpop.f32.mrf.mxu1  ;;  %8032 = vmatprep.subr.bf16.mxu1 %v13488_v40  ;;  %7759 = vmatprep.mubr.bf16.mxu0 %v17364_v52  ;;  %v13492_v18 = vld [vmem:[%s14901_s14 + $0xfc0] ss:$16 sps:$4 sm:$0xff]  }
 0x550   : > { %v17380_v8 = vpop.f32.mrf.mxu0  ;;  %7920 = vmatpush2.bf16.msra.mxu0 %v13483_v36 }
 0x551   : > { %v17374_v61 = vpop.f32.mrf.mxu1  ;;  %7863 = vmatmul.mubr.bf16.gmra.mxu1 %v17360_v55  ;;  %7921 = vmatprep.subr.bf16.mxu0 %v13491_v63  ;;  %v13495_v55 = vld [vmem:[%s14901_s14 + $0xda0] ss:$16 sps:$4 sm:$0xff]   ;;  %v20566_v63 = vld [vmem:[#allocation144_spill] sm:$0xff] }
 0x552   : > { %20561 = vst [vmem:[#allocation173_spill] sm:$0xff] %v17374_v61  ;;  %7872 = vmatprep.mubr.bf16.mxu1 %v17372_v37  ;;  %8033 = vmatpush2.bf16.msra.mxu1 %v13486_v33  ;;  %v17386_v35 = vpop.f32.mrf.mxu0  ;;  %v20564_v37 = vld [vmem:[#allocation145_spill] sm:$0xff]  ;;  %v17404_v61 = vpack.c.bf16 %v20567_v34, %v20566_v63  ;;  %v13512_v63 = vld [vmem:[%s14901_s14 + $0xf64] ss:$16 sps:$4 sm:$0xff]  }
 0x553   : > { %v17383_v59 = vpop.f32.mrf.mxu1  ;;  %20562 = vst [vmem:[#allocation174_spill] sm:$0xff] %v17386_v35  ;;  %8034 = vmatprep.subr.bf16.mxu1 %v13494_v24  ;;  %v17397_v36 = vpack.c.bf16 %v20564_v37, %v17064_v25  ;;  %v13498_v35 = vld [vmem:[%s14901_s14 + $0xfa0] ss:$16 sps:$4 sm:$0xff]   ;;  %v13503_v25 = vld [vmem:[%s14901_s14 + $0xd84] ss:$16 sps:$4 sm:$0xff]   ;;  %v17416_v37 = vpack.c.bf16 %v17144_v54, %v17120_v56 }
 0x554   : > { %v17393_v52 = vpop.f32.mrf.mxu0  ;;  %7922 = vmatpush2.bf16.msra.mxu0 %v13489_v12  ;;  %20568 = vst [vmem:[#allocation144_spill] sm:$0xff] %v17404_v61  ;;  %v13501_v54 = vld [vmem:[%s14901_s14 + $0xd80] ss:$16 sps:$4 sm:$0xff]  }
 0x555   : > { %v17390_v40 = vpop.f32.mrf.mxu1  ;;  %20565 = vst [vmem:[#allocation145_spill] sm:$0xff] %v17397_v36  ;;  %7923 = vmatprep.subr.bf16.mxu0 %v13497_v15  ;;  %20570 = vst [vmem:[#allocation176_spill] sm:$0xff] %v17416_v37  ;;  %v13509_v15 = vld [vmem:[%s14901_s14 + $0xd64] ss:$16 sps:$4 sm:$0xff]  }
 0x556   : > { %20563 = vst [vmem:[#allocation175_spill] sm:$0xff] %v17390_v40  ;;  %v17408_v40 = vpack.c.bf16 %v17133_v3, %v17117_v11  ;;  %8035 = vmatpush2.bf16.msra.mxu1 %v13492_v18  ;;  %v17410_v24 = vpop.f32.mrf.mxu0  ;;  %7760 = vmatmul.mubr.bf16.gmra.mxu0 %v17397_v36  ;;  %v13506_v11 = vld [vmem:[%s14901_s14 + $0xf84] ss:$16 sps:$4 sm:$0xff]   ;;  %v13504_v18 = vld [vmem:[%s14901_s14 + $0xf80] ss:$16 sps:$4 sm:$0xff]  }
 0x557   : > { %v17399_v33 = vpop.f32.mrf.mxu1  ;;  %8036 = vmatprep.subr.bf16.mxu1 %v13500_v0  ;;  %v13510_v36 = vld [vmem:[%s14901_s14 + $0xf60] ss:$16 sps:$4 sm:$0xff]  }
 0x558   : > { %20569 = vst [vmem:[#allocation146_spill] sm:$0xff] %v17408_v40  ;;  %7769 = vmatprep.mubr.bf16.mxu0 %v17408_v40  ;;  %v17424_v3 = vpop.f32.mrf.mxu0  ;;  %7924 = vmatpush2.bf16.msra.mxu0 %v13495_v55  ;;  %v17441_v55 = vpack.c.bf16 %v17124_v7, %v17108_v16  ;;  %v13515_v16 = vld [vmem:[%s14901_s14 + $0xd44] ss:$16 sps:$4 sm:$0xff]   ;;  %v17460_v7 = vpack.c.bf16 %v17179_v42, %v17164_v44 }
 0x559   : > { %v17418_v12 = vpop.f32.mrf.mxu1  ;;  %7873 = vmatmul.mubr.bf16.gmra.mxu1 %v17404_v61  ;;  %7925 = vmatprep.subr.bf16.mxu0 %v13503_v25  ;;  %v17448_v25 = vpack.c.bf16 %v17127_v14, %v17112_v39  ;;  %v17452_v61 = vpack.c.bf16 %v17173_v26, %v17161_v62  ;;  %v13518_v14 = vld [vmem:[%s14901_s14 + $0xf44] ss:$16 sps:$4 sm:$0xff]   ;;  %v4645_v39 = vlaneseq  ;;  %v13513_v26 = vld [vmem:[%s14901_s14 + $0xd40] ss:$16 sps:$4 sm:$0xff]  }
 0x55a   : > { %7882 = vmatprep.mubr.bf16.mxu1 %v17416_v37  ;;  %8037 = vmatpush2.bf16.msra.mxu1 %v13498_v35  ;;  %v17430_v34 = vpop.f32.mrf.mxu0  ;;  %20571 = vst [vmem:[#allocation177_spill] sm:$0xff] %v17441_v55  ;;  %v13507_v37 = vld [vmem:[%s14901_s14 + $0xd60] ss:$16 sps:$4 sm:$0xff]   ;;  %20574 = vst [vmem:[#allocation180_spill] sm:$0xff] %v17460_v7 }
 0x55b   : > { %v17427_v56 = vpop.f32.mrf.mxu1  ;;  %8038 = vmatprep.subr.bf16.mxu1 %v13506_v11  ;;  %20572 = vst [vmem:[#allocation178_spill] sm:$0xff] %v17448_v25  ;;  %20573 = vst [vmem:[#allocation179_spill] sm:$0xff] %v17452_v61 }
 0x55c   : > { %v17437_v40 = vpop.f32.mrf.mxu0  ;;  %7926 = vmatpush2.bf16.msra.mxu0 %v13501_v54 }
 0x55d   : > { %v17434_v0 = vpop.f32.mrf.mxu1  ;;  %7927 = vmatprep.subr.bf16.mxu0 %v13509_v15  ;;  %v13521_v15 = vld [vmem:[%s14901_s14 + $0xd24] ss:$16 sps:$4 sm:$0xff]  }
 0x55e   : > { %8039 = vmatpush2.bf16.msra.mxu1 %v13504_v18  ;;  %v17454_v11 = vpop.f32.mrf.mxu0  ;;  %7770 = vmatmul.mubr.bf16.gmra.mxu0 %v17441_v55  ;;  %v13516_v18 = vld [vmem:[%s14901_s14 + $0xf40] ss:$16 sps:$4 sm:$0xff]   ;;  %v20579_v55 = vld [vmem:[#allocation152_spill] sm:$0xff] }
 0x55f   : > { %v17443_v35 = vpop.f32.mrf.mxu1  ;;  %8040 = vmatprep.subr.bf16.mxu1 %v13512_v63  ;;  %7779 = vmatprep.mubr.bf16.mxu0 %v17452_v61  ;;  %v13524_v61 = vld [vmem:[%s14901_s14 + $0xf24] ss:$16 sps:$4 sm:$0xff]  }
 0x560   : > { %v17468_v62 = vpop.f32.mrf.mxu0  ;;  %7928 = vmatpush2.bf16.msra.mxu0 %v13507_v37  ;;  %v17487_v37 = vpack.c.bf16 %v17168_v47, %v17152_v28  ;;  %v13522_v28 = vld [vmem:[%s14901_s14 + $0xf20] ss:$16 sps:$4 sm:$0xff]   ;;  %v13527_v47 = vld [vmem:[%s14901_s14 + $0xd04] ss:$16 sps:$4 sm:$0xff]  }
 0x561   : > { %v17462_v54 = vpop.f32.mrf.mxu1  ;;  %7883 = vmatmul.mubr.bf16.gmra.mxu1 %v17448_v25  ;;  %7929 = vmatprep.subr.bf16.mxu0 %v13515_v16  ;;  %v17481_v25 = vshrl.u32 %v4645_v39, 7  ;;  %v13519_v16 = vld [vmem:[%s14901_s14 + $0xd20] ss:$16 sps:$4 sm:$0xff]  }
 0x562   : > { %20575 = vst [vmem:[#allocation181_spill] sm:$0xff] %v17462_v54  ;;  %7892 = vmatprep.mubr.bf16.mxu1 %v17460_v7  ;;  %8041 = vmatpush2.bf16.msra.mxu1 %v13510_v36  ;;  %v17474_v42 = vpop.f32.mrf.mxu0  ;;  %20578 = vst [vmem:[#allocation184_spill] sm:$0xff] %v17487_v37  ;;  %v17494_v54 = vpack.c.bf16 %v20579_v55, %v17156_v53 }
 0x563   : > { %v17471_v44 = vpop.f32.mrf.mxu1  ;;  %8042 = vmatprep.subr.bf16.mxu1 %v13518_v14  ;;  %20577 = vst [vmem:[#allocation183_spill] sm:$0xff] %v17481_v25  ;;  %v17498_v14 = vpack.c.bf16 %v17217_v6, %v17204_v1  ;;  %v13530_v6 = vld [vmem:[%s14901_s14 + $0xf04] ss:$16 sps:$4 sm:$0xff]   ;;  %v17513_v53 = vsub.s32 0, %v17481_v25  ;;  %v17526_v55 = vsub.s32 1, %v17481_v25 }
 0x564   : > { %v17483_v7 = vpop.f32.mrf.mxu0  ;;  %7930 = vmatpush2.bf16.msra.mxu0 %v13513_v26  ;;  %20580 = vst [vmem:[#allocation152_spill] sm:$0xff] %v17494_v54  ;;  %v17506_v26 = vpack.c.bf16 %v17223_v19, %v17207_v2  ;;  %v3777_v2 = vld [vmem:[%s580_s28] sm:$0xf] }
 0x565   : > { %v17478_v63 = vpop.f32.mrf.mxu1  ;;  %20581 = vst [vmem:[#allocation185_spill] sm:$0xff] %v17498_v14  ;;  %7931 = vmatprep.subr.bf16.mxu0 %v13521_v15  ;;  %20584 = vst [vmem:[#allocation188_spill] sm:$0xff] %v17513_v53  ;;  %v13528_v15 = vld [vmem:[%s14901_s14 + $0xf00] ss:$16 sps:$4 sm:$0xff]  }
 0x566   : > { %20576 = vst [vmem:[#allocation182_spill] sm:$0xff] %v17478_v63  ;;  %8043 = vmatpush2.bf16.msra.mxu1 %v13516_v18  ;;  %v17500_v39 = vpop.f32.mrf.mxu0  ;;  %20582 = vst [vmem:[#allocation186_spill] sm:$0xff] %v17506_v26  ;;  %7780 = vmatmul.mubr.bf16.gmra.mxu0 %v17487_v37 }
 0x567   : > { %v17489_v36 = vpop.f32.mrf.mxu1  ;;  %8044 = vmatprep.subr.bf16.mxu1 %v13524_v61  ;;  %7935 = vmatprep.mubr.bf16.mxu0 %v17498_v14  ;;  %v13525_v61 = vld [vmem:[%s14901_s14 + $0xd00] ss:$16 sps:$4 sm:$0xff]   ;;  %20585 = vst [vmem:[#allocation189_spill] sm:$0xff] %v17526_v55  ;;  %v13533_v14 = vld [vmem:[%s14901_s14 + $0xec] ss:$16 sps:$4 sm:$0xff]  }
 0x568   : > { %v17517_v1 = vpop.f32.mrf.mxu0  ;;  %7932 = vmatpush2.bf16.msra.mxu0 %v13519_v16  ;;  %v17535_v16 = vrot.slane %v3777_v2, %v17513_v53  ;;  %v20588_v53 = vld [vmem:[#allocation156_spill] sm:$0xff] }
 0x569   : > { %v17508_v63 = vpop.f32.mrf.mxu1  ;;  %7893 = vmatmul.mubr.bf16.gmra.mxu1 %v17494_v54  ;;  %7933 = vmatprep.subr.bf16.mxu0 %v13527_v47  ;;  %v17547_v47 = vpack.c.bf16 %v17210_v13, %v17190_v58  ;;  %v13539_v58 = vld [vmem:[%s14901_s14 + $0xcc] ss:$16 sps:$4 sm:$0xff]   ;;  %v17563_v13 = vpack.c.bf16 %v17267_v30, %v17251_v50  ;;  %v13537_v30 = vld [vmem:[%s14901_s14 + $0xc8] ss:$16 sps:$4 sm:$0xff]  }
 0x56a   : > { %20583 = vst [vmem:[#allocation187_spill] sm:$0xff] %v17508_v63  ;;  %8048 = vmatprep.mubr.bf16.mxu1 %v17506_v26  ;;  %8045 = vmatpush2.bf16.msra.mxu1 %v13522_v28  ;;  %v17528_v18 = vpop.f32.mrf.mxu0  ;;  %v13536_v26 = vld [vmem:[%s14901_s14 + $0x2ec] ss:$16 sps:$4 sm:$0xff]   ;;  %v17543_v28 = vrot.slane %v3777_v2, %v17526_v55  ;;  %v17552_v63 = vpack.c.bf16 %v20588_v53, %v17198_v23 }
 0x56b   : > { %v17522_v19 = vpop.f32.mrf.mxu1  ;;  %20586 = vst [vmem:[#allocation190_spill] sm:$0xff] %v17528_v18  ;;  %8046 = vmatprep.subr.bf16.mxu1 %v13530_v6  ;;  %v13534_v18 = vld [vmem:[%s14901_s14 + $0x2e8] ss:$16 sps:$4 sm:$0xff]   ;;  %20591 = vst [vmem:[#allocation193_spill] sm:$0xff] %v17563_v13  ;;  %v13542_v23 = vld [vmem:[%s14901_s14 + $0x2cc] ss:$16 sps:$4 sm:$0xff]  }
 0x56c   : > { %v17538_v37 = vpop.f32.mrf.mxu0  ;;  %7934 = vmatpush2.bf16.msra.mxu0 %v13525_v61  ;;  %20589 = vst [vmem:[#allocation156_spill] sm:$0xff] %v17552_v63  ;;  %v17556_v61 = vpack.c.bf16 %v17261_v45, %v17248_v20 }
 0x56d   : > { %v17532_v54 = vpop.f32.mrf.mxu1  ;;  %8129 = vmatprep.subr.bf16.mxu0 %v13533_v14 }
 0x56e   : > { %20587 = vst [vmem:[#allocation191_spill] sm:$0xff] %v17532_v54  ;;  %8047 = vmatpush2.bf16.msra.mxu1 %v13528_v15  ;;  %v7259_v6 = vpop.f32.mrf.mxu0  ;;  %v13531_v54 = vld [vmem:[%s14901_s14 + $0xe8] ss:$16 sps:$4 sm:$0xff]   ;;  %20590 = vst [vmem:[#allocation192_spill] sm:$0xff] %v17556_v61 }
 0x56f   : > { %v17540_v25 = vpop.f32.mrf.mxu1  ;;  %v7260_v2 = vadd.f32 %v7259_v6, %v17535_v16  ;;  %8242 = vmatprep.subr.bf16.mxu1 %v13536_v26  ;;  %7936 = vmatmul.mubr.bf16.vlgmr.msra.gmra.mxu0 %v17547_v47  ;;  %v13540_v6 = vld [vmem:[%s14901_s14 + $0x2c8] ss:$16 sps:$4 sm:$0xff]  }
 0x570   : > { %v7261_v14 = vpop.f32.mrf.mxu0  ;;  %7945 = vmatprep.mubr.bf16.mxu0 %v17556_v61  ;;  %8130 = vmatpush1.bf16.msra.mxu0 %v13531_v54 }
 0x571   : > { %v7372_v55 = vpop.f32.mrf.mxu1  ;;  %8049 = vmatmul.mubr.bf16.vlgmr.msra.gmra.mxu1 %v17552_v63  ;;  %v7262_v45 = vadd.f32 %v7261_v14, %v17543_v28  ;;  %8131 = vmatprep.subr.bf16.mxu0 %v13539_v58  ;;  %v13548_v14 = vld [vmem:[%s14901_s14 + $0x2ac] ss:$16 sps:$4 sm:$0xff]  }
 0x572   : > { %v17567_v53 = vadd.f32 %v7372_v55, %v7260_v2  ;;  %8058 = vmatprep.mubr.bf16.mxu1 %v17563_v13  ;;  %v7263_v50 = vpop.f32.mrf.mxu0  ;;  %8243 = vmatpush1.bf16.msra.mxu1 %v13534_v18  ;;  %v13545_v2 = vld [vmem:[%s14901_s14 + $0xac] ss:$16 sps:$4 sm:$0xff]   ;;  %v17585_v18 = vpack.c.bf16 %v17254_v10, %v17234_v21  ;;  %v13546_v21 = vld [vmem:[%s14901_s14 + $0x2a8] ss:$16 sps:$4 sm:$0xff]  }
 0x573   : > { %v7374_v20 = vpop.f32.mrf.mxu1  ;;  %v7264_v55 = vadd.f32 %v7263_v50, %v17535_v16  ;;  %8244 = vmatprep.subr.bf16.mxu1 %v13542_v23  ;;  %v13543_v23 = vld [vmem:[%s14901_s14 + $0xa8] ss:$16 sps:$4 sm:$0xff]   ;;  %v13551_v10 = vld [vmem:[%s14901_s14 + $0x8c] ss:$16 sps:$4 sm:$0xff]  }
 0x574   : > { %v17574_v26 = vadd.f32 %v7374_v20, %v7262_v45  ;;  %v7265_v61 = vpop.f32.mrf.mxu0  ;;  %v17589_v45 = vpack.c.bf16 %v17258_v60, %v17242_v49  ;;  %8132 = vmatpush1.bf16.msra.mxu0 %v13537_v30  ;;  %v17594_v20 = vpack.c.bf16 %v17305_v17, %v17292_v32  ;;  %v17603_v49 = vpack.c.bf16 %v17311_v46, %v17295_v43  ;;  %v13554_v17 = vld [vmem:[%s14901_s14 + $0x28c] ss:$16 sps:$4 sm:$0xff]   ;;  %v13549_v46 = vld [vmem:[%s14901_s14 + $0x88] ss:$16 sps:$4 sm:$0xff]  }
 0x575   : > { %v7376_v15 = vpop.f32.mrf.mxu1  ;;  %v7266_v54 = vadd.f32 %v7265_v61, %v17543_v28  ;;  %8133 = vmatprep.subr.bf16.mxu0 %v13545_v2 }
 0x576   : > { %v17580_v63 = vadd.f32 %v7376_v15, %v7264_v55  ;;  %v7269_v58 = vpop.f32.mrf.mxu0  ;;  %8245 = vmatpush1.bf16.msra.mxu1 %v13540_v6 }
 0x577   : > { %v7378_v13 = vpop.f32.mrf.mxu1  ;;  %v7270_v61 = vadd.f32 %v7269_v58, %v17535_v16  ;;  %7946 = vmatmul.mubr.bf16.gmra.mxu0 %v17585_v18  ;;  %8246 = vmatprep.subr.bf16.mxu1 %v13548_v14  ;;  %v13552_v14 = vld [vmem:[%s14901_s14 + $0x288] ss:$16 sps:$4 sm:$0xff]  }
 0x578   : > { %v17596_v50 = vadd.f32 %v7378_v13, %v7266_v54  ;;  %v7271_v60 = vpop.f32.mrf.mxu0  ;;  %7955 = vmatprep.mubr.bf16.mxu0 %v17594_v20  ;;  %8134 = vmatpush1.bf16.msra.mxu0 %v13543_v23  ;;  %v13557_v54 = vld [vmem:[%s14901_s14 + $0x6c] ss:$16 sps:$4 sm:$0xff]  }
 0x579   : > { %v7382_v55 = vpop.f32.mrf.mxu1  ;;  %8059 = vmatmul.mubr.bf16.gmra.mxu1 %v17589_v45  ;;  %v7272_v13 = vadd.f32 %v7271_v60, %v17543_v28  ;;  %8135 = vmatprep.subr.bf16.mxu0 %v13551_v10 }
 0x57a   : > { %v17607_v32 = vadd.f32 %v7382_v55, %v7270_v61  ;;  %8068 = vmatprep.mubr.bf16.mxu1 %v17603_v49  ;;  %v7273_v43 = vpop.f32.mrf.mxu0  ;;  %8247 = vmatpush1.bf16.msra.mxu1 %v13546_v21  ;;  %v13560_v61 = vld [vmem:[%s14901_s14 + $0x26c] ss:$16 sps:$4 sm:$0xff]   ;;  %v17625_v21 = vpack.c.bf16 %v17298_v22, %v17278_v4  ;;  %v13558_v4 = vld [vmem:[%s14901_s14 + $0x268] ss:$16 sps:$4 sm:$0xff]  }
 0x57b   : > { %v7384_v30 = vpop.f32.mrf.mxu1  ;;  %v7274_v6 = vadd.f32 %v7273_v43, %v17535_v16  ;;  %8248 = vmatprep.subr.bf16.mxu1 %v13554_v17  ;;  %v13555_v17 = vld [vmem:[%s14901_s14 + $0x68] ss:$16 sps:$4 sm:$0xff]   ;;  %v13563_v22 = vld [vmem:[%s14901_s14 + $0x4c] ss:$16 sps:$4 sm:$0xff]  }
 0x57c   : > { %v17614_v15 = vadd.f32 %v7384_v30, %v7272_v13  ;;  %v7275_v58 = vpop.f32.mrf.mxu0  ;;  %v17629_v13 = vpack.c.bf16 %v17302_v9, %v17286_v57  ;;  %8136 = vmatpush1.bf16.msra.mxu0 %v13549_v46  ;;  %v17634_v30 = vpack.c.bf16 %v17349_v51, %v17336_v27  ;;  %v17643_v57 = vpack.c.bf16 %v17355_v41, %v17339_v31  ;;  %v13566_v51 = vld [vmem:[%s14901_s14 + $0x24c] ss:$16 sps:$4 sm:$0xff]   ;;  %v13561_v41 = vld [vmem:[%s14901_s14 + $0x48] ss:$16 sps:$4 sm:$0xff]  }
 0x57d   : > { %v7386_v2 = vpop.f32.mrf.mxu1  ;;  %v7276_v23 = vadd.f32 %v7275_v58, %v17543_v28  ;;  %8137 = vmatprep.subr.bf16.mxu0 %v13557_v54 }
 0x57e   : > { %v17620_v55 = vadd.f32 %v7386_v2, %v7274_v6  ;;  %20592 = vst [vmem:[#allocation194_spill] sm:$0xff] %v17629_v13  ;;  %v7279_v10 = vpop.f32.mrf.mxu0  ;;  %20593 = vst [vmem:[#allocation195_spill] sm:$0xff] %v17634_v30  ;;  %8249 = vmatpush1.bf16.msra.mxu1 %v13552_v14 }
 0x57f   : > { %v7388_v60 = vpop.f32.mrf.mxu1  ;;  %v7280_v6 = vadd.f32 %v7279_v10, %v17535_v16  ;;  %20594 = vst [vmem:[#allocation196_spill] sm:$0xff] %v17643_v57  ;;  %7956 = vmatmul.mubr.bf16.gmra.mxu0 %v17625_v21  ;;  %8250 = vmatprep.subr.bf16.mxu1 %v13560_v61 }
 0x580   : > { %v17636_v43 = vadd.f32 %v7388_v60, %v7276_v23  ;;  %v7281_v9 = vpop.f32.mrf.mxu0  ;;  %7965 = vmatprep.mubr.bf16.mxu0 %v17634_v30  ;;  %8138 = vmatpush1.bf16.msra.mxu0 %v13555_v17  ;;  %v13564_v23 = vld [vmem:[%s14901_s14 + $0x248] ss:$16 sps:$4 sm:$0xff]   ;;  %v13569_v60 = vld [vmem:[%s14901_s14 + $0x2c] ss:$16 sps:$4 sm:$0xff]  }
 0x581   : > { %v7392_v2 = vpop.f32.mrf.mxu1  ;;  %8069 = vmatmul.mubr.bf16.gmra.mxu1 %v17629_v13  ;;  %v7282_v46 = vadd.f32 %v7281_v9, %v17543_v28  ;;  %8139 = vmatprep.subr.bf16.mxu0 %v13563_v22 }
 0x582   : > { %v17647_v27 = vadd.f32 %v7392_v2, %v7280_v6  ;;  %8078 = vmatprep.mubr.bf16.mxu1 %v17643_v57  ;;  %v7283_v31 = vpop.f32.mrf.mxu0  ;;  %8251 = vmatpush1.bf16.msra.mxu1 %v13558_v4  ;;  %v13572_v6 = vld [vmem:[%s14901_s14 + $0x22c] ss:$16 sps:$4 sm:$0xff]   ;;  %v17665_v4 = vpack.c.bf16 %v17342_v29, %v17322_v38  ;;  %v13570_v38 = vld [vmem:[%s14901_s14 + $0x228] ss:$16 sps:$4 sm:$0xff]  }
 0x583   : > { %v7394_v14 = vpop.f32.mrf.mxu1  ;;  %v7284_v58 = vadd.f32 %v7283_v31, %v17535_v16  ;;  %8252 = vmatprep.subr.bf16.mxu1 %v13566_v51  ;;  %v13567_v51 = vld [vmem:[%s14901_s14 + $0x28] ss:$16 sps:$4 sm:$0xff]   ;;  %v17674_v31 = vpack.c.bf16 %v17393_v52, %v17380_v8  ;;  %v13575_v29 = vld [vmem:[%s14901_s14 + $0xc] ss:$16 sps:$4 sm:$0xff]  }
 0x584   : > { %v17654_v54 = vadd.f32 %v7394_v14, %v7282_v46  ;;  %v7285_v10 = vpop.f32.mrf.mxu0  ;;  %20595 = vst [vmem:[#allocation197_spill] sm:$0xff] %v17665_v4  ;;  %v20596_v46 = vld [vmem:[#allocation169_spill] sm:$0xff]  ;;  %8140 = vmatpush1.bf16.msra.mxu0 %v13561_v41  ;;  %v20698_v57 = vld [vmem:[#allocation160_spill] sm:$0xff] }
 0x585   : > { %v7396_v61 = vpop.f32.mrf.mxu1  ;;  %v7286_v17 = vadd.f32 %v7285_v10, %v17543_v28  ;;  %v17669_v14 = vpack.c.bf16 %v20596_v46, %v17330_v48  ;;  %20598 = vst [vmem:[#allocation198_spill] sm:$0xff] %v17674_v31  ;;  %8141 = vmatprep.subr.bf16.mxu0 %v13569_v60  ;;  %v17683_v48 = vpack.c.bf16 %v17399_v33, %v17383_v59  ;;  %v13578_v52 = vld [vmem:[%s14901_s14 + $0x20c] ss:$16 sps:$4 sm:$0xff]   ;;  %v13573_v33 = vld [vmem:[%s14901_s14 + $0x8] ss:$16 sps:$4 sm:$0xff]  }
 0x586   : > { %v17660_v2 = vadd.f32 %v7396_v61, %v7284_v58  ;;  %v7289_v22 = vpop.f32.mrf.mxu0  ;;  %8253 = vmatpush1.bf16.msra.mxu1 %v13564_v23  ;;  %v13576_v46 = vld [vmem:[%s14901_s14 + $0x208] ss:$16 sps:$4 sm:$0xff]  }
 0x587   : > { %v7398_v9 = vpop.f32.mrf.mxu1  ;;  %20597 = vst [vmem:[#allocation169_spill] sm:$0xff] %v17669_v14  ;;  %v7290_v61 = vadd.f32 %v7289_v22, %v17535_v16  ;;  %20599 = vst [vmem:[#allocation199_spill] sm:$0xff] %v17683_v48  ;;  %7966 = vmatmul.mubr.bf16.gmra.mxu0 %v17665_v4  ;;  %8254 = vmatprep.subr.bf16.mxu1 %v13572_v6  ;;  %v13581_v22 = vld [vmem:[%s14901_s14 + $0x1ec] ss:$16 sps:$4 sm:$0xff]  }
 0x588   : > { %v17676_v58 = vadd.f32 %v7398_v9, %v7286_v17  ;;  %v7291_v41 = vpop.f32.mrf.mxu0  ;;  %7975 = vmatprep.mubr.bf16.mxu0 %v17674_v31  ;;  %8142 = vmatpush1.bf16.msra.mxu0 %v13567_v51 }
 0x589   : > { %v7402_v10 = vpop.f32.mrf.mxu1  ;;  %8079 = vmatmul.mubr.bf16.gmra.mxu1 %v17669_v14  ;;  %v7292_v23 = vadd.f32 %v7291_v41, %v17543_v28  ;;  %8143 = vmatprep.subr.bf16.mxu0 %v13575_v29  ;;  %v17714_v14 = vpack.c.bf16 %v17437_v40, %v17424_v3  ;;  %v13590_v40 = vld [vmem:[%s14901_s14 + $0x3cc] ss:$16 sps:$4 sm:$0xff]  }
 0x58a   : > { %v17687_v8 = vadd.f32 %v7402_v10, %v7290_v61  ;;  %8088 = vmatprep.mubr.bf16.mxu1 %v17683_v48  ;;  %v7293_v59 = vpop.f32.mrf.mxu0  ;;  %8255 = vmatpush1.bf16.msra.mxu1 %v13570_v38  ;;  %v13584_v10 = vld [vmem:[%s14901_s14 + $0x3ec] ss:$16 sps:$4 sm:$0xff]   ;;  %v20600_v38 = vld [vmem:[#allocation174_spill] sm:$0xff] }
 0x58b   : > { %v7404_v60 = vpop.f32.mrf.mxu1  ;;  %v7294_v17 = vadd.f32 %v7293_v59, %v17535_v16  ;;  %8256 = vmatprep.subr.bf16.mxu1 %v13578_v52  ;;  %v20603_v59 = vld [vmem:[#allocation175_spill] sm:$0xff]  ;;  %v13579_v52 = vld [vmem:[%s14901_s14 + $0x1e8] ss:$16 sps:$4 sm:$0xff]  }
 0x58c   : > { %v17694_v6 = vadd.f32 %v7404_v60, %v7292_v23  ;;  %v7295_v61 = vpop.f32.mrf.mxu0  ;;  %v17705_v23 = vpack.c.bf16 %v20600_v38, %v17366_v5  ;;  %v20602_v60 = vld [vmem:[#allocation173_spill] sm:$0xff]  ;;  %8144 = vmatpush1.bf16.msra.mxu0 %v13573_v33  ;;  %20605 = vst [vmem:[#allocation175_spill] sm:$0xff] %v17714_v14  ;;  %v13582_v5 = vld [vmem:[%s14901_s14 + $0x3e8] ss:$16 sps:$4 sm:$0xff]  }
 0x58d   : > { %v7406_v9 = vpop.f32.mrf.mxu1  ;;  %v7296_v51 = vadd.f32 %v7295_v61, %v17543_v28  ;;  %v17709_v31 = vpack.c.bf16 %v20603_v59, %v20602_v60  ;;  %8145 = vmatprep.subr.bf16.mxu0 %v13581_v22  ;;  %v13587_v38 = vld [vmem:[%s14901_s14 + $0x1cc] ss:$16 sps:$4 sm:$0xff]   ;;  %v17723_v60 = vpack.c.bf16 %v17443_v35, %v17427_v56  ;;  %v13585_v35 = vld [vmem:[%s14901_s14 + $0x1c8] ss:$16 sps:$4 sm:$0xff]  }
 0x58e   : > { %v17700_v41 = vadd.f32 %v7406_v9, %v7294_v17  ;;  %20601 = vst [vmem:[#allocation174_spill] sm:$0xff] %v17705_v23  ;;  %v7299_v29 = vpop.f32.mrf.mxu0  ;;  %8257 = vmatpush1.bf16.msra.mxu1 %v13576_v46  ;;  %v13588_v59 = vld [vmem:[%s14901_s14 + $0x3c8] ss:$16 sps:$4 sm:$0xff]  }
 0x58f   : > { %v7408_v48 = vpop.f32.mrf.mxu1  ;;  %20604 = vst [vmem:[#allocation173_spill] sm:$0xff] %v17709_v31  ;;  %v7300_v9 = vadd.f32 %v7299_v29, %v17535_v16  ;;  %20606 = vst [vmem:[#allocation200_spill] sm:$0xff] %v17723_v60  ;;  %7976 = vmatmul.mubr.bf16.gmra.mxu0 %v17705_v23  ;;  %8258 = vmatprep.subr.bf16.mxu1 %v13584_v10  ;;  %v13593_v29 = vld [vmem:[%s14901_s14 + $0x1ac] ss:$16 sps:$4 sm:$0xff]  }
 0x590   : > { %v17716_v17 = vadd.f32 %v7408_v48, %v7296_v51  ;;  %v7301_v33 = vpop.f32.mrf.mxu0  ;;  %7985 = vmatprep.mubr.bf16.mxu0 %v17714_v14  ;;  %8146 = vmatpush2.bf16.msra.mxu0 %v13579_v52 }
 0x591   : > { %v7412_v61 = vpop.f32.mrf.mxu1  ;;  %8089 = vmatmul.mubr.bf16.gmra.mxu1 %v17709_v31  ;;  %v7302_v48 = vadd.f32 %v7301_v33, %v17543_v28  ;;  %8147 = vmatprep.subr.bf16.mxu0 %v13587_v38  ;;  %v13842_v31 = vld [vmem:[%s14901_s14 + $0xe8c] ss:$16 sps:$4 sm:$0xff]  }
 0x592   : > { %v17727_v3 = vadd.f32 %v7412_v61, %v7300_v9  ;;  %8098 = vmatprep.mubr.bf16.mxu1 %v17723_v60  ;;  %v7303_v56 = vpop.f32.mrf.mxu0  ;;  %8259 = vmatpush2.bf16.msra.mxu1 %v13582_v5  ;;  %v13596_v61 = vld [vmem:[%s14901_s14 + $0x3ac] ss:$16 sps:$4 sm:$0xff]   ;;  %v17745_v5 = vpack.c.bf16 %v17430_v34, %v17410_v24  ;;  %v13594_v24 = vld [vmem:[%s14901_s14 + $0x3a8] ss:$16 sps:$4 sm:$0xff]  }
 0x593   : > { %v7414_v46 = vpop.f32.mrf.mxu1  ;;  %v7304_v10 = vadd.f32 %v7303_v56, %v17535_v16  ;;  %8260 = vmatprep.subr.bf16.mxu1 %v13590_v40  ;;  %v13591_v40 = vld [vmem:[%s14901_s14 + $0x1a8] ss:$16 sps:$4 sm:$0xff]   ;;  %v13599_v34 = vld [vmem:[%s14901_s14 + $0x18c] ss:$16 sps:$4 sm:$0xff]  }
 0x594   : > { %v17734_v22 = vadd.f32 %v7414_v46, %v7302_v48  ;;  %v7305_v9 = vpop.f32.mrf.mxu0  ;;  %20607 = vst [vmem:[#allocation201_spill] sm:$0xff] %v17745_v5  ;;  %v17749_v48 = vpack.c.bf16 %v17434_v0, %v17418_v12  ;;  %8148 = vmatpush2.bf16.msra.mxu0 %v13585_v35  ;;  %v17754_v46 = vpack.c.bf16 %v17483_v7, %v17468_v62  ;;  %v13602_v7 = vld [vmem:[%s14901_s14 + $0x38c] ss:$16 sps:$4 sm:$0xff]  }
 0x595   : > { %v7416_v51 = vpop.f32.mrf.mxu1  ;;  %v7306_v52 = vadd.f32 %v7305_v9, %v17543_v28  ;;  %8149 = vmatprep.subr.bf16.mxu0 %v13593_v29  ;;  %v17763_v12 = vpack.c.bf16 %v17489_v36, %v17471_v44  ;;  %v13597_v36 = vld [vmem:[%s14901_s14 + $0x188] ss:$16 sps:$4 sm:$0xff]  }
 0x596   : > { %v17740_v33 = vadd.f32 %v7416_v51, %v7304_v10  ;;  %20608 = vst [vmem:[#allocation202_spill] sm:$0xff] %v17749_v48  ;;  %v7309_v38 = vpop.f32.mrf.mxu0  ;;  %20609 = vst [vmem:[#allocation203_spill] sm:$0xff] %v17754_v46  ;;  %8261 = vmatpush2.bf16.msra.mxu1 %v13588_v59 }
 0x597   : > { %v7418_v60 = vpop.f32.mrf.mxu1  ;;  %v7310_v10 = vadd.f32 %v7309_v38, %v17535_v16  ;;  %20610 = vst [vmem:[#allocation204_spill] sm:$0xff] %v17763_v12  ;;  %7986 = vmatmul.mubr.bf16.gmra.mxu0 %v17745_v5  ;;  %8262 = vmatprep.subr.bf16.mxu1 %v13596_v61  ;;  %v13600_v61 = vld [vmem:[%s14901_s14 + $0x388] ss:$16 sps:$4 sm:$0xff]  }
 0x598   : > { %v17756_v56 = vadd.f32 %v7418_v60, %v7306_v52  ;;  %v7311_v0 = vpop.f32.mrf.mxu0  ;;  %7995 = vmatprep.mubr.bf16.mxu0 %v17754_v46  ;;  %8150 = vmatpush2.bf16.msra.mxu0 %v13591_v40  ;;  %v13605_v52 = vld [vmem:[%s14901_s14 + $0x16c] ss:$16 sps:$4 sm:$0xff]   ;;  %v20660_v46 = vld [vmem:[#allocation124_spill] sm:$0xff] }
 0x599   : > { %v7422_v51 = vpop.f32.mrf.mxu1  ;;  %8099 = vmatmul.mubr.bf16.gmra.mxu1 %v17749_v48  ;;  %v7312_v60 = vadd.f32 %v7311_v0, %v17543_v28  ;;  %8151 = vmatprep.subr.bf16.mxu0 %v13599_v34 }
 0x59a   : > { %v17767_v62 = vadd.f32 %v7422_v51, %v7310_v10  ;;  %8108 = vmatprep.mubr.bf16.mxu1 %v17763_v12  ;;  %v7313_v44 = vpop.f32.mrf.mxu0  ;;  %8263 = vmatpush2.bf16.msra.mxu1 %v13594_v24  ;;  %v13608_v10 = vld [vmem:[%s14901_s14 + $0x36c] ss:$16 sps:$4 sm:$0xff]   ;;  %v17785_v24 = vpack.c.bf16 %v17474_v42, %v17454_v11  ;;  %v17794_v12 = vpack.c.bf16 %v17538_v37, %v17517_v1  ;;  %v13606_v11 = vld [vmem:[%s14901_s14 + $0x368] ss:$16 sps:$4 sm:$0xff]  }
 0x59b   : > { %v7424_v35 = vpop.f32.mrf.mxu1  ;;  %v7314_v29 = vadd.f32 %v7313_v44, %v17535_v16  ;;  %8264 = vmatprep.subr.bf16.mxu1 %v13602_v7  ;;  %v13603_v7 = vld [vmem:[%s14901_s14 + $0x168] ss:$16 sps:$4 sm:$0xff]   ;;  %v13611_v42 = vld [vmem:[%s14901_s14 + $0x14c] ss:$16 sps:$4 sm:$0xff]  }
 0x59c   : > { %v17774_v59 = vadd.f32 %v7424_v35, %v7312_v60  ;;  %v7315_v38 = vpop.f32.mrf.mxu0  ;;  %20611 = vst [vmem:[#allocation205_spill] sm:$0xff] %v17785_v24  ;;  %v20612_v60 = vld [vmem:[#allocation181_spill] sm:$0xff]  ;;  %v20613_v35 = vld [vmem:[#allocation182_spill] sm:$0xff]  ;;  %8152 = vmatpush2.bf16.msra.mxu0 %v13597_v36 }
 0x59d   : > { %v7426_v9 = vpop.f32.mrf.mxu1  ;;  %v7316_v40 = vadd.f32 %v7315_v38, %v17543_v28  ;;  %v17789_v44 = vpack.c.bf16 %v20613_v35, %v20612_v60  ;;  %20615 = vst [vmem:[#allocation182_spill] sm:$0xff] %v17794_v12  ;;  %8153 = vmatprep.subr.bf16.mxu0 %v13605_v52  ;;  %v17803_v60 = vpack.c.bf16 %v17540_v25, %v17522_v19  ;;  %v13614_v37 = vld [vmem:[%s14901_s14 + $0x34c] ss:$16 sps:$4 sm:$0xff]   ;;  %v13609_v19 = vld [vmem:[%s14901_s14 + $0x148] ss:$16 sps:$4 sm:$0xff]  }
 0x59e   : > { %v17780_v51 = vadd.f32 %v7426_v9, %v7314_v29  ;;  %v7319_v34 = vpop.f32.mrf.mxu0  ;;  %8265 = vmatpush2.bf16.msra.mxu1 %v13600_v61  ;;  %v13612_v35 = vld [vmem:[%s14901_s14 + $0x348] ss:$16 sps:$4 sm:$0xff]  }
 0x59f   : > { %v7428_v0 = vpop.f32.mrf.mxu1  ;;  %20614 = vst [vmem:[#allocation181_spill] sm:$0xff] %v17789_v44  ;;  %v7320_v9 = vadd.f32 %v7319_v34, %v17535_v16  ;;  %20616 = vst [vmem:[#allocation206_spill] sm:$0xff] %v17803_v60  ;;  %7996 = vmatmul.mubr.bf16.gmra.mxu0 %v17785_v24  ;;  %8266 = vmatprep.subr.bf16.mxu1 %v13608_v10  ;;  %v13617_v34 = vld [vmem:[%s14901_s14 + $0x12c] ss:$16 sps:$4 sm:$0xff]  }
 0x5a0   : > { %v17796_v29 = vadd.f32 %v7428_v0, %v7316_v40  ;;  %v7321_v36 = vpop.f32.mrf.mxu0  ;;  %8005 = vmatprep.mubr.bf16.mxu0 %v17794_v12  ;;  %8154 = vmatpush2.bf16.msra.mxu0 %v13603_v7  ;;  %v20620_v12 = vld [vmem:[#allocation191_spill] sm:$0xff] }
 0x5a1   : > { %v7432_v38 = vpop.f32.mrf.mxu1  ;;  %8109 = vmatmul.mubr.bf16.gmra.mxu1 %v17789_v44  ;;  %v7322_v61 = vadd.f32 %v7321_v36, %v17543_v28  ;;  %8155 = vmatprep.subr.bf16.mxu0 %v13611_v42  ;;  %v13615_v42 = vld [vmem:[%s14901_s14 + $0x128] ss:$16 sps:$4 sm:$0xff]   ;;  %v13623_v24 = vld [vmem:[%s14901_s14 + $0x10c] ss:$16 sps:$4 sm:$0xff]  }
 0x5a2   : > { %v17807_v1 = vadd.f32 %v7432_v38, %v7320_v9  ;;  %8118 = vmatprep.mubr.bf16.mxu1 %v17803_v60  ;;  %v7323_v25 = vpop.f32.mrf.mxu0  ;;  %8267 = vmatpush2.bf16.msra.mxu1 %v13606_v11  ;;  %v13620_v38 = vld [vmem:[%s14901_s14 + $0x32c] ss:$16 sps:$4 sm:$0xff]   ;;  %v20617_v11 = vld [vmem:[#allocation190_spill] sm:$0xff] }
 0x5a3   : > { %v7434_v52 = vpop.f32.mrf.mxu1  ;;  %v7324_v40 = vadd.f32 %v7323_v25, %v17535_v16  ;;  %8268 = vmatprep.subr.bf16.mxu1 %v13614_v37  ;;  %v20619_v25 = vld [vmem:[#allocation187_spill] sm:$0xff] }
 0x5a4   : > { %v17814_v10 = vadd.f32 %v7434_v52, %v7322_v61  ;;  %v7325_v9 = vpop.f32.mrf.mxu0  ;;  %v17825_v61 = vpack.c.bf16 %v20617_v11, %v17500_v39  ;;  %8156 = vmatpush2.bf16.msra.mxu0 %v13609_v19  ;;  %v17830_v37 = vpack.c.bf16 %v20620_v12, %v20619_v25  ;;  %v13626_v19 = vld [vmem:[%s14901_s14 + $0x30c] ss:$16 sps:$4 sm:$0xff]  }
 0x5a5   : > { %v7436_v0 = vpop.f32.mrf.mxu1  ;;  %v7326_v7 = vadd.f32 %v7325_v9, %v17543_v28  ;;  %8157 = vmatprep.subr.bf16.mxu0 %v13617_v34  ;;  %v13618_v9 = vld [vmem:[%s14901_s14 + $0x328] ss:$16 sps:$4 sm:$0xff]  }
 0x5a6   : > { %v17820_v36 = vadd.f32 %v7436_v0, %v7324_v40  ;;  %20618 = vst [vmem:[#allocation190_spill] sm:$0xff] %v17825_v61  ;;  %v7329_v52 = vpop.f32.mrf.mxu0  ;;  %20621 = vst [vmem:[#allocation187_spill] sm:$0xff] %v17830_v37  ;;  %8269 = vmatpush2.bf16.msra.mxu1 %v13612_v35  ;;  %v20622_v35 = vld [vmem:[#allocation114_spill] sm:$0xff] }
 0x5a7   : > { %v7438_v60 = vpop.f32.mrf.mxu1  ;;  %v7330_v40 = vadd.f32 %v7329_v52, %v17535_v16  ;;  %8006 = vmatmul.mubr.bf16.gmra.mxu0 %v17825_v61  ;;  %8270 = vmatprep.subr.bf16.mxu1 %v13620_v38  ;;  %v20623_v52 = vld [vmem:[#allocation115_spill] sm:$0xff] }
 0x5a8   : > { %v17832_v44 = vadd.f32 %v7438_v60, %v7326_v7  ;;  %v7331_v39 = vpop.f32.mrf.mxu0  ;;  %8161 = vmatprep.mubr.bf16.mxu0 %v20622_v35  ;;  %8158 = vmatpush2.bf16.msra.mxu0 %v13615_v42  ;;  %v13621_v7 = vld [vmem:[%s14901_s14 + $0x108] ss:$16 sps:$4 sm:$0xff]   ;;  %v13632_v35 = vld [vmem:[%s14901_s14 + $0x6ec] ss:$16 sps:$4 sm:$0xff]  }
 0x5a9   : > { %v7442_v0 = vpop.f32.mrf.mxu1  ;;  %8119 = vmatmul.mubr.bf16.gmra.mxu1 %v17830_v37  ;;  %v7332_v12 = vadd.f32 %v7331_v39, %v17543_v28  ;;  %8159 = vmatprep.subr.bf16.mxu0 %v13623_v24  ;;  %v13629_v39 = vld [vmem:[%s14901_s14 + $0x4ec] ss:$16 sps:$4 sm:$0xff]  }
 0x5aa   : > { %v17839_v11 = vadd.f32 %v7442_v0, %v7330_v40  ;;  %v7333_v34 = vpop.f32.mrf.mxu0  ;;  %8274 = vmatprep.mubr.bf16.mxu1 %v20623_v52  ;;  %8271 = vmatpush2.bf16.msra.mxu1 %v13618_v9  ;;  %v13624_v0 = vld [vmem:[%s14901_s14 + $0x308] ss:$16 sps:$4 sm:$0xff]  }
 0x5ab   : > { %v7444_v60 = vpop.f32.mrf.mxu1  ;;  %v7334_v25 = vadd.f32 %v7333_v34, %v17535_v16  ;;  %8272 = vmatprep.subr.bf16.mxu1 %v13626_v19  ;;  %v13630_v19 = vld [vmem:[%s14901_s14 + $0x6e8] ss:$16 sps:$4 sm:$0xff]   ;;  %v13635_v34 = vld [vmem:[%s14901_s14 + $0x4cc] ss:$16 sps:$4 sm:$0xff]  }
 0x5ac   : > { %v17846_v38 = vadd.f32 %v7444_v60, %v7332_v12  ;;  %v7335_v37 = vpop.f32.mrf.mxu0  ;;  %8160 = vmatpush2.bf16.msra.mxu0 %v13621_v7  ;;  %v13627_v12 = vld [vmem:[%s14901_s14 + $0x4e8] ss:$16 sps:$4 sm:$0xff]  }
 0x5ad   : > { %v7446_v40 = vpop.f32.mrf.mxu1  ;;  %v7336_v52 = vadd.f32 %v7335_v37, %v17543_v28  ;;  %8355 = vmatprep.subr.bf16.mxu0 %v13629_v39  ;;  %v20624_v37 = vld [vmem:[#allocation44_spill] sm:$0xff] }
 0x5ae   : > { %v17852_v42 = vadd.f32 %v7446_v40, %v7334_v25  ;;  %v7485_v9 = vpop.f32.mrf.mxu0  ;;  %8273 = vmatpush2.bf16.msra.mxu1 %v13624_v0  ;;  %v13638_v40 = vld [vmem:[%s14901_s14 + $0x6cc] ss:$16 sps:$4 sm:$0xff]   ;;  %v13633_v39 = vld [vmem:[%s14901_s14 + $0x4c8] ss:$16 sps:$4 sm:$0xff]  }
 0x5af   : > { %v7448_v61 = vpop.f32.mrf.mxu1  ;;  %v7486_v24 = vadd.f32 %v7485_v9, %v17567_v53  ;;  %8468 = vmatprep.subr.bf16.mxu1 %v13632_v35  ;;  %8162 = vmatmul.mubr.bf16.vlgmr.msra.gmra.mxu0 %v20624_v37  ;;  %v20625_v0 = vld [vmem:[#allocation45_spill] sm:$0xff] }
 0x5b0   : > { %v17856_v16 = vadd.f32 %v7448_v61, %v7336_v52  ;;  %v7487_v25 = vpop.f32.mrf.mxu0  ;;  %8356 = vmatpush1.bf16.msra.mxu0 %v13627_v12  ;;  %v13644_v37 = vld [vmem:[%s14901_s14 + $0x6ac] ss:$16 sps:$4 sm:$0xff]  }
 0x5b1   : > { %v7598_v60 = vpop.f32.mrf.mxu1  ;;  %v7488_v7 = vadd.f32 %v7487_v25, %v17574_v26  ;;  %8275 = vmatmul.mubr.bf16.vlgmr.msra.gmra.mxu1 %v20625_v0  ;;  %8357 = vmatprep.subr.bf16.mxu0 %v13635_v34  ;;  %v20626_v25 = vld [vmem:[#allocation112_spill] sm:$0xff] }
 0x5b2   : > { %v17862_v28 = vadd.f32 %v7598_v60, %v7486_v24  ;;  %v7489_v53 = vpop.f32.mrf.mxu0  ;;  %8469 = vmatpush1.bf16.msra.mxu1 %v13630_v19  ;;  %v13636_v24 = vld [vmem:[%s14901_s14 + $0x6c8] ss:$16 sps:$4 sm:$0xff]   ;;  %v13641_v60 = vld [vmem:[%s14901_s14 + $0x4ac] ss:$16 sps:$4 sm:$0xff]   ;;  %8171 = vmatprep.mubr.bf16.mxu0 %v20626_v25 }
 0x5b3   : > { %v7600_v61 = vpop.f32.mrf.mxu1  ;;  %v7490_v35 = vadd.f32 %v7489_v53, %v17580_v63  ;;  %8470 = vmatprep.subr.bf16.mxu1 %v13638_v40  ;;  %v13639_v34 = vld [vmem:[%s14901_s14 + $0x4a8] ss:$16 sps:$4 sm:$0xff]  }
 0x5b4   : > { %v17868_v52 = vadd.f32 %v7600_v61, %v7488_v7  ;;  %v7491_v26 = vpop.f32.mrf.mxu0  ;;  %v20627_v61 = vld [vmem:[#allocation113_spill] sm:$0xff]  ;;  %8358 = vmatpush1.bf16.msra.mxu0 %v13633_v39  ;;  %v13642_v25 = vld [vmem:[%s14901_s14 + $0x6a8] ss:$16 sps:$4 sm:$0xff]  }
 0x5b5   : > { %v7602_v9 = vpop.f32.mrf.mxu1  ;;  %v7492_v19 = vadd.f32 %v7491_v26, %v17596_v50  ;;  %8284 = vmatprep.mubr.bf16.mxu1 %v20627_v61  ;;  %8359 = vmatprep.subr.bf16.mxu0 %v13641_v60  ;;  %v13650_v50 = vld [vmem:[%s14901_s14 + $0x68c] ss:$16 sps:$4 sm:$0xff]   ;;  %v20628_v39 = vld [vmem:[#allocation42_spill] sm:$0xff] }
 0x5b6   : > { %v17875_v12 = vadd.f32 %v7602_v9, %v7490_v35  ;;  %v7495_v63 = vpop.f32.mrf.mxu0  ;;  %8471 = vmatpush1.bf16.msra.mxu1 %v13636_v24  ;;  %v13647_v35 = vld [vmem:[%s14901_s14 + $0x48c] ss:$16 sps:$4 sm:$0xff]   ;;  %v13645_v60 = vld [vmem:[%s14901_s14 + $0x488] ss:$16 sps:$4 sm:$0xff]  }
 0x5b7   : > { %v7604_v7 = vpop.f32.mrf.mxu1  ;;  %v7496_v40 = vadd.f32 %v7495_v63, %v17607_v32  ;;  %8472 = vmatprep.subr.bf16.mxu1 %v13644_v37  ;;  %8172 = vmatmul.mubr.bf16.gmra.mxu0 %v20628_v39  ;;  %v13656_v39 = vld [vmem:[%s14901_s14 + $0x66c] ss:$16 sps:$4 sm:$0xff]  }
 0x5b8   : > { %v17880_v0 = vadd.f32 %v7604_v7, %v7492_v19  ;;  %v7497_v9 = vpop.f32.mrf.mxu0  ;;  %v20629_v7 = vld [vmem:[#allocation43_spill] sm:$0xff]  ;;  %8360 = vmatpush1.bf16.msra.mxu0 %v13639_v34 }
 0x5b9   : > { %v7608_v53 = vpop.f32.mrf.mxu1  ;;  %v7498_v24 = vadd.f32 %v7497_v9, %v17614_v15  ;;  %8285 = vmatmul.mubr.bf16.gmra.mxu1 %v20629_v7  ;;  %8361 = vmatprep.subr.bf16.mxu0 %v13647_v35  ;;  %v20630_v9 = vld [vmem:[#allocation110_spill] sm:$0xff] }
 0x5ba   : > { %v17886_v26 = vadd.f32 %v7608_v53, %v7496_v40  ;;  %v7499_v32 = vpop.f32.mrf.mxu0  ;;  %8473 = vmatpush1.bf16.msra.mxu1 %v13642_v25  ;;  %v13648_v40 = vld [vmem:[%s14901_s14 + $0x688] ss:$16 sps:$4 sm:$0xff]   ;;  %v13653_v53 = vld [vmem:[%s14901_s14 + $0x46c] ss:$16 sps:$4 sm:$0xff]   ;;  %8181 = vmatprep.mubr.bf16.mxu0 %v20630_v9 }
 0x5bb   : > { %v7610_v19 = vpop.f32.mrf.mxu1  ;;  %v7500_v37 = vadd.f32 %v7499_v32, %v17620_v55  ;;  %8474 = vmatprep.subr.bf16.mxu1 %v13650_v50  ;;  %v13651_v35 = vld [vmem:[%s14901_s14 + $0x468] ss:$16 sps:$4 sm:$0xff]  }
 0x5bc   : > { %v17892_v61 = vadd.f32 %v7610_v19, %v7498_v24  ;;  %v7501_v15 = vpop.f32.mrf.mxu0  ;;  %v20631_v19 = vld [vmem:[#allocation111_spill] sm:$0xff]  ;;  %8362 = vmatpush1.bf16.msra.mxu0 %v13645_v60  ;;  %v13654_v9 = vld [vmem:[%s14901_s14 + $0x668] ss:$16 sps:$4 sm:$0xff]  }
 0x5bd   : > { %v7612_v63 = vpop.f32.mrf.mxu1  ;;  %v7502_v25 = vadd.f32 %v7501_v15, %v17636_v43  ;;  %8294 = vmatprep.mubr.bf16.mxu1 %v20631_v19  ;;  %8363 = vmatprep.subr.bf16.mxu0 %v13653_v53  ;;  %v13662_v43 = vld [vmem:[%s14901_s14 + $0x64c] ss:$16 sps:$4 sm:$0xff]   ;;  %v20632_v60 = vld [vmem:[#allocation40_spill] sm:$0xff] }
 0x5be   : > { %v17899_v34 = vadd.f32 %v7612_v63, %v7500_v37  ;;  %v7505_v55 = vpop.f32.mrf.mxu0  ;;  %8475 = vmatpush1.bf16.msra.mxu1 %v13648_v40  ;;  %v13659_v37 = vld [vmem:[%s14901_s14 + $0x44c] ss:$16 sps:$4 sm:$0xff]   ;;  %v13657_v53 = vld [vmem:[%s14901_s14 + $0x448] ss:$16 sps:$4 sm:$0xff]  }
 0x5bf   : > { %v7614_v24 = vpop.f32.mrf.mxu1  ;;  %v7506_v50 = vadd.f32 %v7505_v55, %v17647_v27  ;;  %8476 = vmatprep.subr.bf16.mxu1 %v13656_v39  ;;  %8182 = vmatmul.mubr.bf16.gmra.mxu0 %v20632_v60  ;;  %v13668_v60 = vld [vmem:[%s14901_s14 + $0x62c] ss:$16 sps:$4 sm:$0xff]  }
 0x5c0   : > { %v17904_v7 = vadd.f32 %v7614_v24, %v7502_v25  ;;  %v7507_v63 = vpop.f32.mrf.mxu0  ;;  %v20633_v24 = vld [vmem:[#allocation41_spill] sm:$0xff]  ;;  %8364 = vmatpush1.bf16.msra.mxu0 %v13651_v35 }
 0x5c1   : > { %v7618_v32 = vpop.f32.mrf.mxu1  ;;  %v7508_v40 = vadd.f32 %v7507_v63, %v17654_v54  ;;  %8295 = vmatmul.mubr.bf16.gmra.mxu1 %v20633_v24  ;;  %8365 = vmatprep.subr.bf16.mxu0 %v13659_v37  ;;  %v20634_v63 = vld [vmem:[#allocation108_spill] sm:$0xff] }
 0x5c2   : > { %v17910_v15 = vadd.f32 %v7618_v32, %v7506_v50  ;;  %v7509_v27 = vpop.f32.mrf.mxu0  ;;  %8477 = vmatpush1.bf16.msra.mxu1 %v13654_v9  ;;  %v13660_v50 = vld [vmem:[%s14901_s14 + $0x648] ss:$16 sps:$4 sm:$0xff]   ;;  %v13665_v32 = vld [vmem:[%s14901_s14 + $0x42c] ss:$16 sps:$4 sm:$0xff]   ;;  %8191 = vmatprep.mubr.bf16.mxu0 %v20634_v63 }
 0x5c3   : > { %v7620_v25 = vpop.f32.mrf.mxu1  ;;  %v7510_v39 = vadd.f32 %v7509_v27, %v17660_v2  ;;  %8478 = vmatprep.subr.bf16.mxu1 %v13662_v43  ;;  %v13663_v37 = vld [vmem:[%s14901_s14 + $0x428] ss:$16 sps:$4 sm:$0xff]  }
 0x5c4   : > { %v17916_v19 = vadd.f32 %v7620_v25, %v7508_v40  ;;  %v7511_v54 = vpop.f32.mrf.mxu0  ;;  %v20635_v25 = vld [vmem:[#allocation109_spill] sm:$0xff]  ;;  %8366 = vmatpush1.bf16.msra.mxu0 %v13657_v53  ;;  %v13666_v63 = vld [vmem:[%s14901_s14 + $0x628] ss:$16 sps:$4 sm:$0xff]  }
 0x5c5   : > { %v7622_v55 = vpop.f32.mrf.mxu1  ;;  %v7512_v9 = vadd.f32 %v7511_v54, %v17676_v58  ;;  %8304 = vmatprep.mubr.bf16.mxu1 %v20635_v25  ;;  %8367 = vmatprep.subr.bf16.mxu0 %v13665_v32  ;;  %v13674_v58 = vld [vmem:[%s14901_s14 + $0x60c] ss:$16 sps:$4 sm:$0xff]   ;;  %v20636_v53 = vld [vmem:[#allocation38_spill] sm:$0xff] }
 0x5c6   : > { %v17923_v35 = vadd.f32 %v7622_v55, %v7510_v39  ;;  %v7515_v2 = vpop.f32.mrf.mxu0  ;;  %8479 = vmatpush1.bf16.msra.mxu1 %v13660_v50  ;;  %v13671_v39 = vld [vmem:[%s14901_s14 + $0x40c] ss:$16 sps:$4 sm:$0xff]   ;;  %v13669_v32 = vld [vmem:[%s14901_s14 + $0x408] ss:$16 sps:$4 sm:$0xff]  }
 0x5c7   : > { %v7624_v40 = vpop.f32.mrf.mxu1  ;;  %v7516_v43 = vadd.f32 %v7515_v2, %v17687_v8  ;;  %8480 = vmatprep.subr.bf16.mxu1 %v13668_v60  ;;  %8192 = vmatmul.mubr.bf16.gmra.mxu0 %v20636_v53  ;;  %v13680_v53 = vld [vmem:[%s14901_s14 + $0x7ec] ss:$16 sps:$4 sm:$0xff]  }
 0x5c8   : > { %v17928_v24 = vadd.f32 %v7624_v40, %v7512_v9  ;;  %v7517_v55 = vpop.f32.mrf.mxu0  ;;  %v20637_v40 = vld [vmem:[#allocation39_spill] sm:$0xff]  ;;  %8368 = vmatpush1.bf16.msra.mxu0 %v13663_v37 }
 0x5c9   : > { %v7628_v27 = vpop.f32.mrf.mxu1  ;;  %v7518_v50 = vadd.f32 %v7517_v55, %v17694_v6  ;;  %8305 = vmatmul.mubr.bf16.gmra.mxu1 %v20637_v40  ;;  %8369 = vmatprep.subr.bf16.mxu0 %v13671_v39  ;;  %v20638_v55 = vld [vmem:[#allocation106_spill] sm:$0xff] }
 0x5ca   : > { %v17934_v54 = vadd.f32 %v7628_v27, %v7516_v43  ;;  %v7519_v8 = vpop.f32.mrf.mxu0  ;;  %8481 = vmatpush1.bf16.msra.mxu1 %v13666_v63  ;;  %v13672_v43 = vld [vmem:[%s14901_s14 + $0x608] ss:$16 sps:$4 sm:$0xff]   ;;  %v13677_v27 = vld [vmem:[%s14901_s14 + $0x5ec] ss:$16 sps:$4 sm:$0xff]   ;;  %8201 = vmatprep.mubr.bf16.mxu0 %v20638_v55 }
 0x5cb   : > { %v7630_v9 = vpop.f32.mrf.mxu1  ;;  %v7520_v60 = vadd.f32 %v7519_v8, %v17700_v41  ;;  %8482 = vmatprep.subr.bf16.mxu1 %v13674_v58  ;;  %v13675_v39 = vld [vmem:[%s14901_s14 + $0x5e8] ss:$16 sps:$4 sm:$0xff]  }
 0x5cc   : > { %v17940_v25 = vadd.f32 %v7630_v9, %v7518_v50  ;;  %v7521_v6 = vpop.f32.mrf.mxu0  ;;  %v20639_v9 = vld [vmem:[#allocation107_spill] sm:$0xff]  ;;  %8370 = vmatpush1.bf16.msra.mxu0 %v13669_v32  ;;  %v13678_v55 = vld [vmem:[%s14901_s14 + $0x7e8] ss:$16 sps:$4 sm:$0xff]  }
 0x5cd   : > { %v7632_v2 = vpop.f32.mrf.mxu1  ;;  %v7522_v63 = vadd.f32 %v7521_v6, %v17716_v17  ;;  %8314 = vmatprep.mubr.bf16.mxu1 %v20639_v9  ;;  %8371 = vmatprep.subr.bf16.mxu0 %v13677_v27  ;;  %v13686_v17 = vld [vmem:[%s14901_s14 + $0x7cc] ss:$16 sps:$4 sm:$0xff]   ;;  %v20640_v32 = vld [vmem:[#allocation36_spill] sm:$0xff] }
 0x5ce   : > { %v17947_v37 = vadd.f32 %v7632_v2, %v7520_v60  ;;  %v7525_v41 = vpop.f32.mrf.mxu0  ;;  %8483 = vmatpush1.bf16.msra.mxu1 %v13672_v43  ;;  %v13683_v60 = vld [vmem:[%s14901_s14 + $0x5cc] ss:$16 sps:$4 sm:$0xff]   ;;  %v13681_v27 = vld [vmem:[%s14901_s14 + $0x5c8] ss:$16 sps:$4 sm:$0xff]  }
 0x5cf   : > { %v7634_v50 = vpop.f32.mrf.mxu1  ;;  %v7526_v58 = vadd.f32 %v7525_v41, %v17727_v3  ;;  %8484 = vmatprep.subr.bf16.mxu1 %v13680_v53  ;;  %8202 = vmatmul.mubr.bf16.gmra.mxu0 %v20640_v32  ;;  %v13692_v32 = vld [vmem:[%s14901_s14 + $0x7ac] ss:$16 sps:$4 sm:$0xff]  }
 0x5d0   : > { %v17952_v40 = vadd.f32 %v7634_v50, %v7522_v63  ;;  %v7527_v2 = vpop.f32.mrf.mxu0  ;;  %v20641_v50 = vld [vmem:[#allocation37_spill] sm:$0xff]  ;;  %8372 = vmatpush2.bf16.msra.mxu0 %v13675_v39 }
 0x5d1   : > { %v7638_v8 = vpop.f32.mrf.mxu1  ;;  %v7528_v43 = vadd.f32 %v7527_v2, %v17734_v22  ;;  %8315 = vmatmul.mubr.bf16.gmra.mxu1 %v20641_v50  ;;  %8373 = vmatprep.subr.bf16.mxu0 %v13683_v60  ;;  %v20642_v2 = vld [vmem:[#allocation103_spill] sm:$0xff]  ;;  %v13687_v60 = vld [vmem:[%s14901_s14 + $0x5a8] ss:$16 sps:$4 sm:$0xff]  }
 0x5d2   : > { %v17958_v6 = vadd.f32 %v7638_v8, %v7526_v58  ;;  %v7529_v3 = vpop.f32.mrf.mxu0  ;;  %8485 = vmatpush2.bf16.msra.mxu1 %v13678_v55  ;;  %v13684_v58 = vld [vmem:[%s14901_s14 + $0x7c8] ss:$16 sps:$4 sm:$0xff]   ;;  %v13689_v8 = vld [vmem:[%s14901_s14 + $0x5ac] ss:$16 sps:$4 sm:$0xff]   ;;  %8211 = vmatprep.mubr.bf16.mxu0 %v20642_v2 }
 0x5d3   : > { %v7640_v63 = vpop.f32.mrf.mxu1  ;;  %v7530_v53 = vadd.f32 %v7529_v3, %v17740_v33  ;;  %8486 = vmatprep.subr.bf16.mxu1 %v13686_v17  ;;  %v13690_v2 = vld [vmem:[%s14901_s14 + $0x7a8] ss:$16 sps:$4 sm:$0xff]  }
 0x5d4   : > { %v17964_v9 = vadd.f32 %v7640_v63, %v7528_v43  ;;  %v7531_v22 = vpop.f32.mrf.mxu0  ;;  %v20643_v63 = vld [vmem:[#allocation104_spill] sm:$0xff]  ;;  %8374 = vmatpush2.bf16.msra.mxu0 %v13681_v27  ;;  %v20644_v27 = vld [vmem:[#allocation34_spill] sm:$0xff] }
 0x5d5   : > { %v7642_v41 = vpop.f32.mrf.mxu1  ;;  %v7532_v55 = vadd.f32 %v7531_v22, %v17756_v56  ;;  %8324 = vmatprep.mubr.bf16.mxu1 %v20643_v63  ;;  %8375 = vmatprep.subr.bf16.mxu0 %v13689_v8  ;;  %v13698_v56 = vld [vmem:[%s14901_s14 + $0x78c] ss:$16 sps:$4 sm:$0xff]   ;;  %v13693_v8 = vld [vmem:[%s14901_s14 + $0x588] ss:$16 sps:$4 sm:$0xff]  }
 0x5d6   : > { %v17971_v39 = vadd.f32 %v7642_v41, %v7530_v53  ;;  %v7535_v33 = vpop.f32.mrf.mxu0  ;;  %8487 = vmatpush2.bf16.msra.mxu1 %v13684_v58  ;;  %v13695_v53 = vld [vmem:[%s14901_s14 + $0x58c] ss:$16 sps:$4 sm:$0xff]  }
 0x5d7   : > { %v7644_v43 = vpop.f32.mrf.mxu1  ;;  %v7536_v17 = vadd.f32 %v7535_v33, %v17767_v62  ;;  %8488 = vmatprep.subr.bf16.mxu1 %v13692_v32  ;;  %8212 = vmatmul.mubr.bf16.gmra.mxu0 %v20644_v27  ;;  %v13704_v27 = vld [vmem:[%s14901_s14 + $0x76c] ss:$16 sps:$4 sm:$0xff]  }
 0x5d8   : > { %v17976_v50 = vadd.f32 %v7644_v43, %v7532_v55  ;;  %v7537_v41 = vpop.f32.mrf.mxu0  ;;  %v20645_v43 = vld [vmem:[#allocation105_spill] sm:$0xff]  ;;  %8376 = vmatpush2.bf16.msra.mxu0 %v13687_v60 }
 0x5d9   : > { %v7648_v3 = vpop.f32.mrf.mxu1  ;;  %v7538_v58 = vadd.f32 %v7537_v41, %v17774_v59  ;;  %8325 = vmatmul.mubr.bf16.gmra.mxu1 %v20645_v43  ;;  %8377 = vmatprep.subr.bf16.mxu0 %v13695_v53  ;;  %v20646_v41 = vld [vmem:[#allocation33_spill] sm:$0xff]  ;;  %v13699_v53 = vld [vmem:[%s14901_s14 + $0x568] ss:$16 sps:$4 sm:$0xff]  }
 0x5da   : > { %v17982_v22 = vadd.f32 %v7648_v3, %v7536_v17  ;;  %v7539_v62 = vpop.f32.mrf.mxu0  ;;  %8489 = vmatpush2.bf16.msra.mxu1 %v13690_v2  ;;  %v13696_v17 = vld [vmem:[%s14901_s14 + $0x788] ss:$16 sps:$4 sm:$0xff]   ;;  %v13701_v3 = vld [vmem:[%s14901_s14 + $0x56c] ss:$16 sps:$4 sm:$0xff]   ;;  %8221 = vmatprep.mubr.bf16.mxu0 %v20646_v41 }
 0x5db   : > { %v7650_v55 = vpop.f32.mrf.mxu1  ;;  %v7540_v32 = vadd.f32 %v7539_v62, %v17780_v51  ;;  %8490 = vmatprep.subr.bf16.mxu1 %v13698_v56  ;;  %v13702_v41 = vld [vmem:[%s14901_s14 + $0x768] ss:$16 sps:$4 sm:$0xff]  }
 0x5dc   : > { %v17988_v63 = vadd.f32 %v7650_v55, %v7538_v58  ;;  %v7541_v59 = vpop.f32.mrf.mxu0  ;;  %v20647_v55 = vld [vmem:[#allocation101_spill] sm:$0xff]  ;;  %8378 = vmatpush2.bf16.msra.mxu0 %v13693_v8  ;;  %v20648_v8 = vld [vmem:[#allocation102_spill] sm:$0xff] }
 0x5dd   : > { %v7652_v33 = vpop.f32.mrf.mxu1  ;;  %v7542_v2 = vadd.f32 %v7541_v59, %v17796_v29  ;;  %8334 = vmatprep.mubr.bf16.mxu1 %v20647_v55  ;;  %8379 = vmatprep.subr.bf16.mxu0 %v13701_v3  ;;  %v13710_v29 = vld [vmem:[%s14901_s14 + $0x74c] ss:$16 sps:$4 sm:$0xff]   ;;  %v13705_v3 = vld [vmem:[%s14901_s14 + $0x548] ss:$16 sps:$4 sm:$0xff]  }
 0x5de   : > { %v17995_v60 = vadd.f32 %v7652_v33, %v7540_v32  ;;  %v7545_v51 = vpop.f32.mrf.mxu0  ;;  %8491 = vmatpush2.bf16.msra.mxu1 %v13696_v17  ;;  %v13707_v32 = vld [vmem:[%s14901_s14 + $0x54c] ss:$16 sps:$4 sm:$0xff]  }
 0x5df   : > { %v7654_v58 = vpop.f32.mrf.mxu1  ;;  %v7546_v56 = vadd.f32 %v7545_v51, %v17807_v1  ;;  %8492 = vmatprep.subr.bf16.mxu1 %v13704_v27  ;;  %8222 = vmatmul.mubr.bf16.gmra.mxu0 %v20648_v8  ;;  %v13716_v8 = vld [vmem:[%s14901_s14 + $0x72c] ss:$16 sps:$4 sm:$0xff]  }
 0x5e0   : > { %v18000_v43 = vadd.f32 %v7654_v58, %v7542_v2  ;;  %v7547_v33 = vpop.f32.mrf.mxu0  ;;  %v20649_v58 = vld [vmem:[#allocation35_spill] sm:$0xff]  ;;  %8380 = vmatpush2.bf16.msra.mxu0 %v13699_v53 }
 0x5e1   : > { %v7658_v62 = vpop.f32.mrf.mxu1  ;;  %v7548_v17 = vadd.f32 %v7547_v33, %v17814_v10  ;;  %8335 = vmatmul.mubr.bf16.gmra.mxu1 %v20649_v58  ;;  %8381 = vmatprep.subr.bf16.mxu0 %v13707_v32  ;;  %v20650_v33 = vld [vmem:[#allocation97_spill] sm:$0xff]  ;;  %v13711_v32 = vld [vmem:[%s14901_s14 + $0x528] ss:$16 sps:$4 sm:$0xff]  }
 0x5e2   : > { %v18006_v59 = vadd.f32 %v7658_v62, %v7546_v56  ;;  %v7549_v1 = vpop.f32.mrf.mxu0  ;;  %8493 = vmatpush2.bf16.msra.mxu1 %v13702_v41  ;;  %v13708_v56 = vld [vmem:[%s14901_s14 + $0x748] ss:$16 sps:$4 sm:$0xff]   ;;  %v13713_v62 = vld [vmem:[%s14901_s14 + $0x52c] ss:$16 sps:$4 sm:$0xff]   ;;  %8231 = vmatprep.mubr.bf16.mxu0 %v20650_v33 }
 0x5e3   : > { %v7660_v2 = vpop.f32.mrf.mxu1  ;;  %v7550_v27 = vadd.f32 %v7549_v1, %v17820_v36  ;;  %8494 = vmatprep.subr.bf16.mxu1 %v13710_v29  ;;  %v13714_v33 = vld [vmem:[%s14901_s14 + $0x728] ss:$16 sps:$4 sm:$0xff]  }
 0x5e4   : > { %v18012_v55 = vadd.f32 %v7660_v2, %v7548_v17  ;;  %v7551_v10 = vpop.f32.mrf.mxu0  ;;  %v20651_v2 = vld [vmem:[#allocation98_spill] sm:$0xff]  ;;  %8382 = vmatpush2.bf16.msra.mxu0 %v13705_v3  ;;  %v20652_v3 = vld [vmem:[#allocation99_spill] sm:$0xff] }
 0x5e5   : > { %v7662_v51 = vpop.f32.mrf.mxu1  ;;  %v7552_v41 = vadd.f32 %v7551_v10, %v17832_v44  ;;  %8344 = vmatprep.mubr.bf16.mxu1 %v20651_v2  ;;  %8383 = vmatprep.subr.bf16.mxu0 %v13713_v62  ;;  %v13719_v44 = vld [vmem:[%s14901_s14 + $0x50c] ss:$16 sps:$4 sm:$0xff]   ;;  %v13717_v62 = vld [vmem:[%s14901_s14 + $0x508] ss:$16 sps:$4 sm:$0xff]  }
 0x5e6   : > { %v18019_v53 = vadd.f32 %v7662_v51, %v7550_v27  ;;  %v7555_v36 = vpop.f32.mrf.mxu0  ;;  %8495 = vmatpush2.bf16.msra.mxu1 %v13708_v56  ;;  %v20654_v2 = vld [vmem:[#allocation117_spill] sm:$0xff] }
 0x5e7   : > { %v7664_v17 = vpop.f32.mrf.mxu1  ;;  %v7556_v29 = vadd.f32 %v7555_v36, %v17839_v11  ;;  %8496 = vmatprep.subr.bf16.mxu1 %v13716_v8  ;;  %8232 = vmatmul.mubr.bf16.gmra.mxu0 %v20652_v3  ;;  %v13725_v3 = vld [vmem:[%s14901_s14 + $0x8ec] ss:$16 sps:$4 sm:$0xff]  }
 0x5e8   : > { %v18024_v58 = vadd.f32 %v7664_v17, %v7552_v41  ;;  %v7557_v27 = vpop.f32.mrf.mxu0  ;;  %v13722_v41 = vld [vmem:[%s14901_s14 + $0x70c] ss:$16 sps:$4 sm:$0xff]   ;;  %v20653_v17 = vld [vmem:[#allocation100_spill] sm:$0xff]  ;;  %8384 = vmatpush2.bf16.msra.mxu0 %v13711_v32  ;;  %8387 = vmatprep.mubr.bf16.mxu0 %v20654_v2 }
 0x5e9   : > { %v7668_v1 = vpop.f32.mrf.mxu1  ;;  %v7558_v10 = vadd.f32 %v7557_v27, %v17846_v38  ;;  %8345 = vmatmul.mubr.bf16.gmra.mxu1 %v20653_v17  ;;  %v20655_v38 = vld [vmem:[#allocation118_spill] sm:$0xff]  ;;  %8385 = vmatprep.subr.bf16.mxu0 %v13719_v44  ;;  %v13728_v32 = vld [vmem:[%s14901_s14 + $0xaec] ss:$16 sps:$4 sm:$0xff]  }
 0x5ea   : > { %v18029_v51 = vadd.f32 %v7668_v1, %v7556_v29  ;;  %v7559_v11 = vpop.f32.mrf.mxu0  ;;  %8497 = vmatpush2.bf16.msra.mxu1 %v13714_v33  ;;  %v13720_v1 = vld [vmem:[%s14901_s14 + $0x708] ss:$16 sps:$4 sm:$0xff]   ;;  %8500 = vmatprep.mubr.bf16.mxu1 %v20655_v38 }
 0x5eb   : > { %v7670_v56 = vpop.f32.mrf.mxu1  ;;  %v7560_v36 = vadd.f32 %v7559_v11, %v17852_v42  ;;  %8498 = vmatprep.subr.bf16.mxu1 %v13722_v41  ;;  %v13723_v11 = vld [vmem:[%s14901_s14 + $0x8e8] ss:$16 sps:$4 sm:$0xff]  }
 0x5ec   : > { %v18037_v8 = vadd.f32 %v7670_v56, %v7558_v10  ;;  %v7561_v27 = vpop.f32.mrf.mxu0  ;;  %8386 = vmatpush2.bf16.msra.mxu0 %v13717_v62  ;;  %v13726_v38 = vld [vmem:[%s14901_s14 + $0xae8] ss:$16 sps:$4 sm:$0xff]  }
 0x5ed   : > { %v7672_v29 = vpop.f32.mrf.mxu1  ;;  %v7562_v33 = vadd.f32 %v7561_v27, %v17856_v16  ;;  %8581 = vmatprep.subr.bf16.mxu0 %v13725_v3  ;;  %v13734_v16 = vld [vmem:[%s14901_s14 + $0xacc] ss:$16 sps:$4 sm:$0xff]  }
 0x5ee   : > { %v18044_v17 = vadd.f32 %v7672_v29, %v7560_v36  ;;  %8499 = vmatpush2.bf16.msra.mxu1 %v13720_v1  ;;  %v7711_v56 = vpop.f32.mrf.mxu0  ;;  %v13731_v36 = vld [vmem:[%s14901_s14 + $0x8cc] ss:$16 sps:$4 sm:$0xff]   ;;  %v20657_v1 = vld [vmem:[#allocation120_spill] sm:$0xff] }
 0x5ef   : > { %v7674_v10 = vpop.f32.mrf.mxu1  ;;  %v7712_v2 = vadd.f32 %v7711_v56, %v17862_v28  ;;  %8694 = vmatprep.subr.bf16.mxu1 %v13728_v32  ;;  %v20656_v29 = vld [vmem:[#allocation119_spill] sm:$0xff]  ;;  %v20658_v27 = vld [vmem:[#allocation121_spill] sm:$0xff] }
 0x5f0   : > { %v18047_v42 = vadd.f32 %v7674_v10, %v7562_v33  ;;  %8388 = vmatmul.mubr.bf16.vlgmr.msra.gmra.mxu0 %v20656_v29  ;;  %v7713_v41 = vpop.f32.mrf.mxu0  ;;  %v20659_v33 = vld [vmem:[#allocation122_spill] sm:$0xff] }
 0x5f1   : > { %v7824_v44 = vpop.f32.mrf.mxu1  ;;  %8501 = vmatmul.mubr.bf16.vlgmr.msra.gmra.mxu1 %v20657_v1  ;;  %8397 = vmatprep.mubr.bf16.mxu0 %v20658_v27  ;;  %v7714_v28 = vadd.f32 %v7713_v41, %v17868_v52  ;;  %v13729_v10 = vld [vmem:[%s14901_s14 + $0x8c8] ss:$16 sps:$4 sm:$0xff]   ;;  %v13737_v1 = vld [vmem:[%s14901_s14 + $0x8ac] ss:$16 sps:$4 sm:$0xff]  }
 0x5f2   : > { %v18055_v62 = vadd.f32 %v7824_v44, %v7712_v2  ;;  %8510 = vmatprep.mubr.bf16.mxu1 %v20659_v33  ;;  %8582 = vmatpush1.bf16.msra.mxu0 %v13723_v11  ;;  %v7715_v32 = vpop.f32.mrf.mxu0  ;;  %v13732_v29 = vld [vmem:[%s14901_s14 + $0xac8] ss:$16 sps:$4 sm:$0xff]   ;;  %v13740_v41 = vld [vmem:[%s14901_s14 + $0xaac] ss:$16 sps:$4 sm:$0xff]  }
 0x5f3   : > { %v7826_v3 = vpop.f32.mrf.mxu1  ;;  %8695 = vmatpush1.bf16.msra.mxu1 %v13726_v38  ;;  %v7716_v2 = vadd.f32 %v7715_v32, %v17875_v12  ;;  %8583 = vmatprep.subr.bf16.mxu0 %v13731_v36  ;;  %v13743_v32 = vld [vmem:[%s14901_s14 + $0x88c] ss:$16 sps:$4 sm:$0xff]  }
 0x5f4   : > { %v18062_v56 = vadd.f32 %v7826_v3, %v7714_v28  ;;  %8696 = vmatprep.subr.bf16.mxu1 %v13734_v16  ;;  %v7717_v52 = vpop.f32.mrf.mxu0  ;;  %v13735_v28 = vld [vmem:[%s14901_s14 + $0x8a8] ss:$16 sps:$4 sm:$0xff]  }
 0x5f5   : > { %v7828_v44 = vpop.f32.mrf.mxu1  ;;  %v7718_v11 = vadd.f32 %v7717_v52, %v17880_v0  ;;  %v13738_v16 = vld [vmem:[%s14901_s14 + $0xaa8] ss:$16 sps:$4 sm:$0xff]   ;;  %v13746_v0 = vld [vmem:[%s14901_s14 + $0xa8c] ss:$16 sps:$4 sm:$0xff]  }
 0x5f6   : > { %v18068_v27 = vadd.f32 %v7828_v44, %v7716_v2  ;;  %8584 = vmatpush1.bf16.msra.mxu0 %v13729_v10  ;;  %v7721_v38 = vpop.f32.mrf.mxu0  ;;  %v20661_v44 = vld [vmem:[#allocation125_spill] sm:$0xff] }
 0x5f7   : > { %v7830_v33 = vpop.f32.mrf.mxu1  ;;  %8697 = vmatpush1.bf16.msra.mxu1 %v13732_v29  ;;  %v7722_v36 = vadd.f32 %v7721_v38, %v17886_v26  ;;  %8585 = vmatprep.subr.bf16.mxu0 %v13737_v1  ;;  %v20662_v29 = vld [vmem:[#allocation126_spill] sm:$0xff]  ;;  %v20663_v1 = vld [vmem:[#allocation127_spill] sm:$0xff] }
 0x5f8   : > { %v18072_v12 = vadd.f32 %v7830_v33, %v7718_v11  ;;  %8398 = vmatmul.mubr.bf16.gmra.mxu0 %v20660_v46  ;;  %8698 = vmatprep.subr.bf16.mxu1 %v13740_v41  ;;  %v7723_v2 = vpop.f32.mrf.mxu0  ;;  %v13741_v46 = vld [vmem:[%s14901_s14 + $0x888] ss:$16 sps:$4 sm:$0xff]  }
 0x5f9   : > { %v7834_v3 = vpop.f32.mrf.mxu1  ;;  %8511 = vmatmul.mubr.bf16.gmra.mxu1 %v20661_v44  ;;  %8407 = vmatprep.mubr.bf16.mxu0 %v20662_v29  ;;  %v7724_v26 = vadd.f32 %v7723_v2, %v17892_v61  ;;  %v13752_v2 = vld [vmem:[%s14901_s14 + $0xa6c] ss:$16 sps:$4 sm:$0xff]  }
 0x5fa   : > { %v18079_v10 = vadd.f32 %v7834_v3, %v7722_v36  ;;  %8520 = vmatprep.mubr.bf16.mxu1 %v20663_v1  ;;  %8586 = vmatpush1.bf16.msra.mxu0 %v13735_v28  ;;  %v7725_v11 = vpop.f32.mrf.mxu0  ;;  %v13744_v36 = vld [vmem:[%s14901_s14 + $0xa88] ss:$16 sps:$4 sm:$0xff]   ;;  %v13749_v3 = vld [vmem:[%s14901_s14 + $0x86c] ss:$16 sps:$4 sm:$0xff]  }
 0x5fb   : > { %v7836_v52 = vpop.f32.mrf.mxu1  ;;  %8699 = vmatpush1.bf16.msra.mxu1 %v13738_v16  ;;  %v7726_v33 = vadd.f32 %v7725_v11, %v17899_v34  ;;  %8587 = vmatprep.subr.bf16.mxu0 %v13743_v32  ;;  %v13755_v1 = vld [vmem:[%s14901_s14 + $0x84c] ss:$16 sps:$4 sm:$0xff]   ;;  %v20664_v11 = vld [vmem:[#allocation128_spill] sm:$0xff] }
 0x5fc   : > { %v18086_v41 = vadd.f32 %v7836_v52, %v7724_v26  ;;  %8700 = vmatprep.subr.bf16.mxu1 %v13746_v0  ;;  %v7727_v61 = vpop.f32.mrf.mxu0  ;;  %v13747_v26 = vld [vmem:[%s14901_s14 + $0x868] ss:$16 sps:$4 sm:$0xff]  }
 0x5fd   : > { %v7838_v38 = vpop.f32.mrf.mxu1  ;;  %v7728_v28 = vadd.f32 %v7727_v61, %v17904_v7  ;;  %v13750_v0 = vld [vmem:[%s14901_s14 + $0xa68] ss:$16 sps:$4 sm:$0xff]   ;;  %v13758_v7 = vld [vmem:[%s14901_s14 + $0xa4c] ss:$16 sps:$4 sm:$0xff]  }
 0x5fe   : > { %v18092_v44 = vadd.f32 %v7838_v38, %v7726_v33  ;;  %8588 = vmatpush1.bf16.msra.mxu0 %v13741_v46  ;;  %v7731_v16 = vpop.f32.mrf.mxu0  ;;  %v20665_v38 = vld [vmem:[#allocation129_spill] sm:$0xff] }
 0x5ff   : > { %v7840_v29 = vpop.f32.mrf.mxu1  ;;  %8701 = vmatpush1.bf16.msra.mxu1 %v13744_v36  ;;  %v7732_v32 = vadd.f32 %v7731_v16, %v17910_v15  ;;  %8589 = vmatprep.subr.bf16.mxu0 %v13749_v3  ;;  %v20666_v36 = vld [vmem:[#allocation130_spill] sm:$0xff]  ;;  %v20667_v3 = vld [vmem:[#allocation131_spill] sm:$0xff] }
 0x600   : > { %v18096_v34 = vadd.f32 %v7840_v29, %v7728_v28  ;;  %8408 = vmatmul.mubr.bf16.gmra.mxu0 %v20664_v11  ;;  %8702 = vmatprep.subr.bf16.mxu1 %v13752_v2  ;;  %v7733_v33 = vpop.f32.mrf.mxu0  ;;  %v13753_v29 = vld [vmem:[%s14901_s14 + $0x848] ss:$16 sps:$4 sm:$0xff]   ;;  %v13761_v11 = vld [vmem:[%s14901_s14 + $0x82c] ss:$16 sps:$4 sm:$0xff]  }
 0x601   : > { %v7844_v52 = vpop.f32.mrf.mxu1  ;;  %8521 = vmatmul.mubr.bf16.gmra.mxu1 %v20665_v38  ;;  %8417 = vmatprep.mubr.bf16.mxu0 %v20666_v36  ;;  %v7734_v15 = vadd.f32 %v7733_v33, %v17916_v19  ;;  %v13764_v33 = vld [vmem:[%s14901_s14 + $0xa2c] ss:$16 sps:$4 sm:$0xff]  }
 0x602   : > { %v18103_v46 = vadd.f32 %v7844_v52, %v7732_v32  ;;  %8530 = vmatprep.mubr.bf16.mxu1 %v20667_v3  ;;  %8590 = vmatpush1.bf16.msra.mxu0 %v13747_v26  ;;  %v7735_v28 = vpop.f32.mrf.mxu0  ;;  %v13756_v52 = vld [vmem:[%s14901_s14 + $0xa48] ss:$16 sps:$4 sm:$0xff]   ;;  %v13767_v3 = vld [vmem:[%s14901_s14 + $0x80c] ss:$16 sps:$4 sm:$0xff]  }
 0x603   : > { %v7846_v61 = vpop.f32.mrf.mxu1  ;;  %8703 = vmatpush1.bf16.msra.mxu1 %v13750_v0  ;;  %v7736_v16 = vadd.f32 %v7735_v28, %v17923_v35  ;;  %8591 = vmatprep.subr.bf16.mxu0 %v13755_v1  ;;  %v20668_v28 = vld [vmem:[#allocation132_spill] sm:$0xff] }
 0x604   : > { %v18110_v2 = vadd.f32 %v7846_v61, %v7734_v15  ;;  %8704 = vmatprep.subr.bf16.mxu1 %v13758_v7  ;;  %v7737_v19 = vpop.f32.mrf.mxu0  ;;  %v13759_v15 = vld [vmem:[%s14901_s14 + $0x828] ss:$16 sps:$4 sm:$0xff]  }
 0x605   : > { %v7848_v32 = vpop.f32.mrf.mxu1  ;;  %v7738_v26 = vadd.f32 %v7737_v19, %v17928_v24  ;;  %v13762_v7 = vld [vmem:[%s14901_s14 + $0xa28] ss:$16 sps:$4 sm:$0xff]   ;;  %v13770_v24 = vld [vmem:[%s14901_s14 + $0xa0c] ss:$16 sps:$4 sm:$0xff]  }
 0x606   : > { %v18116_v38 = vadd.f32 %v7848_v32, %v7736_v16  ;;  %8592 = vmatpush1.bf16.msra.mxu0 %v13753_v29  ;;  %v7741_v0 = vpop.f32.mrf.mxu0  ;;  %v20669_v32 = vld [vmem:[#allocation133_spill] sm:$0xff] }
 0x607   : > { %v7850_v36 = vpop.f32.mrf.mxu1  ;;  %8705 = vmatpush1.bf16.msra.mxu1 %v13756_v52  ;;  %v7742_v1 = vadd.f32 %v7741_v0, %v17934_v54  ;;  %8593 = vmatprep.subr.bf16.mxu0 %v13761_v11  ;;  %v20670_v52 = vld [vmem:[#allocation134_spill] sm:$0xff]  ;;  %v20671_v11 = vld [vmem:[#allocation135_spill] sm:$0xff] }
 0x608   : > { %v18120_v35 = vadd.f32 %v7850_v36, %v7738_v26  ;;  %8418 = vmatmul.mubr.bf16.gmra.mxu0 %v20668_v28  ;;  %8706 = vmatprep.subr.bf16.mxu1 %v13764_v33  ;;  %v7743_v16 = vpop.f32.mrf.mxu0  ;;  %v13765_v36 = vld [vmem:[%s14901_s14 + $0x808] ss:$16 sps:$4 sm:$0xff]   ;;  %v13773_v28 = vld [vmem:[%s14901_s14 + $0x9ec] ss:$16 sps:$4 sm:$0xff]  }
 0x609   : > { %v7854_v61 = vpop.f32.mrf.mxu1  ;;  %8531 = vmatmul.mubr.bf16.gmra.mxu1 %v20669_v32  ;;  %8427 = vmatprep.mubr.bf16.mxu0 %v20670_v52  ;;  %v7744_v54 = vadd.f32 %v7743_v16, %v17940_v25  ;;  %v13776_v16 = vld [vmem:[%s14901_s14 + $0xbec] ss:$16 sps:$4 sm:$0xff]  }
 0x60a   : > { %v18127_v29 = vadd.f32 %v7854_v61, %v7742_v1  ;;  %8540 = vmatprep.mubr.bf16.mxu1 %v20671_v11  ;;  %8594 = vmatpush1.bf16.msra.mxu0 %v13759_v15  ;;  %v7745_v26 = vpop.f32.mrf.mxu0  ;;  %v13768_v61 = vld [vmem:[%s14901_s14 + $0xa08] ss:$16 sps:$4 sm:$0xff]   ;;  %v13779_v11 = vld [vmem:[%s14901_s14 + $0x9cc] ss:$16 sps:$4 sm:$0xff]  }
 0x60b   : > { %v7856_v19 = vpop.f32.mrf.mxu1  ;;  %8707 = vmatpush1.bf16.msra.mxu1 %v13762_v7  ;;  %v7746_v0 = vadd.f32 %v7745_v26, %v17947_v37  ;;  %8595 = vmatprep.subr.bf16.mxu0 %v13767_v3  ;;  %v20672_v26 = vld [vmem:[#allocation136_spill] sm:$0xff] }
 0x60c   : > { %v18134_v33 = vadd.f32 %v7856_v19, %v7744_v54  ;;  %8708 = vmatprep.subr.bf16.mxu1 %v13770_v24  ;;  %v7747_v25 = vpop.f32.mrf.mxu0  ;;  %v13771_v54 = vld [vmem:[%s14901_s14 + $0x9e8] ss:$16 sps:$4 sm:$0xff]  }
 0x60d   : > { %v7858_v1 = vpop.f32.mrf.mxu1  ;;  %v7748_v15 = vadd.f32 %v7747_v25, %v17952_v40  ;;  %v13774_v24 = vld [vmem:[%s14901_s14 + $0xbe8] ss:$16 sps:$4 sm:$0xff]   ;;  %v13782_v40 = vld [vmem:[%s14901_s14 + $0xbcc] ss:$16 sps:$4 sm:$0xff]  }
 0x60e   : > { %v18140_v32 = vadd.f32 %v7858_v1, %v7746_v0  ;;  %8596 = vmatpush1.bf16.msra.mxu0 %v13765_v36  ;;  %v7751_v7 = vpop.f32.mrf.mxu0  ;;  %v20673_v1 = vld [vmem:[#allocation137_spill] sm:$0xff] }
 0x60f   : > { %v7860_v52 = vpop.f32.mrf.mxu1  ;;  %8709 = vmatpush1.bf16.msra.mxu1 %v13768_v61  ;;  %v7752_v3 = vadd.f32 %v7751_v7, %v17958_v6  ;;  %8597 = vmatprep.subr.bf16.mxu0 %v13773_v28  ;;  %v20674_v61 = vld [vmem:[#allocation138_spill] sm:$0xff]  ;;  %v20675_v28 = vld [vmem:[#allocation139_spill] sm:$0xff] }
 0x610   : > { %v18144_v37 = vadd.f32 %v7860_v52, %v7748_v15  ;;  %8428 = vmatmul.mubr.bf16.gmra.mxu0 %v20672_v26  ;;  %8710 = vmatprep.subr.bf16.mxu1 %v13776_v16  ;;  %v7753_v0 = vpop.f32.mrf.mxu0  ;;  %v13777_v52 = vld [vmem:[%s14901_s14 + $0x9c8] ss:$16 sps:$4 sm:$0xff]   ;;  %v13785_v26 = vld [vmem:[%s14901_s14 + $0x9ac] ss:$16 sps:$4 sm:$0xff]  }
 0x611   : > { %v7864_v19 = vpop.f32.mrf.mxu1  ;;  %8541 = vmatmul.mubr.bf16.gmra.mxu1 %v20673_v1  ;;  %8437 = vmatprep.mubr.bf16.mxu0 %v20674_v61  ;;  %v7754_v6 = vadd.f32 %v7753_v0, %v17964_v9  ;;  %v13788_v0 = vld [vmem:[%s14901_s14 + $0xbac] ss:$16 sps:$4 sm:$0xff]  }
 0x612   : > { %v18151_v36 = vadd.f32 %v7864_v19, %v7752_v3  ;;  %8550 = vmatprep.mubr.bf16.mxu1 %v20675_v28  ;;  %8598 = vmatpush2.bf16.msra.mxu0 %v13771_v54  ;;  %v7755_v15 = vpop.f32.mrf.mxu0  ;;  %v13780_v19 = vld [vmem:[%s14901_s14 + $0xbc8] ss:$16 sps:$4 sm:$0xff]   ;;  %v13791_v28 = vld [vmem:[%s14901_s14 + $0x98c] ss:$16 sps:$4 sm:$0xff]  }
 0x613   : > { %v7866_v25 = vpop.f32.mrf.mxu1  ;;  %8711 = vmatpush2.bf16.msra.mxu1 %v13774_v24  ;;  %v7756_v7 = vadd.f32 %v7755_v15, %v17971_v39  ;;  %8599 = vmatprep.subr.bf16.mxu0 %v13779_v11  ;;  %v20676_v15 = vld [vmem:[#allocation141_spill] sm:$0xff] }
 0x614   : > { %v18158_v16 = vadd.f32 %v7866_v25, %v7754_v6  ;;  %8712 = vmatprep.subr.bf16.mxu1 %v13782_v40  ;;  %v7757_v9 = vpop.f32.mrf.mxu0  ;;  %v13783_v6 = vld [vmem:[%s14901_s14 + $0x9a8] ss:$16 sps:$4 sm:$0xff]  }
 0x615   : > { %v7868_v3 = vpop.f32.mrf.mxu1  ;;  %v7758_v54 = vadd.f32 %v7757_v9, %v17976_v50  ;;  %v13786_v40 = vld [vmem:[%s14901_s14 + $0xba8] ss:$16 sps:$4 sm:$0xff]   ;;  %v13794_v50 = vld [vmem:[%s14901_s14 + $0xb8c] ss:$16 sps:$4 sm:$0xff]  }
 0x616   : > { %v18164_v1 = vadd.f32 %v7868_v3, %v7756_v7  ;;  %8600 = vmatpush2.bf16.msra.mxu0 %v13777_v52  ;;  %v7761_v24 = vpop.f32.mrf.mxu0  ;;  %v20677_v3 = vld [vmem:[#allocation46_spill] sm:$0xff] }
 0x617   : > { %v7870_v61 = vpop.f32.mrf.mxu1  ;;  %8713 = vmatpush2.bf16.msra.mxu1 %v13780_v19  ;;  %v7762_v11 = vadd.f32 %v7761_v24, %v17982_v22  ;;  %8601 = vmatprep.subr.bf16.mxu0 %v13785_v26  ;;  %v20678_v19 = vld [vmem:[#allocation142_spill] sm:$0xff]  ;;  %v20679_v26 = vld [vmem:[#allocation143_spill] sm:$0xff] }
 0x618   : > { %v18168_v39 = vadd.f32 %v7870_v61, %v7758_v54  ;;  %8438 = vmatmul.mubr.bf16.gmra.mxu0 %v20676_v15  ;;  %8714 = vmatprep.subr.bf16.mxu1 %v13788_v0  ;;  %v7763_v7 = vpop.f32.mrf.mxu0  ;;  %v13789_v61 = vld [vmem:[%s14901_s14 + $0x988] ss:$16 sps:$4 sm:$0xff]   ;;  %v13797_v15 = vld [vmem:[%s14901_s14 + $0x96c] ss:$16 sps:$4 sm:$0xff]  }
 0x619   : > { %v7874_v25 = vpop.f32.mrf.mxu1  ;;  %8551 = vmatmul.mubr.bf16.gmra.mxu1 %v20677_v3  ;;  %8447 = vmatprep.mubr.bf16.mxu0 %v20678_v19  ;;  %v7764_v22 = vadd.f32 %v7763_v7, %v17988_v63  ;;  %v13800_v7 = vld [vmem:[%s14901_s14 + $0xb6c] ss:$16 sps:$4 sm:$0xff]  }
 0x61a   : > { %v18175_v52 = vadd.f32 %v7874_v25, %v7762_v11  ;;  %8560 = vmatprep.mubr.bf16.mxu1 %v20679_v26  ;;  %8602 = vmatpush2.bf16.msra.mxu0 %v13783_v6  ;;  %v7765_v54 = vpop.f32.mrf.mxu0  ;;  %v13792_v25 = vld [vmem:[%s14901_s14 + $0xb88] ss:$16 sps:$4 sm:$0xff]   ;;  %v13803_v26 = vld [vmem:[%s14901_s14 + $0x94c] ss:$16 sps:$4 sm:$0xff]  }
 0x61b   : > { %v7876_v9 = vpop.f32.mrf.mxu1  ;;  %8715 = vmatpush2.bf16.msra.mxu1 %v13786_v40  ;;  %v7766_v24 = vadd.f32 %v7765_v54, %v17995_v60  ;;  %8603 = vmatprep.subr.bf16.mxu0 %v13791_v28  ;;  %v20680_v54 = vld [vmem:[#allocation47_spill] sm:$0xff] }
 0x61c   : > { %v18182_v0 = vadd.f32 %v7876_v9, %v7764_v22  ;;  %8716 = vmatprep.subr.bf16.mxu1 %v13794_v50  ;;  %v7767_v63 = vpop.f32.mrf.mxu0  ;;  %v13795_v22 = vld [vmem:[%s14901_s14 + $0x968] ss:$16 sps:$4 sm:$0xff]  }
 0x61d   : > { %v7878_v11 = vpop.f32.mrf.mxu1  ;;  %v7768_v6 = vadd.f32 %v7767_v63, %v18000_v43  ;;  %v13798_v50 = vld [vmem:[%s14901_s14 + $0xb68] ss:$16 sps:$4 sm:$0xff]   ;;  %v13806_v43 = vld [vmem:[%s14901_s14 + $0xb4c] ss:$16 sps:$4 sm:$0xff]  }
 0x61e   : > { %v18188_v3 = vadd.f32 %v7878_v11, %v7766_v24  ;;  %8604 = vmatpush2.bf16.msra.mxu0 %v13789_v61  ;;  %v7771_v40 = vpop.f32.mrf.mxu0  ;;  %v20681_v11 = vld [vmem:[#allocation48_spill] sm:$0xff] }
 0x61f   : > { %v7880_v19 = vpop.f32.mrf.mxu1  ;;  %8717 = vmatpush2.bf16.msra.mxu1 %v13792_v25  ;;  %v7772_v28 = vadd.f32 %v7771_v40, %v18006_v59  ;;  %8605 = vmatprep.subr.bf16.mxu0 %v13797_v15  ;;  %v20682_v25 = vld [vmem:[#allocation116_spill] sm:$0xff]  ;;  %v20683_v15 = vld [vmem:[#allocation147_spill] sm:$0xff] }
 0x620   : > { %v18192_v60 = vadd.f32 %v7880_v19, %v7768_v6  ;;  %8448 = vmatmul.mubr.bf16.gmra.mxu0 %v20680_v54  ;;  %8718 = vmatprep.subr.bf16.mxu1 %v13800_v7  ;;  %v7773_v24 = vpop.f32.mrf.mxu0  ;;  %v13801_v19 = vld [vmem:[%s14901_s14 + $0x948] ss:$16 sps:$4 sm:$0xff]   ;;  %v13809_v54 = vld [vmem:[%s14901_s14 + $0x92c] ss:$16 sps:$4 sm:$0xff]  }
 0x621   : > { %v7884_v9 = vpop.f32.mrf.mxu1  ;;  %8561 = vmatmul.mubr.bf16.gmra.mxu1 %v20681_v11  ;;  %8457 = vmatprep.mubr.bf16.mxu0 %v20682_v25  ;;  %v7774_v59 = vadd.f32 %v7773_v24, %v18012_v55  ;;  %v13812_v24 = vld [vmem:[%s14901_s14 + $0xb2c] ss:$16 sps:$4 sm:$0xff]  }
 0x622   : > { %v18199_v61 = vadd.f32 %v7884_v9, %v7772_v28  ;;  %8570 = vmatprep.mubr.bf16.mxu1 %v20683_v15  ;;  %8606 = vmatpush2.bf16.msra.mxu0 %v13795_v22  ;;  %v7775_v6 = vpop.f32.mrf.mxu0  ;;  %v13804_v9 = vld [vmem:[%s14901_s14 + $0xb48] ss:$16 sps:$4 sm:$0xff]   ;;  %v13815_v15 = vld [vmem:[%s14901_s14 + $0x90c] ss:$16 sps:$4 sm:$0xff]  }
 0x623   : > { %v7886_v63 = vpop.f32.mrf.mxu1  ;;  %8719 = vmatpush2.bf16.msra.mxu1 %v13798_v50  ;;  %v7776_v40 = vadd.f32 %v7775_v6, %v18019_v53  ;;  %8607 = vmatprep.subr.bf16.mxu0 %v13803_v26  ;;  %v20684_v6 = vld [vmem:[#allocation148_spill] sm:$0xff] }
 0x624   : > { %v18206_v7 = vadd.f32 %v7886_v63, %v7774_v59  ;;  %8720 = vmatprep.subr.bf16.mxu1 %v13806_v43  ;;  %v7777_v55 = vpop.f32.mrf.mxu0  ;;  %v13807_v59 = vld [vmem:[%s14901_s14 + $0x928] ss:$16 sps:$4 sm:$0xff]  }
 0x625   : > { %v7888_v28 = vpop.f32.mrf.mxu1  ;;  %v7778_v22 = vadd.f32 %v7777_v55, %v18024_v58  ;;  %v13810_v43 = vld [vmem:[%s14901_s14 + $0xb28] ss:$16 sps:$4 sm:$0xff]   ;;  %v13818_v58 = vld [vmem:[%s14901_s14 + $0xb0c] ss:$16 sps:$4 sm:$0xff]  }
 0x626   : > { %v18212_v11 = vadd.f32 %v7888_v28, %v7776_v40  ;;  %8608 = vmatpush2.bf16.msra.mxu0 %v13801_v19  ;;  %v7781_v50 = vpop.f32.mrf.mxu0  ;;  %v20685_v28 = vld [vmem:[#allocation149_spill] sm:$0xff] }
 0x627   : > { %v7890_v25 = vpop.f32.mrf.mxu1  ;;  %8721 = vmatpush2.bf16.msra.mxu1 %v13804_v9  ;;  %v7782_v26 = vadd.f32 %v7781_v50, %v18029_v51  ;;  %8609 = vmatprep.subr.bf16.mxu0 %v13809_v54  ;;  %v20686_v9 = vld [vmem:[#allocation150_spill] sm:$0xff]  ;;  %v20687_v54 = vld [vmem:[#allocation151_spill] sm:$0xff] }
 0x628   : > { %v18216_v53 = vadd.f32 %v7890_v25, %v7778_v22  ;;  %8458 = vmatmul.mubr.bf16.gmra.mxu0 %v20684_v6  ;;  %8722 = vmatprep.subr.bf16.mxu1 %v13812_v24  ;;  %v7783_v40 = vpop.f32.mrf.mxu0  ;;  %v13813_v25 = vld [vmem:[%s14901_s14 + $0x908] ss:$16 sps:$4 sm:$0xff]   ;;  %v13821_v6 = vld [vmem:[%s14901_s14 + $0xcec] ss:$16 sps:$4 sm:$0xff]  }
 0x629   : > { %v7894_v63 = vpop.f32.mrf.mxu1  ;;  %8571 = vmatmul.mubr.bf16.gmra.mxu1 %v20685_v28  ;;  %8613 = vmatprep.mubr.bf16.mxu0 %v20686_v9  ;;  %v7784_v51 = vadd.f32 %v7783_v40, %v18037_v8  ;;  %v13824_v8 = vld [vmem:[%s14901_s14 + $0xeec] ss:$16 sps:$4 sm:$0xff]  }
 0x62a   : > { %v18223_v19 = vadd.f32 %v7894_v63, %v7782_v26  ;;  %8610 = vmatpush2.bf16.msra.mxu0 %v13807_v59  ;;  %8726 = vmatprep.mubr.bf16.mxu1 %v20687_v54  ;;  %v7785_v22 = vpop.f32.mrf.mxu0  ;;  %v13816_v63 = vld [vmem:[%s14901_s14 + $0xb08] ss:$16 sps:$4 sm:$0xff]  }
 0x62b   : > { %v7896_v55 = vpop.f32.mrf.mxu1  ;;  %8723 = vmatpush2.bf16.msra.mxu1 %v13810_v43  ;;  %v7786_v50 = vadd.f32 %v7785_v22, %v18044_v17  ;;  %8611 = vmatprep.subr.bf16.mxu0 %v13815_v15  ;;  %v18242_v15 = vpop.permute.xlu0 %9035  ;;  %v13822_v54 = vld [vmem:[%s14901_s14 + $0xee8] ss:$16 sps:$4 sm:$0xff]   ;;  %v13827_v22 = vld [vmem:[%s14901_s14 + $0xccc] ss:$16 sps:$4 sm:$0xff]  }
 0x62c   : > { %v18230_v24 = vadd.f32 %v7896_v55, %v7784_v51  ;;  %8724 = vmatprep.subr.bf16.mxu1 %v13818_v58  ;;  %v7787_v28 = vpop.f32.mrf.mxu0  ;;  %v13819_v51 = vld [vmem:[%s14901_s14 + $0xce8] ss:$16 sps:$4 sm:$0xff]   ;;  %20688 = vst [vmem:[#allocation191_spill] sm:$0xff] %v18242_v15 }
 0x62d   : > { %v7898_v26 = vpop.f32.mrf.mxu1  ;;  %v7788_v40 = vadd.f32 %v7787_v28, %v18047_v42  ;;  %v20691_v28 = vld [vmem:[#allocation154_spill] sm:$0xff] }
 0x62e   : > { %v18236_v59 = vadd.f32 %v7898_v26, %v7786_v50  ;;  %8612 = vmatpush2.bf16.msra.mxu0 %v13813_v25  ;;  %v20689_v50 = vld [vmem:[#allocation153_spill] sm:$0xff] }
 0x62f   : > { %v7900_v43 = vpop.f32.mrf.mxu1  ;;  %8725 = vmatpush2.bf16.msra.mxu1 %v13816_v63  ;;  %v7937_v17 = vpop.f32.mrf.mxu0  ;;  %8807 = vmatprep.subr.bf16.mxu0 %v13821_v6  ;;  %v13830_v25 = vld [vmem:[%s14901_s14 + $0xecc] ss:$16 sps:$4 sm:$0xff]  }
 0x630   : > { %v18239_v9 = vadd.f32 %v7900_v43, %v7788_v40  ;;  %v7938_v58 = vadd.f32 %v7937_v17, %v18055_v62  ;;  %8920 = vmatprep.subr.bf16.mxu1 %v13824_v8  ;;  %v20690_v63 = vld [vmem:[#allocation123_spill] sm:$0xff]  ;;  %v13825_v43 = vld [vmem:[%s14901_s14 + $0xcc8] ss:$16 sps:$4 sm:$0xff]  }
 0x631   : > { %v8050_v55 = vpop.f32.mrf.mxu1  ;;  %8614 = vmatmul.mubr.bf16.vlgmr.msra.gmra.mxu0 %v20689_v50  ;;  %v7939_v42 = vpop.f32.mrf.mxu0  ;;  %v20692_v40 = vld [vmem:[#allocation155_spill] sm:$0xff]  ;;  %v13828_v50 = vld [vmem:[%s14901_s14 + $0xec8] ss:$16 sps:$4 sm:$0xff]  }
 0x632   : > { %v18249_v26 = vadd.f32 %v8050_v55, %v7938_v58  ;;  %8727 = vmatmul.mubr.bf16.vlgmr.msra.gmra.mxu1 %v20690_v63  ;;  %8623 = vmatprep.mubr.bf16.mxu0 %v20691_v28  ;;  %v7940_v6 = vadd.f32 %v7939_v42, %v18062_v56  ;;  %v18262_v42 = vpop.permute.xlu0 %9040 }
 0x633   : > { %v8052_v62 = vpop.f32.mrf.mxu1  ;;  %8736 = vmatprep.mubr.bf16.mxu1 %v20692_v40  ;;  %8808 = vmatpush1.bf16.msra.mxu0 %v13819_v51  ;;  %v7941_v8 = vpop.f32.mrf.mxu0  ;;  %20693 = vst [vmem:[#allocation114_spill] sm:$0xff] %v18262_v42  ;;  %v13833_v51 = vld [vmem:[%s14901_s14 + $0xcac] ss:$16 sps:$4 sm:$0xff]  }
 0x634   : > { %8921 = vmatpush1.bf16.msra.mxu1 %v13822_v54  ;;  %v18256_v17 = vadd.f32 %v8052_v62, %v7940_v6  ;;  %v7942_v58 = vadd.f32 %v7941_v8, %v18068_v27  ;;  %8809 = vmatprep.subr.bf16.mxu0 %v13827_v22  ;;  %v9113_v63 = vmul.f32 %v18242_v15, %v18249_v26  ;;  %v13836_v62 = vld [vmem:[%s14901_s14 + $0xeac] ss:$16 sps:$4 sm:$0xff]  }
 0x635   : > { %v8054_v55 = vpop.f32.mrf.mxu1  ;;  %8922 = vmatprep.subr.bf16.mxu1 %v13830_v25  ;;  %v7943_v56 = vpop.f32.mrf.mxu0 }
 0x636   : > { %v18265_v28 = vadd.f32 %v8054_v55, %v7942_v58  ;;  %v7944_v54 = vadd.f32 %v7943_v56, %v18072_v12  ;;  %v9114_v27 = vmul.f32 %v18242_v15, %v18256_v17  ;;  %v13831_v12 = vld [vmem:[%s14901_s14 + $0xca8] ss:$16 sps:$4 sm:$0xff]   ;;  %v18277_v55 = vpop.permute.xlu1 %9045  ;;  %v9261_v56 = vmul.f32 %v9113_v63, %v18249_v26  ;;  %v20695_v15 = vld [vmem:[#allocation157_spill] sm:$0xff] }
 0x637   : > { %v8056_v6 = vpop.f32.mrf.mxu1  ;;  %8810 = vmatpush1.bf16.msra.mxu0 %v13825_v43  ;;  %v7947_v22 = vpop.f32.mrf.mxu0  ;;  %20694 = vst [vmem:[#allocation115_spill] sm:$0xff] %v18277_v55  ;;  %v13834_v43 = vld [vmem:[%s14901_s14 + $0xea8] ss:$16 sps:$4 sm:$0xff]  }
 0x638   : > { %8923 = vmatpush1.bf16.msra.mxu1 %v13828_v50  ;;  %v18271_v25 = vadd.f32 %v8056_v6, %v7944_v54  ;;  %v9117_v40 = vmul.f32 %v18262_v42, %v18265_v28  ;;  %v7948_v8 = vadd.f32 %v7947_v22, %v18079_v10  ;;  %8811 = vmatprep.subr.bf16.mxu0 %v13833_v51  ;;  %v13839_v50 = vld [vmem:[%s14901_s14 + $0xc8c] ss:$16 sps:$4 sm:$0xff]   ;;  %v20696_v22 = vld [vmem:[#allocation158_spill] sm:$0xff] }
 0x639   : > { %v8060_v58 = vpop.f32.mrf.mxu1  ;;  %8624 = vmatmul.mubr.bf16.gmra.mxu0 %v20695_v15  ;;  %v7949_v48 = vpop.f32.mrf.mxu0  ;;  %v9262_v23 = vmul.f32 %v9114_v27, %v18256_v17  ;;  %8924 = vmatprep.subr.bf16.mxu1 %v13836_v62  ;;  %v20697_v15 = vld [vmem:[#allocation159_spill] sm:$0xff] }
 0x63a   : > { %v9118_v54 = vmul.f32 %v18262_v42, %v18271_v25  ;;  %v9177_v6 = vadd.f32 %v9117_v40, %v9113_v63  ;;  %v9265_v5 = vmul.f32 %v9117_v40, %v18265_v28  ;;  %v18286_v10 = vadd.f32 %v8060_v58, %v7948_v8  ;;  %8737 = vmatmul.mubr.bf16.gmra.mxu1 %v20696_v22  ;;  %v13837_v58 = vld [vmem:[%s14901_s14 + $0xc88] ss:$16 sps:$4 sm:$0xff]  }
 0x63b   : > { %v8062_v14 = vpop.f32.mrf.mxu1  ;;  %8633 = vmatprep.mubr.bf16.mxu0 %v20697_v15  ;;  %v7950_v51 = vadd.f32 %v7949_v48, %v18086_v41  ;;  %v7951_v4 = vpop.f32.mrf.mxu0  ;;  %8746 = vmatprep.mubr.bf16.mxu1 %v20698_v57  ;;  %v13840_v41 = vld [vmem:[%s14901_s14 + $0xe88] ss:$16 sps:$4 sm:$0xff]  }
 0x63c   : > { %v9198_v42 = vadd.f32 %v9118_v54, %v9114_v27  ;;  %v9266_v63 = vmul.f32 %v9118_v54, %v18271_v25  ;;  %v9325_v40 = vadd.f32 %v9265_v5, %v9261_v56  ;;  %8812 = vmatpush1.bf16.msra.mxu0 %v13831_v12  ;;  %8925 = vmatpush1.bf16.msra.mxu1 %v13834_v43  ;;  %v18303_v12 = vpop.permute.xlu1 %9050 }
 0x63d   : > { %v8064_v8 = vpop.f32.mrf.mxu1  ;;  %v18296_v22 = vadd.f32 %v8062_v14, %v7950_v51  ;;  %v9121_v62 = vmul.f32 %v18277_v55, %v18286_v10  ;;  %v7952_v48 = vadd.f32 %v7951_v4, %v18092_v44  ;;  %8813 = vmatprep.subr.bf16.mxu0 %v13839_v50  ;;  %v7953_v27 = vpop.f32.mrf.mxu0  ;;  %8926 = vmatprep.subr.bf16.mxu1 %v13842_v31  ;;  %v13845_v44 = vld [vmem:[%s14901_s14 + $0xc6c] ss:$16 sps:$4 sm:$0xff]  }
 0x63e   : > { %v9346_v54 = vadd.f32 %v9266_v63, %v9262_v23  ;;  %v7954_v57 = vadd.f32 %v7953_v27, %v18096_v34  ;;  %20699 = vst [vmem:[#allocation44_spill] sm:$0xff] %v18303_v12  ;;  %v13848_v50 = vld [vmem:[%s14901_s14 + $0xe6c] ss:$16 sps:$4 sm:$0xff]  }
 0x63f   : > { %v8066_v5 = vpop.f32.mrf.mxu1  ;;  %v9122_v14 = vmul.f32 %v18277_v55, %v18296_v22  ;;  %v9178_v56 = vadd.f32 %v9177_v6, %v9121_v62  ;;  %v9269_v43 = vmul.f32 %v9121_v62, %v18286_v10  ;;  %v18308_v15 = vadd.f32 %v8064_v8, %v7952_v48  ;;  %v7957_v4 = vpop.f32.mrf.mxu0  ;;  %v13843_v62 = vld [vmem:[%s14901_s14 + $0xc68] ss:$16 sps:$4 sm:$0xff]  }
 0x640   : > { %8814 = vmatpush1.bf16.msra.mxu0 %v13837_v58  ;;  %v18312_v31 = vadd.f32 %v8066_v5, %v7954_v57  ;;  %v7958_v23 = vadd.f32 %v7957_v4, %v18103_v46  ;;  %8927 = vmatpush1.bf16.msra.mxu1 %v13840_v41  ;;  %v13846_v48 = vld [vmem:[%s14901_s14 + $0xe68] ss:$16 sps:$4 sm:$0xff]   ;;  %v20700_v46 = vld [vmem:[#allocation161_spill] sm:$0xff] }
 0x641   : > { %v8070_v34 = vpop.f32.mrf.mxu1  ;;  %v9199_v51 = vadd.f32 %v9198_v42, %v9122_v14  ;;  %v9270_v63 = vmul.f32 %v9122_v14, %v18296_v22  ;;  %v9326_v6 = vadd.f32 %v9325_v40, %v9269_v43  ;;  %v9125_v8 = vmul.f32 %v18303_v12, %v18308_v15  ;;  %v7959_v27 = vpop.f32.mrf.mxu0  ;;  %8634 = vmatmul.mubr.bf16.gmra.mxu0 %v20700_v46  ;;  %v20701_v5 = vld [vmem:[#allocation162_spill] sm:$0xff]  ;;  %v13851_v41 = vld [vmem:[%s14901_s14 + $0xc4c] ss:$16 sps:$4 sm:$0xff]  }
 0x642   : > { %v9126_v58 = vmul.f32 %v18303_v12, %v18312_v31  ;;  %v18322_v57 = vadd.f32 %v8070_v34, %v7958_v23  ;;  %8747 = vmatmul.mubr.bf16.gmra.mxu1 %v20701_v5  ;;  %v7960_v42 = vadd.f32 %v7959_v27, %v18110_v2  ;;  %v18327_v40 = vpop.permute.xlu0 %9055  ;;  %v13854_v43 = vld [vmem:[%s14901_s14 + $0xe4c] ss:$16 sps:$4 sm:$0xff]   ;;  %8815 = vmatprep.subr.bf16.mxu0 %v13845_v44  ;;  %v20704_v2 = vld [vmem:[#allocation164_spill] sm:$0xff] }
 0x643   : > { %v8072_v14 = vpop.f32.mrf.mxu1  ;;  %20702 = vst [vmem:[#allocation45_spill] sm:$0xff] %v18327_v40  ;;  %v9347_v4 = vadd.f32 %v9346_v54, %v9270_v63  ;;  %v9179_v55 = vadd.f32 %v9178_v56, %v9125_v8  ;;  %v9273_v30 = vmul.f32 %v9125_v8, %v18308_v15  ;;  %8928 = vmatprep.subr.bf16.mxu1 %v13848_v50  ;;  %v7961_v23 = vpop.f32.mrf.mxu0  ;;  %v20703_v5 = vld [vmem:[#allocation163_spill] sm:$0xff]  ;;  %v13849_v44 = vld [vmem:[%s14901_s14 + $0xc48] ss:$16 sps:$4 sm:$0xff]  }
 0x644   : > { %v9200_v34 = vadd.f32 %v9199_v51, %v9126_v58  ;;  %v9274_v46 = vmul.f32 %v9126_v58, %v18312_v31  ;;  %8643 = vmatprep.mubr.bf16.mxu0 %v20703_v5  ;;  %8756 = vmatprep.mubr.bf16.mxu1 %v20704_v2  ;;  %v18335_v27 = vadd.f32 %v8072_v14, %v7960_v42  ;;  %v13852_v50 = vld [vmem:[%s14901_s14 + $0xe48] ss:$16 sps:$4 sm:$0xff]   ;;  %v13857_v14 = vld [vmem:[%s14901_s14 + $0xc2c] ss:$16 sps:$4 sm:$0xff]  }
 0x645   : > { %v8074_v12 = vpop.f32.mrf.mxu1  ;;  %v9327_v13 = vadd.f32 %v9326_v6, %v9273_v30  ;;  %8816 = vmatpush1.bf16.msra.mxu0 %v13843_v62  ;;  %8929 = vmatpush1.bf16.msra.mxu1 %v13846_v48  ;;  %v9129_v54 = vmul.f32 %v18327_v40, %v18322_v57  ;;  %v7962_v56 = vadd.f32 %v7961_v23, %v18116_v38  ;;  %v7963_v51 = vpop.f32.mrf.mxu0  ;;  %v13858_v2 = vld [vmem:[%s14901_s14 + $0xe28] ss:$16 sps:$4 sm:$0xff]  }
 0x646   : > { %v9348_v63 = vadd.f32 %v9347_v4, %v9274_v46  ;;  %v9130_v8 = vmul.f32 %v18327_v40, %v18335_v27  ;;  %8817 = vmatprep.subr.bf16.mxu0 %v13851_v41  ;;  %8930 = vmatprep.subr.bf16.mxu1 %v13854_v43  ;;  %v7964_v30 = vadd.f32 %v7963_v51, %v18120_v35  ;;  %v18345_v62 = vpop.permute.xlu1 %9060  ;;  %v13860_v4 = vld [vmem:[%s14901_s14 + $0xe2c] ss:$16 sps:$4 sm:$0xff]  }
 0x647   : > { %v8076_v6 = vpop.f32.mrf.mxu1  ;;  %20705 = vst [vmem:[#allocation112_spill] sm:$0xff] %v18345_v62  ;;  %v9180_v48 = vadd.f32 %v9179_v55, %v9129_v54  ;;  %v9277_v38 = vmul.f32 %v9129_v54, %v18322_v57  ;;  %v18348_v58 = vadd.f32 %v8074_v12, %v7962_v56  ;;  %v7967_v42 = vpop.f32.mrf.mxu0  ;;  %v13855_v12 = vld [vmem:[%s14901_s14 + $0xc28] ss:$16 sps:$4 sm:$0xff]  }
 0x648   : > { %v9201_v23 = vadd.f32 %v9200_v34, %v9130_v8  ;;  %v9278_v46 = vmul.f32 %v9130_v8, %v18335_v27  ;;  %v18353_v41 = vadd.f32 %v8076_v6, %v7964_v30  ;;  %v7968_v35 = vadd.f32 %v7967_v42, %v18127_v29  ;;  %v18360_v56 = vpop.permute.xlu0 %9065  ;;  %v20707_v29 = vld [vmem:[#allocation165_spill] sm:$0xff]  ;;  %v20708_v30 = vld [vmem:[#allocation166_spill] sm:$0xff] }
 0x649   : > { %v8080_v43 = vpop.f32.mrf.mxu1  ;;  %v9328_v5 = vadd.f32 %v9327_v13, %v9277_v38  ;;  %8818 = vmatpush1.bf16.msra.mxu0 %v13849_v44  ;;  %8931 = vmatpush1.bf16.msra.mxu1 %v13852_v50  ;;  %v9133_v55 = vmul.f32 %v18345_v62, %v18348_v58  ;;  %v7969_v54 = vpop.f32.mrf.mxu0  ;;  %20706 = vst [vmem:[#allocation113_spill] sm:$0xff] %v18360_v56  ;;  %v13863_v44 = vld [vmem:[%s14901_s14 + $0xc0c] ss:$16 sps:$4 sm:$0xff]  }
 0x64a   : > { %v9349_v34 = vadd.f32 %v9348_v63, %v9278_v46  ;;  %v9134_v51 = vmul.f32 %v18345_v62, %v18353_v41  ;;  %v18364_v8 = vadd.f32 %v8080_v43, %v7968_v35  ;;  %8644 = vmatmul.mubr.bf16.gmra.mxu0 %v20707_v29  ;;  %8757 = vmatmul.mubr.bf16.gmra.mxu1 %v20708_v30  ;;  %v13866_v50 = vld [vmem:[%s14901_s14 + $0xe0c] ss:$16 sps:$4 sm:$0xff]   ;;  %v20710_v29 = vld [vmem:[#allocation168_spill] sm:$0xff] }
 0x64b   : > { %v8082_v13 = vpop.f32.mrf.mxu1  ;;  %v9181_v6 = vadd.f32 %v9180_v48, %v9133_v55  ;;  %v9281_v38 = vmul.f32 %v9133_v55, %v18348_v58  ;;  %8819 = vmatprep.subr.bf16.mxu0 %v13857_v14  ;;  %8932 = vmatprep.subr.bf16.mxu1 %v13860_v4  ;;  %v7970_v63 = vadd.f32 %v7969_v54, %v18134_v33  ;;  %v7971_v42 = vpop.f32.mrf.mxu0  ;;  %v20709_v43 = vld [vmem:[#allocation167_spill] sm:$0xff]  ;;  %v13861_v4 = vld [vmem:[%s14901_s14 + $0xc08] ss:$16 sps:$4 sm:$0xff]  }
 0x64c   : > { %v9202_v46 = vadd.f32 %v9201_v23, %v9134_v51  ;;  %v9282_v35 = vmul.f32 %v9134_v51, %v18353_v41  ;;  %8653 = vmatprep.mubr.bf16.mxu0 %v20709_v43  ;;  %8766 = vmatprep.mubr.bf16.mxu1 %v20710_v29  ;;  %v9137_v30 = vmul.f32 %v18360_v56, %v18364_v8  ;;  %v13864_v23 = vld [vmem:[%s14901_s14 + $0xe08] ss:$16 sps:$4 sm:$0xff]  }
 0x64d   : > { %v8084_v48 = vpop.f32.mrf.mxu1  ;;  %v9329_v62 = vadd.f32 %v9328_v5, %v9281_v38  ;;  %8820 = vmatpush1.bf16.msra.mxu0 %v13855_v12  ;;  %8933 = vmatpush1.bf16.msra.mxu1 %v13858_v2  ;;  %v18377_v14 = vadd.f32 %v8082_v13, %v7970_v63  ;;  %v7972_v33 = vadd.f32 %v7971_v42, %v18140_v32  ;;  %v7973_v55 = vpop.f32.mrf.mxu0  ;;  %v13869_v38 = vld [vmem:[%s14901_s14 + $0xdec] ss:$16 sps:$4 sm:$0xff]  }
 0x64e   : > { %v9350_v54 = vadd.f32 %v9349_v34, %v9282_v35  ;;  %v9182_v51 = vadd.f32 %v9181_v6, %v9137_v30  ;;  %v9285_v43 = vmul.f32 %v9137_v30, %v18364_v8  ;;  %8821 = vmatprep.subr.bf16.mxu0 %v13863_v44  ;;  %8934 = vmatprep.subr.bf16.mxu1 %v13866_v50  ;;  %v18388_v2 = vpop.permute.xlu1 %9070  ;;  %v13872_v34 = vld [vmem:[%s14901_s14 + $0xfec] ss:$16 sps:$4 sm:$0xff]   ;;  %v13867_v30 = vld [vmem:[%s14901_s14 + $0xde8] ss:$16 sps:$4 sm:$0xff]  }
 0x64f   : > { %v8086_v29 = vpop.f32.mrf.mxu1  ;;  %v9138_v5 = vmul.f32 %v18360_v56, %v18377_v14  ;;  %v18385_v12 = vadd.f32 %v8084_v48, %v7972_v33  ;;  %v7974_v32 = vadd.f32 %v7973_v55, %v18144_v37  ;;  %20711 = vst [vmem:[#allocation42_spill] sm:$0xff] %v18388_v2  ;;  %v7977_v13 = vpop.f32.mrf.mxu0  ;;  %v13870_v37 = vld [vmem:[%s14901_s14 + $0xfe8] ss:$16 sps:$4 sm:$0xff]  }
 0x650   : > { %v9330_v6 = vadd.f32 %v9329_v62, %v9285_v43  ;;  %v7978_v63 = vadd.f32 %v7977_v13, %v18151_v36  ;;  %v20712_v62 = vld [vmem:[#allocation170_spill] sm:$0xff]  ;;  %v20713_v36 = vld [vmem:[#allocation140_spill] sm:$0xff] }
 0x651   : > { %v8090_v44 = vpop.f32.mrf.mxu1  ;;  %v9203_v50 = vadd.f32 %v9202_v46, %v9138_v5  ;;  %v9286_v42 = vmul.f32 %v9138_v5, %v18377_v14  ;;  %8822 = vmatpush1.bf16.msra.mxu0 %v13861_v4  ;;  %8935 = vmatpush1.bf16.msra.mxu1 %v13864_v23  ;;  %v18394_v35 = vadd.f32 %v8086_v29, %v7974_v32  ;;  %v7979_v48 = vpop.f32.mrf.mxu0  ;;  %v13875_v4 = vld [vmem:[%s14901_s14 + $0xdcc] ss:$16 sps:$4 sm:$0xff]  }
 0x652   : > { %v9141_v33 = vmul.f32 %v18388_v2, %v18385_v12  ;;  %v18400_v55 = vadd.f32 %v8090_v44, %v7978_v63  ;;  %8654 = vmatmul.mubr.bf16.gmra.mxu0 %v20712_v62  ;;  %8767 = vmatmul.mubr.bf16.gmra.mxu1 %v20713_v36  ;;  %v7980_v46 = vadd.f32 %v7979_v48, %v18158_v16  ;;  %v18405_v5 = vpop.permute.xlu0 %9075  ;;  %v13878_v23 = vld [vmem:[%s14901_s14 + $0xfcc] ss:$16 sps:$4 sm:$0xff]   ;;  %v20716_v16 = vld [vmem:[#allocation172_spill] sm:$0xff] }
 0x653   : > { %v8092_v43 = vpop.f32.mrf.mxu1  ;;  %20714 = vst [vmem:[#allocation43_spill] sm:$0xff] %v18405_v5  ;;  %v9351_v29 = vadd.f32 %v9350_v54, %v9286_v42  ;;  %v9142_v32 = vmul.f32 %v18388_v2, %v18394_v35  ;;  %8823 = vmatprep.subr.bf16.mxu0 %v13869_v38  ;;  %8936 = vmatprep.subr.bf16.mxu1 %v13872_v34  ;;  %v7981_v13 = vpop.f32.mrf.mxu0  ;;  %v20715_v62 = vld [vmem:[#allocation171_spill] sm:$0xff]  ;;  %v13873_v34 = vld [vmem:[%s14901_s14 + $0xdc8] ss:$16 sps:$4 sm:$0xff]  }
 0x654   : > { %v9183_v63 = vadd.f32 %v9182_v51, %v9141_v33  ;;  %v9289_v44 = vmul.f32 %v9141_v33, %v18385_v12  ;;  %8663 = vmatprep.mubr.bf16.mxu0 %v20715_v62  ;;  %8776 = vmatprep.mubr.bf16.mxu1 %v20716_v16  ;;  %v18414_v48 = vadd.f32 %v8092_v43, %v7980_v46  ;;  %v13876_v51 = vld [vmem:[%s14901_s14 + $0xfc8] ss:$16 sps:$4 sm:$0xff]   ;;  %v18426_v16 = vpop.permute.xlu1 %9080 }
 0x655   : > { %v8094_v36 = vpop.f32.mrf.mxu1  ;;  %v9204_v56 = vadd.f32 %v9203_v50, %v9142_v32  ;;  %v9290_v54 = vmul.f32 %v9142_v32, %v18394_v35  ;;  %8824 = vmatpush2.bf16.msra.mxu0 %v13867_v30  ;;  %8937 = vmatpush2.bf16.msra.mxu1 %v13870_v37  ;;  %v9145_v38 = vmul.f32 %v18405_v5, %v18400_v55  ;;  %v7983_v42 = vpop.f32.mrf.mxu0 }
 0x656   : > { %v9331_v33 = vadd.f32 %v9330_v6, %v9289_v44  ;;  %v9146_v62 = vmul.f32 %v18405_v5, %v18414_v48  ;;  %v7982_v46 = vadd.f32 %v7981_v13, %v18164_v1  ;;  %8825 = vmatprep.subr.bf16.mxu0 %v13875_v4  ;;  %8938 = vmatprep.subr.bf16.mxu1 %v13878_v23  ;;  %v13881_v6 = vld [vmem:[%s14901_s14 + $0xdac] ss:$16 sps:$4 sm:$0xff]  }
 0x657   : > { %v8096_v50 = vpop.f32.mrf.mxu1  ;;  %v9352_v43 = vadd.f32 %v9351_v29, %v9290_v54  ;;  %v9184_v30 = vadd.f32 %v9183_v63, %v9145_v38  ;;  %v9293_v37 = vmul.f32 %v9145_v38, %v18400_v55  ;;  %v7984_v32 = vadd.f32 %v7983_v42, %v18168_v39  ;;  %20717 = vst [vmem:[#allocation110_spill] sm:$0xff] %v18426_v16  ;;  %v7987_v2 = vpop.f32.mrf.mxu0  ;;  %v13884_v44 = vld [vmem:[%s14901_s14 + $0xfac] ss:$16 sps:$4 sm:$0xff]   ;;  %v13879_v39 = vld [vmem:[%s14901_s14 + $0xda8] ss:$16 sps:$4 sm:$0xff]  }
 0x658   : > { %v9205_v40 = vadd.f32 %v9204_v56, %v9146_v62  ;;  %v9294_v5 = vmul.f32 %v9146_v62, %v18414_v48  ;;  %v18431_v1 = vadd.f32 %v8094_v36, %v7982_v46  ;;  %v7988_v4 = vadd.f32 %v7987_v2, %v18175_v52  ;;  %v13882_v63 = vld [vmem:[%s14901_s14 + $0xfa8] ss:$16 sps:$4 sm:$0xff]   ;;  %v18438_v38 = vpop.permute.xlu0 %9085  ;;  %v20719_v52 = vld [vmem:[#allocation145_spill] sm:$0xff] }
 0x659   : > { %v8100_v23 = vpop.f32.mrf.mxu1  ;;  %v9332_v29 = vadd.f32 %v9331_v33, %v9293_v37  ;;  %8826 = vmatpush2.bf16.msra.mxu0 %v13873_v34  ;;  %8939 = vmatpush2.bf16.msra.mxu1 %v13876_v51  ;;  %v18434_v13 = vadd.f32 %v8096_v50, %v7984_v32  ;;  %v7989_v54 = vpop.f32.mrf.mxu0  ;;  %20718 = vst [vmem:[#allocation111_spill] sm:$0xff] %v18438_v38  ;;  %v20720_v2 = vld [vmem:[#allocation144_spill] sm:$0xff]  ;;  %v13887_v51 = vld [vmem:[%s14901_s14 + $0xd8c] ss:$16 sps:$4 sm:$0xff]   ;;  %v20721_v37 = vld [vmem:[#allocation146_spill] sm:$0xff] }
 0x65a   : > { %v9353_v56 = vadd.f32 %v9352_v43, %v9294_v5  ;;  %v9149_v36 = vmul.f32 %v18426_v16, %v18431_v1  ;;  %v18442_v42 = vadd.f32 %v8100_v23, %v7988_v4  ;;  %8664 = vmatmul.mubr.bf16.gmra.mxu0 %v20719_v52  ;;  %8777 = vmatmul.mubr.bf16.gmra.mxu1 %v20720_v2  ;;  %v13890_v46 = vld [vmem:[%s14901_s14 + $0xf8c] ss:$16 sps:$4 sm:$0xff]   ;;  %v20722_v32 = vld [vmem:[#allocation176_spill] sm:$0xff] }
 0x65b   : > { %v8102_v34 = vpop.f32.mrf.mxu1  ;;  %v9150_v33 = vmul.f32 %v18426_v16, %v18434_v13  ;;  %8827 = vmatprep.subr.bf16.mxu0 %v13881_v6  ;;  %8940 = vmatprep.subr.bf16.mxu1 %v13884_v44  ;;  %v7990_v5 = vadd.f32 %v7989_v54, %v18182_v0  ;;  %v7991_v62 = vpop.f32.mrf.mxu0  ;;  %v13885_v0 = vld [vmem:[%s14901_s14 + $0xd88] ss:$16 sps:$4 sm:$0xff]  }
 0x65c   : > { %v9185_v50 = vadd.f32 %v9184_v30, %v9149_v36  ;;  %v9297_v43 = vmul.f32 %v9149_v36, %v18431_v1  ;;  %8673 = vmatprep.mubr.bf16.mxu0 %v20721_v37  ;;  %8786 = vmatprep.mubr.bf16.mxu1 %v20722_v32  ;;  %v9153_v4 = vmul.f32 %v18438_v38, %v18442_v42  ;;  %v13888_v30 = vld [vmem:[%s14901_s14 + $0xf88] ss:$16 sps:$4 sm:$0xff]  }
 0x65d   : > { %v8104_v23 = vpop.f32.mrf.mxu1  ;;  %v9206_v52 = vadd.f32 %v9205_v40, %v9150_v33  ;;  %v9298_v6 = vmul.f32 %v9150_v33, %v18434_v13  ;;  %8828 = vmatpush2.bf16.msra.mxu0 %v13879_v39  ;;  %8941 = vmatpush2.bf16.msra.mxu1 %v13882_v63  ;;  %v18457_v44 = vadd.f32 %v8102_v34, %v7990_v5  ;;  %v7993_v54 = vpop.f32.mrf.mxu0  ;;  %v13896_v5 = vld [vmem:[%s14901_s14 + $0xf6c] ss:$16 sps:$4 sm:$0xff]  }
 0x65e   : > { %v9333_v36 = vadd.f32 %v9332_v29, %v9297_v43  ;;  %v9186_v2 = vadd.f32 %v9185_v50, %v9153_v4  ;;  %v9301_v37 = vmul.f32 %v9153_v4, %v18442_v42  ;;  %v7992_v32 = vadd.f32 %v7991_v62, %v18188_v3  ;;  %8829 = vmatprep.subr.bf16.mxu0 %v13887_v51  ;;  %v18466_v34 = vpop.permute.xlu1 %9090  ;;  %v13893_v29 = vld [vmem:[%s14901_s14 + $0xd6c] ss:$16 sps:$4 sm:$0xff]   ;;  %v13894_v4 = vld [vmem:[%s14901_s14 + $0xf68] ss:$16 sps:$4 sm:$0xff]  }
 0x65f   : > { %v8106_v16 = vpop.f32.mrf.mxu1  ;;  %v9354_v40 = vadd.f32 %v9353_v56, %v9298_v6  ;;  %v9154_v39 = vmul.f32 %v18438_v38, %v18457_v44  ;;  %8942 = vmatprep.subr.bf16.mxu1 %v13890_v46  ;;  %v7994_v63 = vadd.f32 %v7993_v54, %v18192_v60  ;;  %20723 = vst [vmem:[#allocation40_spill] sm:$0xff] %v18466_v34  ;;  %v7997_v33 = vpop.f32.mrf.mxu0  ;;  %v13891_v60 = vld [vmem:[%s14901_s14 + $0xd68] ss:$16 sps:$4 sm:$0xff]   ;;  %v13908_v38 = vld [vmem:[%s14901_s14 + $0xf2c] ss:$16 sps:$4 sm:$0xff]  }
 0x660   : > { %v9334_v50 = vadd.f32 %v9333_v36, %v9301_v37  ;;  %v18470_v43 = vadd.f32 %v8104_v23, %v7992_v32  ;;  %v7998_v3 = vadd.f32 %v7997_v33, %v18199_v61  ;;  %v20727_v36 = vld [vmem:[#allocation177_spill] sm:$0xff]  ;;  %v20728_v61 = vld [vmem:[#allocation178_spill] sm:$0xff]  ;;  %v18485_v32 = vpop.permute.xlu0 %9095 }
 0x661   : > { %v8110_v51 = vpop.f32.mrf.mxu1  ;;  %v9207_v56 = vadd.f32 %v9206_v52, %v9154_v39  ;;  %v9302_v62 = vmul.f32 %v9154_v39, %v18457_v44  ;;  %8830 = vmatpush2.bf16.msra.mxu0 %v13885_v0  ;;  %8943 = vmatpush2.bf16.msra.mxu1 %v13888_v30  ;;  %v18474_v46 = vadd.f32 %v8106_v16, %v7994_v63  ;;  %v7999_v6 = vpop.f32.mrf.mxu0  ;;  %v13899_v0 = vld [vmem:[%s14901_s14 + $0xd4c] ss:$16 sps:$4 sm:$0xff]  }
 0x662   : > { %20724 = vst [vmem:[#allocation41_spill] sm:$0xff] %v18470_v43  ;;  %v9157_v54 = vmul.f32 %v18466_v34, %v18470_v43  ;;  %v18480_v23 = vadd.f32 %v8110_v51, %v7998_v3  ;;  %8674 = vmatmul.mubr.bf16.gmra.mxu0 %v20727_v36  ;;  %8787 = vmatmul.mubr.bf16.gmra.mxu1 %v20728_v61  ;;  %20729 = vst [vmem:[#allocation38_spill] sm:$0xff] %v18485_v32  ;;  %v13902_v16 = vld [vmem:[%s14901_s14 + $0xf4c] ss:$16 sps:$4 sm:$0xff]  }
 0x663   : > { %20725 = vst [vmem:[#allocation108_spill] sm:$0xff] %v18474_v46  ;;  %v8000_v52 = vadd.f32 %v7999_v6, %v18206_v7  ;;  %v8112_v37 = vpop.f32.mrf.mxu1  ;;  %v9355_v30 = vadd.f32 %v9354_v40, %v9302_v62  ;;  %v9158_v39 = vmul.f32 %v18466_v34, %v18474_v46  ;;  %8831 = vmatprep.subr.bf16.mxu0 %v13893_v29  ;;  %v8001_v63 = vpop.f32.mrf.mxu0  ;;  %v20730_v51 = vld [vmem:[#allocation179_spill] sm:$0xff]  ;;  %v20731_v7 = vld [vmem:[#allocation180_spill] sm:$0xff] }
 0x664   : > { %20726 = vst [vmem:[#allocation109_spill] sm:$0xff] %v18480_v23  ;;  %8944 = vmatprep.subr.bf16.mxu1 %v13896_v5  ;;  %v9187_v33 = vadd.f32 %v9186_v2, %v9157_v54  ;;  %v9305_v3 = vmul.f32 %v9157_v54, %v18470_v43  ;;  %8683 = vmatprep.mubr.bf16.mxu0 %v20730_v51  ;;  %v13897_v5 = vld [vmem:[%s14901_s14 + $0xd48] ss:$16 sps:$4 sm:$0xff]  }
 0x665   : > { %8796 = vmatprep.mubr.bf16.mxu1 %v20731_v7  ;;  %v18494_v6 = vadd.f32 %v8112_v37, %v8000_v52  ;;  %v8114_v36 = vpop.f32.mrf.mxu1  ;;  %v9208_v61 = vadd.f32 %v9207_v56, %v9158_v39  ;;  %v9306_v40 = vmul.f32 %v9158_v39, %v18474_v46  ;;  %8832 = vmatpush2.bf16.msra.mxu0 %v13891_v60  ;;  %v13900_v2 = vld [vmem:[%s14901_s14 + $0xf48] ss:$16 sps:$4 sm:$0xff]   ;;  %v8003_v62 = vpop.f32.mrf.mxu0  ;;  %v20733_v37 = vld [vmem:[#allocation183_spill] sm:$0xff] }
 0x666   : > { %8945 = vmatpush2.bf16.msra.mxu1 %v13894_v4  ;;  %v9161_v29 = vmul.f32 %v18485_v32, %v18480_v23  ;;  %v9335_v54 = vadd.f32 %v9334_v50, %v9305_v3  ;;  %v8002_v52 = vadd.f32 %v8001_v63, %v18212_v11  ;;  %8833 = vmatprep.subr.bf16.mxu0 %v13899_v0  ;;  %v18505_v60 = vsub.s32 2, %v20733_v37  ;;  %v18509_v50 = vpop.permute.xlu1 %9100 }
 0x667   : > { %20732 = vst [vmem:[#allocation39_spill] sm:$0xff] %v18494_v6  ;;  %v9162_v51 = vmul.f32 %v18485_v32, %v18494_v6  ;;  %8946 = vmatprep.subr.bf16.mxu1 %v13902_v16  ;;  %v8116_v56 = vpop.f32.mrf.mxu1  ;;  %v9356_v4 = vadd.f32 %v9355_v30, %v9306_v40  ;;  %v8004_v34 = vadd.f32 %v8003_v62, %v18216_v53  ;;  %20735 = vst [vmem:[#allocation107_spill] sm:$0xff] %v18509_v50  ;;  %v8007_v3 = vpop.f32.mrf.mxu0  ;;  %v13905_v32 = vld [vmem:[%s14901_s14 + $0xd2c] ss:$16 sps:$4 sm:$0xff]   ;;  %v13903_v53 = vld [vmem:[%s14901_s14 + $0xd28] ss:$16 sps:$4 sm:$0xff]  }
 0x668   : > { %20734 = vst [vmem:[#allocation106_spill] sm:$0xff] %v18505_v60  ;;  %v9188_v39 = vadd.f32 %v9187_v33, %v9161_v29  ;;  %v9309_v7 = vmul.f32 %v9161_v29, %v18480_v23  ;;  %v18514_v16 = vadd.f32 %v8114_v36, %v8002_v52  ;;  %v8008_v63 = vadd.f32 %v8007_v3, %v18223_v19  ;;  %v13906_v29 = vld [vmem:[%s14901_s14 + $0xf28] ss:$16 sps:$4 sm:$0xff]   ;;  %v18521_v23 = vpop.permute.xlu0 %9105 }
 0x669   : > { %v9209_v11 = vadd.f32 %v9208_v61, %v9162_v51  ;;  %v9310_v0 = vmul.f32 %v9162_v51, %v18494_v6  ;;  %v8120_v30 = vpop.f32.mrf.mxu1  ;;  %8834 = vmatpush2.bf16.msra.mxu0 %v13897_v5  ;;  %v18517_v40 = vadd.f32 %v8116_v56, %v8004_v34  ;;  %v8009_v62 = vpop.f32.mrf.mxu0  ;;  %20737 = vst [vmem:[#allocation37_spill] sm:$0xff] %v18521_v23  ;;  %v20738_v19 = vld [vmem:[#allocation184_spill] sm:$0xff]  ;;  %v13911_v34 = vld [vmem:[%s14901_s14 + $0xd0c] ss:$16 sps:$4 sm:$0xff]  }
 0x66a   : > { %20736 = vst [vmem:[#allocation36_spill] sm:$0xff] %v18514_v16  ;;  %v9336_v33 = vadd.f32 %v9335_v54, %v9309_v7  ;;  %8947 = vmatpush2.bf16.msra.mxu1 %v13900_v2  ;;  %v9165_v36 = vmul.f32 %v18509_v50, %v18514_v16  ;;  %v18525_v51 = vadd.f32 %v8120_v30, %v8008_v63  ;;  %v20739_v54 = vld [vmem:[#allocation152_spill] sm:$0xff]  ;;  %v20741_v30 = vld [vmem:[#allocation185_spill] sm:$0xff] }
 0x66b   : > { %v9357_v61 = vadd.f32 %v9356_v4, %v9310_v0  ;;  %8684 = vmatmul.mubr.bf16.gmra.mxu0 %v20738_v19  ;;  %8797 = vmatmul.mubr.bf16.gmra.mxu1 %v20739_v54  ;;  %v8122_v5 = vpop.f32.mrf.mxu1  ;;  %v9166_v2 = vmul.f32 %v18509_v50, %v18517_v40  ;;  %v8010_v52 = vadd.f32 %v8009_v62, %v18230_v24  ;;  %v8011_v56 = vpop.f32.mrf.mxu0  ;;  %v13914_v4 = vld [vmem:[%s14901_s14 + $0xf0c] ss:$16 sps:$4 sm:$0xff]   ;;  %v13923_v7 = vld [vmem:[%s580_s28] sm:$0xf]  ;;  %v18540_v0 = vsub.s32 3, %v20733_v37 }
 0x66c   : > { %8835 = vmatprep.subr.bf16.mxu0 %v13905_v32  ;;  %8948 = vmatprep.subr.bf16.mxu1 %v13908_v38  ;;  %v18537_v3 = vrot.slane %v13923_v7, %v18505_v60  ;;  %v9313_v63 = vmul.f32 %v9165_v36, %v18514_v16  ;;  %v20742_v32 = vld [vmem:[#allocation186_spill] sm:$0xff]  ;;  %v9169_v24 = vmul.f32 %v18521_v23, %v18525_v51 }
 0x66d   : > { %20740 = vst [vmem:[#allocation103_spill] sm:$0xff] %v18540_v0  ;;  %8839 = vmatprep.mubr.bf16.mxu0 %v20741_v30  ;;  %8952 = vmatprep.mubr.bf16.mxu1 %v20742_v32  ;;  %v9189_v38 = vadd.f32 %v9188_v39, %v9165_v36  ;;  %v8124_v62 = vpop.f32.mrf.mxu1  ;;  %v9314_v19 = vmul.f32 %v9166_v2, %v18517_v40  ;;  %v13909_v37 = vld [vmem:[%s14901_s14 + $0xd08] ss:$16 sps:$4 sm:$0xff]   ;;  %v8013_v6 = vpop.f32.mrf.mxu0 }
 0x66e   : > { %8836 = vmatpush2.bf16.msra.mxu0 %v13903_v53  ;;  %8949 = vmatpush2.bf16.msra.mxu1 %v13906_v29  ;;  %v18548_v54 = vadd.f32 %v8122_v5, %v8010_v52  ;;  %v9210_v60 = vadd.f32 %v9209_v11, %v9166_v2  ;;  %v13912_v50 = vld [vmem:[%s14901_s14 + $0xf08] ss:$16 sps:$4 sm:$0xff]   ;;  %v9317_v30 = vmul.f32 %v9169_v24, %v18525_v51  ;;  %v18557_v29 = vpop.permute.xlu1 %9110 }
 0x66f   : > { %v9190_v16 = vadd.f32 %v9189_v38, %v9169_v24  ;;  %v9337_v46 = vadd.f32 %v9336_v33, %v9313_v63  ;;  %v8012_v32 = vadd.f32 %v8011_v56, %v18236_v59  ;;  %8837 = vmatprep.subr.bf16.mxu0 %v13911_v34  ;;  %v8126_v43 = vpop.f32.mrf.mxu1  ;;  %v9358_v36 = vadd.f32 %v9357_v61, %v9314_v19  ;;  %v8163_v33 = vpop.f32.mrf.mxu0 }
 0x670   : > { %v9170_v39 = vmul.f32 %v18521_v23, %v18548_v54  ;;  %8950 = vmatprep.subr.bf16.mxu1 %v13914_v4  ;;  %v8014_v53 = vadd.f32 %v8013_v6, %v18239_v9  ;;  %20743 = vst [vmem:[#allocation104_spill] sm:$0xff] %v18557_v29  ;;  %v18560_v11 = vrot.slane %v13923_v7, %v18540_v0 }
 0x671   : > { %v9338_v5 = vadd.f32 %v9337_v46, %v9317_v30  ;;  %v18562_v2 = vadd.f32 %v8124_v62, %v8012_v32  ;;  %v8276_v61 = vpop.f32.mrf.mxu1  ;;  %v8164_v6 = vadd.f32 %v8163_v33, %v18537_v3  ;;  %v8165_v56 = vpop.f32.mrf.mxu0  ;;  %v20747_v30 = vld [vmem:[#allocation193_spill] sm:$0xff] }
 0x672   : > { %v9211_v52 = vadd.f32 %v9210_v60, %v9170_v39  ;;  %v9318_v59 = vmul.f32 %v9170_v39, %v18548_v54  ;;  %8838 = vmatpush2.bf16.msra.mxu0 %v13909_v37  ;;  %8951 = vmatpush2.bf16.msra.mxu1 %v13912_v50  ;;  %v18565_v34 = vadd.f32 %v8126_v43, %v8014_v53  ;;  %v20745_v43 = vld [vmem:[#allocation156_spill] sm:$0xff] }
 0x673   : > { %v9173_v9 = vmul.f32 %v18557_v29, %v18562_v2  ;;  %v8166_v7 = vadd.f32 %v8165_v56, %v18560_v11  ;;  %v8278_v60 = vpop.f32.mrf.mxu1  ;;  %v18574_v50 = vadd.f32 %v8276_v61, %v8164_v6  ;;  %v8167_v38 = vpop.f32.mrf.mxu0  ;;  %v20746_v37 = vld [vmem:[#allocation192_spill] sm:$0xff] }
 0x674   : > { %v9359_v4 = vadd.f32 %v9358_v36, %v9318_v59  ;;  %v9174_v46 = vmul.f32 %v18557_v29, %v18565_v34  ;;  %v8168_v53 = vadd.f32 %v8167_v38, %v18537_v3 }
 0x675   : > { %v9191_v63 = vadd.f32 %v9190_v16, %v9173_v9  ;;  %v9321_v24 = vmul.f32 %v9173_v9, %v18562_v2  ;;  %20744 = vst [vmem:[#allocation34_spill] sm:$0xff] %v18574_v50  ;;  %8840 = vmatmul.mubr.bf16.vlgmr.msra.gmra.mxu0 %v17547_v47  ;;  %8953 = vmatmul.mubr.bf16.vlgmr.msra.gmra.mxu1 %v20745_v43  ;;  %v8280_v39 = vpop.f32.mrf.mxu1  ;;  %v8169_v33 = vpop.f32.mrf.mxu0 }
 0x676   : > { %v9212_v62 = vadd.f32 %v9211_v52, %v9174_v46  ;;  %v9322_v19 = vmul.f32 %v9174_v46, %v18565_v34  ;;  %8849 = vmatprep.mubr.bf16.mxu0 %v20746_v37  ;;  %8962 = vmatprep.mubr.bf16.mxu1 %v20747_v30  ;;  %v18581_v32 = vadd.f32 %v8278_v60, %v8166_v7 }
 0x677   : > { %v9192_v16 = vrot.slane %v9191_v63, 4  ;;  %v9339_v36 = vadd.f32 %v9338_v5, %v9321_v24  ;;  %v8170_v61 = vadd.f32 %v8169_v33, %v18560_v11  ;;  %v8282_v9 = vpop.f32.mrf.mxu1  ;;  %v18585_v56 = vadd.f32 %v8280_v39, %v8168_v53  ;;  %v8173_v46 = vpop.f32.mrf.mxu0 }
 0x678   : > { %20748 = vst [vmem:[#allocation105_spill] sm:$0xff] %v18581_v32  ;;  %v9213_v59 = vrot.slane %v9212_v62, 4  ;;  %v9360_v47 = vadd.f32 %v9359_v4, %v9322_v19  ;;  %v8174_v60 = vadd.f32 %v8173_v46, %v18537_v3 }
 0x679   : > { %v9193_v52 = vadd.f32 %v9192_v16, %v9191_v63  ;;  %v9340_v6 = vrot.slane %v9339_v36, 4  ;;  %20749 = vst [vmem:[#allocation33_spill] sm:$0xff] %v18585_v56  ;;  %v18587_v7 = vadd.f32 %v8282_v9, %v8170_v61  ;;  %v8286_v5 = vpop.f32.mrf.mxu1  ;;  %v8175_v30 = vpop.f32.mrf.mxu0 }
 0x67a   : > { %v9214_v43 = vadd.f32 %v9213_v59, %v9212_v62  ;;  %v9361_v37 = vrot.slane %v9360_v47, 4  ;;  %v18590_v19 = vadd.f32 %v8286_v5, %v8174_v60  ;;  %v8176_v63 = vadd.f32 %v8175_v30, %v18560_v11 }
 0x67b   : > { %20750 = vst [vmem:[#allocation101_spill] sm:$0xff] %v18587_v7  ;;  %v9194_v24 = vrot.slane %v9193_v52, 2  ;;  %v9341_v38 = vadd.f32 %v9340_v6, %v9339_v36  ;;  %v8288_v16 = vpop.f32.mrf.mxu1  ;;  %v8177_v62 = vpop.f32.mrf.mxu0  ;;  %v20765_v7 = vld [vmem:[#allocation169_spill] sm:$0xff] }
 0x67c   : > { %v9215_v0 = vrot.slane %v9214_v43, 2  ;;  %v9362_v4 = vadd.f32 %v9361_v37, %v9360_v47  ;;  %20751 = vst [vmem:[#allocation102_spill] sm:$0xff] %v18590_v19  ;;  %v18597_v36 = vadd.f32 %v8288_v16, %v8176_v63  ;;  %v8178_v47 = vadd.f32 %v8177_v62, %v18537_v3  ;;  %v20762_v16 = vld [vmem:[#allocation36_spill] sm:$0xff]  ;;  %v20764_v19 = vld [vmem:[#allocation197_spill] sm:$0xff] }
 0x67d   : > { %v9195_v39 = vadd.f32 %v9194_v24, %v9193_v52  ;;  %v9342_v53 = vrot.slane %v9341_v38, 2  ;;  %8850 = vmatmul.mubr.bf16.gmra.mxu0 %v17585_v18  ;;  %8963 = vmatmul.mubr.bf16.gmra.mxu1 %v17589_v45  ;;  %v8290_v61 = vpop.f32.mrf.mxu1  ;;  %v8179_v52 = vpop.f32.mrf.mxu0 }
 0x67e   : > { %v9216_v33 = vadd.f32 %v9215_v0, %v9214_v43  ;;  %v9363_v59 = vrot.slane %v9362_v4, 2  ;;  %8859 = vmatprep.mubr.bf16.mxu0 %v17594_v20  ;;  %8972 = vmatprep.mubr.bf16.mxu1 %v17603_v49  ;;  %20752 = vst [vmem:[#allocation35_spill] sm:$0xff] %v18597_v36  ;;  %v18600_v18 = vadd.f32 %v8290_v61, %v8178_v47 }
 0x67f   : > { %v9196_v9 = vrot.slane %v9195_v39, 1  ;;  %v9343_v6 = vadd.f32 %v9342_v53, %v9341_v38  ;;  %v8180_v45 = vadd.f32 %v8179_v52, %v18560_v11  ;;  %v8292_v0 = vpop.f32.mrf.mxu1  ;;  %v8183_v60 = vpop.f32.mrf.mxu0  ;;  %v20757_v52 = vld [vmem:[#allocation196_spill] sm:$0xff] }
 0x680   : > { %v9217_v46 = vrot.slane %v9216_v33, 1  ;;  %v9364_v37 = vadd.f32 %v9363_v59, %v9362_v4  ;;  %20753 = vst [vmem:[#allocation97_spill] sm:$0xff] %v18600_v18  ;;  %v8184_v30 = vadd.f32 %v8183_v60, %v18537_v3 }
 0x681   : > { %v18603_v43 = vadd.f32 %v9196_v9, %v9195_v39  ;;  %v9344_v20 = vrot.slane %v9343_v6, 1  ;;  %v18607_v24 = vadd.f32 %v8292_v0, %v8180_v45  ;;  %v8296_v38 = vpop.f32.mrf.mxu1  ;;  %v8185_v53 = vpop.f32.mrf.mxu0  ;;  %v20756_v0 = vld [vmem:[#allocation195_spill] sm:$0xff]  ;;  %v20766_v39 = vld [vmem:[#allocation198_spill] sm:$0xff] }
 0x682   : > { %v18605_v49 = vadd.f32 %v9217_v46, %v9216_v33  ;;  %v9365_v5 = vrot.slane %v9364_v37, 1  ;;  %v20760_v46 = vld [vmem:[#allocation109_spill] sm:$0xff]  ;;  %v18682_v60 = vadd.f32 %v8296_v38, %v8184_v30 }
 0x683   : > { %20754 = vst [vmem:[#allocation98_spill] sm:$0xff] %v18607_v24  ;;  %v9345_v63 = vadd.f32 %v9344_v20, %v9343_v6  ;;  %v9409_v4 = vmul.f32 %v18603_v43, %v18603_v43  ;;  %v8298_v61 = vpop.f32.mrf.mxu1 }
 0x684   : > { %v9366_v62 = vadd.f32 %v9365_v5, %v9364_v37  ;;  %v9410_v33 = vmul.f32 %v18605_v49, %v18605_v49  ;;  %v8187_v37 = vpop.f32.mrf.mxu0  ;;  %v20755_v5 = vld [vmem:[#allocation194_spill] sm:$0xff]  ;;  %20763 = vst [vmem:[#allocation99_spill] sm:$0xff] %v18682_v60 }
 0x685   : > { %v9413_v9 = vsub.f32 %v9345_v63, %v9409_v4  ;;  %8860 = vmatmul.mubr.bf16.gmra.mxu0 %v17625_v21  ;;  %8973 = vmatmul.mubr.bf16.gmra.mxu1 %v20755_v5  ;;  %v8300_v63 = vpop.f32.mrf.mxu1  ;;  %v20758_v4 = vld [vmem:[#allocation41_spill] sm:$0xff]  ;;  %v20759_v21 = vld [vmem:[#allocation108_spill] sm:$0xff]  ;;  %v8186_v5 = vadd.f32 %v8185_v53, %v18560_v11  ;;  %v8188_v36 = vadd.f32 %v8187_v37, %v18537_v3 }
 0x686   : > { %v9414_v45 = vsub.f32 %v9366_v62, %v9410_v33  ;;  %8869 = vmatprep.mubr.bf16.mxu0 %v20756_v0  ;;  %v8189_v20 = vpop.f32.mrf.mxu0  ;;  %8982 = vmatprep.mubr.bf16.mxu1 %v20757_v52  ;;  %v20761_v33 = vld [vmem:[#allocation39_spill] sm:$0xff] }
 0x687   : > { %v8302_v62 = vpop.f32.mrf.mxu1  ;;  %v9481_v23 = vadd.f32 1e-05, %v9413_v9  ;;  %v8190_v29 = vadd.f32 %v8189_v20, %v18560_v11  ;;  %v18693_v53 = vadd.f32 %v8298_v61, %v8186_v5  ;;  %v18695_v37 = vadd.f32 %v8300_v63, %v8188_v36  ;;  %v20776_v5 = vld [vmem:[#allocation174_spill] sm:$0xff] }
 0x688   : > { %v8193_v47 = vpop.f32.mrf.mxu0  ;;  %v9482_v24 = vadd.f32 1e-05, %v9414_v45 }
 0x689   : > { %v8306_v0 = vpop.f32.mrf.mxu1  ;;  %13915 = vrsqrt.f32 %v9481_v23  ;;  %v8194_v6 = vadd.f32 %v8193_v47, %v18537_v3  ;;  %20767 = vst [vmem:[#allocation100_spill] sm:$0xff] %v18693_v53  ;;  %20768 = vst [vmem:[#allocation117_spill] sm:$0xff] %v18695_v37  ;;  %v18697_v45 = vadd.f32 %v8302_v62, %v8190_v29  ;;  %v20810_v37 = vld [vmem:[#allocation204_spill] sm:$0xff] }
 0x68a   : > { %v8195_v52 = vpop.f32.mrf.mxu0  ;;  %13917 = vrsqrt.f32 %v9482_v24 }
 0x68b   : > { %v8308_v18 = vpop.f32.mrf.mxu1  ;;  %v8196_v9 = vadd.f32 %v8195_v52, %v18560_v11  ;;  %20769 = vst [vmem:[#allocation118_spill] sm:$0xff] %v18697_v45  ;;  %v18700_v47 = vadd.f32 %v8306_v0, %v8194_v6  ;;  %v20777_v0 = vld [vmem:[#allocation173_spill] sm:$0xff]  ;;  %v20805_v45 = vld [vmem:[#allocation203_spill] sm:$0xff] }
 0x68c   : > { %v8197_v59 = vpop.f32.mrf.mxu0 }
 0x68d   : > { %8870 = vmatmul.mubr.bf16.gmra.mxu0 %v20764_v19  ;;  %8983 = vmatmul.mubr.bf16.gmra.mxu1 %v20765_v7  ;;  %v8198_v30 = vadd.f32 %v8197_v59, %v18537_v3  ;;  %v8310_v38 = vpop.f32.mrf.mxu1  ;;  %v20770_v19 = vld [vmem:[#allocation199_spill] sm:$0xff]  ;;  %20771 = vst [vmem:[#allocation119_spill] sm:$0xff] %v18700_v47  ;;  %v18702_v7 = vadd.f32 %v8308_v18, %v8196_v9  ;;  %v20800_v47 = vld [vmem:[#allocation202_spill] sm:$0xff] }
 0x68e   : > { %8879 = vmatprep.mubr.bf16.mxu0 %v20766_v39  ;;  %8992 = vmatprep.mubr.bf16.mxu1 %v20770_v19  ;;  %v8199_v23 = vpop.f32.mrf.mxu0  ;;  %v20778_v9 = vld [vmem:[#allocation175_spill] sm:$0xff] }
 0x68f   : > { %20772 = vst [vmem:[#allocation120_spill] sm:$0xff] %v18702_v7  ;;  %v18704_v39 = vadd.f32 %v8310_v38, %v8198_v30  ;;  %v8200_v20 = vadd.f32 %v8199_v23, %v18560_v11  ;;  %v8312_v59 = vpop.f32.mrf.mxu1  ;;  %v20780_v23 = vld [vmem:[#allocation200_spill] sm:$0xff] }
 0x690   : > { %v8203_v52 = vpop.f32.mrf.mxu0 }
 0x691   : > { %20773 = vst [vmem:[#allocation121_spill] sm:$0xff] %v18704_v39  ;;  %v18707_v24 = vadd.f32 %v8312_v59, %v8200_v20  ;;  %v8204_v36 = vadd.f32 %v8203_v52, %v18537_v3  ;;  %v8316_v61 = vpop.f32.mrf.mxu1  ;;  %v20791_v39 = vsub.f32 %v18256_v17, %v18605_v49  ;;  %v20796_v17 = vsub.f32 %v18322_v57, %v18603_v43 }
 0x692   : > { %v8205_v29 = vpop.f32.mrf.mxu0  ;;  %v20801_v57 = vsub.f32 %v18364_v8, %v18603_v43  ;;  %v20806_v8 = vsub.f32 %v18400_v55, %v18603_v43  ;;  %v20811_v55 = vsub.f32 %v18442_v42, %v18603_v43  ;;  %v20816_v42 = vsub.f32 %v20761_v33, %v18605_v49 }
 0x693   : > { %20774 = vst [vmem:[#allocation122_spill] sm:$0xff] %v18707_v24  ;;  %v18710_v63 = vadd.f32 %v8316_v61, %v8204_v36  ;;  %v8206_v62 = vadd.f32 %v8205_v29, %v18560_v11  ;;  %v8318_v6 = vpop.f32.mrf.mxu1  ;;  %v20782_v29 = vld [vmem:[#allocation189_spill] sm:$0xff]  ;;  %v20821_v33 = vsub.f32 %v18562_v2, %v18603_v43 }
 0x694   : > { %v8207_v18 = vpop.f32.mrf.mxu0 }
 0x695   : > { %20775 = vst [vmem:[#allocation124_spill] sm:$0xff] %v18710_v63  ;;  %8880 = vmatmul.mubr.bf16.gmra.mxu0 %v20776_v5  ;;  %8993 = vmatmul.mubr.bf16.gmra.mxu1 %v20777_v0  ;;  %v18716_v30 = vadd.f32 %v8318_v6, %v8206_v62  ;;  %v8208_v38 = vadd.f32 %v8207_v18, %v18537_v3  ;;  %v8320_v19 = vpop.f32.mrf.mxu1  ;;  %v20783_v5 = vld [vmem:[#allocation31_spill] sm:$0xff]  ;;  %v20785_v18 = vld [vmem:[#allocation32_spill] sm:$0xff] }
 0x696   : > { %8889 = vmatprep.mubr.bf16.mxu0 %v20778_v9  ;;  %9002 = vmatprep.mubr.bf16.mxu1 %v20780_v23  ;;  %v8209_v20 = vpop.f32.mrf.mxu0  ;;  %v18725_v63 = vrot.slane %v20783_v5, %v20782_v29  ;;  %v13916_v6 = vpop.eup %13915  ;;  %v18733_v9 = vrot.slane %v20785_v18, %v20782_v29  ;;  %v20786_v23 = vld [vmem:[#allocation188_spill] sm:$0xff]  ;;  %v20788_v29 = vsub.f32 %v18265_v28, %v18603_v43 }
 0x697   : > { %20779 = vst [vmem:[#allocation125_spill] sm:$0xff] %v18716_v30  ;;  %v18720_v59 = vadd.f32 %v8320_v19, %v8208_v38  ;;  %v8210_v52 = vadd.f32 %v8209_v20, %v18560_v11  ;;  %v8322_v36 = vpop.f32.mrf.mxu1  ;;  %v18737_v38 = vrot.slane %v20783_v5, %v20786_v23  ;;  %v18741_v19 = vrot.slane %v20785_v18, %v20786_v23 }
 0x698   : > { %v8213_v61 = vpop.f32.mrf.mxu0  ;;  %v9493_v30 = vmul.f32 %v13916_v6, %v20788_v29  ;;  %v20789_v5 = vsub.f32 %v18286_v10, %v18603_v43  ;;  %v20790_v23 = vsub.f32 %v18308_v15, %v18603_v43  ;;  %v20793_v28 = vsub.f32 %v18296_v22, %v18605_v49  ;;  %v20795_v15 = vld [vmem:[#allocation201_spill] sm:$0xff] }
 0x699   : > { %20781 = vst [vmem:[#allocation126_spill] sm:$0xff] %v18720_v59  ;;  %v18727_v0 = vadd.f32 %v8322_v36, %v8210_v52  ;;  %v18729_v62 = vpop.f32.mrf.mxu1  ;;  %v18744_v20 = vadd.f32 %v8213_v61, %v18537_v3  ;;  %v13918_v36 = vpop.eup %13917  ;;  %v20794_v10 = vsub.f32 %v18312_v31, %v18605_v49  ;;  %v20798_v22 = vsub.f32 %v18348_v58, %v18603_v43 }
 0x69a   : > { %v18746_v52 = vpop.f32.mrf.mxu0  ;;  %v9497_v24 = vmul.f32 %v13916_v6, %v20789_v5  ;;  %v9501_v61 = vmul.f32 %v13916_v6, %v20790_v23  ;;  %v9490_v7 = vmul.f32 %v13918_v36, %v20791_v39  ;;  %v9498_v29 = vmul.f32 %v13918_v36, %v20793_v28 }
 0x69b   : > { %20784 = vst [vmem:[#allocation127_spill] sm:$0xff] %v18727_v0  ;;  %v20787_v0 = vsub.f32 %v18249_v26, %v18603_v43  ;;  %v18760_v18 = vpop.f32.mrf.mxu1  ;;  %v20792_v26 = vsub.f32 %v18271_v25, %v18605_v49  ;;  %v9502_v5 = vmul.f32 %v13918_v36, %v20794_v10  ;;  %v9505_v39 = vmul.f32 %v13916_v6, %v20796_v17 }
 0x69c   : > { %v18775_v23 = vpop.f32.mrf.mxu0  ;;  %v20797_v25 = vsub.f32 %v18335_v27, %v18605_v49  ;;  %v9509_v28 = vmul.f32 %v13916_v6, %v20798_v22  ;;  %v20799_v31 = vsub.f32 %v18353_v41, %v18605_v49  ;;  %v9513_v17 = vmul.f32 %v13916_v6, %v20801_v57 }
 0x69d   : > { %v9489_v59 = vmul.f32 %v13916_v6, %v20787_v0  ;;  %v9494_v0 = vmul.f32 %v13918_v36, %v20792_v26  ;;  %8890 = vmatmul.mubr.bf16.gmra.mxu0 %v20795_v15  ;;  %9003 = vmatmul.mubr.bf16.gmra.mxu1 %v20800_v47  ;;  %v18790_v15 = vpop.f32.mrf.mxu1  ;;  %v20802_v27 = vsub.f32 %v18377_v14, %v18605_v49 }
 0x69e   : > { %v9506_v26 = vmul.f32 %v13918_v36, %v20797_v25  ;;  %v9510_v10 = vmul.f32 %v13918_v36, %v20799_v31  ;;  %v20803_v58 = vsub.f32 %v18385_v12, %v18603_v43  ;;  %v20804_v41 = vsub.f32 %v18394_v35, %v18605_v49  ;;  %8899 = vmatprep.mubr.bf16.mxu0 %v20805_v45  ;;  %v18805_v47 = vpop.f32.mrf.mxu0 }
 0x69f   : > { %v9514_v25 = vmul.f32 %v13918_v36, %v20802_v27  ;;  %v9521_v57 = vmul.f32 %v13916_v6, %v20806_v8  ;;  %v20807_v14 = vsub.f32 %v18414_v48, %v18605_v49  ;;  %v20808_v12 = vsub.f32 %v18431_v1, %v18603_v43  ;;  %9012 = vmatprep.mubr.bf16.mxu1 %v20810_v37  ;;  %v18820_v45 = vpop.f32.mrf.mxu1 }
 0x6a0   : > { %v9517_v22 = vmul.f32 %v13916_v6, %v20803_v58  ;;  %v9518_v31 = vmul.f32 %v13918_v36, %v20804_v41  ;;  %v20809_v35 = vsub.f32 %v18434_v13, %v18605_v49  ;;  %v9529_v8 = vmul.f32 %v13916_v6, %v20811_v55  ;;  %v18834_v53 = vpop.f32.mrf.mxu0 }
 0x6a1   : > { %v9522_v27 = vmul.f32 %v13918_v36, %v20807_v14  ;;  %v9525_v58 = vmul.f32 %v13916_v6, %v20808_v12  ;;  %v20812_v48 = vsub.f32 %v18457_v44, %v18605_v49  ;;  %v20813_v1 = vsub.f32 %v20758_v4, %v18603_v43 }
 0x6a2   : > { %v9526_v41 = vmul.f32 %v13918_v36, %v20809_v35  ;;  %v20814_v13 = vsub.f32 %v20759_v21, %v18605_v49  ;;  %v20815_v37 = vsub.f32 %v20760_v46, %v18603_v43  ;;  %v9538_v55 = vmul.f32 %v13918_v36, %v20816_v42  ;;  %v18848_v21 = vpop.f32.mrf.mxu1 }
 0x6a3   : > { %v9530_v14 = vmul.f32 %v13918_v36, %v20812_v48  ;;  %v9533_v12 = vmul.f32 %v13916_v6, %v20813_v1  ;;  %v20817_v44 = vsub.f32 %v20762_v16, %v18603_v43  ;;  %v20818_v4 = vsub.f32 %v18517_v40, %v18605_v49  ;;  %v18862_v40 = vpop.f32.mrf.mxu0 }
 0x6a4   : > { %v9534_v35 = vmul.f32 %v13918_v36, %v20814_v13  ;;  %v9537_v60 = vmul.f32 %v13916_v6, %v20815_v37  ;;  %v20819_v13 = vsub.f32 %v18525_v51, %v18603_v43  ;;  %v20820_v46 = vsub.f32 %v18548_v54, %v18605_v49  ;;  %v18868_v54 = vpop.f32.mrf.mxu1 }
 0x6a5   : > { %v9541_v48 = vmul.f32 %v13916_v6, %v20817_v44  ;;  %v9542_v1 = vmul.f32 %v13918_v36, %v20818_v4  ;;  %v9549_v42 = vmul.f32 %v13916_v6, %v20821_v33  ;;  %v20822_v16 = vsub.f32 %v18565_v34, %v18605_v49  ;;  %v20823_v49 = vld [vmem:[#allocation205_spill] sm:$0xff] }
 0x6a6   : > { %v9545_v56 = vmul.f32 %v13916_v6, %v20819_v13  ;;  %v9546_v37 = vmul.f32 %v13918_v36, %v20820_v46  ;;  %v9574_v4 = vmul.f32 %v18737_v38, %v9489_v59  ;;  %v9575_v32 = vmul.f32 %v18725_v63, %v9490_v7  ;;  %8900 = vmatmul.mubr.bf16.gmra.mxu0 %v20823_v49  ;;  %v18875_v6 = vpop.f32.mrf.mxu0 }
 0x6a7   : > { %v9550_v44 = vmul.f32 %v13918_v36, %v20822_v16  ;;  %v9578_v51 = vmul.f32 %v18737_v38, %v9493_v30  ;;  %v9579_v13 = vmul.f32 %v18725_v63, %v9494_v0  ;;  %v9582_v46 = vmul.f32 %v18737_v38, %v9497_v24  ;;  %v20824_v0 = vld [vmem:[#allocation181_spill] sm:$0xff]  ;;  %v18882_v24 = vpop.f32.mrf.mxu1  ;;  %v20825_v16 = vld [vmem:[#allocation182_spill] sm:$0xff] }
 0x6a8   : > { %v9583_v2 = vmul.f32 %v18725_v63, %v9498_v29  ;;  %v9586_v43 = vmul.f32 %v18737_v38, %v9501_v61  ;;  %v9587_v34 = vmul.f32 %v18725_v63, %v9502_v5  ;;  %v9590_v7 = vmul.f32 %v18737_v38, %v9505_v39  ;;  %9013 = vmatmul.mubr.bf16.gmra.mxu1 %v20824_v0  ;;  %v18889_v39 = vpop.f32.mrf.mxu0  ;;  %v20826_v0 = vld [vmem:[#allocation206_spill] sm:$0xff] }
 0x6a9   : > { %v9591_v30 = vmul.f32 %v18725_v63, %v9506_v26  ;;  %v9594_v59 = vmul.f32 %v18737_v38, %v9509_v28  ;;  %v9595_v36 = vmul.f32 %v18725_v63, %v9510_v10  ;;  %v9598_v61 = vmul.f32 %v18737_v38, %v9513_v17  ;;  %8909 = vmatprep.mubr.bf16.mxu0 %v20825_v16  ;;  %v18896_v17 = vpop.f32.mrf.mxu1 }
 0x6aa   : > { %v9599_v29 = vmul.f32 %v18725_v63, %v9514_v25  ;;  %v9602_v5 = vmul.f32 %v18737_v38, %v9517_v22  ;;  %v9603_v33 = vmul.f32 %v18725_v63, %v9518_v31  ;;  %v9606_v26 = vmul.f32 %v18737_v38, %v9521_v57  ;;  %9022 = vmatprep.mubr.bf16.mxu1 %v20826_v0  ;;  %v18902_v50 = vpop.f32.mrf.mxu0 }
 0x6ab   : > { %v9607_v28 = vmul.f32 %v18725_v63, %v9522_v27  ;;  %v9610_v10 = vmul.f32 %v18737_v38, %v9525_v58  ;;  %v9611_v49 = vmul.f32 %v18725_v63, %v9526_v41  ;;  %20827 = vst [vmem:[#allocation128_spill] sm:$0xff] %v18896_v17  ;;  %v9614_v25 = vmul.f32 %v18737_v38, %v9529_v8  ;;  %v18908_v0 = vpop.f32.mrf.mxu1 }
 0x6ac   : > { %v9615_v22 = vmul.f32 %v18725_v63, %v9530_v14  ;;  %v9618_v31 = vmul.f32 %v18737_v38, %v9533_v12  ;;  %v9619_v16 = vmul.f32 %v18725_v63, %v9534_v35  ;;  %v9622_v57 = vmul.f32 %v18737_v38, %v9537_v60  ;;  %v18914_v17 = vpop.f32.mrf.mxu0 }
 0x6ad   : > { %v9623_v27 = vmul.f32 %v18725_v63, %v9538_v55  ;;  %v9626_v58 = vmul.f32 %v18737_v38, %v9541_v48  ;;  %v9627_v41 = vmul.f32 %v18725_v63, %v9542_v1  ;;  %v9630_v8 = vmul.f32 %v18737_v38, %v9545_v56  ;;  %v18928_v56 = vpop.f32.mrf.mxu1 }
 0x6ae   : > { %v9631_v14 = vmul.f32 %v18725_v63, %v9546_v37  ;;  %v9634_v12 = vmul.f32 %v18737_v38, %v9549_v42  ;;  %v9635_v35 = vmul.f32 %v18725_v63, %v9550_v44  ;;  %v18917_v60 = vadd.f32 %v18741_v19, %v9574_v4  ;;  %20832 = vst [vmem:[#allocation133_spill] sm:$0xff] %v18928_v56  ;;  %v20837_v42 = vld [vmem:[#allocation190_spill] sm:$0xff]  ;;  %v18943_v44 = vpop.f32.mrf.mxu0 }
 0x6af   : > { %v18920_v55 = vadd.f32 %v18733_v9, %v9575_v32  ;;  %v18923_v48 = vadd.f32 %v18741_v19, %v9578_v51  ;;  %v18926_v1 = vadd.f32 %v18733_v9, %v9579_v13  ;;  %v18931_v38 = vadd.f32 %v18741_v19, %v9582_v46  ;;  %8910 = vmatmul.mubr.bf16.gmra.mxu0 %v20837_v42 }
 0x6b0   : > { %20828 = vst [vmem:[#allocation129_spill] sm:$0xff] %v18917_v60  ;;  %v18934_v63 = vadd.f32 %v18733_v9, %v9583_v2  ;;  %v18937_v37 = vadd.f32 %v18741_v19, %v9586_v43  ;;  %v18940_v32 = vadd.f32 %v18733_v9, %v9587_v34  ;;  %v18946_v4 = vadd.f32 %v18741_v19, %v9590_v7  ;;  %v20842_v2 = vld [vmem:[#allocation187_spill] sm:$0xff]  ;;  %v18958_v43 = vpop.f32.mrf.mxu1 }
 0x6b1   : > { %20829 = vst [vmem:[#allocation130_spill] sm:$0xff] %v18920_v55  ;;  %20830 = vst [vmem:[#allocation131_spill] sm:$0xff] %v18923_v48  ;;  %v18949_v51 = vadd.f32 %v18733_v9, %v9591_v30  ;;  %v18952_v13 = vadd.f32 %v18741_v19, %v9594_v59  ;;  %v18955_v46 = vadd.f32 %v18733_v9, %v9595_v36  ;;  %9023 = vmatmul.mubr.bf16.gmra.mxu1 %v20842_v2  ;;  %v18972_v59 = vpop.f32.mrf.mxu0 }
 0x6b2   : > { %20831 = vst [vmem:[#allocation132_spill] sm:$0xff] %v18926_v1  ;;  %20833 = vst [vmem:[#allocation134_spill] sm:$0xff] %v18931_v38  ;;  %v18961_v34 = vadd.f32 %v18741_v19, %v9598_v61  ;;  %v18964_v42 = vadd.f32 %v18733_v9, %v9599_v29  ;;  %v18967_v7 = vadd.f32 %v18741_v19, %v9602_v5 }
 0x6b3   : > { %20834 = vst [vmem:[#allocation135_spill] sm:$0xff] %v18934_v63  ;;  %20835 = vst [vmem:[#allocation136_spill] sm:$0xff] %v18937_v37  ;;  %v18970_v30 = vadd.f32 %v18733_v9, %v9603_v33  ;;  %v18975_v36 = vadd.f32 %v18741_v19, %v9606_v26  ;;  %v18978_v2 = vadd.f32 %v18733_v9, %v9607_v28  ;;  %v19000_v56 = vpop.f32.mrf.mxu0 }
 0x6b4   : > { %20836 = vst [vmem:[#allocation137_spill] sm:$0xff] %v18940_v32  ;;  %20838 = vst [vmem:[#allocation138_spill] sm:$0xff] %v18946_v4  ;;  %v18981_v61 = vadd.f32 %v18741_v19, %v9610_v10  ;;  %v18984_v29 = vadd.f32 %v18733_v9, %v9611_v49  ;;  %v18989_v5 = vadd.f32 %v18741_v19, %v9614_v25 }
 0x6b5   : > { %20839 = vst [vmem:[#allocation139_spill] sm:$0xff] %v18949_v51  ;;  %20840 = vst [vmem:[#allocation141_spill] sm:$0xff] %v18952_v13  ;;  %v18992_v33 = vadd.f32 %v18733_v9, %v9615_v22  ;;  %v18995_v26 = vadd.f32 %v18741_v19, %v9618_v31  ;;  %v18998_v28 = vadd.f32 %v18733_v9, %v9619_v16 }
 0x6b6   : > { %20841 = vst [vmem:[#allocation46_spill] sm:$0xff] %v18955_v46  ;;  %20843 = vst [vmem:[#allocation142_spill] sm:$0xff] %v18958_v43  ;;  %v18986_v43 = vpop.f32.mrf.mxu1  ;;  %v19003_v10 = vadd.f32 %v18741_v19, %v9622_v57  ;;  %v19006_v49 = vadd.f32 %v18733_v9, %v9623_v27  ;;  %v19009_v25 = vadd.f32 %v18741_v19, %v9626_v58  ;;  %v9723_v58 = vmax.f32 %v18917_v60, 0.0 }
 0x6b7   : > { %20844 = vst [vmem:[#allocation143_spill] sm:$0xff] %v18961_v34  ;;  %20845 = vst [vmem:[#allocation47_spill] sm:$0xff] %v18964_v42  ;;  %v19012_v22 = vadd.f32 %v18733_v9, %v9627_v41  ;;  %v19017_v31 = vadd.f32 %v18741_v19, %v9630_v8  ;;  %v19020_v16 = vadd.f32 %v18733_v9, %v9631_v14  ;;  %v9724_v41 = vmax.f32 %v18920_v55, 0.0 }
 0x6b8   : > { %20846 = vst [vmem:[#allocation48_spill] sm:$0xff] %v18967_v7  ;;  %20847 = vst [vmem:[#allocation116_spill] sm:$0xff] %v18970_v30  ;;  %v19023_v57 = vadd.f32 %v18741_v19, %v9634_v12  ;;  %v19026_v27 = vadd.f32 %v18733_v9, %v9635_v35  ;;  %v9728_v8 = vmax.f32 %v18926_v1, 0.0  ;;  %v9731_v14 = vmax.f32 %v18931_v38, 0.0 }
 0x6b9   : > { %20848 = vst [vmem:[#allocation147_spill] sm:$0xff] %v18972_v59  ;;  %20849 = vst [vmem:[#allocation148_spill] sm:$0xff] %v18975_v36  ;;  %v9732_v19 = vmax.f32 %v18934_v63, 0.0  ;;  %v9735_v12 = vmax.f32 %v18937_v37, 0.0  ;;  %v9736_v9 = vmax.f32 %v18940_v32, 0.0  ;;  %v9739_v60 = vmax.f32 %v18946_v4, 0.0 }
 0x6ba   : > { %20850 = vst [vmem:[#allocation149_spill] sm:$0xff] %v18978_v2  ;;  %20851 = vst [vmem:[#allocation150_spill] sm:$0xff] %v18981_v61  ;;  %v9740_v55 = vmax.f32 %v18949_v51, 0.0  ;;  %v9744_v1 = vmax.f32 %v18955_v46, 0.0  ;;  %v9747_v37 = vmax.f32 %v18961_v34, 0.0  ;;  %v9748_v32 = vmax.f32 %v18964_v42, 0.0 }
 0x6bb   : > { %20852 = vst [vmem:[#allocation151_spill] sm:$0xff] %v18984_v29  ;;  %20853 = vst [vmem:[#allocation153_spill] sm:$0xff] %v18986_v43  ;;  %v19014_v43 = vpop.f32.mrf.mxu1  ;;  %v9751_v63 = vmax.f32 %v18967_v7, 0.0  ;;  %v9752_v4 = vmax.f32 %v18970_v30, 0.0  ;;  %v9779_v34 = vmax.f32 %v19017_v31, 0.0 }
 0x6bc   : > { %20854 = vst [vmem:[#allocation123_spill] sm:$0xff] %v18989_v5  ;;  %20855 = vst [vmem:[#allocation154_spill] sm:$0xff] %v18992_v33 }
 0x6bd   : > { %20856 = vst [vmem:[#allocation155_spill] sm:$0xff] %v18995_v26  ;;  %20857 = vst [vmem:[#allocation157_spill] sm:$0xff] %v18998_v28  ;;  %v19034_v59 = vpop.f32.mrf.mxu1 }
 0x6be   : > { %20858 = vst [vmem:[#allocation158_spill] sm:$0xff] %v19000_v56  ;;  %20859 = vst [vmem:[#allocation159_spill] sm:$0xff] %v19003_v10  ;;  %v19028_v56 = vpop.f32.mrf.mxu0 }
 0x6bf   : > { %20860 = vst [vmem:[#allocation160_spill] sm:$0xff] %v19009_v25  ;;  %20861 = vst [vmem:[#allocation161_spill] sm:$0xff] %v19012_v22  ;;  %v19046_v38 = vpop.f32.mrf.mxu1 }
 0x6c0   : > { %20862 = vst [vmem:[#allocation162_spill] sm:$0xff] %v19014_v43  ;;  %v9727_v43 = vmax.f32 %v18923_v48, 0.0  ;;  %v19040_v35 = vpop.f32.mrf.mxu0  ;;  %v9743_v48 = vmax.f32 %v18952_v13, 0.0  ;;  %9787 = vst [vmem:[#allocation2 + $0xb0] sm:$0xff] %v9723_v58  ;;  %v9755_v58 = vmax.f32 %v18975_v36, 0.0 }
 0x6c1   : > { %9788 = vst [vmem:[#allocation2 + $0x1b0] sm:$0xff] %v9724_v41  ;;  %9792 = vst [vmem:[#allocation2 + $0x168] sm:$0xff] %v9728_v8  ;;  %v9759_v41 = vmax.f32 %v18981_v61, 0.0  ;;  %v9760_v8 = vmax.f32 %v18984_v29, 0.0  ;;  %v19058_v46 = vpop.f32.mrf.mxu1 }
 0x6c2   : > { %9791 = vst [vmem:[#allocation2 + $0x50] sm:$0xff] %v9727_v43  ;;  %9795 = vst [vmem:[#allocation2 + $0x180] sm:$0xff] %v9731_v14  ;;  %v19052_v13 = vpop.f32.mrf.mxu0  ;;  %v9756_v43 = vmax.f32 %v18978_v2, 0.0  ;;  %v9763_v14 = vmax.f32 %v18989_v5, 0.0 }
 0x6c3   : > { %9796 = vst [vmem:[#allocation2 + $0x110] sm:$0xff] %v9732_v19  ;;  %9799 = vst [vmem:[#allocation2 + $0x120] sm:$0xff] %v9735_v12  ;;  %v9764_v19 = vmax.f32 %v18992_v33, 0.0  ;;  %v9767_v12 = vmax.f32 %v18995_v26, 0.0  ;;  %v8512_v7 = vpop.f32.mrf.mxu1  ;;  %v20892_v33 = vld [vmem:[#allocation115_spill] sm:$0xff] }
 0x6c4   : > { %9800 = vst [vmem:[#allocation2 + $0x150] sm:$0xff] %v9736_v9  ;;  %9803 = vst [vmem:[#allocation2 + $0xe0] sm:$0xff] %v9739_v60  ;;  %v9768_v9 = vmax.f32 %v18998_v28, 0.0  ;;  %v8399_v51 = vpop.f32.mrf.mxu0  ;;  %v9771_v60 = vmax.f32 %v19003_v10, 0.0 }
 0x6c5   : > { %9804 = vst [vmem:[#allocation2 + $0x188] sm:$0xff] %v9740_v55  ;;  %9807 = vst [vmem:[#allocation2 + $0x80] sm:$0xff] %v9743_v48  ;;  %v9772_v55 = vmax.f32 %v19006_v49, 0.0  ;;  %v9775_v48 = vmax.f32 %v19009_v25, 0.0 }
 0x6c6   : > { %9808 = vst [vmem:[#allocation2 + $0x1a8] sm:$0xff] %v9744_v1  ;;  %9811 = vst [vmem:[#allocation2 + $0x1e8] sm:$0xff] %v9747_v37  ;;  %v9776_v1 = vmax.f32 %v19012_v22, 0.0  ;;  %v9780_v37 = vmax.f32 %v19020_v16, 0.0 }
 0x6c7   : > { %9812 = vst [vmem:[#allocation2 + $0xf8] sm:$0xff] %v9748_v32  ;;  %9815 = vst [vmem:[#allocation2 + $0x1e0] sm:$0xff] %v9751_v63  ;;  %v9783_v63 = vmax.f32 %v19023_v57, 0.0  ;;  %v9784_v32 = vmax.f32 %v19026_v27, 0.0 }
 0x6c8   : > { %9816 = vst [vmem:[#allocation2] sm:$0xff] %v9752_v4  ;;  %9819 = vst [vmem:[#allocation2 + $0x148] sm:$0xff] %v9755_v58  ;;  %v8401_v4 = vpop.f32.mrf.mxu0  ;;  %v19074_v58 = vadd.f32 %v18729_v62, %v18744_v20  ;;  %v8226_v62 = vadd.f32 %v18862_v40, %v18560_v11  ;;  %v8228_v20 = vadd.f32 %v18875_v6, %v18537_v3 }
 0x6c9   : > { %9820 = vst [vmem:[#allocation2 + $0x1d0] sm:$0xff] %v9756_v43  ;;  %9823 = vst [vmem:[#allocation2 + $0x40] sm:$0xff] %v9759_v41  ;;  %v8216_v43 = vadd.f32 %v18746_v52, %v18560_v11  ;;  %v8218_v41 = vadd.f32 %v18775_v23, %v18537_v3  ;;  %v8230_v52 = vadd.f32 %v18889_v39, %v18560_v11 }
 0x6ca   : > { %9824 = vst [vmem:[#allocation2 + $0x1f8] sm:$0xff] %v9760_v8  ;;  %9827 = vst [vmem:[#allocation2 + $0x1a0] sm:$0xff] %v9763_v14  ;;  %v8220_v8 = vadd.f32 %v18805_v47, %v18560_v11  ;;  %v8514_v14 = vpop.f32.mrf.mxu1  ;;  %v8403_v23 = vpop.f32.mrf.mxu0  ;;  %v19105_v6 = vadd.f32 %v18868_v54, %v8226_v62  ;;  %v19108_v39 = vadd.f32 %v18882_v24, %v8228_v20  ;;  %v20866_v24 = vld [vmem:[#allocation158_spill] sm:$0xff] }
 0x6cb   : > { %9828 = vst [vmem:[#allocation2 + $0x1f0] sm:$0xff] %v9764_v19  ;;  %9831 = vst [vmem:[#allocation2 + $0x70] sm:$0xff] %v9767_v12  ;;  %v8224_v19 = vadd.f32 %v18834_v53, %v18537_v3  ;;  %v19091_v47 = vadd.f32 %v18760_v18, %v8216_v43  ;;  %v8234_v53 = vadd.f32 %v18902_v50, %v18537_v3  ;;  %v20863_v18 = vld [vmem:[#allocation128_spill] sm:$0xff]  ;;  %v20868_v43 = vld [vmem:[#allocation33_spill] sm:$0xff] }
 0x6cc   : > { %9832 = vst [vmem:[#allocation2 + $0x90] sm:$0xff] %v9768_v9  ;;  %9835 = vst [vmem:[#allocation2 + $0xb8] sm:$0xff] %v9771_v60  ;;  %v19097_v12 = vadd.f32 %v18820_v45, %v8220_v8  ;;  %v8516_v40 = vpop.f32.mrf.mxu1  ;;  %v19111_v60 = vadd.f32 %v20863_v18, %v8230_v52  ;;  %v8236_v50 = vadd.f32 %v18914_v17, %v18560_v11  ;;  %v20873_v52 = vld [vmem:[#allocation102_spill] sm:$0xff] }
 0x6cd   : > { %9836 = vst [vmem:[#allocation2 + $0x88] sm:$0xff] %v9772_v55  ;;  %9839 = vst [vmem:[#allocation2 + $0x170] sm:$0xff] %v9775_v48  ;;  %v19102_v9 = vadd.f32 %v18848_v21, %v8224_v19  ;;  %v19114_v45 = vadd.f32 %v18908_v0, %v8234_v53  ;;  %v8238_v21 = vadd.f32 %v18943_v44, %v18537_v3  ;;  %v20864_v55 = vld [vmem:[#allocation147_spill] sm:$0xff]  ;;  %v20870_v19 = vld [vmem:[#allocation133_spill] sm:$0xff] }
 0x6ce   : > { %9840 = vst [vmem:[#allocation2 + $0x178] sm:$0xff] %v9776_v1  ;;  %9843 = vst [vmem:[#allocation2 + $0x198] sm:$0xff] %v9779_v34  ;;  %v19094_v34 = vadd.f32 %v18790_v15, %v8218_v41  ;;  %v8405_v15 = vpop.f32.mrf.mxu0  ;;  %v8240_v54 = vadd.f32 %v20864_v55, %v18560_v11  ;;  %v8518_v48 = vpop.f32.mrf.mxu1  ;;  %v20865_v1 = vld [vmem:[#allocation34_spill] sm:$0xff]  ;;  %v8394_v0 = vadd.f32 %v19040_v35, %v20868_v43  ;;  %v20869_v41 = vld [vmem:[#allocation101_spill] sm:$0xff] }
 0x6cf   : > { %9844 = vst [vmem:[#allocation2 + $0x38] sm:$0xff] %v9780_v37  ;;  %9847 = vst [vmem:[#allocation2 + $0x158] sm:$0xff] %v9783_v63  ;;  %v8390_v37 = vadd.f32 %v20866_v24, %v20865_v1  ;;  %v20867_v63 = vld [vmem:[#allocation105_spill] sm:$0xff]  ;;  %v8396_v8 = vadd.f32 %v19052_v13, %v20869_v41  ;;  %v19131_v62 = vadd.f32 %v20870_v19, %v8236_v50  ;;  %v20871_v3 = vld [vmem:[#allocation142_spill] sm:$0xff] }
 0x6d0   : > { %9848 = vst [vmem:[#allocation2 + $0x10] sm:$0xff] %v9784_v32  ;;  %v8392_v32 = vadd.f32 %v19028_v56, %v20867_v63  ;;  %v8409_v17 = vpop.f32.mrf.mxu0  ;;  %v19134_v44 = vadd.f32 %v20871_v3, %v8238_v21  ;;  %v20872_v11 = vld [vmem:[#allocation153_spill] sm:$0xff]  ;;  %v8400_v53 = vadd.f32 %v8399_v51, %v20873_v52  ;;  %v8522_v18 = vpop.f32.mrf.mxu1  ;;  %v20874_v56 = vld [vmem:[#allocation162_spill] sm:$0xff]  ;;  %v19147_v13 = vadd.f32 %v19046_v38, %v8394_v0  ;;  %v20878_v19 = vld [vmem:[#allocation99_spill] sm:$0xff] }
 0x6d1   : > { %v19137_v20 = vadd.f32 %v20872_v11, %v8240_v54  ;;  %v19141_v55 = vadd.f32 %v20874_v56, %v8390_v37  ;;  %v19150_v50 = vadd.f32 %v19058_v46, %v8396_v8  ;;  %v20875_v54 = vld [vmem:[#allocation35_spill] sm:$0xff]  ;;  %v20876_v63 = vld [vmem:[#allocation97_spill] sm:$0xff]  ;;  %v20877_v43 = vld [vmem:[#allocation98_spill] sm:$0xff]  ;;  %v8410_v3 = vadd.f32 %v8409_v17, %v20878_v19 }
 0x6d2   : > { %v19144_v35 = vadd.f32 %v19034_v59, %v8392_v32  ;;  %v8411_v21 = vpop.f32.mrf.mxu0  ;;  %v19152_v1 = vadd.f32 %v8512_v7, %v8400_v53  ;;  %v8402_v24 = vadd.f32 %v8401_v4, %v20875_v54  ;;  %v8404_v51 = vadd.f32 %v8403_v23, %v20876_v63  ;;  %v8524_v37 = vpop.f32.mrf.mxu1  ;;  %v20879_v59 = vld [vmem:[#allocation100_spill] sm:$0xff]  ;;  %v20880_v7 = vld [vmem:[#allocation117_spill] sm:$0xff]  ;;  %v20881_v17 = vld [vmem:[#allocation118_spill] sm:$0xff] }
 0x6d3   : > { %v8406_v41 = vadd.f32 %v8405_v15, %v20877_v43  ;;  %v8412_v32 = vadd.f32 %v8411_v21, %v20879_v59  ;;  %v19166_v4 = vadd.f32 %v8522_v18, %v8410_v3  ;;  %v20883_v43 = vld [vmem:[#allocation120_spill] sm:$0xff]  ;;  %v20884_v3 = vld [vmem:[#allocation121_spill] sm:$0xff] }
 0x6d4   : > { %v8413_v11 = vpop.f32.mrf.mxu0  ;;  %v19159_v38 = vadd.f32 %v8514_v14, %v8402_v24  ;;  %v19161_v0 = vadd.f32 %v8516_v40, %v8404_v51  ;;  %v8526_v52 = vpop.f32.mrf.mxu1  ;;  %v20882_v40 = vld [vmem:[#allocation119_spill] sm:$0xff] }
 0x6d5   : > { %v19163_v46 = vadd.f32 %v8518_v48, %v8406_v41  ;;  %v8414_v8 = vadd.f32 %v8413_v11, %v20880_v7  ;;  %v19168_v23 = vadd.f32 %v8524_v37, %v8412_v32 }
 0x6d6   : > { %v8415_v15 = vpop.f32.mrf.mxu0  ;;  %v8528_v21 = vpop.f32.mrf.mxu1 }
 0x6d7   : > { %v19170_v53 = vadd.f32 %v8526_v52, %v8414_v8  ;;  %v8416_v56 = vadd.f32 %v8415_v15, %v20881_v17  ;;  %v20885_v8 = vld [vmem:[#allocation122_spill] sm:$0xff] }
 0x6d8   : > { %v8419_v54 = vpop.f32.mrf.mxu0  ;;  %v8532_v48 = vpop.f32.mrf.mxu1 }
 0x6d9   : > { %v19173_v14 = vadd.f32 %v8528_v21, %v8416_v56  ;;  %v8420_v24 = vadd.f32 %v8419_v54, %v20882_v40  ;;  %v20886_v21 = vld [vmem:[#allocation124_spill] sm:$0xff] }
 0x6da   : > { %v8421_v63 = vpop.f32.mrf.mxu0  ;;  %v8534_v41 = vpop.f32.mrf.mxu1 }
 0x6db   : > { %v19176_v51 = vadd.f32 %v8532_v48, %v8420_v24  ;;  %v8422_v18 = vadd.f32 %v8421_v63, %v20883_v43  ;;  %v20887_v63 = vld [vmem:[#allocation125_spill] sm:$0xff] }
 0x6dc   : > { %v8423_v37 = vpop.f32.mrf.mxu0  ;;  %v8536_v32 = vpop.f32.mrf.mxu1 }
 0x6dd   : > { %v19179_v19 = vadd.f32 %v8534_v41, %v8422_v18  ;;  %v8424_v59 = vadd.f32 %v8423_v37, %v20884_v3  ;;  %v20888_v3 = vld [vmem:[#allocation126_spill] sm:$0xff] }
 0x6de   : > { %v8425_v11 = vpop.f32.mrf.mxu0  ;;  %v8538_v15 = vpop.f32.mrf.mxu1 }
 0x6df   : > { %v19182_v7 = vadd.f32 %v8536_v32, %v8424_v59  ;;  %v8426_v52 = vadd.f32 %v8425_v11, %v20885_v8 }
 0x6e0   : > { %v8429_v17 = vpop.f32.mrf.mxu0  ;;  %v8542_v40 = vpop.f32.mrf.mxu1 }
 0x6e1   : > { %v19185_v56 = vadd.f32 %v8538_v15, %v8426_v52  ;;  %v8430_v54 = vadd.f32 %v8429_v17, %v20886_v21  ;;  %v20889_v52 = vld [vmem:[#allocation127_spill] sm:$0xff] }
 0x6e2   : > { %v8431_v24 = vpop.f32.mrf.mxu0  ;;  %v8544_v18 = vpop.f32.mrf.mxu1 }
 0x6e3   : > { %v19188_v48 = vadd.f32 %v8542_v40, %v8430_v54  ;;  %v8432_v43 = vadd.f32 %v8431_v24, %v20887_v63 }
 0x6e4   : > { %v8433_v41 = vpop.f32.mrf.mxu0  ;;  %v8546_v32 = vpop.f32.mrf.mxu1 }
 0x6e5   : > { %v19191_v37 = vadd.f32 %v8544_v18, %v8432_v43  ;;  %v8434_v59 = vadd.f32 %v8433_v41, %v20888_v3 }
 0x6e6   : > { %v8435_v11 = vpop.f32.mrf.mxu0  ;;  %v8548_v30 = vpop.f32.mrf.mxu1 }
 0x6e7   : > { %v19194_v8 = vadd.f32 %v8546_v32, %v8434_v59  ;;  %v8436_v15 = vadd.f32 %v8435_v11, %v20889_v52 }
 0x6e8   : > { %v8439_v17 = vpop.f32.mrf.mxu0  ;;  %v8552_v40 = vpop.f32.mrf.mxu1 }
 0x6e9   : > { %v19197_v21 = vadd.f32 %v8548_v30, %v8436_v15  ;;  %v8440_v54 = vadd.f32 %v8439_v17, %v19074_v58 }
 0x6ea   : > { %v8441_v24 = vpop.f32.mrf.mxu0  ;;  %v8554_v18 = vpop.f32.mrf.mxu1 }
 0x6eb   : > { %v19200_v63 = vadd.f32 %v8552_v40, %v8440_v54  ;;  %v8442_v43 = vadd.f32 %v8441_v24, %v19091_v47 }
 0x6ec   : > { %v8443_v41 = vpop.f32.mrf.mxu0  ;;  %v8556_v32 = vpop.f32.mrf.mxu1 }
 0x6ed   : > { %v19203_v3 = vadd.f32 %v8554_v18, %v8442_v43  ;;  %v8444_v59 = vadd.f32 %v8443_v41, %v19094_v34 }
 0x6ee   : > { %v8445_v11 = vpop.f32.mrf.mxu0  ;;  %v8558_v15 = vpop.f32.mrf.mxu1 }
 0x6ef   : > { %v19206_v52 = vadd.f32 %v8556_v32, %v8444_v59  ;;  %v8446_v30 = vadd.f32 %v8445_v11, %v19097_v12 }
 0x6f0   : > { %v8449_v58 = vpop.f32.mrf.mxu0  ;;  %v8562_v40 = vpop.f32.mrf.mxu1 }
 0x6f1   : > { %v19209_v17 = vadd.f32 %v8558_v15, %v8446_v30  ;;  %v8450_v54 = vadd.f32 %v8449_v58, %v19102_v9 }
 0x6f2   : > { %v8451_v47 = vpop.f32.mrf.mxu0  ;;  %v8564_v18 = vpop.f32.mrf.mxu1 }
 0x6f3   : > { %v19212_v24 = vadd.f32 %v8562_v40, %v8450_v54  ;;  %v8452_v43 = vadd.f32 %v8451_v47, %v19105_v6 }
 0x6f4   : > { %v8453_v34 = vpop.f32.mrf.mxu0  ;;  %v8566_v32 = vpop.f32.mrf.mxu1 }
 0x6f5   : > { %v19215_v41 = vadd.f32 %v8564_v18, %v8452_v43  ;;  %v8454_v59 = vadd.f32 %v8453_v34, %v19108_v39 }
 0x6f6   : > { %v8455_v12 = vpop.f32.mrf.mxu0  ;;  %v8568_v15 = vpop.f32.mrf.mxu1 }
 0x6f7   : > { %v19218_v11 = vadd.f32 %v8566_v32, %v8454_v59  ;;  %v8456_v30 = vadd.f32 %v8455_v12, %v19111_v60 }
 0x6f8   : > { %v8459_v9 = vpop.f32.mrf.mxu0  ;;  %v8572_v40 = vpop.f32.mrf.mxu1 }
 0x6f9   : > { %v19221_v58 = vadd.f32 %v8568_v15, %v8456_v30  ;;  %v8460_v54 = vadd.f32 %v8459_v9, %v19114_v45 }
 0x6fa   : > { %v8461_v6 = vpop.f32.mrf.mxu0  ;;  %v8574_v18 = vpop.f32.mrf.mxu1 }
 0x6fb   : > { %v19224_v47 = vadd.f32 %v8572_v40, %v8460_v54  ;;  %v8462_v43 = vadd.f32 %v8461_v6, %v19131_v62 }
 0x6fc   : > { %v8463_v39 = vpop.f32.mrf.mxu0  ;;  %v8576_v32 = vpop.f32.mrf.mxu1 }
 0x6fd   : > { %v19227_v34 = vadd.f32 %v8574_v18, %v8462_v43  ;;  %v8464_v59 = vadd.f32 %v8463_v39, %v19134_v44 }
 0x6fe   : > { %v8465_v60 = vpop.f32.mrf.mxu0  ;;  %v8578_v15 = vpop.f32.mrf.mxu1 }
 0x6ff   : > { %v19230_v12 = vadd.f32 %v8576_v32, %v8464_v59  ;;  %v8466_v30 = vadd.f32 %v8465_v60, %v19137_v20 }
 0x700   : > { %v8615_v9 = vpop.f32.mrf.mxu0  ;;  %v8728_v40 = vpop.f32.mrf.mxu1 }
 0x701   : > { %v19233_v45 = vadd.f32 %v8578_v15, %v8466_v30  ;;  %v8616_v54 = vadd.f32 %v8615_v9, %v19141_v55 }
 0x702   : > { %v8617_v62 = vpop.f32.mrf.mxu0  ;;  %v8730_v18 = vpop.f32.mrf.mxu1 }
 0x703   : > { %v19236_v6 = vadd.f32 %v8728_v40, %v8616_v54  ;;  %v8618_v43 = vadd.f32 %v8617_v62, %v19144_v35 }
 0x704   : > { %v8619_v44 = vpop.f32.mrf.mxu0  ;;  %v8732_v32 = vpop.f32.mrf.mxu1 }
 0x705   : > { %v19239_v39 = vadd.f32 %v8730_v18, %v8618_v43  ;;  %v8620_v59 = vadd.f32 %v8619_v44, %v19147_v13 }
 0x706   : > { %v8621_v20 = vpop.f32.mrf.mxu0  ;;  %v8734_v15 = vpop.f32.mrf.mxu1 }
 0x707   : > { %v19242_v60 = vadd.f32 %v8732_v32, %v8620_v59  ;;  %v8622_v30 = vadd.f32 %v8621_v20, %v19150_v50 }
 0x708   : > { %v8625_v55 = vpop.f32.mrf.mxu0  ;;  %v8738_v40 = vpop.f32.mrf.mxu1 }
 0x709   : > { %v19245_v9 = vadd.f32 %v8734_v15, %v8622_v30  ;;  %v8626_v54 = vadd.f32 %v8625_v55, %v19152_v1 }
 0x70a   : > { %v8627_v35 = vpop.f32.mrf.mxu0  ;;  %v8740_v18 = vpop.f32.mrf.mxu1 }
 0x70b   : > { %v19248_v62 = vadd.f32 %v8738_v40, %v8626_v54  ;;  %v8628_v43 = vadd.f32 %v8627_v35, %v19159_v38 }
 0x70c   : > { %v8629_v13 = vpop.f32.mrf.mxu0  ;;  %v8742_v32 = vpop.f32.mrf.mxu1 }
 0x70d   : > { %v19251_v44 = vadd.f32 %v8740_v18, %v8628_v43  ;;  %v8630_v59 = vadd.f32 %v8629_v13, %v19161_v0 }
 0x70e   : > { %v8631_v50 = vpop.f32.mrf.mxu0  ;;  %v8744_v15 = vpop.f32.mrf.mxu1 }
 0x70f   : > { %v19254_v20 = vadd.f32 %v8742_v32, %v8630_v59  ;;  %v8632_v30 = vadd.f32 %v8631_v50, %v19163_v46 }
 0x710   : > { %v8635_v55 = vpop.f32.mrf.mxu0  ;;  %v8748_v54 = vpop.f32.mrf.mxu1 }
 0x711   : > { %v19257_v1 = vadd.f32 %v8744_v15, %v8632_v30  ;;  %v8636_v40 = vadd.f32 %v8635_v55, %v19166_v4 }
 0x712   : > { %v8637_v38 = vpop.f32.mrf.mxu0  ;;  %v8750_v35 = vpop.f32.mrf.mxu1 }
 0x713   : > { %v19260_v42 = vadd.f32 %v8748_v54, %v8636_v40  ;;  %v8638_v43 = vadd.f32 %v8637_v38, %v19168_v23 }
 0x714   : > { %v8639_v0 = vpop.f32.mrf.mxu0  ;;  %v8752_v18 = vpop.f32.mrf.mxu1 }
 0x715   : > { %v19263_v13 = vadd.f32 %v8750_v35, %v8638_v43  ;;  %v8640_v59 = vadd.f32 %v8639_v0, %v19170_v53 }
 0x716   : > { %v8641_v46 = vpop.f32.mrf.mxu0  ;;  %v8754_v32 = vpop.f32.mrf.mxu1 }
 0x717   : > { %v19266_v50 = vadd.f32 %v8752_v18, %v8640_v59  ;;  %v8642_v30 = vadd.f32 %v8641_v46, %v19173_v14 }
 0x718   : > { %v8645_v15 = vpop.f32.mrf.mxu0  ;;  %v8758_v4 = vpop.f32.mrf.mxu1 }
 0x719   : > { %v19269_v55 = vadd.f32 %v8754_v32, %v8642_v30  ;;  %v8646_v54 = vadd.f32 %v8645_v15, %v19176_v51 }
 0x71a   : > { %v8647_v40 = vpop.f32.mrf.mxu0  ;;  %v8760_v23 = vpop.f32.mrf.mxu1 }
 0x71b   : > { %v19272_v38 = vadd.f32 %v8758_v4, %v8646_v54  ;;  %v8648_v35 = vadd.f32 %v8647_v40, %v19179_v19 }
 0x71c   : > { %v8649_v43 = vpop.f32.mrf.mxu0  ;;  %v8762_v53 = vpop.f32.mrf.mxu1 }
 0x71d   : > { %v19275_v0 = vadd.f32 %v8760_v23, %v8648_v35  ;;  %v8650_v18 = vadd.f32 %v8649_v43, %v19182_v7 }
 0x71e   : > { %v8651_v59 = vpop.f32.mrf.mxu0  ;;  %v8764_v14 = vpop.f32.mrf.mxu1 }
 0x71f   : > { %v19278_v46 = vadd.f32 %v8762_v53, %v8650_v18  ;;  %v8652_v32 = vadd.f32 %v8651_v59, %v19185_v56 }
 0x720   : > { %v8655_v30 = vpop.f32.mrf.mxu0  ;;  %v8768_v51 = vpop.f32.mrf.mxu1 }
 0x721   : > { %v19281_v15 = vadd.f32 %v8764_v14, %v8652_v32  ;;  %v8656_v4 = vadd.f32 %v8655_v30, %v19188_v48 }
 0x722   : > { %v8657_v54 = vpop.f32.mrf.mxu0  ;;  %v8770_v19 = vpop.f32.mrf.mxu1 }
 0x723   : > { %v19284_v40 = vadd.f32 %v8768_v51, %v8656_v4  ;;  %v8658_v23 = vadd.f32 %v8657_v54, %v19191_v37 }
 0x724   : > { %v8659_v35 = vpop.f32.mrf.mxu0  ;;  %v8772_v7 = vpop.f32.mrf.mxu1 }
 0x725   : > { %v19287_v43 = vadd.f32 %v8770_v19, %v8658_v23  ;;  %v8660_v53 = vadd.f32 %v8659_v35, %v19194_v8 }
 0x726   : > { %v8661_v18 = vpop.f32.mrf.mxu0  ;;  %v8774_v56 = vpop.f32.mrf.mxu1 }
 0x727   : > { %v19290_v59 = vadd.f32 %v8772_v7, %v8660_v53  ;;  %v8662_v14 = vadd.f32 %v8661_v18, %v19197_v21 }
 0x728   : > { %v8665_v32 = vpop.f32.mrf.mxu0  ;;  %v8778_v48 = vpop.f32.mrf.mxu1 }
 0x729   : > { %v19293_v30 = vadd.f32 %v8774_v56, %v8662_v14  ;;  %v8666_v51 = vadd.f32 %v8665_v32, %v19200_v63 }
 0x72a   : > { %v8667_v4 = vpop.f32.mrf.mxu0  ;;  %v8780_v37 = vpop.f32.mrf.mxu1 }
 0x72b   : > { %v19296_v54 = vadd.f32 %v8778_v48, %v8666_v51  ;;  %v8668_v19 = vadd.f32 %v8667_v4, %v19203_v3 }
 0x72c   : > { %v8669_v23 = vpop.f32.mrf.mxu0  ;;  %v8782_v8 = vpop.f32.mrf.mxu1 }
 0x72d   : > { %v19299_v35 = vadd.f32 %v8780_v37, %v8668_v19  ;;  %v8670_v7 = vadd.f32 %v8669_v23, %v19206_v52 }
 0x72e   : > { %v8671_v53 = vpop.f32.mrf.mxu0  ;;  %v8784_v21 = vpop.f32.mrf.mxu1 }
 0x72f   : > { %v19302_v18 = vadd.f32 %v8782_v8, %v8670_v7  ;;  %v8672_v56 = vadd.f32 %v8671_v53, %v19209_v17 }
 0x730   : > { %v8675_v14 = vpop.f32.mrf.mxu0  ;;  %v8788_v63 = vpop.f32.mrf.mxu1 }
 0x731   : > { %v19305_v32 = vadd.f32 %v8784_v21, %v8672_v56  ;;  %v8676_v48 = vadd.f32 %v8675_v14, %v19212_v24 }
 0x732   : > { %v8677_v51 = vpop.f32.mrf.mxu0  ;;  %v8790_v3 = vpop.f32.mrf.mxu1 }
 0x733   : > { %v19308_v4 = vadd.f32 %v8788_v63, %v8676_v48  ;;  %v8678_v37 = vadd.f32 %v8677_v51, %v19215_v41 }
 0x734   : > { %v8679_v19 = vpop.f32.mrf.mxu0  ;;  %v8792_v52 = vpop.f32.mrf.mxu1 }
 0x735   : > { %v19311_v23 = vadd.f32 %v8790_v3, %v8678_v37  ;;  %v8680_v8 = vadd.f32 %v8679_v19, %v19218_v11 }
 0x736   : > { %v8681_v7 = vpop.f32.mrf.mxu0  ;;  %v8794_v17 = vpop.f32.mrf.mxu1 }
 0x737   : > { %v19314_v53 = vadd.f32 %v8792_v52, %v8680_v8  ;;  %v8682_v21 = vadd.f32 %v8681_v7, %v19221_v58 }
 0x738   : > { %v19317_v56 = vpop.f32.mrf.mxu0  ;;  %v19319_v24 = vpop.f32.mrf.mxu1 }
 0x739   : > { %v19321_v14 = vadd.f32 %v8794_v17, %v8682_v21 }
 0x73a   : > { %v8687_v63 = vpop.f32.mrf.mxu0  ;;  %v8800_v41 = vpop.f32.mrf.mxu1 }
 0x73b   : > { %v8688_v48 = vadd.f32 %v8687_v63, %v19227_v34 }
 0x73c   : > { %v19324_v51 = vpop.f32.mrf.mxu0  ;;  %v19326_v3 = vpop.f32.mrf.mxu1 }
 0x73d   : > { %v19328_v11 = vadd.f32 %v8800_v41, %v8688_v48 }
 0x73e   : > { %v8691_v37 = vpop.f32.mrf.mxu0  ;;  %v8804_v19 = vpop.f32.mrf.mxu1 }
 0x73f   : > { %v8692_v58 = vadd.f32 %v8691_v37, %v19233_v45  ;;  %v20890_v45 = vld [vmem:[#allocation191_spill] sm:$0xff] }
 0x740   : > { %v8841_v8 = vpop.f32.mrf.mxu0  ;;  %v8954_v7 = vpop.f32.mrf.mxu1 }
 0x741   : > { %v19331_v52 = vadd.f32 %v8804_v19, %v8692_v58  ;;  %v8842_v17 = vadd.f32 %v8841_v8, %v19236_v6 }
 0x742   : > { %v8843_v21 = vpop.f32.mrf.mxu0  ;;  %v8956_v61 = vpop.f32.mrf.mxu1 }
 0x743   : > { %v19334_v36 = vadd.f32 %v8954_v7, %v8842_v17  ;;  %v8844_v34 = vadd.f32 %v8843_v21, %v19239_v39  ;;  %v20891_v17 = vld [vmem:[#allocation114_spill] sm:$0xff] }
 0x744   : > { %v8845_v63 = vpop.f32.mrf.mxu0  ;;  %v8958_v29 = vpop.f32.mrf.mxu1 }
 0x745   : > { %v19337_v41 = vadd.f32 %v8956_v61, %v8844_v34  ;;  %v8846_v48 = vadd.f32 %v8845_v63, %v19242_v60  ;;  %v9115_v37 = vmul.f32 %v20890_v45, %v19334_v36 }
 0x746   : > { %v8847_v19 = vpop.f32.mrf.mxu0  ;;  %v8960_v58 = vpop.f32.mrf.mxu1 }
 0x747   : > { %v19342_v2 = vadd.f32 %v8958_v29, %v8846_v48  ;;  %v8848_v6 = vadd.f32 %v8847_v19, %v19245_v9  ;;  %v9116_v8 = vmul.f32 %v20890_v45, %v19337_v41  ;;  %v9263_v34 = vmul.f32 %v9115_v37, %v19334_v36 }
 0x748   : > { %v8851_v7 = vpop.f32.mrf.mxu0  ;;  %v8964_v39 = vpop.f32.mrf.mxu1 }
 0x749   : > { %v9119_v61 = vmul.f32 %v20891_v17, %v19342_v2  ;;  %v19349_v21 = vadd.f32 %v8960_v58, %v8848_v6  ;;  %v8852_v60 = vadd.f32 %v8851_v7, %v19248_v62  ;;  %v9264_v19 = vmul.f32 %v9116_v8, %v19337_v41 }
 0x74a   : > { %v8853_v63 = vpop.f32.mrf.mxu0  ;;  %v8966_v26 = vpop.f32.mrf.mxu1 }
 0x74b   : > { %v9219_v29 = vadd.f32 %v9119_v61, %v9115_v37  ;;  %v9267_v48 = vmul.f32 %v9119_v61, %v19342_v2  ;;  %v9120_v9 = vmul.f32 %v20891_v17, %v19349_v21  ;;  %v19356_v45 = vadd.f32 %v8964_v39, %v8852_v60 }
 0x74c   : > { %v8854_v5 = vadd.f32 %v8853_v63, %v19251_v44  ;;  %v8855_v58 = vpop.f32.mrf.mxu0  ;;  %v8968_v6 = vpop.f32.mrf.mxu1 }
 0x74d   : > { %v9367_v28 = vadd.f32 %v9267_v48, %v9263_v34  ;;  %v9240_v62 = vadd.f32 %v9120_v9, %v9116_v8  ;;  %v9268_v7 = vmul.f32 %v9120_v9, %v19349_v21  ;;  %v9123_v37 = vmul.f32 %v20892_v33, %v19356_v45 }
 0x74e   : > { %v19363_v25 = vadd.f32 %v8966_v26, %v8854_v5  ;;  %v8856_v61 = vadd.f32 %v8855_v58, %v19254_v20  ;;  %v8857_v17 = vpop.f32.mrf.mxu0  ;;  %v8970_v39 = vpop.f32.mrf.mxu1 }
 0x74f   : > { %v9388_v60 = vadd.f32 %v9268_v7, %v9264_v19  ;;  %v9220_v10 = vadd.f32 %v9219_v29, %v9123_v37  ;;  %v9271_v22 = vmul.f32 %v9123_v37, %v19356_v45  ;;  %v8858_v44 = vadd.f32 %v8857_v17, %v19257_v1  ;;  %v20893_v29 = vld [vmem:[#allocation44_spill] sm:$0xff] }
 0x750   : > { %v9124_v8 = vmul.f32 %v20892_v33, %v19363_v25  ;;  %v19370_v34 = vadd.f32 %v8968_v6, %v8856_v61  ;;  %v8861_v63 = vpop.f32.mrf.mxu0  ;;  %v8974_v26 = vpop.f32.mrf.mxu1 }
 0x751   : > { %v9368_v48 = vadd.f32 %v9367_v28, %v9271_v22  ;;  %v19372_v9 = vadd.f32 %v8970_v39, %v8858_v44  ;;  %v8862_v5 = vadd.f32 %v8861_v63, %v19260_v42  ;;  %v20894_v39 = vld [vmem:[#allocation45_spill] sm:$0xff] }
 0x752   : > { %v9241_v20 = vadd.f32 %v9240_v62, %v9124_v8  ;;  %v9272_v19 = vmul.f32 %v9124_v8, %v19363_v25  ;;  %v9127_v58 = vmul.f32 %v20893_v29, %v19370_v34  ;;  %v8863_v7 = vpop.f32.mrf.mxu0  ;;  %v8976_v28 = vpop.f32.mrf.mxu1 }
 0x753   : > { %v9128_v1 = vmul.f32 %v20893_v29, %v19372_v9  ;;  %v19380_v33 = vadd.f32 %v8974_v26, %v8862_v5  ;;  %v8864_v6 = vadd.f32 %v8863_v7, %v19263_v13 }
 0x754   : > { %v9389_v22 = vadd.f32 %v9388_v60, %v9272_v19  ;;  %v9221_v37 = vadd.f32 %v9220_v10, %v9127_v58  ;;  %v9275_v42 = vmul.f32 %v9127_v58, %v19370_v34  ;;  %v8865_v61 = vpop.f32.mrf.mxu0  ;;  %v8978_v63 = vpop.f32.mrf.mxu1 }
 0x755   : > { %v9242_v62 = vadd.f32 %v9241_v20, %v9128_v1  ;;  %v9276_v17 = vmul.f32 %v9128_v1, %v19372_v9  ;;  %v9131_v44 = vmul.f32 %v20894_v39, %v19380_v33  ;;  %v19387_v8 = vadd.f32 %v8976_v28, %v8864_v6 }
 0x756   : > { %v9369_v29 = vadd.f32 %v9368_v48, %v9275_v42  ;;  %v8866_v5 = vadd.f32 %v8865_v61, %v19266_v50  ;;  %v8867_v26 = vpop.f32.mrf.mxu0  ;;  %v8980_v20 = vpop.f32.mrf.mxu1 }
 0x757   : > { %v9390_v13 = vadd.f32 %v9389_v22, %v9276_v17  ;;  %v9222_v7 = vadd.f32 %v9221_v37, %v9131_v44  ;;  %v9279_v10 = vmul.f32 %v9131_v44, %v19380_v33  ;;  %v9132_v60 = vmul.f32 %v20894_v39, %v19387_v8  ;;  %v20895_v22 = vld [vmem:[#allocation112_spill] sm:$0xff] }
 0x758   : > { %v19393_v19 = vadd.f32 %v8978_v63, %v8866_v5  ;;  %v8868_v58 = vadd.f32 %v8867_v26, %v19269_v55  ;;  %v8871_v1 = vpop.f32.mrf.mxu0  ;;  %v8984_v42 = vpop.f32.mrf.mxu1  ;;  %v20896_v26 = vld [vmem:[#allocation113_spill] sm:$0xff] }
 0x759   : > { %v9370_v6 = vadd.f32 %v9369_v29, %v9279_v10  ;;  %v9243_v28 = vadd.f32 %v9242_v62, %v9132_v60  ;;  %v9280_v48 = vmul.f32 %v9132_v60, %v19387_v8  ;;  %v8872_v50 = vadd.f32 %v8871_v1, %v19272_v38 }
 0x75a   : > { %v9135_v37 = vmul.f32 %v20895_v22, %v19393_v19  ;;  %v19400_v61 = vadd.f32 %v8980_v20, %v8868_v58  ;;  %v8873_v17 = vpop.f32.mrf.mxu0  ;;  %v8986_v55 = vpop.f32.mrf.mxu1 }
 0x75b   : > { %v9391_v39 = vadd.f32 %v9390_v13, %v9280_v48  ;;  %v19402_v44 = vadd.f32 %v8984_v42, %v8872_v50  ;;  %v8874_v63 = vadd.f32 %v8873_v17, %v19275_v0 }
 0x75c   : > { %v9223_v5 = vadd.f32 %v9222_v7, %v9135_v37  ;;  %v9283_v62 = vmul.f32 %v9135_v37, %v19393_v19  ;;  %v9136_v29 = vmul.f32 %v20895_v22, %v19400_v61  ;;  %v8875_v38 = vpop.f32.mrf.mxu0  ;;  %v8988_v13 = vpop.f32.mrf.mxu1 }
 0x75d   : > { %v9139_v10 = vmul.f32 %v20896_v26, %v19402_v44  ;;  %v19410_v60 = vadd.f32 %v8986_v55, %v8874_v63  ;;  %v8876_v20 = vadd.f32 %v8875_v38, %v19278_v46 }
 0x75e   : > { %v9371_v58 = vadd.f32 %v9370_v6, %v9283_v62  ;;  %v9244_v1 = vadd.f32 %v9243_v28, %v9136_v29  ;;  %v9284_v0 = vmul.f32 %v9136_v29, %v19400_v61  ;;  %v8877_v48 = vpop.f32.mrf.mxu0  ;;  %v8990_v37 = vpop.f32.mrf.mxu1  ;;  %v20897_v28 = vld [vmem:[#allocation42_spill] sm:$0xff] }
 0x75f   : > { %v9224_v7 = vadd.f32 %v9223_v5, %v9139_v10  ;;  %v9287_v50 = vmul.f32 %v9139_v10, %v19402_v44  ;;  %v9140_v42 = vmul.f32 %v20896_v26, %v19410_v60  ;;  %v19417_v22 = vadd.f32 %v8988_v13, %v8876_v20 }
 0x760   : > { %v9392_v17 = vadd.f32 %v9391_v39, %v9284_v0  ;;  %v8878_v63 = vadd.f32 %v8877_v48, %v19281_v15  ;;  %v8881_v55 = vpop.f32.mrf.mxu0  ;;  %v8994_v5 = vpop.f32.mrf.mxu1 }
 0x761   : > { %v9372_v46 = vadd.f32 %v9371_v58, %v9287_v50  ;;  %v9245_v38 = vadd.f32 %v9244_v1, %v9140_v42  ;;  %v9288_v6 = vmul.f32 %v9140_v42, %v19410_v60  ;;  %v9143_v62 = vmul.f32 %v20897_v28, %v19417_v22 }
 0x762   : > { %v19423_v29 = vadd.f32 %v8990_v37, %v8878_v63  ;;  %v8882_v10 = vadd.f32 %v8881_v55, %v19284_v40  ;;  %v8883_v26 = vpop.f32.mrf.mxu0  ;;  %v8996_v0 = vpop.f32.mrf.mxu1 }
 0x763   : > { %v9393_v20 = vadd.f32 %v9392_v17, %v9288_v6  ;;  %v9225_v13 = vadd.f32 %v9224_v7, %v9143_v62  ;;  %v9291_v39 = vmul.f32 %v9143_v62, %v19417_v22  ;;  %v8884_v15 = vadd.f32 %v8883_v26, %v19287_v43  ;;  %v20898_v17 = vld [vmem:[#allocation43_spill] sm:$0xff] }
 0x764   : > { %v9144_v58 = vmul.f32 %v20897_v28, %v19423_v29  ;;  %v19430_v1 = vadd.f32 %v8994_v5, %v8882_v10  ;;  %v8885_v48 = vpop.f32.mrf.mxu0  ;;  %v8998_v40 = vpop.f32.mrf.mxu1 }
 0x765   : > { %v9373_v50 = vadd.f32 %v9372_v46, %v9291_v39  ;;  %v19432_v42 = vadd.f32 %v8996_v0, %v8884_v15  ;;  %v8886_v37 = vadd.f32 %v8885_v48, %v19290_v59  ;;  %v20899_v15 = vld [vmem:[#allocation110_spill] sm:$0xff] }
 0x766   : > { %v9246_v63 = vadd.f32 %v9245_v38, %v9144_v58  ;;  %v9292_v7 = vmul.f32 %v9144_v58, %v19423_v29  ;;  %v9147_v55 = vmul.f32 %v20898_v17, %v19430_v1  ;;  %v8887_v43 = vpop.f32.mrf.mxu0  ;;  %v9000_v46 = vpop.f32.mrf.mxu1 }
 0x767   : > { %v9148_v6 = vmul.f32 %v20898_v17, %v19432_v42  ;;  %v19440_v28 = vadd.f32 %v8998_v40, %v8886_v37  ;;  %v8888_v62 = vadd.f32 %v8887_v43, %v19293_v30 }
 0x768   : > { %v9394_v5 = vadd.f32 %v9393_v20, %v9292_v7  ;;  %v9226_v10 = vadd.f32 %v9225_v13, %v9147_v55  ;;  %v9295_v59 = vmul.f32 %v9147_v55, %v19430_v1  ;;  %v8891_v26 = vpop.f32.mrf.mxu0  ;;  %v9004_v48 = vpop.f32.mrf.mxu1 }
 0x769   : > { %v9247_v38 = vadd.f32 %v9246_v63, %v9148_v6  ;;  %v9296_v39 = vmul.f32 %v9148_v6, %v19432_v42  ;;  %v9151_v0 = vmul.f32 %v20899_v15, %v19440_v28  ;;  %v19447_v58 = vadd.f32 %v9000_v46, %v8888_v62 }
 0x76a   : > { %v9374_v17 = vadd.f32 %v9373_v50, %v9295_v59  ;;  %v8892_v37 = vadd.f32 %v8891_v26, %v19296_v54  ;;  %v8893_v40 = vpop.f32.mrf.mxu0  ;;  %v9006_v63 = vpop.f32.mrf.mxu1 }
 0x76b   : > { %v9395_v30 = vadd.f32 %v9394_v5, %v9296_v39  ;;  %v9227_v43 = vadd.f32 %v9226_v10, %v9151_v0  ;;  %v9299_v20 = vmul.f32 %v9151_v0, %v19440_v28  ;;  %v9152_v13 = vmul.f32 %v20899_v15, %v19447_v58  ;;  %v20900_v5 = vld [vmem:[#allocation111_spill] sm:$0xff] }
 0x76c   : > { %v19453_v7 = vadd.f32 %v9004_v48, %v8892_v37  ;;  %v8894_v55 = vadd.f32 %v8893_v40, %v19299_v35  ;;  %v8895_v6 = vpop.f32.mrf.mxu0  ;;  %v9008_v59 = vpop.f32.mrf.mxu1  ;;  %v20901_v40 = vld [vmem:[#allocation40_spill] sm:$0xff] }
 0x76d   : > { %v9375_v62 = vadd.f32 %v9374_v17, %v9299_v20  ;;  %v9248_v46 = vadd.f32 %v9247_v38, %v9152_v13  ;;  %v9300_v50 = vmul.f32 %v9152_v13, %v19447_v58  ;;  %v8896_v54 = vadd.f32 %v8895_v6, %v19302_v18 }
 0x76e   : > { %v9155_v10 = vmul.f32 %v20900_v5, %v19453_v7  ;;  %v19460_v26 = vadd.f32 %v9006_v63, %v8894_v55  ;;  %v8897_v39 = vpop.f32.mrf.mxu0  ;;  %v9010_v35 = vpop.f32.mrf.mxu1  ;;  %v8686_v55 = vadd.f32 %v19317_v56, %v19224_v47 }
 0x76f   : > { %v9396_v15 = vadd.f32 %v9395_v30, %v9300_v50  ;;  %v19462_v0 = vadd.f32 %v9008_v59, %v8896_v54  ;;  %v8898_v48 = vadd.f32 %v8897_v39, %v19305_v32 }
 0x770   : > { %v9228_v37 = vadd.f32 %v9227_v43, %v9155_v10  ;;  %v9303_v38 = vmul.f32 %v9155_v10, %v19453_v7  ;;  %v9156_v17 = vmul.f32 %v20900_v5, %v19460_v26  ;;  %v8901_v18 = vpop.f32.mrf.mxu0  ;;  %v9014_v30 = vpop.f32.mrf.mxu1 }
 0x771   : > { %v9159_v20 = vmul.f32 %v20901_v40, %v19462_v0  ;;  %v19470_v13 = vadd.f32 %v9010_v35, %v8898_v48  ;;  %v8902_v63 = vadd.f32 %v8901_v18, %v19308_v4 }
 0x772   : > { %v9376_v32 = vadd.f32 %v9375_v62, %v9303_v38  ;;  %v9249_v6 = vadd.f32 %v9248_v46, %v9156_v17  ;;  %v9304_v43 = vmul.f32 %v9156_v17, %v19460_v26  ;;  %v8903_v50 = vpop.f32.mrf.mxu0  ;;  %v9016_v39 = vpop.f32.mrf.mxu1  ;;  %v20902_v62 = vld [vmem:[#allocation38_spill] sm:$0xff]  ;;  %v8799_v38 = vadd.f32 %v19319_v24, %v8686_v55 }
 0x773   : > { %v9229_v54 = vadd.f32 %v9228_v37, %v9159_v20  ;;  %v9307_v59 = vmul.f32 %v9159_v20, %v19462_v0  ;;  %v9160_v5 = vmul.f32 %v20901_v40, %v19470_v13  ;;  %v19479_v10 = vadd.f32 %v9014_v30, %v8902_v63 }
 0x774   : > { %v9397_v48 = vadd.f32 %v9396_v15, %v9304_v43  ;;  %v8904_v4 = vadd.f32 %v8903_v50, %v19311_v23  ;;  %v8905_v35 = vpop.f32.mrf.mxu0  ;;  %v9018_v37 = vpop.f32.mrf.mxu1 }
 0x775   : > { %v9377_v18 = vadd.f32 %v9376_v32, %v9307_v59  ;;  %v9250_v47 = vadd.f32 %v9249_v6, %v9160_v5  ;;  %v9308_v56 = vmul.f32 %v9160_v5, %v19470_v13  ;;  %v9163_v46 = vmul.f32 %v20902_v62, %v19479_v10 }
 0x776   : > { %v19486_v17 = vadd.f32 %v9016_v39, %v8904_v4  ;;  %v8906_v40 = vadd.f32 %v8905_v35, %v19314_v53  ;;  %v8907_v20 = vpop.f32.mrf.mxu0  ;;  %v9020_v32 = vpop.f32.mrf.mxu1  ;;  %v8690_v6 = vadd.f32 %v19324_v51, %v19230_v12 }
 0x777   : > { %v9398_v63 = vadd.f32 %v9397_v48, %v9308_v56  ;;  %v9230_v15 = vadd.f32 %v9229_v54, %v9163_v46  ;;  %v9311_v23 = vmul.f32 %v9163_v46, %v19479_v10  ;;  %v8908_v30 = vadd.f32 %v8907_v20, %v19321_v14  ;;  %v20903_v14 = vld [vmem:[#allocation107_spill] sm:$0xff]  ;;  %v20904_v20 = vld [vmem:[#allocation37_spill] sm:$0xff] }
 0x778   : > { %v9164_v43 = vmul.f32 %v20902_v62, %v19486_v17  ;;  %v19495_v50 = vadd.f32 %v9018_v37, %v8906_v40  ;;  %v8911_v24 = vpop.f32.mrf.mxu0  ;;  %v9024_v5 = vpop.f32.mrf.mxu1 }
 0x779   : > { %v9378_v55 = vadd.f32 %v9377_v18, %v9311_v23  ;;  %v19497_v59 = vadd.f32 %v9020_v32, %v8908_v30  ;;  %v8912_v53 = vadd.f32 %v8911_v24, %v8799_v38  ;;  %v8803_v18 = vadd.f32 %v19326_v3, %v8690_v6 }
 0x77a   : > { %v9251_v54 = vadd.f32 %v9250_v47, %v9164_v43  ;;  %v9312_v39 = vmul.f32 %v9164_v43, %v19486_v17  ;;  %v9167_v48 = vmul.f32 %v20903_v14, %v19495_v50  ;;  %v8913_v4 = vpop.f32.mrf.mxu0  ;;  %v9026_v56 = vpop.f32.mrf.mxu1 }
 0x77b   : > { %v9168_v12 = vmul.f32 %v20903_v14, %v19497_v59  ;;  %v19504_v51 = vadd.f32 %v9024_v5, %v8912_v53  ;;  %v8914_v35 = vadd.f32 %v8913_v4, %v19328_v11 }
 0x77c   : > { %v9399_v62 = vadd.f32 %v9398_v63, %v9312_v39  ;;  %v9231_v46 = vadd.f32 %v9230_v15, %v9167_v48  ;;  %v9315_v47 = vmul.f32 %v9167_v48, %v19495_v50  ;;  %v8915_v37 = vpop.f32.mrf.mxu0  ;;  %v9028_v32 = vpop.f32.mrf.mxu1 }
 0x77d   : > { %v9252_v38 = vadd.f32 %v9251_v54, %v9168_v12  ;;  %v9316_v40 = vmul.f32 %v9168_v12, %v19497_v59  ;;  %v9171_v23 = vmul.f32 %v20904_v20, %v19504_v51  ;;  %v19512_v30 = vadd.f32 %v9026_v56, %v8914_v35 }
 0x77e   : > { %v9379_v43 = vadd.f32 %v9378_v55, %v9315_v47  ;;  %v8916_v24 = vadd.f32 %v8915_v37, %v8803_v18  ;;  %v8917_v11 = vpop.f32.mrf.mxu0  ;;  %v9030_v48 = vpop.f32.mrf.mxu1  ;;  %v20905_v55 = vld [vmem:[#allocation104_spill] sm:$0xff] }
 0x77f   : > { %v9400_v53 = vadd.f32 %v9399_v62, %v9316_v40  ;;  %v9232_v5 = vadd.f32 %v9231_v46, %v9171_v23  ;;  %v9319_v3 = vmul.f32 %v9171_v23, %v19504_v51  ;;  %v9172_v63 = vmul.f32 %v20904_v20, %v19512_v30 }
 0x780   : > { %v19517_v15 = vadd.f32 %v9028_v32, %v8916_v24  ;;  %v8918_v6 = vadd.f32 %v8917_v11, %v19331_v52 }
 0x781   : > { %v9380_v54 = vadd.f32 %v9379_v43, %v9319_v3  ;;  %v9253_v39 = vadd.f32 %v9252_v38, %v9172_v63  ;;  %v9320_v14 = vmul.f32 %v9172_v63, %v19512_v30 }
 0x782   : > { %v9175_v4 = vmul.f32 %v20905_v55, %v19517_v15  ;;  %v19523_v12 = vadd.f32 %v9030_v48, %v8918_v6 }
 0x783   : > { %v9401_v35 = vadd.f32 %v9400_v53, %v9320_v14 }
 0x784   : > { %v9233_v56 = vadd.f32 %v9232_v5, %v9175_v4  ;;  %v9323_v18 = vmul.f32 %v9175_v4, %v19517_v15  ;;  %v9176_v62 = vmul.f32 %v20905_v55, %v19523_v12 }
 0x786   : > { %v9234_v46 = vrot.slane %v9233_v56, 4  ;;  %v9381_v47 = vadd.f32 %v9380_v54, %v9323_v18  ;;  %v9254_v52 = vadd.f32 %v9253_v39, %v9176_v62  ;;  %v9324_v37 = vmul.f32 %v9176_v62, %v19523_v12 }
 0x788   : > { %v9235_v38 = vadd.f32 %v9234_v46, %v9233_v56  ;;  %v9382_v40 = vrot.slane %v9381_v47, 4  ;;  %v9255_v20 = vrot.slane %v9254_v52, 4  ;;  %v9402_v23 = vadd.f32 %v9401_v35, %v9324_v37 }
 0x78a   : > { %v9236_v32 = vrot.slane %v9235_v38, 2  ;;  %v9383_v43 = vadd.f32 %v9382_v40, %v9381_v47  ;;  %v9256_v24 = vadd.f32 %v9255_v20, %v9254_v52  ;;  %v9403_v11 = vrot.slane %v9402_v23, 4 }
 0x78c   : > { %v9237_v53 = vadd.f32 %v9236_v32, %v9235_v38  ;;  %v9384_v5 = vrot.slane %v9383_v43, 2  ;;  %v9257_v3 = vrot.slane %v9256_v24, 2  ;;  %v9404_v63 = vadd.f32 %v9403_v11, %v9402_v23 }
 0x78e   : > { %v9238_v6 = vrot.slane %v9237_v53, 1  ;;  %v9385_v14 = vadd.f32 %v9384_v5, %v9383_v43  ;;  %v9258_v48 = vadd.f32 %v9257_v3, %v9256_v24  ;;  %v9405_v55 = vrot.slane %v9404_v63, 2 }
 0x790   : > { %v19529_v54 = vadd.f32 %v9238_v6, %v9237_v53  ;;  %v9386_v39 = vrot.slane %v9385_v14, 1  ;;  %v9259_v4 = vrot.slane %v9258_v48, 1  ;;  %v9406_v56 = vadd.f32 %v9405_v55, %v9404_v63 }
 0x792   : > { %v9387_v18 = vadd.f32 %v9386_v39, %v9385_v14  ;;  %v9411_v35 = vmul.f32 %v19529_v54, %v19529_v54  ;;  %v9419_v62 = vsub.f32 %v19334_v36, %v19529_v54  ;;  %v9423_v46 = vsub.f32 %v19342_v2, %v19529_v54 }
 0x793   : > { %v9427_v47 = vsub.f32 %v19356_v45, %v19529_v54  ;;  %v9431_v52 = vsub.f32 %v19370_v34, %v19529_v54  ;;  %v9435_v37 = vsub.f32 %v19380_v33, %v19529_v54  ;;  %v9439_v38 = vsub.f32 %v19393_v19, %v19529_v54 }
 0x794   : > { %v9415_v40 = vsub.f32 %v9387_v18, %v9411_v35  ;;  %v9443_v20 = vsub.f32 %v19402_v44, %v19529_v54  ;;  %v9447_v36 = vsub.f32 %v19417_v22, %v19529_v54  ;;  %v9451_v2 = vsub.f32 %v19430_v1, %v19529_v54  ;;  %v20907_v18 = vld [vmem:[#allocation31_spill] sm:$0xff] }
 0x795   : > { %v9455_v45 = vsub.f32 %v19440_v28, %v19529_v54  ;;  %v9459_v34 = vsub.f32 %v19453_v7, %v19529_v54  ;;  %v9463_v33 = vsub.f32 %v19462_v0, %v19529_v54  ;;  %v9467_v19 = vsub.f32 %v19479_v10, %v19529_v54 }
 0x796   : > { %v9471_v44 = vsub.f32 %v19495_v50, %v19529_v54  ;;  %v9475_v22 = vsub.f32 %v19504_v51, %v19529_v54  ;;  %v9479_v1 = vsub.f32 %v19517_v15, %v19529_v54  ;;  %v9483_v23 = vadd.f32 1e-05, %v9415_v40 }
 0x797   : > { %v19565_v28 = vadd.f32 %v9259_v4, %v9258_v48  ;;  %v9407_v32 = vrot.slane %v9406_v56, 1 }
 0x798   : > { %13919 = vrsqrt.f32 %v9483_v23  ;;  %v20908_v23 = vld [vmem:[#allocation32_spill] sm:$0xff] }
 0x799   : > { %v9408_v7 = vadd.f32 %v9407_v32, %v9406_v56  ;;  %v9412_v0 = vmul.f32 %v19565_v28, %v19565_v28  ;;  %v9420_v10 = vsub.f32 %v19337_v41, %v19565_v28  ;;  %v20906_v56 = vld [vmem:[#allocation106_spill] sm:$0xff]  ;;  %v20913_v41 = vsub.f32 %v19387_v8, %v19565_v28 }
 0x79a   : > { %v9565_v35 = vrot.slane %v20907_v18, %v20906_v56  ;;  %v9650_v32 = vrot.slane %v20908_v23, %v20906_v56  ;;  %v20918_v8 = vsub.f32 %v19447_v58, %v19565_v28  ;;  %v20923_v58 = vsub.f32 %v19512_v30, %v19565_v28 }
 0x79b   : > { %v9416_v11 = vsub.f32 %v9408_v7, %v9412_v0  ;;  %v20909_v7 = vld [vmem:[#allocation103_spill] sm:$0xff] }
 0x79c   : > { %v19607_v0 = vrot.slane %v20907_v18, %v20909_v7  ;;  %v19611_v55 = vrot.slane %v20908_v23, %v20909_v7 }
 0x79d   : > { %v9484_v4 = vadd.f32 1e-05, %v9416_v11 }
 0x79f   : > { %13921 = vrsqrt.f32 %v9484_v4 }
 0x7a5   : > { %v13920_v40 = vpop.eup %13919 }
 0x7a6   : > { %v9491_v54 = vmul.f32 %v13920_v40, %v9419_v62  ;;  %v9495_v48 = vmul.f32 %v13920_v40, %v9423_v46  ;;  %v9499_v39 = vmul.f32 %v13920_v40, %v9427_v47  ;;  %v9503_v11 = vmul.f32 %v13920_v40, %v9431_v52 }
 0x7a7   : > { %v9507_v14 = vmul.f32 %v13920_v40, %v9435_v37  ;;  %v9511_v6 = vmul.f32 %v13920_v40, %v9439_v38  ;;  %v9515_v63 = vmul.f32 %v13920_v40, %v9443_v20  ;;  %v9519_v3 = vmul.f32 %v13920_v40, %v9447_v36 }
 0x7a8   : > { %v9523_v5 = vmul.f32 %v13920_v40, %v9451_v2  ;;  %v9527_v53 = vmul.f32 %v13920_v40, %v9455_v45  ;;  %v9531_v56 = vmul.f32 %v13920_v40, %v9459_v34  ;;  %v9535_v4 = vmul.f32 %v13920_v40, %v9463_v33 }
 0x7a9   : > { %v9539_v24 = vmul.f32 %v13920_v40, %v9467_v19  ;;  %v9543_v43 = vmul.f32 %v13920_v40, %v9471_v44  ;;  %v9547_v18 = vmul.f32 %v13920_v40, %v9475_v22  ;;  %v9551_v15 = vmul.f32 %v13920_v40, %v9479_v1 }
 0x7aa   : > { %v9576_v51 = vmul.f32 %v9565_v35, %v9491_v54  ;;  %v9580_v50 = vmul.f32 %v9565_v35, %v9495_v48  ;;  %v9584_v23 = vmul.f32 %v9565_v35, %v9499_v39  ;;  %v9588_v7 = vmul.f32 %v9565_v35, %v9503_v11 }
 0x7ab   : > { %v9592_v62 = vmul.f32 %v9565_v35, %v9507_v14  ;;  %v9596_v46 = vmul.f32 %v9565_v35, %v9511_v6  ;;  %v9600_v47 = vmul.f32 %v9565_v35, %v9515_v63  ;;  %v9604_v52 = vmul.f32 %v9565_v35, %v9519_v3 }
 0x7ac   : > { %v9608_v37 = vmul.f32 %v9565_v35, %v9523_v5  ;;  %v9612_v38 = vmul.f32 %v9565_v35, %v9527_v53  ;;  %v9616_v20 = vmul.f32 %v9565_v35, %v9531_v56  ;;  %v9620_v36 = vmul.f32 %v9565_v35, %v9535_v4  ;;  %v13922_v54 = vpop.eup %13921 }
 0x7ad   : > { %v9624_v2 = vmul.f32 %v9565_v35, %v9539_v24  ;;  %v9628_v45 = vmul.f32 %v9565_v35, %v9543_v43  ;;  %v9632_v34 = vmul.f32 %v9565_v35, %v9547_v18  ;;  %v9636_v33 = vmul.f32 %v9565_v35, %v9551_v15 }
 0x7ae   : > { %v19613_v19 = vadd.f32 %v9650_v32, %v9576_v51  ;;  %v19615_v44 = vadd.f32 %v9650_v32, %v9580_v50  ;;  %v19617_v22 = vadd.f32 %v9650_v32, %v9584_v23  ;;  %v19619_v1 = vadd.f32 %v9650_v32, %v9588_v7 }
 0x7af   : > { %v19621_v14 = vadd.f32 %v9650_v32, %v9592_v62  ;;  %v19623_v63 = vadd.f32 %v9650_v32, %v9596_v46  ;;  %v19625_v5 = vadd.f32 %v9650_v32, %v9600_v47  ;;  %v19627_v53 = vadd.f32 %v9650_v32, %v9604_v52 }
 0x7b0   : > { %v19629_v24 = vadd.f32 %v9650_v32, %v9608_v37  ;;  %v19631_v43 = vadd.f32 %v9650_v32, %v9612_v38  ;;  %v19633_v51 = vadd.f32 %v9650_v32, %v9616_v20  ;;  %v19635_v50 = vadd.f32 %v9650_v32, %v9620_v36 }
 0x7b1   : > { %v19637_v15 = vadd.f32 %v9650_v32, %v9624_v2  ;;  %v19639_v3 = vadd.f32 %v9650_v32, %v9628_v45  ;;  %v19641_v6 = vadd.f32 %v9650_v32, %v9632_v34  ;;  %v19643_v48 = vadd.f32 %v9650_v32, %v9636_v33 }
 0x7b2   : > { %v9725_v39 = vmax.f32 %v19613_v19, 0.0  ;;  %v9729_v35 = vmax.f32 %v19615_v44, 0.0  ;;  %v9733_v40 = vmax.f32 %v19617_v22, 0.0  ;;  %v9737_v11 = vmax.f32 %v19619_v1, 0.0 }
 0x7b3   : > { %v9741_v56 = vmax.f32 %v19621_v14, 0.0  ;;  %v9745_v4 = vmax.f32 %v19623_v63, 0.0  ;;  %v9749_v18 = vmax.f32 %v19625_v5, 0.0  ;;  %v9753_v23 = vmax.f32 %v19627_v53, 0.0 }
 0x7b4   : > { %v9757_v32 = vmax.f32 %v19629_v24, 0.0  ;;  %v9761_v7 = vmax.f32 %v19631_v43, 0.0  ;;  %v9765_v62 = vmax.f32 %v19633_v51, 0.0  ;;  %v9769_v46 = vmax.f32 %v19635_v50, 0.0  ;;  %9789 = vst [vmem:[#allocation2 + $0xd8] sm:$0xff] %v9725_v39  ;;  %9793 = vst [vmem:[#allocation2 + $0x130] sm:$0xff] %v9729_v35 }
 0x7b5   : > { %9797 = vst [vmem:[#allocation2 + $0x118] sm:$0xff] %v9733_v40  ;;  %9801 = vst [vmem:[#allocation2 + $0x108] sm:$0xff] %v9737_v11  ;;  %v9773_v47 = vmax.f32 %v19637_v15, 0.0  ;;  %v9777_v52 = vmax.f32 %v19639_v3, 0.0  ;;  %v9781_v37 = vmax.f32 %v19641_v6, 0.0  ;;  %v9785_v38 = vmax.f32 %v19643_v48, 0.0 }
 0x7b6   : > { %9805 = vst [vmem:[#allocation2 + $0x138] sm:$0xff] %v9741_v56  ;;  %9809 = vst [vmem:[#allocation2 + $0x1b8] sm:$0xff] %v9745_v4  ;;  %v9492_v20 = vmul.f32 %v13922_v54, %v9420_v10  ;;  %v20910_v36 = vsub.f32 %v19349_v21, %v19565_v28  ;;  %v20911_v45 = vsub.f32 %v19363_v25, %v19565_v28 }
 0x7b7   : > { %9813 = vst [vmem:[#allocation2 + $0x160] sm:$0xff] %v9749_v18  ;;  %9817 = vst [vmem:[#allocation2 + $0xf0] sm:$0xff] %v9753_v23  ;;  %v20912_v33 = vsub.f32 %v19372_v9, %v19565_v28  ;;  %v9508_v10 = vmul.f32 %v13922_v54, %v20913_v41  ;;  %v20914_v21 = vsub.f32 %v19400_v61, %v19565_v28 }
 0x7b8   : > { %9821 = vst [vmem:[#allocation2 + $0x100] sm:$0xff] %v9757_v32  ;;  %9825 = vst [vmem:[#allocation2 + $0x20] sm:$0xff] %v9761_v7  ;;  %v9496_v2 = vmul.f32 %v13922_v54, %v20910_v36  ;;  %v9500_v34 = vmul.f32 %v13922_v54, %v20911_v45  ;;  %v20915_v25 = vsub.f32 %v19410_v60, %v19565_v28 }
 0x7b9   : > { %9829 = vst [vmem:[#allocation2 + $0xe8] sm:$0xff] %v9765_v62  ;;  %9833 = vst [vmem:[#allocation2 + $0x1d8] sm:$0xff] %v9769_v46  ;;  %v9504_v39 = vmul.f32 %v13922_v54, %v20912_v33  ;;  %v9512_v35 = vmul.f32 %v13922_v54, %v20914_v21  ;;  %v20916_v9 = vsub.f32 %v19423_v29, %v19565_v28 }
 0x7ba   : > { %9837 = vst [vmem:[#allocation2 + $0xa8] sm:$0xff] %v9773_v47  ;;  %9841 = vst [vmem:[#allocation2 + $0x68] sm:$0xff] %v9777_v52  ;;  %v9516_v40 = vmul.f32 %v13922_v54, %v20915_v25  ;;  %v20917_v56 = vsub.f32 %v19432_v42, %v19565_v28  ;;  %v9528_v18 = vmul.f32 %v13922_v54, %v20918_v8 }
 0x7bb   : > { %9845 = vst [vmem:[#allocation2 + $0xc0] sm:$0xff] %v9781_v37  ;;  %9849 = vst [vmem:[#allocation2 + $0x58] sm:$0xff] %v9785_v38  ;;  %v9520_v11 = vmul.f32 %v13922_v54, %v20916_v9  ;;  %v20919_v61 = vsub.f32 %v19460_v26, %v19565_v28  ;;  %v20920_v60 = vsub.f32 %v19470_v13, %v19565_v28 }
 0x7bc   : > { %v9524_v4 = vmul.f32 %v13922_v54, %v20917_v56  ;;  %v20921_v29 = vsub.f32 %v19486_v17, %v19565_v28  ;;  %v20922_v42 = vsub.f32 %v19497_v59, %v19565_v28  ;;  %v9548_v46 = vmul.f32 %v13922_v54, %v20923_v58 }
 0x7bd   : > { %v9532_v23 = vmul.f32 %v13922_v54, %v20919_v61  ;;  %v9536_v32 = vmul.f32 %v13922_v54, %v20920_v60  ;;  %v20924_v26 = vsub.f32 %v19523_v12, %v19565_v28  ;;  %v9577_v52 = vmul.f32 %v19607_v0, %v9492_v20 }
 0x7be   : > { %v9540_v7 = vmul.f32 %v13922_v54, %v20921_v29  ;;  %v9544_v62 = vmul.f32 %v13922_v54, %v20922_v42  ;;  %v9581_v13 = vmul.f32 %v19607_v0, %v9496_v2  ;;  %v9585_v37 = vmul.f32 %v19607_v0, %v9500_v34 }
 0x7bf   : > { %v9552_v47 = vmul.f32 %v13922_v54, %v20924_v26  ;;  %v9589_v17 = vmul.f32 %v19607_v0, %v9504_v39  ;;  %v9593_v38 = vmul.f32 %v19607_v0, %v9508_v10  ;;  %v9597_v59 = vmul.f32 %v19607_v0, %v9512_v35 }
 0x7c0   : > { %v9601_v36 = vmul.f32 %v19607_v0, %v9516_v40  ;;  %v9605_v30 = vmul.f32 %v19607_v0, %v9520_v11  ;;  %v9609_v45 = vmul.f32 %v19607_v0, %v9524_v4  ;;  %v9613_v12 = vmul.f32 %v19607_v0, %v9528_v18 }
 0x7c1   : > { %v9617_v28 = vmul.f32 %v19607_v0, %v9532_v23  ;;  %v9621_v54 = vmul.f32 %v19607_v0, %v9536_v32  ;;  %v9625_v20 = vmul.f32 %v19607_v0, %v9540_v7  ;;  %v9629_v2 = vmul.f32 %v19607_v0, %v9544_v62 }
 0x7c2   : > { %v9633_v34 = vmul.f32 %v19607_v0, %v9548_v46  ;;  %v9637_v33 = vmul.f32 %v19607_v0, %v9552_v47  ;;  %v19726_v39 = vadd.f32 %v19611_v55, %v9577_v52  ;;  %v19729_v41 = vadd.f32 %v19611_v55, %v9581_v13 }
 0x7c3   : > { %v19732_v10 = vadd.f32 %v19611_v55, %v9585_v37  ;;  %v19735_v21 = vadd.f32 %v19611_v55, %v9589_v17  ;;  %v19738_v35 = vadd.f32 %v19611_v55, %v9593_v38  ;;  %v19741_v25 = vadd.f32 %v19611_v55, %v9597_v59 }
 0x7c4   : > { %v19744_v0 = vadd.f32 %v19611_v55, %v9601_v36  ;;  %v19747_v40 = vadd.f32 %v19611_v55, %v9605_v30  ;;  %v19750_v9 = vadd.f32 %v19611_v55, %v9609_v45  ;;  %v19753_v11 = vadd.f32 %v19611_v55, %v9613_v12 }
 0x7c5   : > { %v19756_v56 = vadd.f32 %v19611_v55, %v9617_v28  ;;  %v19759_v4 = vadd.f32 %v19611_v55, %v9621_v54  ;;  %v9710_v8 = vadd.f32 %v19611_v55, %v9625_v20  ;;  %v9714_v18 = vadd.f32 %v19611_v55, %v9629_v2 }
 0x7c6   : > { %v9718_v61 = vadd.f32 %v19611_v55, %v9633_v34  ;;  %v9722_v23 = vadd.f32 %v19611_v55, %v9637_v33  ;;  %v9726_v60 = vmax.f32 %v19726_v39, 0.0  ;;  %v9730_v32 = vmax.f32 %v19729_v41, 0.0 }
 0x7c7   : > { %v9734_v29 = vmax.f32 %v19732_v10, 0.0  ;;  %v9738_v7 = vmax.f32 %v19735_v21, 0.0  ;;  %v9742_v42 = vmax.f32 %v19738_v35, 0.0  ;;  %v9746_v62 = vmax.f32 %v19741_v25, 0.0 }
 0x7c8   : > { %v9750_v58 = vmax.f32 %v19744_v0, 0.0  ;;  %v9754_v46 = vmax.f32 %v19747_v40, 0.0  ;;  %v9758_v26 = vmax.f32 %v19750_v9, 0.0  ;;  %v9762_v55 = vmax.f32 %v19753_v11, 0.0  ;;  %9790 = vst [vmem:[#allocation2 + $0x18] sm:$0xff] %v9726_v60  ;;  %9794 = vst [vmem:[#allocation2 + $0x48] sm:$0xff] %v9730_v32 }
 0x7c9   : > { %v9766_v47 = vmax.f32 %v19756_v56, 0.0  ;;  %v9770_v52 = vmax.f32 %v19759_v4, 0.0  ;;  %9798 = vst [vmem:[#allocation2 + $0x98] sm:$0xff] %v9734_v29  ;;  %9802 = vst [vmem:[#allocation2 + $0x60] sm:$0xff] %v9738_v7  ;;  %v9774_v13 = vmax.f32 %v9710_v8, 0.0  ;;  %v9778_v37 = vmax.f32 %v9714_v18, 0.0 }
 0x7ca   : > { %v9782_v17 = vmax.f32 %v9718_v61, 0.0  ;;  %v9786_v38 = vmax.f32 %v9722_v23, 0.0  ;;  %9806 = vst [vmem:[#allocation2 + $0x140] sm:$0xff] %v9742_v42  ;;  %9810 = vst [vmem:[#allocation2 + $0x28] sm:$0xff] %v9746_v62 }
 0x7cb   : > { %9814 = vst [vmem:[#allocation2 + $0x30] sm:$0xff] %v9750_v58  ;;  %9818 = vst [vmem:[#allocation2 + $0x8] sm:$0xff] %v9754_v46  ;;  %9854 = sbr.rel (%p12347_p13) target bundleno = 2703 (0xa8f), region = 136 }
 0x7cc   : > { %9822 = vst [vmem:[#allocation2 + $0xc8] sm:$0xff] %v9758_v26  ;;  %9826 = vst [vmem:[#allocation2 + $0x128] sm:$0xff] %v9762_v55 }
 0x7cd   : > { %9830 = vst [vmem:[#allocation2 + $0x78] sm:$0xff] %v9766_v47  ;;  %9834 = vst [vmem:[#allocation2 + $0xd0] sm:$0xff] %v9770_v52 }
 0x7ce   : > { %9838 = vst [vmem:[#allocation2 + $0x1c8] sm:$0xff] %v9774_v13  ;;  %9842 = vst [vmem:[#allocation2 + $0x190] sm:$0xff] %v9778_v37 }
 0x7cf   : > { %9846 = vst [vmem:[#allocation2 + $0x1c0] sm:$0xff] %v9782_v17  ;;  %9850 = vst [vmem:[#allocation2 + $0xa0] sm:$0xff] %v9786_v38 }
 0x7d0   : > { %v9885_v59 = vpack.c.bf16 %v19026_v27, %v19020_v16  ;;  %v9887_v36 = vpack.c.bf16 %v9722_v23, %v9718_v61  ;;  %v9884_v30 = vpack.c.bf16 %v19023_v57, %v19017_v31  ;;  %v9886_v45 = vpack.c.bf16 %v19643_v48, %v19641_v6  ;;  %v20925_v12 = vld [vmem:[#allocation161_spill] sm:$0xff]  ;;  %v20926_v20 = vld [vmem:[#allocation159_spill] sm:$0xff]  ;;  %v20927_v2 = vld [vmem:[#allocation160_spill] sm:$0xff] }
 0x7d1   : > { %v9881_v28 = vpack.c.bf16 %v20925_v12, %v19006_v49  ;;  %v9883_v54 = vpack.c.bf16 %v9714_v18, %v9710_v8  ;;  %v9880_v34 = vpack.c.bf16 %v20927_v2, %v20926_v20  ;;  %v9882_v16 = vpack.c.bf16 %v19639_v3, %v19637_v15  ;;  %v20928_v31 = vld [vmem:[#allocation154_spill] sm:$0xff]  ;;  %v20929_v57 = vld [vmem:[#allocation157_spill] sm:$0xff]  ;;  %v20930_v48 = vld [vmem:[#allocation123_spill] sm:$0xff] }
 0x7d2   : > { %9888 = vmatprep.subr.bf16.mxu0 %v9885_v59  ;;  %9929 = vmatprep.subr.bf16.mxu1 %v9887_v36  ;;  %v9877_v27 = vpack.c.bf16 %v20929_v57, %v20928_v31  ;;  %v9879_v6 = vpack.c.bf16 %v19759_v4, %v19756_v56  ;;  %v14581_v49 = vmov 0   ;;  %v20931_v33 = vld [vmem:[#allocation155_spill] sm:$0xff]  ;;  %v9878_v15 = vpack.c.bf16 %v19635_v50, %v19633_v51  ;;  %v20932_v3 = vld [vmem:[#allocation149_spill] sm:$0xff]  ;;  %v20934_v4 = vld [vmem:[#allocation148_spill] sm:$0xff] }
 0x7d3   : > { %9889 = vmatpush1.bf16.msra.mxu0 %v9884_v30  ;;  %9930 = vmatpush1.bf16.msra.mxu1 %v9886_v45  ;;  %v9876_v8 = vpack.c.bf16 %v20931_v33, %v20930_v48  ;;  %v20933_v18 = vld [vmem:[#allocation151_spill] sm:$0xff]  ;;  %v9875_v56 = vpack.c.bf16 %v19753_v11, %v19750_v9  ;;  %v20935_v23 = vld [vmem:[#allocation150_spill] sm:$0xff]  ;;  %v9874_v32 = vpack.c.bf16 %v19631_v43, %v19629_v24  ;;  %v20937_v51 = vld [vmem:[#allocation116_spill] sm:$0xff]  ;;  %vm14583_vm0 = vmmov 0  }
 0x7d4   : > { %9890 = vmatprep.subr.bf16.mxu0 %v9881_v28  ;;  %9931 = vmatprep.subr.bf16.mxu1 %v9883_v54  ;;  %v9873_v61 = vpack.c.bf16 %v20933_v18, %v20932_v3  ;;  %v9872_v60 = vpack.c.bf16 %v20935_v23, %v20934_v4  ;;  %v20936_v29 = vld [vmem:[#allocation47_spill] sm:$0xff]  ;;  %v9871_v7 = vpack.c.bf16 %v19747_v40, %v19744_v0  ;;  %v20939_v9 = vld [vmem:[#allocation48_spill] sm:$0xff]  ;;  %v20941_v24 = vld [vmem:[#allocation46_spill] sm:$0xff] }
 0x7d5   : > { %9920 = vmatprep.mubr.bf16.mxu0 %v14581_v49  ;;  %9961 = vmatprep.mubr.bf16.mxu1 %v14581_v49  ;;  %v9869_v50 = vpack.c.bf16 %v20937_v51, %v20936_v29  ;;  %v20938_v42 = vld [vmem:[#allocation143_spill] sm:$0xff]  ;;  %v9870_v62 = vpack.c.bf16 %v19627_v53, %v19625_v5  ;;  %v9867_v46 = vpack.c.bf16 %v19741_v25, %v19738_v35  ;;  %v20942_v26 = vld [vmem:[#allocation138_spill] sm:$0xff]  ;;  %v20943_v0 = vld [vmem:[#allocation141_spill] sm:$0xff] }
 0x7d6   : > { %v9868_v11 = vpack.c.bf16 %v20939_v9, %v20938_v42  ;;  %v20940_v58 = vld [vmem:[#allocation139_spill] sm:$0xff]  ;;  %v9864_v40 = vpack.c.bf16 %v20943_v0, %v20942_v26  ;;  %v9866_v55 = vpack.c.bf16 %v19623_v63, %v19621_v14  ;;  %v20945_v5 = vld [vmem:[#allocation137_spill] sm:$0xff]  ;;  %v9863_v52 = vpack.c.bf16 %v19735_v21, %v19732_v10  ;;  %v20946_v13 = vld [vmem:[#allocation134_spill] sm:$0xff] }
 0x7d7   : > { %9891 = vmatpush1.bf16.msra.mxu0 %v9880_v34  ;;  %9932 = vmatpush1.bf16.msra.mxu1 %v9882_v16  ;;  %v9865_v43 = vpack.c.bf16 %v20941_v24, %v20940_v58  ;;  %v20944_v47 = vld [vmem:[#allocation135_spill] sm:$0xff]  ;;  %v20947_v35 = vld [vmem:[#allocation136_spill] sm:$0xff]  ;;  %v9862_v37 = vpack.c.bf16 %v19619_v1, %v19617_v22  ;;  %v20948_v17 = vld [vmem:[#allocation130_spill] sm:$0xff]  ;;  %v9859_v38 = vpack.c.bf16 %v19729_v41, %v19726_v39 }
 0x7d8   : > { %9892 = vmatprep.subr.bf16.mxu0 %v9877_v27  ;;  %9933 = vmatprep.subr.bf16.mxu1 %v9879_v6  ;;  %v9861_v53 = vpack.c.bf16 %v20945_v5, %v20944_v47  ;;  %v9860_v25 = vpack.c.bf16 %v20947_v35, %v20946_v13  ;;  %v20949_v14 = vld [vmem:[#allocation132_spill] sm:$0xff]  ;;  %v20950_v59 = vld [vmem:[#allocation129_spill] sm:$0xff]  ;;  %v20951_v10 = vld [vmem:[#allocation131_spill] sm:$0xff]  ;;  %v9858_v36 = vpack.c.bf16 %v19615_v44, %v19613_v19 }
 0x7d9   : > { %v9857_v63 = vpack.c.bf16 %v20949_v14, %v20948_v17  ;;  %v9856_v21 = vpack.c.bf16 %v20951_v10, %v20950_v59  ;;  %v13926_v30 = vld [vmem:[#allocation16 + $0xac] ss:$12 sps:$4 sm:$0xff]   ;;  %v9855_v1 = vld [vmem:[#allocation14] sm:$0xf]  ;;  %v13924_v45 = vld [vmem:[#allocation16 + $0xa8] ss:$12 sps:$4 sm:$0xff]  }
 0x7da   : > { %v13929_v22 = vld [vmem:[#allocation16 + $0x22c] ss:$12 sps:$4 sm:$0xff]   ;;  %v13927_v12 = vld [vmem:[#allocation16 + $0x228] ss:$12 sps:$4 sm:$0xff]   ;;  %v13930_v41 = vld [vmem:[#allocation16 + $0x90] ss:$12 sps:$4 sm:$0xff]  }
 0x7db   : > { %9893 = vmatpush1.bf16.msra.mxu0 %v9876_v8  ;;  %9934 = vmatpush1.bf16.msra.mxu1 %v9878_v15  ;;  %v13932_v28 = vld [vmem:[#allocation16 + $0x94] ss:$12 sps:$4 sm:$0xff]   ;;  %v13933_v54 = vld [vmem:[#allocation16 + $0x210] ss:$12 sps:$4 sm:$0xff]   ;;  %v13936_v20 = vld [vmem:[#allocation16 + $0x78] ss:$12 sps:$4 sm:$0xff]  }
 0x7dc   : > { %9894 = vmatprep.subr.bf16.mxu0 %v9873_v61  ;;  %9935 = vmatprep.subr.bf16.mxu1 %v9875_v56  ;;  %v13935_v39 = vld [vmem:[#allocation16 + $0x214] ss:$12 sps:$4 sm:$0xff]   ;;  %v13938_v19 = vld [vmem:[#allocation16 + $0x7c] ss:$12 sps:$4 sm:$0xff]   ;;  %v13939_v2 = vld [vmem:[#allocation16 + $0x1f8] ss:$12 sps:$4 sm:$0xff]  }
 0x7dd   : > { %v13941_v44 = vld [vmem:[#allocation16 + $0x1fc] ss:$12 sps:$4 sm:$0xff]   ;;  %v13944_v34 = vld [vmem:[#allocation16 + $0x64] ss:$12 sps:$4 sm:$0xff]   ;;  %v13942_v31 = vld [vmem:[#allocation16 + $0x60] ss:$12 sps:$4 sm:$0xff]  }
 0x7de   : > { %v13947_v16 = vld [vmem:[#allocation16 + $0x1e4] ss:$12 sps:$4 sm:$0xff]   ;;  %v13945_v57 = vld [vmem:[#allocation16 + $0x1e0] ss:$12 sps:$4 sm:$0xff]   ;;  %v13948_v48 = vld [vmem:[#allocation16 + $0x48] ss:$12 sps:$4 sm:$0xff]  }
 0x7df   : > { %9895 = vmatpush1.bf16.msra.mxu0 %v9872_v60  ;;  %9936 = vmatpush1.bf16.msra.mxu1 %v9874_v32  ;;  %v13950_v27 = vld [vmem:[#allocation16 + $0x4c] ss:$12 sps:$4 sm:$0xff]   ;;  %v13951_v33 = vld [vmem:[#allocation16 + $0x1c8] ss:$12 sps:$4 sm:$0xff]   ;;  %v13954_v3 = vld [vmem:[#allocation16 + $0x30] ss:$12 sps:$4 sm:$0xff]  }
 0x7e0   : > { %9896 = vmatprep.subr.bf16.mxu0 %v9869_v50  ;;  %9937 = vmatprep.subr.bf16.mxu1 %v9871_v7  ;;  %v13953_v6 = vld [vmem:[#allocation16 + $0x1cc] ss:$12 sps:$4 sm:$0xff]   ;;  %v13956_v8 = vld [vmem:[#allocation16 + $0x34] ss:$12 sps:$4 sm:$0xff]   ;;  %v13957_v18 = vld [vmem:[#allocation16 + $0x1b0] ss:$12 sps:$4 sm:$0xff]  }
 0x7e1   : > { %v13959_v15 = vld [vmem:[#allocation16 + $0x1b4] ss:$12 sps:$4 sm:$0xff]   ;;  %v13962_v61 = vld [vmem:[#allocation16 + $0x1c] ss:$12 sps:$4 sm:$0xff]   ;;  %v13960_v4 = vld [vmem:[#allocation16 + $0x18] ss:$12 sps:$4 sm:$0xff]  }
 0x7e2   : > { %v13965_v56 = vld [vmem:[#allocation16 + $0x19c] ss:$12 sps:$4 sm:$0xff]   ;;  %v13963_v23 = vld [vmem:[#allocation16 + $0x198] ss:$12 sps:$4 sm:$0xff]   ;;  %v13966_v29 = vld [vmem:[#allocation16] ss:$12 sps:$4 sm:$0xff]  }
 0x7e3   : > { %9897 = vmatpush1.bf16.msra.mxu0 %v9868_v11  ;;  %9938 = vmatpush1.bf16.msra.mxu1 %v9870_v62  ;;  %v13968_v60 = vld [vmem:[#allocation16 + $0x4] ss:$12 sps:$4 sm:$0xff]   ;;  %v13969_v51 = vld [vmem:[#allocation16 + $0x180] ss:$12 sps:$4 sm:$0xff]   ;;  %v13972_v42 = vld [vmem:[#allocation16 + $0x168] ss:$12 sps:$4 sm:$0xff]  }
 0x7e4   : > { %9898 = vmatprep.subr.bf16.mxu0 %v9865_v43  ;;  %9939 = vmatprep.subr.bf16.mxu1 %v9867_v46  ;;  %v13971_v32 = vld [vmem:[#allocation16 + $0x184] ss:$12 sps:$4 sm:$0xff]   ;;  %v13974_v50 = vld [vmem:[#allocation16 + $0x16c] ss:$12 sps:$4 sm:$0xff]   ;;  %v13975_v9 = vld [vmem:[#allocation16 + $0x2e8] ss:$12 sps:$4 sm:$0xff]  }
 0x7e5   : > { %v13977_v7 = vld [vmem:[#allocation16 + $0x2ec] ss:$12 sps:$4 sm:$0xff]   ;;  %v13980_v11 = vld [vmem:[#allocation16 + $0x154] ss:$12 sps:$4 sm:$0xff]   ;;  %v13978_v58 = vld [vmem:[#allocation16 + $0x150] ss:$12 sps:$4 sm:$0xff]  }
 0x7e6   : > { %v13983_v62 = vld [vmem:[#allocation16 + $0x2d4] ss:$12 sps:$4 sm:$0xff]   ;;  %v13981_v24 = vld [vmem:[#allocation16 + $0x2d0] ss:$12 sps:$4 sm:$0xff]   ;;  %v13984_v26 = vld [vmem:[#allocation16 + $0x138] ss:$12 sps:$4 sm:$0xff]  }
 0x7e7   : > { %9899 = vmatpush1.bf16.msra.mxu0 %v9864_v40  ;;  %9940 = vmatpush1.bf16.msra.mxu1 %v9866_v55  ;;  %v13986_v43 = vld [vmem:[#allocation16 + $0x13c] ss:$12 sps:$4 sm:$0xff]   ;;  %v13987_v0 = vld [vmem:[#allocation16 + $0x2b8] ss:$12 sps:$4 sm:$0xff]   ;;  %v13990_v47 = vld [vmem:[#allocation16 + $0x120] ss:$12 sps:$4 sm:$0xff]  }
 0x7e8   : > { %9900 = vmatprep.subr.bf16.mxu0 %v9861_v53  ;;  %9941 = vmatprep.subr.bf16.mxu1 %v9863_v52  ;;  %v13989_v46 = vld [vmem:[#allocation16 + $0x2bc] ss:$12 sps:$4 sm:$0xff]   ;;  %v13992_v40 = vld [vmem:[#allocation16 + $0x124] ss:$12 sps:$4 sm:$0xff]   ;;  %v13993_v5 = vld [vmem:[#allocation16 + $0x2a0] ss:$12 sps:$4 sm:$0xff]  }
 0x7e9   : > { %v13995_v55 = vld [vmem:[#allocation16 + $0x2a4] ss:$12 sps:$4 sm:$0xff]   ;;  %v13998_v53 = vld [vmem:[#allocation16 + $0x10c] ss:$12 sps:$4 sm:$0xff]   ;;  %v13996_v13 = vld [vmem:[#allocation16 + $0x108] ss:$12 sps:$4 sm:$0xff]  }
 0x7ea   : > { %v14001_v52 = vld [vmem:[#allocation16 + $0x28c] ss:$12 sps:$4 sm:$0xff]   ;;  %v13999_v35 = vld [vmem:[#allocation16 + $0x288] ss:$12 sps:$4 sm:$0xff]   ;;  %v14002_v17 = vld [vmem:[#allocation16 + $0xf0] ss:$12 sps:$4 sm:$0xff]  }
 0x7eb   : > { %9901 = vmatpush1.bf16.msra.mxu0 %v9860_v25  ;;  %9942 = vmatpush1.bf16.msra.mxu1 %v9862_v37  ;;  %v14004_v25 = vld [vmem:[#allocation16 + $0xf4] ss:$12 sps:$4 sm:$0xff]   ;;  %v14005_v14 = vld [vmem:[#allocation16 + $0x270] ss:$12 sps:$4 sm:$0xff]   ;;  %v14008_v59 = vld [vmem:[#allocation16 + $0xd8] ss:$12 sps:$4 sm:$0xff]  }
 0x7ec   : > { %9902 = vmatprep.subr.bf16.mxu0 %v9857_v63  ;;  %9943 = vmatprep.subr.bf16.mxu1 %v9859_v38  ;;  %v14007_v37 = vld [vmem:[#allocation16 + $0x274] ss:$12 sps:$4 sm:$0xff]   ;;  %v14010_v63 = vld [vmem:[#allocation16 + $0xdc] ss:$12 sps:$4 sm:$0xff]   ;;  %v14011_v10 = vld [vmem:[#allocation16 + $0x258] ss:$12 sps:$4 sm:$0xff]  }
 0x7ed   : > { %v14013_v38 = vld [vmem:[#allocation16 + $0x25c] ss:$12 sps:$4 sm:$0xff]  }
 0x7ef   : > { %9903 = vmatpush1.bf16.msra.mxu0 %v9856_v21  ;;  %9944 = vmatpush1.bf16.msra.mxu1 %v9858_v36  ;;  %v14016_v21 = vld [vmem:[#allocation16 + $0xc4] ss:$12 sps:$4 sm:$0xff]  }
 0x7f0   : > { %10631 = vmatprep.subr.bf16.mxu0 %v13926_v30  ;;  %10672 = vmatprep.subr.bf16.mxu1 %v13929_v22  ;;  %v14019_v36 = vld [vmem:[#allocation16 + $0x244] ss:$12 sps:$4 sm:$0xff]   ;;  %v14014_v30 = vld [vmem:[#allocation16 + $0xc0] ss:$12 sps:$4 sm:$0xff]  }
 0x7f1   : > { %v14017_v22 = vld [vmem:[#allocation16 + $0x240] ss:$12 sps:$4 sm:$0xff]  }
 0x7f2   : > { %9921 = vmatmul.mubr.bf16.vlgmr.msra.gmra.mxu0 %v9855_v1  ;;  %9962 = vmatmul.mubr.bf16.vlgmr.msra.gmra.mxu1 %v9855_v1  ;;  %v14020_v1 = vld [vmem:[#allocation16 + $0x170] ss:$12 sps:$4 sm:$0xff]  }
 0x7f3   : > { %10632 = vmatpush1.bf16.msra.mxu0 %v13924_v45  ;;  %10673 = vmatpush1.bf16.msra.mxu1 %v13927_v12  ;;  %v14021_v45 = vld [vmem:[#allocation16 + $0x2f0] ss:$12 sps:$4 sm:$0xff]  }
 0x7f4   : > { %10633 = vmatprep.subr.bf16.mxu0 %v13932_v28  ;;  %10674 = vmatprep.subr.bf16.mxu1 %v13935_v39 }
 0x7f7   : > { %10634 = vmatpush1.bf16.msra.mxu0 %v13930_v41  ;;  %10675 = vmatpush1.bf16.msra.mxu1 %v13933_v54 }
 0x7f8   : > { %10635 = vmatprep.subr.bf16.mxu0 %v13938_v19  ;;  %10676 = vmatprep.subr.bf16.mxu1 %v13941_v44 }
 0x7fb   : > { %10636 = vmatpush1.bf16.msra.mxu0 %v13936_v20  ;;  %10677 = vmatpush1.bf16.msra.mxu1 %v13939_v2  ;;  %v14022_v20 = vld [vmem:[#allocation16 + $0xb0] ss:$12 sps:$4 sm:$0xff]  }
 0x7fc   : > { %10637 = vmatprep.subr.bf16.mxu0 %v13944_v34  ;;  %10678 = vmatprep.subr.bf16.mxu1 %v13947_v16  ;;  %v14023_v2 = vld [vmem:[#allocation16 + $0x230] ss:$12 sps:$4 sm:$0xff]  }
 0x7ff   : > { %10638 = vmatpush1.bf16.msra.mxu0 %v13942_v31  ;;  %10679 = vmatpush1.bf16.msra.mxu1 %v13945_v57  ;;  %v14024_v57 = vld [vmem:[#allocation16 + $0x158] ss:$12 sps:$4 sm:$0xff]  }
 0x800   : > { %10639 = vmatprep.subr.bf16.mxu0 %v13950_v27  ;;  %10680 = vmatprep.subr.bf16.mxu1 %v13953_v6  ;;  %v14025_v27 = vld [vmem:[#allocation16 + $0x2d8] ss:$12 sps:$4 sm:$0xff]  }
 0x803   : > { %10640 = vmatpush1.bf16.msra.mxu0 %v13948_v48  ;;  %10681 = vmatpush1.bf16.msra.mxu1 %v13951_v33  ;;  %v14026_v33 = vld [vmem:[#allocation16 + $0x98] ss:$12 sps:$4 sm:$0xff]  }
 0x804   : > { %10641 = vmatprep.subr.bf16.mxu0 %v13956_v8  ;;  %10682 = vmatprep.subr.bf16.mxu1 %v13959_v15  ;;  %v14027_v8 = vld [vmem:[#allocation16 + $0x218] ss:$12 sps:$4 sm:$0xff]   ;;  %v14028_v15 = vld [vmem:[#allocation16 + $0x140] ss:$12 sps:$4 sm:$0xff]  }
 0x807   : > { %10642 = vmatpush1.bf16.msra.mxu0 %v13954_v3  ;;  %10683 = vmatpush1.bf16.msra.mxu1 %v13957_v18  ;;  %v14029_v3 = vld [vmem:[#allocation16 + $0x2c0] ss:$12 sps:$4 sm:$0xff]  }
 0x808   : > { %10643 = vmatprep.subr.bf16.mxu0 %v13962_v61  ;;  %10684 = vmatprep.subr.bf16.mxu1 %v13965_v56  ;;  %v14030_v18 = vld [vmem:[#allocation16 + $0x80] ss:$12 sps:$4 sm:$0xff]   ;;  %v14032_v56 = vld [vmem:[#allocation16 + $0x128] ss:$12 sps:$4 sm:$0xff]  }
 0x809   : > { %v14031_v61 = vld [vmem:[#allocation16 + $0x200] ss:$12 sps:$4 sm:$0xff]  }
 0x80b   : > { %10644 = vmatpush1.bf16.msra.mxu0 %v13960_v4  ;;  %10685 = vmatpush1.bf16.msra.mxu1 %v13963_v23  ;;  %v14033_v4 = vld [vmem:[#allocation16 + $0x2a8] ss:$12 sps:$4 sm:$0xff]  }
 0x80c   : > { %10645 = vmatprep.subr.bf16.mxu0 %v13968_v60  ;;  %10686 = vmatprep.subr.bf16.mxu1 %v13971_v32  ;;  %v14034_v23 = vld [vmem:[#allocation16 + $0x68] ss:$12 sps:$4 sm:$0xff]   ;;  %v14036_v32 = vld [vmem:[#allocation16 + $0x110] ss:$12 sps:$4 sm:$0xff]  }
 0x80d   : > { %v14035_v60 = vld [vmem:[#allocation16 + $0x1e8] ss:$12 sps:$4 sm:$0xff]  }
 0x80f   : > { %10646 = vmatpush1.bf16.msra.mxu0 %v13966_v29  ;;  %10687 = vmatpush1.bf16.msra.mxu1 %v13969_v51  ;;  %v14037_v29 = vld [vmem:[#allocation16 + $0x290] ss:$12 sps:$4 sm:$0xff]  }
 0x810   : > { %10647 = vmatprep.subr.bf16.mxu0 %v13974_v50  ;;  %10688 = vmatprep.subr.bf16.mxu1 %v13977_v7  ;;  %v14038_v51 = vld [vmem:[#allocation16 + $0x50] ss:$12 sps:$4 sm:$0xff]   ;;  %v14040_v7 = vld [vmem:[#allocation16 + $0xf8] ss:$12 sps:$4 sm:$0xff]  }
 0x811   : > { %v14039_v50 = vld [vmem:[#allocation16 + $0x1d0] ss:$12 sps:$4 sm:$0xff]  }
 0x813   : > { %10648 = vmatpush2.bf16.msra.mxu0 %v13972_v42  ;;  %10689 = vmatpush2.bf16.msra.mxu1 %v13975_v9  ;;  %v14041_v42 = vld [vmem:[#allocation16 + $0x278] ss:$12 sps:$4 sm:$0xff]  }
 0x814   : > { %10649 = vmatprep.subr.bf16.mxu0 %v13980_v11  ;;  %10690 = vmatprep.subr.bf16.mxu1 %v13983_v62  ;;  %v14042_v9 = vld [vmem:[#allocation16 + $0x38] ss:$12 sps:$4 sm:$0xff]   ;;  %v14044_v62 = vld [vmem:[#allocation16 + $0xe0] ss:$12 sps:$4 sm:$0xff]  }
 0x815   : > { %v14043_v11 = vld [vmem:[#allocation16 + $0x1b8] ss:$12 sps:$4 sm:$0xff]  }
 0x817   : > { %10650 = vmatpush2.bf16.msra.mxu0 %v13978_v58  ;;  %10691 = vmatpush2.bf16.msra.mxu1 %v13981_v24  ;;  %v14045_v58 = vld [vmem:[#allocation16 + $0x260] ss:$12 sps:$4 sm:$0xff]  }
 0x818   : > { %10651 = vmatprep.subr.bf16.mxu0 %v13986_v43  ;;  %10692 = vmatprep.subr.bf16.mxu1 %v13989_v46  ;;  %v14046_v24 = vld [vmem:[#allocation16 + $0x20] ss:$12 sps:$4 sm:$0xff]   ;;  %v14048_v46 = vld [vmem:[#allocation16 + $0xc8] ss:$12 sps:$4 sm:$0xff]  }
 0x819   : > { %v14047_v43 = vld [vmem:[#allocation16 + $0x1a0] ss:$12 sps:$4 sm:$0xff]  }
 0x81b   : > { %10652 = vmatpush2.bf16.msra.mxu0 %v13984_v26  ;;  %10693 = vmatpush2.bf16.msra.mxu1 %v13987_v0  ;;  %v14049_v26 = vld [vmem:[#allocation16 + $0x248] ss:$12 sps:$4 sm:$0xff]  }
 0x81c   : > { %10653 = vmatprep.subr.bf16.mxu0 %v13992_v40  ;;  %10694 = vmatprep.subr.bf16.mxu1 %v13995_v55  ;;  %v14050_v0 = vld [vmem:[#allocation16 + $0x8] ss:$12 sps:$4 sm:$0xff]   ;;  %v14054_v55 = vld [vmem:[#allocation19 + $0xac] ss:$12 sps:$4 sm:$0xff]  }
 0x81d   : > { %v14051_v40 = vld [vmem:[#allocation16 + $0x188] ss:$12 sps:$4 sm:$0xff]  }
 0x81f   : > { %10654 = vmatpush2.bf16.msra.mxu0 %v13990_v47  ;;  %10695 = vmatpush2.bf16.msra.mxu1 %v13993_v5  ;;  %v14052_v47 = vld [vmem:[#allocation19 + $0xa8] ss:$12 sps:$4 sm:$0xff]  }
 0x820   : > { %10655 = vmatprep.subr.bf16.mxu0 %v13998_v53  ;;  %10696 = vmatprep.subr.bf16.mxu1 %v14001_v52  ;;  %v14057_v5 = vld [vmem:[#allocation19 + $0x94] ss:$12 sps:$4 sm:$0xff]   ;;  %v14055_v53 = vld [vmem:[#allocation19 + $0x90] ss:$12 sps:$4 sm:$0xff]  }
 0x821   : > { %v14060_v52 = vld [vmem:[#allocation19 + $0x7c] ss:$12 sps:$4 sm:$0xff]  }
 0x823   : > { %10656 = vmatpush2.bf16.msra.mxu0 %v13996_v13  ;;  %10697 = vmatpush2.bf16.msra.mxu1 %v13999_v35  ;;  %v14058_v13 = vld [vmem:[#allocation19 + $0x78] ss:$12 sps:$4 sm:$0xff]  }
 0x824   : > { %10657 = vmatprep.subr.bf16.mxu0 %v14004_v25  ;;  %10698 = vmatprep.subr.bf16.mxu1 %v14007_v37  ;;  %v14063_v35 = vld [vmem:[#allocation19 + $0x64] ss:$12 sps:$4 sm:$0xff]   ;;  %v14061_v25 = vld [vmem:[#allocation19 + $0x60] ss:$12 sps:$4 sm:$0xff]  }
 0x825   : > { %v14066_v37 = vld [vmem:[#allocation19 + $0x4c] ss:$12 sps:$4 sm:$0xff]  }
 0x827   : > { %10658 = vmatpush2.bf16.msra.mxu0 %v14002_v17  ;;  %10699 = vmatpush2.bf16.msra.mxu1 %v14005_v14  ;;  %v14064_v17 = vld [vmem:[#allocation19 + $0x48] ss:$12 sps:$4 sm:$0xff]  }
 0x828   : > { %10659 = vmatprep.subr.bf16.mxu0 %v14010_v63  ;;  %10700 = vmatprep.subr.bf16.mxu1 %v14013_v38  ;;  %v14069_v14 = vld [vmem:[#allocation19 + $0x34] ss:$12 sps:$4 sm:$0xff]   ;;  %v14067_v63 = vld [vmem:[#allocation19 + $0x30] ss:$12 sps:$4 sm:$0xff]  }
 0x829   : > { %v14072_v38 = vld [vmem:[#allocation19 + $0x1c] ss:$12 sps:$4 sm:$0xff]  }
 0x82b   : > { %10660 = vmatpush2.bf16.msra.mxu0 %v14008_v59  ;;  %10701 = vmatpush2.bf16.msra.mxu1 %v14011_v10  ;;  %v14075_v59 = vld [vmem:[#allocation19 + $0x4] ss:$12 sps:$4 sm:$0xff]   ;;  %v14073_v10 = vld [vmem:[#allocation19] ss:$12 sps:$4 sm:$0xff]  }
 0x82c   : > { %10661 = vmatprep.subr.bf16.mxu0 %v14016_v21  ;;  %10702 = vmatprep.subr.bf16.mxu1 %v14019_v36  ;;  %v14078_v21 = vld [vmem:[#allocation19 + $0x16c] ss:$12 sps:$4 sm:$0xff]   ;;  %v14076_v36 = vld [vmem:[#allocation19 + $0x168] ss:$12 sps:$4 sm:$0xff]  }
 0x82f   : > { %10662 = vmatpush2.bf16.msra.mxu0 %v14014_v30  ;;  %10703 = vmatpush2.bf16.msra.mxu1 %v14017_v22  ;;  %v14081_v30 = vld [vmem:[#allocation19 + $0x154] ss:$12 sps:$4 sm:$0xff]   ;;  %v14079_v22 = vld [vmem:[#allocation19 + $0x150] ss:$12 sps:$4 sm:$0xff]  }
 0x830   : > { %12552 = vmatprep.subr.bf16.mxu0 %v14020_v1  ;;  %12574 = vmatprep.subr.bf16.mxu1 %v14021_v45  ;;  %v14084_v1 = vld [vmem:[#allocation19 + $0x13c] ss:$12 sps:$4 sm:$0xff]   ;;  %v14082_v45 = vld [vmem:[#allocation19 + $0x138] ss:$12 sps:$4 sm:$0xff]  }
 0x8b2   : > { %v9922_v12 = vpop.f32.mrf.mxu0  ;;  %v9963_v28 = vpop.f32.mrf.mxu1 }
 0x8b3   : > { %v19840_v39 = vpack.c.bf16 %v9963_v28, %v9963_v28  ;;  %v19842_v34 = vpack.c.bf16 %v9922_v12, %v9922_v12  ;;  %v14087_v12 = vld [vmem:[#allocation19 + $0x124] ss:$12 sps:$4 sm:$0xff]   ;;  %v14085_v28 = vld [vmem:[#allocation19 + $0x120] ss:$12 sps:$4 sm:$0xff]  }
 0x8b4   : > { %v9924_v41 = vpop.f32.mrf.mxu0  ;;  %v9965_v54 = vpop.f32.mrf.mxu1 }
 0x8b5   : > { %v9971_v19 = vpack.c.bf16 %v9924_v41, %v9924_v41  ;;  %v9973_v44 = vpack.c.bf16 %v9965_v54, %v9965_v54  ;;  %v14102_v41 = vld [vmem:[#allocation19 + $0x22c] ss:$12 sps:$4 sm:$0xff]   ;;  %v14100_v54 = vld [vmem:[#allocation19 + $0x228] ss:$12 sps:$4 sm:$0xff]  }
 0x8b6   : > { %v9926_v16 = vpop.f32.mrf.mxu0  ;;  %v9967_v31 = vpop.f32.mrf.mxu1 }
 0x8b7   : > { %10663 = vmatprep.mubr.bf16.mxu0 %v9971_v19  ;;  %10704 = vmatprep.mubr.bf16.mxu1 %v9973_v44  ;;  %v14108_v16 = vld [vmem:[#allocation19 + $0x1f8] ss:$12 sps:$4 sm:$0xff]   ;;  %v14110_v31 = vld [vmem:[#allocation19 + $0x1fc] ss:$12 sps:$4 sm:$0xff]  }
 0x8b8   : > { %v9927_v6 = vpop.f32.mrf.mxu0  ;;  %v9968_v48 = vpop.f32.mrf.mxu1  ;;  %10664 = vmatmul.mubr.bf16.vlgmr.msra.gmra.mxu0 %v19842_v34  ;;  %10705 = vmatmul.mubr.bf16.vlgmr.msra.gmra.mxu1 %v19840_v39 }
 0x8b9   : > { %12553 = vmatpush3.bf16.msra.mxu0 %v14022_v20  ;;  %12575 = vmatpush3.bf16.msra.mxu1 %v14023_v2  ;;  %v14106_v20 = vld [vmem:[#allocation19 + $0x214] ss:$12 sps:$4 sm:$0xff]   ;;  %v14114_v48 = vld [vmem:[#allocation19 + $0x1e4] ss:$12 sps:$4 sm:$0xff]  }
 0x8ba   : > { %10745 = vmatprep.mubr.bf16.mxu0 %v9971_v19  ;;  %10785 = vmatprep.mubr.bf16.mxu1 %v9973_v44  ;;  %v14088_v19 = vld [vmem:[#allocation19 + $0x108] ss:$12 sps:$4 sm:$0xff]   ;;  %v14104_v44 = vld [vmem:[#allocation19 + $0x210] ss:$12 sps:$4 sm:$0xff]   ;;  %v14112_v6 = vld [vmem:[#allocation19 + $0x1e0] ss:$12 sps:$4 sm:$0xff]  }
 0x8bb   : > { %12554 = vmatprep.subr.bf16.mxu0 %v14024_v57  ;;  %12576 = vmatprep.subr.bf16.mxu1 %v14025_v27  ;;  %v14093_v2 = vld [vmem:[#allocation19 + $0xf4] ss:$12 sps:$4 sm:$0xff]   ;;  %v14096_v57 = vld [vmem:[#allocation19 + $0xdc] ss:$12 sps:$4 sm:$0xff]   ;;  %v14094_v27 = vld [vmem:[#allocation19 + $0xd8] ss:$12 sps:$4 sm:$0xff]  }
 0x8bd   : > { %12555 = vmatpush3.bf16.msra.mxu0 %v14026_v33  ;;  %12577 = vmatpush3.bf16.msra.mxu1 %v14027_v8  ;;  %v14099_v33 = vld [vmem:[#allocation19 + $0xc4] ss:$12 sps:$4 sm:$0xff]   ;;  %v14097_v8 = vld [vmem:[#allocation19 + $0xc0] ss:$12 sps:$4 sm:$0xff]  }
 0x8be   : > { %12556 = vmatprep.subr.bf16.mxu0 %v14028_v15  ;;  %12578 = vmatprep.subr.bf16.mxu1 %v14029_v3  ;;  %v14116_v15 = vld [vmem:[#allocation19 + $0x1c8] ss:$12 sps:$4 sm:$0xff]   ;;  %v14118_v3 = vld [vmem:[#allocation19 + $0x1cc] ss:$12 sps:$4 sm:$0xff]  }
 0x8c1   : > { %12557 = vmatpush3.bf16.msra.mxu0 %v14030_v18  ;;  %12579 = vmatpush3.bf16.msra.mxu1 %v14031_v61  ;;  %v14582_v18 = vmov 0.0   ;;  %v14122_v61 = vld [vmem:[#allocation19 + $0x1b4] ss:$12 sps:$4 sm:$0xff]  }
 0x8c2   : > { %12558 = vmatprep.subr.bf16.mxu0 %v14032_v56  ;;  %12580 = vmatprep.subr.bf16.mxu1 %v14033_v4  ;;  %v14120_v56 = vld [vmem:[#allocation19 + $0x1b0] ss:$12 sps:$4 sm:$0xff]  }
 0x8c3   : > { %v14126_v4 = vld [vmem:[#allocation19 + $0x19c] ss:$12 sps:$4 sm:$0xff]  }
 0x8c5   : > { %12559 = vmatpush3.bf16.msra.mxu0 %v14034_v23  ;;  %12581 = vmatpush3.bf16.msra.mxu1 %v14035_v60  ;;  %v14124_v23 = vld [vmem:[#allocation19 + $0x198] ss:$12 sps:$4 sm:$0xff]  }
 0x8c6   : > { %12560 = vmatprep.subr.bf16.mxu0 %v14036_v32  ;;  %12582 = vmatprep.subr.bf16.mxu1 %v14037_v29  ;;  %v14130_v60 = vld [vmem:[#allocation19 + $0x184] ss:$12 sps:$4 sm:$0xff]   ;;  %v14128_v32 = vld [vmem:[#allocation19 + $0x180] ss:$12 sps:$4 sm:$0xff]  }
 0x8c7   : > { %v14132_v29 = vld [vmem:[#allocation19 + $0x170] ss:$12 sps:$4 sm:$0xff]  }
 0x8c9   : > { %12561 = vmatpush3.bf16.msra.mxu0 %v14038_v51  ;;  %12583 = vmatpush3.bf16.msra.mxu1 %v14039_v50  ;;  %v10102_v51 = vld [vmem:[#allocation17] sm:$0x7]  ;;  %v20952_v50 = vld [vmem:[#allocation188_spill] sm:$0xff] }
 0x8ca   : > { %12562 = vmatprep.subr.bf16.mxu0 %v14040_v7  ;;  %12584 = vmatprep.subr.bf16.mxu1 %v14041_v42  ;;  %v10107_v7 = vrot.slane %v10102_v51, %v20952_v50  ;;  %v20953_v42 = vld [vmem:[#allocation189_spill] sm:$0xff] }
 0x8cd   : > { %12563 = vmatpush3.bf16.msra.mxu0 %v14042_v9  ;;  %12585 = vmatpush3.bf16.msra.mxu1 %v14043_v11  ;;  %v10111_v9 = vrot.slane %v10102_v51, %v20953_v42 }
 0x8ce   : > { %12564 = vmatprep.subr.bf16.mxu0 %v14044_v62  ;;  %12586 = vmatprep.subr.bf16.mxu1 %v14045_v58 }
 0x8d1   : > { %12565 = vmatpush3.bf16.msra.mxu0 %v14046_v24  ;;  %12587 = vmatpush3.bf16.msra.mxu1 %v14047_v43 }
 0x8d2   : > { %12566 = vmatprep.subr.bf16.mxu0 %v14048_v46  ;;  %12588 = vmatprep.subr.bf16.mxu1 %v14049_v26 }
 0x8d5   : > { %12567 = vmatpush3.bf16.msra.mxu0 %v14050_v0  ;;  %12589 = vmatpush3.bf16.msra.mxu1 %v14051_v40 }
 0x8d6   : > { %11296 = vmatprep.subr.bf16.mxu0 %v14054_v55  ;;  %11337 = vmatprep.subr.bf16.mxu1 %v14102_v41  ;;  %v14131_v41 = vld [vmem:[#allocation19 + $0x188] ss:$12 sps:$4 sm:$0xff]  }
 0x8d8   : > { %10746 = vmatmul.mubr.bf16.vlgmr.msra.gmra.mxu0 %v19842_v34  ;;  %10786 = vmatmul.mubr.bf16.vlgmr.msra.gmra.mxu1 %v19840_v39  ;;  %v14090_v39 = vld [vmem:[#allocation19 + $0x10c] ss:$12 sps:$4 sm:$0xff]   ;;  %v14091_v34 = vld [vmem:[#allocation19 + $0xf0] ss:$12 sps:$4 sm:$0xff]  }
 0x8d9   : > { %11297 = vmatpush1.bf16.msra.mxu0 %v14052_v47  ;;  %11369 = vmatprep.mubr.bf16.mxu1 %v14581_v49  ;;  %v14070_v49 = vld [vmem:[#allocation19 + $0x18] ss:$12 sps:$4 sm:$0xff]  }
 0x8da   : > { %11298 = vmatprep.subr.bf16.mxu0 %v14057_v5  ;;  %11338 = vmatpush1.bf16.msra.mxu1 %v14100_v54 }
 0x8db   : > { %11339 = vmatprep.subr.bf16.mxu1 %v14106_v20 }
 0x8dd   : > { %11299 = vmatpush1.bf16.msra.mxu0 %v14055_v53 }
 0x8de   : > { %11300 = vmatprep.subr.bf16.mxu0 %v14060_v52  ;;  %11340 = vmatpush1.bf16.msra.mxu1 %v14104_v44 }
 0x8df   : > { %11341 = vmatprep.subr.bf16.mxu1 %v14110_v31  ;;  %v14135_v31 = vld [vmem:[#allocation19 + $0x98] ss:$12 sps:$4 sm:$0xff]  }
 0x8e1   : > { %11301 = vmatpush1.bf16.msra.mxu0 %v14058_v13 }
 0x8e2   : > { %11302 = vmatprep.subr.bf16.mxu0 %v14063_v35  ;;  %11342 = vmatpush1.bf16.msra.mxu1 %v14108_v16  ;;  %v14103_v35 = vld [vmem:[#allocation19 + $0x230] ss:$12 sps:$4 sm:$0xff]   ;;  %v14134_v16 = vld [vmem:[#allocation19 + $0x158] ss:$12 sps:$4 sm:$0xff]  }
 0x8e3   : > { %11343 = vmatprep.subr.bf16.mxu1 %v14114_v48  ;;  %v14139_v48 = vld [vmem:[#allocation19 + $0x68] ss:$12 sps:$4 sm:$0xff]  }
 0x8e5   : > { %11303 = vmatpush1.bf16.msra.mxu0 %v14061_v25 }
 0x8e6   : > { %11304 = vmatprep.subr.bf16.mxu0 %v14066_v37  ;;  %11344 = vmatpush1.bf16.msra.mxu1 %v14112_v6  ;;  %v14107_v37 = vld [vmem:[#allocation19 + $0x218] ss:$12 sps:$4 sm:$0xff]   ;;  %v14138_v6 = vld [vmem:[#allocation19 + $0x128] ss:$12 sps:$4 sm:$0xff]  }
 0x8e7   : > { %11345 = vmatprep.subr.bf16.mxu1 %v14118_v3  ;;  %v14143_v3 = vld [vmem:[#allocation19 + $0x38] ss:$12 sps:$4 sm:$0xff]  }
 0x8e9   : > { %11305 = vmatpush1.bf16.msra.mxu0 %v14064_v17  ;;  %v14111_v17 = vld [vmem:[#allocation19 + $0x200] ss:$12 sps:$4 sm:$0xff]  }
 0x8ea   : > { %11306 = vmatprep.subr.bf16.mxu0 %v14069_v14  ;;  %11346 = vmatpush1.bf16.msra.mxu1 %v14116_v15  ;;  %v14115_v14 = vld [vmem:[#allocation19 + $0x1e8] ss:$12 sps:$4 sm:$0xff]   ;;  %v14142_v15 = vld [vmem:[#allocation19 + $0xf8] ss:$12 sps:$4 sm:$0xff]  }
 0x8eb   : > { %11347 = vmatprep.subr.bf16.mxu1 %v14122_v61  ;;  %v14145_v61 = vld [vmem:[#allocation19 + $0x20] ss:$12 sps:$4 sm:$0xff]  }
 0x8ed   : > { %11307 = vmatpush1.bf16.msra.mxu0 %v14067_v63  ;;  %v14119_v63 = vld [vmem:[#allocation19 + $0x1d0] ss:$12 sps:$4 sm:$0xff]  }
 0x8ee   : > { %11308 = vmatprep.subr.bf16.mxu0 %v14072_v38  ;;  %11348 = vmatpush1.bf16.msra.mxu1 %v14120_v56  ;;  %v14123_v38 = vld [vmem:[#allocation19 + $0x1b8] ss:$12 sps:$4 sm:$0xff]   ;;  %v14146_v56 = vld [vmem:[#allocation19 + $0xc8] ss:$12 sps:$4 sm:$0xff]  }
 0x8ef   : > { %11349 = vmatprep.subr.bf16.mxu1 %v14126_v4  ;;  %v14147_v4 = vld [vmem:[#allocation19 + $0x8] ss:$12 sps:$4 sm:$0xff]  }
 0x8f1   : > { %11309 = vmatpush1.bf16.msra.mxu0 %v14070_v49 }
 0x8f2   : > { %11310 = vmatprep.subr.bf16.mxu0 %v14075_v59  ;;  %11350 = vmatpush1.bf16.msra.mxu1 %v14124_v23 }
 0x8f3   : > { %11351 = vmatprep.subr.bf16.mxu1 %v14130_v60 }
 0x8f5   : > { %11311 = vmatpush1.bf16.msra.mxu0 %v14073_v10  ;;  %v20954_v10 = vld [vmem:[#allocation106_spill] sm:$0xff] }
 0x8f6   : > { %11312 = vmatprep.subr.bf16.mxu0 %v14078_v21  ;;  %11352 = vmatpush1.bf16.msra.mxu1 %v14128_v32  ;;  %v10115_v21 = vrot.slane %v10102_v51, %v20954_v10  ;;  %v10895_v51 = vld [vmem:[#allocation20] sm:$0x7] }
 0x8f7   : > { %12596 = vmatprep.subr.bf16.mxu1 %v14132_v29 }
 0x8f9   : > { %11313 = vmatpush2.bf16.msra.mxu0 %v14076_v36  ;;  %v14127_v36 = vld [vmem:[#allocation19 + $0x1a0] ss:$12 sps:$4 sm:$0xff]  }
 0x8fa   : > { %11314 = vmatprep.subr.bf16.mxu0 %v14081_v30 }
 0x8fd   : > { %11315 = vmatpush2.bf16.msra.mxu0 %v14079_v22 }
 0x8fe   : > { %11316 = vmatprep.subr.bf16.mxu0 %v14084_v1 }
 0x901   : > { %11317 = vmatpush2.bf16.msra.mxu0 %v14082_v45 }
 0x902   : > { %11318 = vmatprep.subr.bf16.mxu0 %v14087_v12 }
 0x905   : > { %11319 = vmatpush2.bf16.msra.mxu0 %v14085_v28 }
 0x906   : > { %11320 = vmatprep.subr.bf16.mxu0 %v14090_v39 }
 0x909   : > { %11321 = vmatpush2.bf16.msra.mxu0 %v14088_v19 }
 0x90a   : > { %11322 = vmatprep.subr.bf16.mxu0 %v14093_v2  ;;  %v14133_v2 = vld [vmem:[#allocation19 + $0xb0] ss:$12 sps:$4 sm:$0xff]  }
 0x90d   : > { %11323 = vmatpush2.bf16.msra.mxu0 %v14091_v34 }
 0x90e   : > { %11324 = vmatprep.subr.bf16.mxu0 %v14096_v57  ;;  %v14136_v57 = vld [vmem:[#allocation19 + $0x140] ss:$12 sps:$4 sm:$0xff]  }
 0x911   : > { %11325 = vmatpush2.bf16.msra.mxu0 %v14094_v27  ;;  %v14137_v27 = vld [vmem:[#allocation19 + $0x80] ss:$12 sps:$4 sm:$0xff]  }
 0x912   : > { %11326 = vmatprep.subr.bf16.mxu0 %v14099_v33  ;;  %v14140_v33 = vld [vmem:[#allocation19 + $0x110] ss:$12 sps:$4 sm:$0xff]  }
 0x915   : > { %11327 = vmatpush2.bf16.msra.mxu0 %v14097_v8  ;;  %v14141_v8 = vld [vmem:[#allocation19 + $0x50] ss:$12 sps:$4 sm:$0xff]  }
 0x916   : > { %12691 = vmatprep.subr.bf16.mxu0 %v14582_v18 }
 0x978   : > { %v10665_v11 = vpop.f32.mrf.mxu0  ;;  %v10706_v62 = vpop.f32.mrf.mxu1 }
 0x979   : > { %v10666_v58 = vadd.f32 %v10665_v11, %v10107_v7  ;;  %v10900_v7 = vrot.slane %v10895_v51, %v20952_v50 }
 0x97a   : > { %v10667_v24 = vpop.f32.mrf.mxu0  ;;  %v10708_v43 = vpop.f32.mrf.mxu1 }
 0x97b   : > { %v10707_v46 = vadd.f32 %v10706_v62, %v10666_v58  ;;  %v10668_v26 = vadd.f32 %v10667_v24, %v10111_v9  ;;  %v10904_v9 = vrot.slane %v10895_v51, %v20953_v42 }
 0x97c   : > { %v10669_v0 = vpop.f32.mrf.mxu0  ;;  %v10710_v40 = vpop.f32.mrf.mxu1 }
 0x97d   : > { %v10709_v55 = vadd.f32 %v10708_v43, %v10668_v26  ;;  %v10793_v47 = vmax.f32 %v10707_v46, 0.0 }
 0x97e   : > { %v10670_v5 = vpop.f32.mrf.mxu0  ;;  %v10711_v53 = vpop.f32.mrf.mxu1 }
 0x97f   : > { %v10794_v52 = vmax.f32 %v10709_v55, 0.0  ;;  %v19852_v25 = vpack.c.bf16 %v10793_v47, %v10793_v47  ;;  %v10908_v5 = vrot.slane %v10895_v51, %v20954_v10 }
 0x981   : > { %v10797_v13 = vpack.c.bf16 %v10794_v52, %v10794_v52 }
 0x983   : > { %11328 = vmatprep.mubr.bf16.mxu0 %v10797_v13 }
 0x984   : > { %11329 = vmatmul.mubr.bf16.vlgmr.msra.gmra.mxu0 %v19852_v25 }
 0x985   : > { %12692 = vmatpush3.bf16.msra.mxu0 %v14103_v35  ;;  %12707 = vmatprep.mubr.msk.bf16.mxu0 %vm14583_vm0, %v14582_v18 }
 0x986   : > { %12693 = vmatprep.subr.bf16.mxu0 %v14582_v18 }
 0x989   : > { %12694 = vmatpush3.bf16.msra.mxu0 %v14107_v37 }
 0x98a   : > { %12695 = vmatprep.subr.bf16.mxu0 %v14582_v18 }
 0x98d   : > { %12696 = vmatpush3.bf16.msra.mxu0 %v14111_v17 }
 0x98e   : > { %12697 = vmatprep.subr.bf16.mxu0 %v14582_v18 }
 0x991   : > { %12698 = vmatpush3.bf16.msra.mxu0 %v14115_v14 }
 0x992   : > { %12699 = vmatprep.subr.bf16.mxu0 %v14582_v18 }
 0x995   : > { %12700 = vmatpush3.bf16.msra.mxu0 %v14119_v63 }
 0x996   : > { %12701 = vmatprep.subr.bf16.mxu0 %v14582_v18 }
 0x998   : > { %v12568_v49 = vpop.f32.mrf.mxu0  ;;  %v12590_v59 = vpop.f32.mrf.mxu1 }
 0x999   : > { %12702 = vmatpush3.bf16.msra.mxu0 %v14123_v38 }
 0x99a   : > { %v12569_v30 = vpop.f32.mrf.mxu0  ;;  %v12591_v22 = vpop.f32.mrf.mxu1  ;;  %12703 = vmatprep.subr.bf16.mxu0 %v14582_v18 }
 0x99b   : > { %v12570_v1 = vadd.f32 %v12569_v30, %v12568_v49  ;;  %v12592_v39 = vadd.f32 %v12591_v22, %v12590_v59 }
 0x99c   : > { %v12571_v45 = vpop.f32.mrf.mxu0  ;;  %v12593_v12 = vpop.f32.mrf.mxu1 }
 0x99d   : > { %v10748_v28 = vadd.f32 %v12570_v1, %v10115_v21  ;;  %12704 = vmatpush3.bf16.msra.mxu0 %v14127_v36 }
 0x99e   : > { %v12572_v54 = vpop.f32.mrf.mxu0  ;;  %v12594_v19 = vpop.f32.mrf.mxu1  ;;  %12705 = vmatprep.subr.bf16.mxu0 %v14582_v18  ;;  %v14144_v18 = vld [vmem:[#allocation19 + $0xe0] ss:$12 sps:$4 sm:$0xff]  }
 0x99f   : > { %v10788_v44 = vadd.f32 %v12592_v39, %v10748_v28 }
 0x9a1   : > { %v10795_v20 = vmax.f32 %v10788_v44, 0.0  ;;  %12706 = vmatpush3.bf16.msra.mxu0 %v14131_v41 }
 0x9a3   : > { %v10798_v34 = vpack.c.bf16 %v10795_v20, %v10795_v20 }
 0x9a5   : > { %11370 = vmatmul.mubr.bf16.vlgmr.msra.gmra.mxu1 %v10798_v34  ;;  %12708 = vmatmul.mubr.bf16.vlgmr.msra.gmra.mxu0 %v10798_v34 }
 0x9a6   : > { %12597 = vmatpush3.bf16.msra.mxu1 %v14133_v2  ;;  %11410 = vmatprep.mubr.bf16.mxu1 %v10797_v13 }
 0x9a7   : > { %12598 = vmatprep.subr.bf16.mxu1 %v14134_v16 }
 0x9aa   : > { %12599 = vmatpush3.bf16.msra.mxu1 %v14135_v31 }
 0x9ab   : > { %12600 = vmatprep.subr.bf16.mxu1 %v14136_v57 }
 0x9ae   : > { %12601 = vmatpush3.bf16.msra.mxu1 %v14137_v27 }
 0x9af   : > { %12602 = vmatprep.subr.bf16.mxu1 %v14138_v6 }
 0x9b2   : > { %12603 = vmatpush3.bf16.msra.mxu1 %v14139_v48 }
 0x9b3   : > { %12604 = vmatprep.subr.bf16.mxu1 %v14140_v33 }
 0x9b6   : > { %12605 = vmatpush3.bf16.msra.mxu1 %v14141_v8 }
 0x9b7   : > { %12606 = vmatprep.subr.bf16.mxu1 %v14142_v15 }
 0x9ba   : > { %12607 = vmatpush3.bf16.msra.mxu1 %v14143_v3 }
 0x9bb   : > { %12608 = vmatprep.subr.bf16.mxu1 %v14144_v18 }
 0x9be   : > { %12609 = vmatpush3.bf16.msra.mxu1 %v14145_v61 }
 0x9bf   : > { %12610 = vmatprep.subr.bf16.mxu1 %v14146_v56 }
 0x9c2   : > { %12611 = vmatpush3.bf16.msra.mxu1 %v14147_v4 }
 0x9c5   : > { %11411 = vmatmul.mubr.bf16.vlgmr.msra.gmra.mxu1 %v19852_v25 }
 0xa44   : > { %v11330_v23 = vpop.f32.mrf.mxu0 }
 0xa45   : > { %v11331_v11 = vadd.f32 %v11330_v23, %v10900_v7 }
 0xa46   : > { %v11332_v60 = vpop.f32.mrf.mxu0 }
 0xa47   : > { %v11333_v24 = vadd.f32 %v11332_v60, %v10904_v9 }
 0xa48   : > { %v11334_v32 = vpop.f32.mrf.mxu0 }
 0xa4a   : > { %v11335_v29 = vpop.f32.mrf.mxu0 }
 0xa65   : > { %v11371_v62 = vpop.f32.mrf.mxu1  ;;  %v11452_v58 = vpop.f32.mrf.mxu0 }
 0xa66   : > { %v11372_v43 = vadd.f32 %v11371_v62, %v11331_v11 }
 0xa67   : > { %v11373_v46 = vpop.f32.mrf.mxu1  ;;  %v12709_v26 = vpop.f32.mrf.mxu0 }
 0xa68   : > { %11458 = vst [vmem:[%s20955_s2] sm:$0xff] %v11372_v43  ;;  %v11374_v0 = vadd.f32 %v11373_v46, %v11333_v24 }
 0xa69   : > { %v11375_v40 = vpop.f32.mrf.mxu1  ;;  %v11455_v55 = vpop.f32.mrf.mxu0 }
 0xa6a   : > { %11459 = vst [vmem:[%s20955_s2 + $0x8] sm:$0xff] %v11374_v0 }
 0xa6b   : > { %v11376_v50 = vpop.f32.mrf.mxu1  ;;  %v12710_v42 = vpop.f32.mrf.mxu0 }
 0xa85   : > { %v12612_v47 = vpop.f32.mrf.mxu1 }
 0xa87   : > { %v12613_v53 = vpop.f32.mrf.mxu1 }
 0xa88   : > { %v12614_v52 = vadd.f32 %v12613_v53, %v12612_v47 }
 0xa89   : > { %v12615_v13 = vpop.f32.mrf.mxu1 }
 0xa8a   : > { %v11413_v35 = vadd.f32 %v12614_v52, %v10908_v5 }
 0xa8b   : > { %v12616_v25 = vpop.f32.mrf.mxu1 }
 0xa8c   : > { %v11453_v37 = vadd.f32 %v11452_v58, %v11413_v35 }
 0xa8e   : > { %11460 = vst [vmem:[%s20955_s2 + $0x10] sm:$0xff] %v11453_v37 }
 0xa8f PF: > { %p27_p9 = scmp.ge.s32.totalorder %s14760_s18, 7   ;;  %s20956_s29 = smov %s14548_s30 }
 0xa90   : > { %s20957_s30 = smov %s14552_s15  ;;  %s20958_s15 = smov %s14772_s0 }
 0xa91   : > { %s20959_s16 = smov %s14760_s18  ;;  %29 = sbr.rel (!%p27_p9) target bundleno = 15 (0xf), region = 174 }
 0xa96   :  { %11472 = vsyncpa [#allocation4], 1 }
 0xa97   :  { %11474 = vsyncpa [#allocation4 + $0x1], 1 }
 0xa98   :  { %11475 = vsyncpa [#allocation6], 1 }
 0xa99   :  { %11476 = vsyncpa [#allocation9], 1 }
 0xa9a   :  { %11477 = vsyncpa [#allocation15], 1 }
 0xa9b   :  { %11478 = vsyncpa [#allocation18], 1 }
 0xa9c   :  { %11479 = vsyncpa [#allocation21], 1 }

</bundles_post_ra>
